<compile_context>
chip_gen: v6e
topology: v6e:2x2x1
jax: 0.10.0
libtpu: 0.0.40
codegen_flags: <defaults>
</compile_context>

<pallas_src>
import functools

import numpy as np
import jax
import jax.numpy as jnp
from jax import lax
from jax.experimental import pallas as pl
from jax.experimental.pallas import tpu as pltpu


def _silu(x):
    return x * (1.0 / (1.0 + jnp.exp(-x)))


# ----------------------------------------------------------------------------
# Fused kernel: upsample branch + ASFF weights + fuse + 3x3 conv, per image.
# ----------------------------------------------------------------------------
def asff_fused_kernel(x_ref, y_ref, aw_ref, wu_ref, bu_ref,
                      w1_ref, b1_ref, w2_ref, b2_ref,
                      wd1_ref, wd2_ref, bd_ref, w3_ref, b3_ref,
                      o_ref, acc_ref, *, H, W, Hs, Ws, C0):
    f32 = jnp.float32
    HW = H * W

    # ---- upsample branch: 1x1 conv (BN scale folded) + SiLU at low res ----
    y2 = y_ref[0].reshape(Hs * Ws, -1)                          # (Hs*Ws, C1)
    z2 = jnp.dot(y2, wu_ref[...], preferred_element_type=f32) + bu_ref[...]
    z2 = _silu(z2)                                              # (Hs*Ws, C0)
    z3 = z2.reshape(Hs, Ws, C0)

    # ---- bilinear x2 (align_corners=False), separable ----
    # W interpolation: batched matmul (batch over the Hs source rows).
    aw_b = jnp.broadcast_to(aw_ref[...], (Hs, W, Ws))
    s3 = jnp.einsum('hWw,hwc->hWc', aw_b, z3,
                    preferred_element_type=f32)                 # (Hs, W, C0)
    # H interpolation: fixed 2x stencil (0.25/0.75) with clamped edges.
    s_up = jnp.concatenate([s3[:1], s3[:-1]], axis=0)           # row a-1 (clamp)
    s_dn = jnp.concatenate([s3[1:], s3[-1:]], axis=0)           # row a+1 (clamp)
    even = 0.25 * s_up + 0.75 * s3                              # output rows 2a
    odd = 0.75 * s3 + 0.25 * s_dn                               # output rows 2a+1
    inp2 = jnp.stack([even, odd], axis=1)                       # (Hs, 2, W, C0)
    in2 = inp2.reshape(HW, C0)                                  # (h, w) row-major

    # ---- ASFF attention weights (literal w.r.t. the torch module) ----
    in1 = x_ref[0].reshape(HW, C0)
    a = _silu(jnp.dot(in1, w1_ref[...], preferred_element_type=f32) + b1_ref[...])
    b = _silu(jnp.dot(in2, w2_ref[...], preferred_element_type=f32) + b2_ref[...])
    # 2-way softmax over levels via a sigmoid of the logit difference.
    ld = (jnp.dot(a, wd1_ref[...], preferred_element_type=f32)
          + jnp.dot(b, wd2_ref[...], preferred_element_type=f32)
          + bd_ref[...])                                        # (HW, 1)
    wgt0 = 1.0 / (1.0 + jnp.exp(-ld))
    wgt1 = 1.0 - wgt0
    # The torch code multiplies input2 by BOTH weights (they sum to 1).
    fused = in2 * wgt0 + in2 * wgt1                             # (HW, C0)

    # ---- 3x3 conv (BN scale folded) + SiLU: 9 accumulated matmuls over
    #      row-shifted, column-masked taps (no im2col materialization) ----
    col = lax.broadcasted_iota(jnp.int32, (HW, 1), 0) % W
    left_ok = col > 0                                            # w-1 valid
    right_ok = col < (W - 1)                                     # w+1 valid

    def tap(dy, dx):
        s = dy * W + dx                                          # flat row shift
        if s > 0:
            t = jnp.concatenate([fused[s:], jnp.zeros((s, C0), f32)], axis=0)
        elif s < 0:
            t = jnp.concatenate([jnp.zeros((-s, C0), f32), fused[:s]], axis=0)
        else:
            t = fused
        if dx == -1:
            t = jnp.where(left_ok, t, 0.0)
        elif dx == 1:
            t = jnp.where(right_ok, t, 0.0)
        return t

    for k in range(9):
        dy, dx = k // 3 - 1, k % 3 - 1
        term = jnp.dot(tap(dy, dx), w3_ref[k], preferred_element_type=f32)
        if k == 0:
            acc_ref[...] = term
        else:
            acc_ref[...] += term

    o_ref[0] = _silu(acc_ref[...] + b3_ref[...]).astype(o_ref.dtype)


# ----------------------------------------------------------------------------
# Wrapper: one pallas_call per forward, grid over the batch.
# ----------------------------------------------------------------------------
def asff_2_3_forward(x_nchw, y_nchw, params):
    N, C0, H, W = x_nchw.shape
    _, C1, Hs, Ws = y_nchw.shape
    assert H == 2 * Hs and W == 2 * Ws, "level=0 path expects a 2x upsample"

    kp = params['kernel']
    x4 = jnp.transpose(x_nchw, (0, 2, 3, 1))                    # (N, H, W, C0)
    y4 = jnp.transpose(y_nchw, (0, 2, 3, 1))                    # (N, Hs, Ws, C1)

    def full(arr):
        nd = arr.ndim
        return pl.BlockSpec(arr.shape, lambda n, _nd=nd: (0,) * _nd)

    weight_order = ('a_w', 'wu', 'bu', 'w1', 'b1', 'w2', 'b2',
                    'wd1', 'wd2', 'bd', 'w3', 'b3')
    weights = [kp[name] for name in weight_order]

    out = pl.pallas_call(
        functools.partial(asff_fused_kernel, H=H, W=W, Hs=Hs, Ws=Ws, C0=C0),
        out_shape=jax.ShapeDtypeStruct((N, H * W, C0), x_nchw.dtype),
        grid_spec=pltpu.PrefetchScalarGridSpec(
            num_scalar_prefetch=0,
            grid=(N,),
            in_specs=[pl.BlockSpec((1, H, W, C0), lambda n: (n, 0, 0, 0)),
                      pl.BlockSpec((1, Hs, Ws, C1), lambda n: (n, 0, 0, 0))]
                     + [full(wt) for wt in weights],
            out_specs=pl.BlockSpec((1, H * W, C0), lambda n: (n, 0, 0)),
            scratch_shapes=[pltpu.VMEM((H * W, C0), jnp.float32)]),
        compiler_params=pltpu.CompilerParams(
            dimension_semantics=("parallel",),
            vmem_limit_bytes=32 * 1024 * 1024),
    )(x4, y4, *weights)

    return jnp.transpose(out.reshape(N, H, W, C0), (0, 3, 1, 2))


# ----------------------------------------------------------------------------
# Parameters (BN folded to per-channel scale/bias; scales folded into weights
# for the kernel, raw copies kept for the pure-JAX reference).
# ----------------------------------------------------------------------------
def bilinear_matrix(n_in, n_out):
    """Row-stochastic interpolation matrix matching torch.nn.Upsample
    (mode='bilinear', align_corners=False)."""
    i = np.arange(n_out)
    src = (i + 0.5) * (n_in / n_out) - 0.5
    src = np.maximum(src, 0.0)
    i0 = np.floor(src).astype(np.int64)
    frac = (src - i0).astype(np.float32)
    i0 = np.minimum(i0, n_in - 1)
    i1 = np.minimum(i0 + 1, n_in - 1)
    A = np.zeros((n_out, n_in), np.float32)
    A[i, i0] += 1.0 - frac
    A[i, i1] += frac
    return A


def init_params(key, C0, C1, H, W, Hs, Ws, compress_c=8):
    ks = jax.random.split(key, 16)

    def w(k, shape, scale=0.2):
        return (jax.random.normal(k, shape) * scale).astype(jnp.float32)

    raw = {}
    # Upsample: Conv(C1, C0, 1) + BN folded
    raw['wu'] = w(ks[0], (C1, C0))
    raw['su'] = 1.0 + w(ks[1], (1, C0), 0.1)
    raw['bu'] = w(ks[2], (1, C0), 0.1)
    # weight_level_1 / weight_level_2: Conv(C0, 8, 1) + BN folded
    raw['w1'] = w(ks[3], (C0, compress_c))
    raw['s1'] = 1.0 + w(ks[4], (1, compress_c), 0.1)
    raw['b1'] = w(ks[5], (1, compress_c), 0.1)
    raw['w2'] = w(ks[6], (C0, compress_c))
    raw['s2'] = 1.0 + w(ks[7], (1, compress_c), 0.1)
    raw['b2'] = w(ks[8], (1, compress_c), 0.1)
    # weight_levels: Conv2d(16, 2, 1) with bias
    raw['wl'] = w(ks[9], (2 * compress_c, 2))
    raw['bl'] = w(ks[10], (1, 2), 0.1)
    # conv: Conv(C0, C0, 3) + BN folded, HWIO weight layout
    raw['w3'] = w(ks[11], (3, 3, C0, C0), 0.1)
    raw['s3'] = 1.0 + w(ks[12], (1, C0), 0.1)
    raw['b3'] = w(ks[13], (1, C0), 0.1)
    raw['A_H'] = jnp.asarray(bilinear_matrix(Hs, H))
    raw['A_W'] = jnp.asarray(bilinear_matrix(Ws, W))

    cc = compress_c
    kern = {
        'a_w': raw['A_W'],                                  # (W, Ws)
        'wu': raw['wu'] * raw['su'],                        # BN scale folded
        'bu': raw['bu'],
        'w1': raw['w1'] * raw['s1'],
        'b1': raw['b1'],
        'w2': raw['w2'] * raw['s2'],
        'b2': raw['b2'],
        # logit-difference weights for the sigmoid-form 2-way softmax
        'wd1': (raw['wl'][:cc, 0] - raw['wl'][:cc, 1]).reshape(cc, 1),
        'wd2': (raw['wl'][cc:, 0] - raw['wl'][cc:, 1]).reshape(cc, 1),
        'bd': raw['bl'][:, 0:1] - raw['bl'][:, 1:2],        # (1, 1)
        'w3': (raw['w3'] * raw['s3'].reshape(1, 1, 1, C0)).reshape(9, C0, C0),
        'b3': raw['b3'],
    }
    return {'raw': raw, 'kernel': kern}


# ----------------------------------------------------------------------------
# Pure-JAX reference (same math as the torch module, no Pallas).
# ----------------------------------------------------------------------------
def reference(x_nchw, y_nchw, p):
    y_nhwc = jnp.transpose(y_nchw, (0, 2, 3, 1))
    z = _silu(jnp.einsum('nhwc,cd->nhwd', y_nhwc, p['wu']) * p['su'][0] + p['bu'][0])
    up = jnp.einsum('Hh,nhwd->nHwd', p['A_H'], z)
    input2 = jnp.einsum('Ww,nHwd->nHWd', p['A_W'], up)
    input1 = jnp.transpose(x_nchw, (0, 2, 3, 1))

    a = _silu(jnp.einsum('nhwc,ce->nhwe', input1, p['w1']) * p['s1'][0] + p['b1'][0])
    b = _silu(jnp.einsum('nhwc,ce->nhwe', input2, p['w2']) * p['s2'][0] + p['b2'][0])
    logits = jnp.einsum('nhwe,ef->nhwf', jnp.concatenate([a, b], -1), p['wl']) + p['bl'][0]
    wsm = jax.nn.softmax(logits, axis=-1)
    fused = input2 * wsm[..., 0:1] + input2 * wsm[..., 1:2]

    conv = lax.conv_general_dilated(fused, p['w3'], (1, 1), 'SAME',
                                    dimension_numbers=('NHWC', 'HWIO', 'NHWC'))
    out = _silu(conv * p['s3'][0] + p['b3'][0])
    return jnp.transpose(out, (0, 3, 1, 2))


# ----------------------------------------------------------------------------
if __name__ == "__main__":
    N, C0, C1, H, W = 2, 32, 64, 16, 16
    Hs, Ws = H // 2, W // 2

    key = jax.random.PRNGKey(0)
    kx, ky, kprm = jax.random.split(key, 3)
    x = jax.random.normal(kx, (N, C0, H, W), jnp.float32)    # level-0 feature
    y = jax.random.normal(ky, (N, C1, Hs, Ws), jnp.float32)  # level-1 feature
    params = init_params(kprm, C0, C1, H, W, Hs, Ws)

    out = asff_2_3_forward(x, y, params)
    out = jax.block_until_ready(out)
    assert out.shape == (N, C0, H, W)

    ref = reference(x, y, params['raw'])
    np.testing.assert_allclose(np.asarray(out), np.asarray(ref),
                               rtol=2e-3, atol=2e-3)

    print("KERNEL_OK")
</pallas_src>

<mosaic_0001>
module attributes {stable_mosaic.version = 11 : i64} {
  func.func @asff_fused_kernel(%arg0: i32, %arg1: memref<1x16x16x32xf32, #tpu.memory_space<vmem>>, %arg2: memref<1x8x8x64xf32, #tpu.memory_space<vmem>>, %arg3: memref<16x8xf32, #tpu.memory_space<vmem>>, %arg4: memref<64x32xf32, #tpu.memory_space<vmem>>, %arg5: memref<1x32xf32, #tpu.memory_space<vmem>>, %arg6: memref<32x8xf32, #tpu.memory_space<vmem>>, %arg7: memref<1x8xf32, #tpu.memory_space<vmem>>, %arg8: memref<32x8xf32, #tpu.memory_space<vmem>>, %arg9: memref<1x8xf32, #tpu.memory_space<vmem>>, %arg10: memref<8x1xf32, #tpu.memory_space<vmem>>, %arg11: memref<8x1xf32, #tpu.memory_space<vmem>>, %arg12: memref<1x1xf32, #tpu.memory_space<vmem>>, %arg13: memref<9x32x32xf32, #tpu.memory_space<vmem>>, %arg14: memref<1x32xf32, #tpu.memory_space<vmem>>, %arg15: memref<1x256x32xf32, #tpu.memory_space<vmem>>, %arg16: memref<256x32xf32, #tpu.memory_space<vmem>>) attributes {dimension_semantics = [#tpu.dimension_semantics<parallel>], iteration_bounds = array<i64: 2>, scalar_prefetch = 0 : i64, scratch_operands = 1 : i64, tpu.core_type = #tpu.core_type<tc>, window_params = [{transform_indices = @transform_0, window_bounds = array<i64: 1, 16, 16, 32>}, {transform_indices = @transform_1, window_bounds = array<i64: 1, 8, 8, 64>}, {pipeline_mode = #tpu.pipeline_mode<synchronous>, transform_indices = @transform_2, window_bounds = array<i64: 16, 8>}, {pipeline_mode = #tpu.pipeline_mode<synchronous>, transform_indices = @transform_3, window_bounds = array<i64: 64, 32>}, {pipeline_mode = #tpu.pipeline_mode<synchronous>, transform_indices = @transform_4, window_bounds = array<i64: 1, 32>}, {pipeline_mode = #tpu.pipeline_mode<synchronous>, transform_indices = @transform_5, window_bounds = array<i64: 32, 8>}, {pipeline_mode = #tpu.pipeline_mode<synchronous>, transform_indices = @transform_6, window_bounds = array<i64: 1, 8>}, {pipeline_mode = #tpu.pipeline_mode<synchronous>, transform_indices = @transform_7, window_bounds = array<i64: 32, 8>}, {pipeline_mode = #tpu.pipeline_mode<synchronous>, transform_indices = @transform_8, window_bounds = array<i64: 1, 8>}, {pipeline_mode = #tpu.pipeline_mode<synchronous>, transform_indices = @transform_9, window_bounds = array<i64: 8, 1>}, {pipeline_mode = #tpu.pipeline_mode<synchronous>, transform_indices = @transform_10, window_bounds = array<i64: 8, 1>}, {pipeline_mode = #tpu.pipeline_mode<synchronous>, transform_indices = @transform_11, window_bounds = array<i64: 1, 1>}, {pipeline_mode = #tpu.pipeline_mode<synchronous>, transform_indices = @transform_12, window_bounds = array<i64: 9, 32, 32>}, {pipeline_mode = #tpu.pipeline_mode<synchronous>, transform_indices = @transform_13, window_bounds = array<i64: 1, 32>}, {transform_indices = @transform_14, window_bounds = array<i64: 1, 256, 32>}]} {
    %c0 = arith.constant 0 : index
    %c0_0 = arith.constant 0 : index
    %c0_1 = arith.constant 0 : index
    %c0_2 = arith.constant 0 : index
    %0 = vector.load %arg2[%c0, %c0_0, %c0_1, %c0_2] : memref<1x8x8x64xf32, #tpu.memory_space<vmem>>, vector<1x8x8x64xf32>
    %1 = vector.shape_cast %0 : vector<1x8x8x64xf32> to vector<8x8x64xf32>
    %2 = vector.shape_cast %1 : vector<8x8x64xf32> to vector<64x64xf32>
    %c0_3 = arith.constant 0 : index
    %c0_4 = arith.constant 0 : index
    %3 = vector.load %arg4[%c0_3, %c0_4] : memref<64x32xf32, #tpu.memory_space<vmem>>, vector<64x32xf32>
    %cst = arith.constant dense<0.000000e+00> : vector<64x32xf32>
    %4 = tpu.matmul %2, %3, %cst {dimension_numbers = #tpu.dot_dimension_numbers<[1], [0], [0], [1], [0, 0, 1, 1], [], []>} : vector<64x64xf32>, vector<64x32xf32>, vector<64x32xf32> -> vector<64x32xf32>
    %c0_5 = arith.constant 0 : index
    %c0_6 = arith.constant 0 : index
    %5 = vector.load %arg5[%c0_5, %c0_6] : memref<1x32xf32, #tpu.memory_space<vmem>>, vector<1x32xf32>
    %6 = vector.broadcast %5 : vector<1x32xf32> to vector<64x32xf32>
    %7 = arith.addf %4, %6 : vector<64x32xf32>
    %cst_7 = arith.constant 0.000000e+00 : f32
    %8 = vector.broadcast %cst_7 : f32 to vector<64x32xf32>
    %9 = arith.subf %8, %7 : vector<64x32xf32>
    %10 = math.exp %9 : vector<64x32xf32>
    %cst_8 = arith.constant 1.000000e+00 : f32
    %11 = vector.broadcast %cst_8 : f32 to vector<64x32xf32>
    %12 = arith.addf %11, %10 : vector<64x32xf32>
    %cst_9 = arith.constant 1.000000e+00 : f32
    %13 = vector.broadcast %cst_9 : f32 to vector<64x32xf32>
    %14 = arith.divf %13, %12 : vector<64x32xf32>
    %15 = arith.mulf %7, %14 : vector<64x32xf32>
    %16 = vector.shape_cast %15 : vector<64x32xf32> to vector<8x8x32xf32>
    %c0_10 = arith.constant 0 : index
    %c0_11 = arith.constant 0 : index
    %17 = vector.load %arg3[%c0_10, %c0_11] : memref<16x8xf32, #tpu.memory_space<vmem>>, vector<16x8xf32>
    %18 = vector.shape_cast %17 : vector<16x8xf32> to vector<1x16x8xf32>
    %19 = vector.broadcast %18 : vector<1x16x8xf32> to vector<8x16x8xf32>
    "tpu.trace_start"() <{level = 10 : i32, message = "hWw,hwc->hWc"}> : () -> ()
    %cst_12 = arith.constant dense<0.000000e+00> : vector<8x16x32xf32>
    %20 = tpu.matmul %19, %16, %cst_12 {dimension_numbers = #tpu.dot_dimension_numbers<[2], [1], [1], [2], [0, 0, 0, 1, 1, 2], [0], [0]>} : vector<8x16x8xf32>, vector<8x8x32xf32>, vector<8x16x32xf32> -> vector<8x16x32xf32>
    "tpu.trace_stop"() : () -> ()
    %21 = vector.extract_strided_slice %20 {offsets = [0, 0, 0], sizes = [1, 16, 32], strides = [1, 1, 1]} : vector<8x16x32xf32> to vector<1x16x32xf32>
    %22 = vector.extract_strided_slice %20 {offsets = [0, 0, 0], sizes = [7, 16, 32], strides = [1, 1, 1]} : vector<8x16x32xf32> to vector<7x16x32xf32>
    %23 = tpu.concatenate %21, %22 in 0 : vector<1x16x32xf32>, vector<7x16x32xf32> -> vector<8x16x32xf32>
    %24 = vector.extract_strided_slice %20 {offsets = [1, 0, 0], sizes = [7, 16, 32], strides = [1, 1, 1]} : vector<8x16x32xf32> to vector<7x16x32xf32>
    %25 = vector.extract_strided_slice %20 {offsets = [7, 0, 0], sizes = [1, 16, 32], strides = [1, 1, 1]} : vector<8x16x32xf32> to vector<1x16x32xf32>
    %26 = tpu.concatenate %24, %25 in 0 : vector<7x16x32xf32>, vector<1x16x32xf32> -> vector<8x16x32xf32>
    %cst_13 = arith.constant 2.500000e-01 : f32
    %27 = vector.broadcast %cst_13 : f32 to vector<8x16x32xf32>
    %28 = arith.mulf %27, %23 : vector<8x16x32xf32>
    %cst_14 = arith.constant 7.500000e-01 : f32
    %29 = vector.broadcast %cst_14 : f32 to vector<8x16x32xf32>
    %30 = arith.mulf %29, %20 : vector<8x16x32xf32>
    %31 = arith.addf %28, %30 : vector<8x16x32xf32>
    %cst_15 = arith.constant 7.500000e-01 : f32
    %32 = vector.broadcast %cst_15 : f32 to vector<8x16x32xf32>
    %33 = arith.mulf %32, %20 : vector<8x16x32xf32>
    %cst_16 = arith.constant 2.500000e-01 : f32
    %34 = vector.broadcast %cst_16 : f32 to vector<8x16x32xf32>
    %35 = arith.mulf %34, %26 : vector<8x16x32xf32>
    %36 = arith.addf %33, %35 : vector<8x16x32xf32>
    %37 = vector.shape_cast %31 : vector<8x16x32xf32> to vector<8x1x16x32xf32>
    %38 = vector.shape_cast %36 : vector<8x16x32xf32> to vector<8x1x16x32xf32>
    %39 = tpu.concatenate %37, %38 in 1 : vector<8x1x16x32xf32>, vector<8x1x16x32xf32> -> vector<8x2x16x32xf32>
    %40 = vector.shape_cast %39 : vector<8x2x16x32xf32> to vector<256x32xf32>
    %c0_17 = arith.constant 0 : index
    %c0_18 = arith.constant 0 : index
    %c0_19 = arith.constant 0 : index
    %c0_20 = arith.constant 0 : index
    %41 = vector.load %arg1[%c0_17, %c0_18, %c0_19, %c0_20] : memref<1x16x16x32xf32, #tpu.memory_space<vmem>>, vector<1x16x16x32xf32>
    %42 = vector.shape_cast %41 : vector<1x16x16x32xf32> to vector<16x16x32xf32>
    %43 = vector.shape_cast %42 : vector<16x16x32xf32> to vector<256x32xf32>
    %c0_21 = arith.constant 0 : index
    %c0_22 = arith.constant 0 : index
    %44 = vector.load %arg6[%c0_21, %c0_22] : memref<32x8xf32, #tpu.memory_space<vmem>>, vector<32x8xf32>
    %cst_23 = arith.constant dense<0.000000e+00> : vector<256x8xf32>
    %45 = tpu.matmul %43, %44, %cst_23 {dimension_numbers = #tpu.dot_dimension_numbers<[1], [0], [0], [1], [0, 0, 1, 1], [], []>} : vector<256x32xf32>, vector<32x8xf32>, vector<256x8xf32> -> vector<256x8xf32>
    %c0_24 = arith.constant 0 : index
    %c0_25 = arith.constant 0 : index
    %46 = vector.load %arg7[%c0_24, %c0_25] : memref<1x8xf32, #tpu.memory_space<vmem>>, vector<1x8xf32>
    %47 = vector.broadcast %46 : vector<1x8xf32> to vector<256x8xf32>
    %48 = arith.addf %45, %47 : vector<256x8xf32>
    %cst_26 = arith.constant 0.000000e+00 : f32
    %49 = vector.broadcast %cst_26 : f32 to vector<256x8xf32>
    %50 = arith.subf %49, %48 : vector<256x8xf32>
    %51 = math.exp %50 : vector<256x8xf32>
    %cst_27 = arith.constant 1.000000e+00 : f32
    %52 = vector.broadcast %cst_27 : f32 to vector<256x8xf32>
    %53 = arith.addf %52, %51 : vector<256x8xf32>
    %cst_28 = arith.constant 1.000000e+00 : f32
    %54 = vector.broadcast %cst_28 : f32 to vector<256x8xf32>
    %55 = arith.divf %54, %53 : vector<256x8xf32>
    %56 = arith.mulf %48, %55 : vector<256x8xf32>
    %c0_29 = arith.constant 0 : index
    %c0_30 = arith.constant 0 : index
    %57 = vector.load %arg8[%c0_29, %c0_30] : memref<32x8xf32, #tpu.memory_space<vmem>>, vector<32x8xf32>
    %cst_31 = arith.constant dense<0.000000e+00> : vector<256x8xf32>
    %58 = tpu.matmul %40, %57, %cst_31 {dimension_numbers = #tpu.dot_dimension_numbers<[1], [0], [0], [1], [0, 0, 1, 1], [], []>} : vector<256x32xf32>, vector<32x8xf32>, vector<256x8xf32> -> vector<256x8xf32>
    %c0_32 = arith.constant 0 : index
    %c0_33 = arith.constant 0 : index
    %59 = vector.load %arg9[%c0_32, %c0_33] : memref<1x8xf32, #tpu.memory_space<vmem>>, vector<1x8xf32>
    %60 = vector.broadcast %59 : vector<1x8xf32> to vector<256x8xf32>
    %61 = arith.addf %58, %60 : vector<256x8xf32>
    %cst_34 = arith.constant 0.000000e+00 : f32
    %62 = vector.broadcast %cst_34 : f32 to vector<256x8xf32>
    %63 = arith.subf %62, %61 : vector<256x8xf32>
    %64 = math.exp %63 : vector<256x8xf32>
    %cst_35 = arith.constant 1.000000e+00 : f32
    %65 = vector.broadcast %cst_35 : f32 to vector<256x8xf32>
    %66 = arith.addf %65, %64 : vector<256x8xf32>
    %cst_36 = arith.constant 1.000000e+00 : f32
    %67 = vector.broadcast %cst_36 : f32 to vector<256x8xf32>
    %68 = arith.divf %67, %66 : vector<256x8xf32>
    %69 = arith.mulf %61, %68 : vector<256x8xf32>
    %c0_37 = arith.constant 0 : index
    %c0_38 = arith.constant 0 : index
    %70 = vector.load %arg10[%c0_37, %c0_38] : memref<8x1xf32, #tpu.memory_space<vmem>>, vector<8x1xf32>
    %cst_39 = arith.constant dense<0.000000e+00> : vector<256x1xf32>
    %71 = tpu.matmul %56, %70, %cst_39 {dimension_numbers = #tpu.dot_dimension_numbers<[1], [0], [0], [1], [0, 0, 1, 1], [], []>} : vector<256x8xf32>, vector<8x1xf32>, vector<256x1xf32> -> vector<256x1xf32>
    %c0_40 = arith.constant 0 : index
    %c0_41 = arith.constant 0 : index
    %72 = vector.load %arg11[%c0_40, %c0_41] : memref<8x1xf32, #tpu.memory_space<vmem>>, vector<8x1xf32>
    %cst_42 = arith.constant dense<0.000000e+00> : vector<256x1xf32>
    %73 = tpu.matmul %69, %72, %cst_42 {dimension_numbers = #tpu.dot_dimension_numbers<[1], [0], [0], [1], [0, 0, 1, 1], [], []>} : vector<256x8xf32>, vector<8x1xf32>, vector<256x1xf32> -> vector<256x1xf32>
    %74 = arith.addf %71, %73 : vector<256x1xf32>
    %c0_43 = arith.constant 0 : index
    %c0_44 = arith.constant 0 : index
    %75 = vector.load %arg12[%c0_43, %c0_44] : memref<1x1xf32, #tpu.memory_space<vmem>>, vector<1x1xf32>
    %76 = vector.broadcast %75 : vector<1x1xf32> to vector<256x1xf32>
    %77 = arith.addf %74, %76 : vector<256x1xf32>
    %cst_45 = arith.constant 0.000000e+00 : f32
    %78 = vector.broadcast %cst_45 : f32 to vector<256x1xf32>
    %79 = arith.subf %78, %77 : vector<256x1xf32>
    %80 = math.exp %79 : vector<256x1xf32>
    %cst_46 = arith.constant 1.000000e+00 : f32
    %81 = vector.broadcast %cst_46 : f32 to vector<256x1xf32>
    %82 = arith.addf %81, %80 : vector<256x1xf32>
    %cst_47 = arith.constant 1.000000e+00 : f32
    %83 = vector.broadcast %cst_47 : f32 to vector<256x1xf32>
    %84 = arith.divf %83, %82 : vector<256x1xf32>
    %cst_48 = arith.constant 1.000000e+00 : f32
    %85 = vector.broadcast %cst_48 : f32 to vector<256x1xf32>
    %86 = arith.subf %85, %84 : vector<256x1xf32>
    %87 = vector.broadcast %84 : vector<256x1xf32> to vector<256x32xf32>
    %88 = arith.mulf %40, %87 : vector<256x32xf32>
    %89 = vector.broadcast %86 : vector<256x1xf32> to vector<256x32xf32>
    %90 = arith.mulf %40, %89 : vector<256x32xf32>
    %91 = arith.addf %88, %90 : vector<256x32xf32>
    %92 = tpu.iota {dimensions = array<i32: 0>} : vector<256x1xi32>
    %c16_i32 = arith.constant 16 : i32
    %c0_i32 = arith.constant 0 : i32
    %93 = arith.cmpi eq, %c16_i32, %c0_i32 : i32
    %c1_i32 = arith.constant 1 : i32
    %94 = arith.select %93, %c1_i32, %c16_i32 : i32
    %95 = vector.broadcast %94 : i32 to vector<256x1xi32>
    %96 = arith.remsi %92, %95 : vector<256x1xi32>
    %c0_i32_49 = arith.constant 0 : i32
    %97 = vector.broadcast %c0_i32_49 : i32 to vector<256x1xi32>
    %98 = arith.cmpi ne, %96, %97 : vector<256x1xi32>
    %c0_i32_50 = arith.constant 0 : i32
    %99 = vector.broadcast %c0_i32_50 : i32 to vector<256x1xi32>
    %100 = arith.cmpi slt, %96, %99 : vector<256x1xi32>
    %c0_i32_51 = arith.constant 0 : i32
    %101 = arith.cmpi slt, %94, %c0_i32_51 : i32
    %102 = vector.broadcast %101 : i1 to vector<256x1xi1>
    %103 = vector.broadcast %102 : vector<256x1xi1> to vector<256x1xi1>
    %104 = arith.xori %100, %103 : vector<256x1xi1>
    %105 = arith.andi %104, %98 : vector<256x1xi1>
    %106 = vector.broadcast %94 : i32 to vector<256x1xi32>
    %107 = arith.addi %96, %106 : vector<256x1xi32>
    %108 = arith.select %105, %107, %96 : vector<256x1xi1>, vector<256x1xi32>
    %c0_i32_52 = arith.constant 0 : i32
    %109 = vector.broadcast %c0_i32_52 : i32 to vector<256x1xi32>
    %110 = arith.cmpi sgt, %108, %109 : vector<256x1xi32>
    %c15_i32 = arith.constant 15 : i32
    %111 = vector.broadcast %c15_i32 : i32 to vector<256x1xi32>
    %112 = arith.cmpi slt, %108, %111 : vector<256x1xi32>
    %cst_53 = arith.constant 0.000000e+00 : f32
    %113 = vector.broadcast %cst_53 : f32 to vector<17x32xf32>
    %114 = vector.extract_strided_slice %91 {offsets = [0, 0], sizes = [239, 32], strides = [1, 1]} : vector<256x32xf32> to vector<239x32xf32>
    %115 = tpu.concatenate %113, %114 in 0 : vector<17x32xf32>, vector<239x32xf32> -> vector<256x32xf32>
    %cst_54 = arith.constant 0.000000e+00 : f32
    %116 = vector.shape_cast %110 : vector<256x1xi1> to vector<256x1xi1>
    %117 = vector.broadcast %116 : vector<256x1xi1> to vector<256x32xi1>
    %118 = vector.broadcast %cst_54 : f32 to vector<256x32xf32>
    %119 = arith.select %117, %115, %118 : vector<256x32xi1>, vector<256x32xf32>
    %c0_55 = arith.constant 0 : index
    %c0_56 = arith.constant 0 : index
    %c0_57 = arith.constant 0 : index
    %120 = vector.load %arg13[%c0_55, %c0_56, %c0_57] : memref<9x32x32xf32, #tpu.memory_space<vmem>>, vector<1x32x32xf32>
    %121 = vector.shape_cast %120 : vector<1x32x32xf32> to vector<32x32xf32>
    %cst_58 = arith.constant dense<0.000000e+00> : vector<256x32xf32>
    %122 = tpu.matmul %119, %121, %cst_58 {dimension_numbers = #tpu.dot_dimension_numbers<[1], [0], [0], [1], [0, 0, 1, 1], [], []>} : vector<256x32xf32>, vector<32x32xf32>, vector<256x32xf32> -> vector<256x32xf32>
    %c0_59 = arith.constant 0 : index
    %c0_60 = arith.constant 0 : index
    %123 = vector.load %arg16[%c0_59, %c0_60] : memref<256x32xf32, #tpu.memory_space<vmem>>, vector<256x32xf32>
    tpu.vector_store %arg16[%c0_59, %c0_60], %122 {strides = array<i32>} : memref<256x32xf32, #tpu.memory_space<vmem>>, vector<256x32xf32>,
    %cst_61 = arith.constant 0.000000e+00 : f32
    %124 = vector.broadcast %cst_61 : f32 to vector<16x32xf32>
    %125 = vector.extract_strided_slice %91 {offsets = [0, 0], sizes = [240, 32], strides = [1, 1]} : vector<256x32xf32> to vector<240x32xf32>
    %126 = tpu.concatenate %124, %125 in 0 : vector<16x32xf32>, vector<240x32xf32> -> vector<256x32xf32>
    %c1 = arith.constant 1 : index
    %c0_62 = arith.constant 0 : index
    %c0_63 = arith.constant 0 : index
    %127 = vector.load %arg13[%c1, %c0_62, %c0_63] : memref<9x32x32xf32, #tpu.memory_space<vmem>>, vector<1x32x32xf32>
    %128 = vector.shape_cast %127 : vector<1x32x32xf32> to vector<32x32xf32>
    %cst_64 = arith.constant dense<0.000000e+00> : vector<256x32xf32>
    %129 = tpu.matmul %126, %128, %cst_64 {dimension_numbers = #tpu.dot_dimension_numbers<[1], [0], [0], [1], [0, 0, 1, 1], [], []>} : vector<256x32xf32>, vector<32x32xf32>, vector<256x32xf32> -> vector<256x32xf32>
    %c0_65 = arith.constant 0 : index
    %c0_66 = arith.constant 0 : index
    %130 = vector.load %arg16[%c0_65, %c0_66] : memref<256x32xf32, #tpu.memory_space<vmem>>, vector<256x32xf32>
    %131 = arith.addf %130, %129 : vector<256x32xf32>
    %c0_67 = arith.constant 0 : index
    %c0_68 = arith.constant 0 : index
    %132 = vector.load %arg16[%c0_67, %c0_68] : memref<256x32xf32, #tpu.memory_space<vmem>>, vector<256x32xf32>
    tpu.vector_store %arg16[%c0_67, %c0_68], %131 {strides = array<i32>} : memref<256x32xf32, #tpu.memory_space<vmem>>, vector<256x32xf32>,
    %cst_69 = arith.constant 0.000000e+00 : f32
    %133 = vector.broadcast %cst_69 : f32 to vector<15x32xf32>
    %134 = vector.extract_strided_slice %91 {offsets = [0, 0], sizes = [241, 32], strides = [1, 1]} : vector<256x32xf32> to vector<241x32xf32>
    %135 = tpu.concatenate %133, %134 in 0 : vector<15x32xf32>, vector<241x32xf32> -> vector<256x32xf32>
    %cst_70 = arith.constant 0.000000e+00 : f32
    %136 = vector.shape_cast %112 : vector<256x1xi1> to vector<256x1xi1>
    %137 = vector.broadcast %136 : vector<256x1xi1> to vector<256x32xi1>
    %138 = vector.broadcast %cst_70 : f32 to vector<256x32xf32>
    %139 = arith.select %137, %135, %138 : vector<256x32xi1>, vector<256x32xf32>
    %c2 = arith.constant 2 : index
    %c0_71 = arith.constant 0 : index
    %c0_72 = arith.constant 0 : index
    %140 = vector.load %arg13[%c2, %c0_71, %c0_72] : memref<9x32x32xf32, #tpu.memory_space<vmem>>, vector<1x32x32xf32>
    %141 = vector.shape_cast %140 : vector<1x32x32xf32> to vector<32x32xf32>
    %cst_73 = arith.constant dense<0.000000e+00> : vector<256x32xf32>
    %142 = tpu.matmul %139, %141, %cst_73 {dimension_numbers = #tpu.dot_dimension_numbers<[1], [0], [0], [1], [0, 0, 1, 1], [], []>} : vector<256x32xf32>, vector<32x32xf32>, vector<256x32xf32> -> vector<256x32xf32>
    %c0_74 = arith.constant 0 : index
    %c0_75 = arith.constant 0 : index
    %143 = vector.load %arg16[%c0_74, %c0_75] : memref<256x32xf32, #tpu.memory_space<vmem>>, vector<256x32xf32>
    %144 = arith.addf %143, %142 : vector<256x32xf32>
    %c0_76 = arith.constant 0 : index
    %c0_77 = arith.constant 0 : index
    %145 = vector.load %arg16[%c0_76, %c0_77] : memref<256x32xf32, #tpu.memory_space<vmem>>, vector<256x32xf32>
    tpu.vector_store %arg16[%c0_76, %c0_77], %144 {strides = array<i32>} : memref<256x32xf32, #tpu.memory_space<vmem>>, vector<256x32xf32>,
    %cst_78 = arith.constant 0.000000e+00 : f32
    %146 = vector.broadcast %cst_78 : f32 to vector<1x32xf32>
    %147 = vector.extract_strided_slice %91 {offsets = [0, 0], sizes = [255, 32], strides = [1, 1]} : vector<256x32xf32> to vector<255x32xf32>
    %148 = tpu.concatenate %146, %147 in 0 : vector<1x32xf32>, vector<255x32xf32> -> vector<256x32xf32>
    %cst_79 = arith.constant 0.000000e+00 : f32
    %149 = vector.shape_cast %110 : vector<256x1xi1> to vector<256x1xi1>
    %150 = vector.broadcast %149 : vector<256x1xi1> to vector<256x32xi1>
    %151 = vector.broadcast %cst_79 : f32 to vector<256x32xf32>
    %152 = arith.select %150, %148, %151 : vector<256x32xi1>, vector<256x32xf32>
    %c3 = arith.constant 3 : index
    %c0_80 = arith.constant 0 : index
    %c0_81 = arith.constant 0 : index
    %153 = vector.load %arg13[%c3, %c0_80, %c0_81] : memref<9x32x32xf32, #tpu.memory_space<vmem>>, vector<1x32x32xf32>
    %154 = vector.shape_cast %153 : vector<1x32x32xf32> to vector<32x32xf32>
    %cst_82 = arith.constant dense<0.000000e+00> : vector<256x32xf32>
    %155 = tpu.matmul %152, %154, %cst_82 {dimension_numbers = #tpu.dot_dimension_numbers<[1], [0], [0], [1], [0, 0, 1, 1], [], []>} : vector<256x32xf32>, vector<32x32xf32>, vector<256x32xf32> -> vector<256x32xf32>
    %c0_83 = arith.constant 0 : index
    %c0_84 = arith.constant 0 : index
    %156 = vector.load %arg16[%c0_83, %c0_84] : memref<256x32xf32, #tpu.memory_space<vmem>>, vector<256x32xf32>
    %157 = arith.addf %156, %155 : vector<256x32xf32>
    %c0_85 = arith.constant 0 : index
    %c0_86 = arith.constant 0 : index
    %158 = vector.load %arg16[%c0_85, %c0_86] : memref<256x32xf32, #tpu.memory_space<vmem>>, vector<256x32xf32>
    tpu.vector_store %arg16[%c0_85, %c0_86], %157 {strides = array<i32>} : memref<256x32xf32, #tpu.memory_space<vmem>>, vector<256x32xf32>,
    %c4 = arith.constant 4 : index
    %c0_87 = arith.constant 0 : index
    %c0_88 = arith.constant 0 : index
    %159 = vector.load %arg13[%c4, %c0_87, %c0_88] : memref<9x32x32xf32, #tpu.memory_space<vmem>>, vector<1x32x32xf32>
    %160 = vector.shape_cast %159 : vector<1x32x32xf32> to vector<32x32xf32>
    %cst_89 = arith.constant dense<0.000000e+00> : vector<256x32xf32>
    %161 = tpu.matmul %91, %160, %cst_89 {dimension_numbers = #tpu.dot_dimension_numbers<[1], [0], [0], [1], [0, 0, 1, 1], [], []>} : vector<256x32xf32>, vector<32x32xf32>, vector<256x32xf32> -> vector<256x32xf32>
    %c0_90 = arith.constant 0 : index
    %c0_91 = arith.constant 0 : index
    %162 = vector.load %arg16[%c0_90, %c0_91] : memref<256x32xf32, #tpu.memory_space<vmem>>, vector<256x32xf32>
    %163 = arith.addf %162, %161 : vector<256x32xf32>
    %c0_92 = arith.constant 0 : index
    %c0_93 = arith.constant 0 : index
    %164 = vector.load %arg16[%c0_92, %c0_93] : memref<256x32xf32, #tpu.memory_space<vmem>>, vector<256x32xf32>
    tpu.vector_store %arg16[%c0_92, %c0_93], %163 {strides = array<i32>} : memref<256x32xf32, #tpu.memory_space<vmem>>, vector<256x32xf32>,
    %165 = vector.extract_strided_slice %91 {offsets = [1, 0], sizes = [255, 32], strides = [1, 1]} : vector<256x32xf32> to vector<255x32xf32>
    %cst_94 = arith.constant 0.000000e+00 : f32
    %166 = vector.broadcast %cst_94 : f32 to vector<1x32xf32>
    %167 = tpu.concatenate %165, %166 in 0 : vector<255x32xf32>, vector<1x32xf32> -> vector<256x32xf32>
    %cst_95 = arith.constant 0.000000e+00 : f32
    %168 = vector.shape_cast %112 : vector<256x1xi1> to vector<256x1xi1>
    %169 = vector.broadcast %168 : vector<256x1xi1> to vector<256x32xi1>
    %170 = vector.broadcast %cst_95 : f32 to vector<256x32xf32>
    %171 = arith.select %169, %167, %170 : vector<256x32xi1>, vector<256x32xf32>
    %c5 = arith.constant 5 : index
    %c0_96 = arith.constant 0 : index
    %c0_97 = arith.constant 0 : index
    %172 = vector.load %arg13[%c5, %c0_96, %c0_97] : memref<9x32x32xf32, #tpu.memory_space<vmem>>, vector<1x32x32xf32>
    %173 = vector.shape_cast %172 : vector<1x32x32xf32> to vector<32x32xf32>
    %cst_98 = arith.constant dense<0.000000e+00> : vector<256x32xf32>
    %174 = tpu.matmul %171, %173, %cst_98 {dimension_numbers = #tpu.dot_dimension_numbers<[1], [0], [0], [1], [0, 0, 1, 1], [], []>} : vector<256x32xf32>, vector<32x32xf32>, vector<256x32xf32> -> vector<256x32xf32>
    %c0_99 = arith.constant 0 : index
    %c0_100 = arith.constant 0 : index
    %175 = vector.load %arg16[%c0_99, %c0_100] : memref<256x32xf32, #tpu.memory_space<vmem>>, vector<256x32xf32>
    %176 = arith.addf %175, %174 : vector<256x32xf32>
    %c0_101 = arith.constant 0 : index
    %c0_102 = arith.constant 0 : index
    %177 = vector.load %arg16[%c0_101, %c0_102] : memref<256x32xf32, #tpu.memory_space<vmem>>, vector<256x32xf32>
    tpu.vector_store %arg16[%c0_101, %c0_102], %176 {strides = array<i32>} : memref<256x32xf32, #tpu.memory_space<vmem>>, vector<256x32xf32>,
    %178 = vector.extract_strided_slice %91 {offsets = [15, 0], sizes = [241, 32], strides = [1, 1]} : vector<256x32xf32> to vector<241x32xf32>
    %cst_103 = arith.constant 0.000000e+00 : f32
    %179 = vector.broadcast %cst_103 : f32 to vector<15x32xf32>
    %180 = tpu.concatenate %178, %179 in 0 : vector<241x32xf32>, vector<15x32xf32> -> vector<256x32xf32>
    %cst_104 = arith.constant 0.000000e+00 : f32
    %181 = vector.shape_cast %110 : vector<256x1xi1> to vector<256x1xi1>
    %182 = vector.broadcast %181 : vector<256x1xi1> to vector<256x32xi1>
    %183 = vector.broadcast %cst_104 : f32 to vector<256x32xf32>
    %184 = arith.select %182, %180, %183 : vector<256x32xi1>, vector<256x32xf32>
    %c6 = arith.constant 6 : index
    %c0_105 = arith.constant 0 : index
    %c0_106 = arith.constant 0 : index
    %185 = vector.load %arg13[%c6, %c0_105, %c0_106] : memref<9x32x32xf32, #tpu.memory_space<vmem>>, vector<1x32x32xf32>
    %186 = vector.shape_cast %185 : vector<1x32x32xf32> to vector<32x32xf32>
    %cst_107 = arith.constant dense<0.000000e+00> : vector<256x32xf32>
    %187 = tpu.matmul %184, %186, %cst_107 {dimension_numbers = #tpu.dot_dimension_numbers<[1], [0], [0], [1], [0, 0, 1, 1], [], []>} : vector<256x32xf32>, vector<32x32xf32>, vector<256x32xf32> -> vector<256x32xf32>
    %c0_108 = arith.constant 0 : index
    %c0_109 = arith.constant 0 : index
    %188 = vector.load %arg16[%c0_108, %c0_109] : memref<256x32xf32, #tpu.memory_space<vmem>>, vector<256x32xf32>
    %189 = arith.addf %188, %187 : vector<256x32xf32>
    %c0_110 = arith.constant 0 : index
    %c0_111 = arith.constant 0 : index
    %190 = vector.load %arg16[%c0_110, %c0_111] : memref<256x32xf32, #tpu.memory_space<vmem>>, vector<256x32xf32>
    tpu.vector_store %arg16[%c0_110, %c0_111], %189 {strides = array<i32>} : memref<256x32xf32, #tpu.memory_space<vmem>>, vector<256x32xf32>,
    %191 = vector.extract_strided_slice %91 {offsets = [16, 0], sizes = [240, 32], strides = [1, 1]} : vector<256x32xf32> to vector<240x32xf32>
    %cst_112 = arith.constant 0.000000e+00 : f32
    %192 = vector.broadcast %cst_112 : f32 to vector<16x32xf32>
    %193 = tpu.concatenate %191, %192 in 0 : vector<240x32xf32>, vector<16x32xf32> -> vector<256x32xf32>
    %c7 = arith.constant 7 : index
    %c0_113 = arith.constant 0 : index
    %c0_114 = arith.constant 0 : index
    %194 = vector.load %arg13[%c7, %c0_113, %c0_114] : memref<9x32x32xf32, #tpu.memory_space<vmem>>, vector<1x32x32xf32>
    %195 = vector.shape_cast %194 : vector<1x32x32xf32> to vector<32x32xf32>
    %cst_115 = arith.constant dense<0.000000e+00> : vector<256x32xf32>
    %196 = tpu.matmul %193, %195, %cst_115 {dimension_numbers = #tpu.dot_dimension_numbers<[1], [0], [0], [1], [0, 0, 1, 1], [], []>} : vector<256x32xf32>, vector<32x32xf32>, vector<256x32xf32> -> vector<256x32xf32>
    %c0_116 = arith.constant 0 : index
    %c0_117 = arith.constant 0 : index
    %197 = vector.load %arg16[%c0_116, %c0_117] : memref<256x32xf32, #tpu.memory_space<vmem>>, vector<256x32xf32>
    %198 = arith.addf %197, %196 : vector<256x32xf32>
    %c0_118 = arith.constant 0 : index
    %c0_119 = arith.constant 0 : index
    %199 = vector.load %arg16[%c0_118, %c0_119] : memref<256x32xf32, #tpu.memory_space<vmem>>, vector<256x32xf32>
    tpu.vector_store %arg16[%c0_118, %c0_119], %198 {strides = array<i32>} : memref<256x32xf32, #tpu.memory_space<vmem>>, vector<256x32xf32>,
    %200 = vector.extract_strided_slice %91 {offsets = [17, 0], sizes = [239, 32], strides = [1, 1]} : vector<256x32xf32> to vector<239x32xf32>
    %cst_120 = arith.constant 0.000000e+00 : f32
    %201 = vector.broadcast %cst_120 : f32 to vector<17x32xf32>
    %202 = tpu.concatenate %200, %201 in 0 : vector<239x32xf32>, vector<17x32xf32> -> vector<256x32xf32>
    %cst_121 = arith.constant 0.000000e+00 : f32
    %203 = vector.shape_cast %112 : vector<256x1xi1> to vector<256x1xi1>
    %204 = vector.broadcast %203 : vector<256x1xi1> to vector<256x32xi1>
    %205 = vector.broadcast %cst_121 : f32 to vector<256x32xf32>
    %206 = arith.select %204, %202, %205 : vector<256x32xi1>, vector<256x32xf32>
    %c8 = arith.constant 8 : index
    %c0_122 = arith.constant 0 : index
    %c0_123 = arith.constant 0 : index
    %207 = vector.load %arg13[%c8, %c0_122, %c0_123] : memref<9x32x32xf32, #tpu.memory_space<vmem>>, vector<1x32x32xf32>
    %208 = vector.shape_cast %207 : vector<1x32x32xf32> to vector<32x32xf32>
    %cst_124 = arith.constant dense<0.000000e+00> : vector<256x32xf32>
    %209 = tpu.matmul %206, %208, %cst_124 {dimension_numbers = #tpu.dot_dimension_numbers<[1], [0], [0], [1], [0, 0, 1, 1], [], []>} : vector<256x32xf32>, vector<32x32xf32>, vector<256x32xf32> -> vector<256x32xf32>
    %c0_125 = arith.constant 0 : index
    %c0_126 = arith.constant 0 : index
    %210 = vector.load %arg16[%c0_125, %c0_126] : memref<256x32xf32, #tpu.memory_space<vmem>>, vector<256x32xf32>
    %211 = arith.addf %210, %209 : vector<256x32xf32>
    %c0_127 = arith.constant 0 : index
    %c0_128 = arith.constant 0 : index
    %212 = vector.load %arg16[%c0_127, %c0_128] : memref<256x32xf32, #tpu.memory_space<vmem>>, vector<256x32xf32>
    tpu.vector_store %arg16[%c0_127, %c0_128], %211 {strides = array<i32>} : memref<256x32xf32, #tpu.memory_space<vmem>>, vector<256x32xf32>,
    %c0_129 = arith.constant 0 : index
    %c0_130 = arith.constant 0 : index
    %213 = vector.load %arg16[%c0_129, %c0_130] : memref<256x32xf32, #tpu.memory_space<vmem>>, vector<256x32xf32>
    %c0_131 = arith.constant 0 : index
    %c0_132 = arith.constant 0 : index
    %214 = vector.load %arg14[%c0_131, %c0_132] : memref<1x32xf32, #tpu.memory_space<vmem>>, vector<1x32xf32>
    %215 = vector.broadcast %214 : vector<1x32xf32> to vector<256x32xf32>
    %216 = arith.addf %213, %215 : vector<256x32xf32>
    %cst_133 = arith.constant 0.000000e+00 : f32
    %217 = vector.broadcast %cst_133 : f32 to vector<256x32xf32>
    %218 = arith.subf %217, %216 : vector<256x32xf32>
    %219 = math.exp %218 : vector<256x32xf32>
    %cst_134 = arith.constant 1.000000e+00 : f32
    %220 = vector.broadcast %cst_134 : f32 to vector<256x32xf32>
    %221 = arith.addf %220, %219 : vector<256x32xf32>
    %cst_135 = arith.constant 1.000000e+00 : f32
    %222 = vector.broadcast %cst_135 : f32 to vector<256x32xf32>
    %223 = arith.divf %222, %221 : vector<256x32xf32>
    %224 = arith.mulf %216, %223 : vector<256x32xf32>
    %c0_136 = arith.constant 0 : index
    %c0_137 = arith.constant 0 : index
    %c0_138 = arith.constant 0 : index
    %225 = vector.load %arg15[%c0_136, %c0_137, %c0_138] : memref<1x256x32xf32, #tpu.memory_space<vmem>>, vector<1x256x32xf32>
    %226 = vector.shape_cast %225 : vector<1x256x32xf32> to vector<256x32xf32>
    %227 = vector.shape_cast %224 : vector<256x32xf32> to vector<1x256x32xf32>
    tpu.vector_store %arg15[%c0_136, %c0_137, %c0_138], %227 {strides = array<i32>} : memref<1x256x32xf32, #tpu.memory_space<vmem>>, vector<1x256x32xf32>,
    return
  }
  func.func @transform_0(%arg0: i32) -> (i32, i32, i32, i32) {
    %c0_i32 = arith.constant 0 : i32
    %c0_i32_0 = arith.constant 0 : i32
    %c0_i32_1 = arith.constant 0 : i32
    %c0_i32_2 = arith.constant 0 : i32
    return %arg0, %c0_i32, %c0_i32_0, %c0_i32_1 : i32, i32, i32, i32
  }
  func.func @transform_1(%arg0: i32) -> (i32, i32, i32, i32) {
    %c0_i32 = arith.constant 0 : i32
    %c0_i32_0 = arith.constant 0 : i32
    %c0_i32_1 = arith.constant 0 : i32
    %c0_i32_2 = arith.constant 0 : i32
    return %arg0, %c0_i32, %c0_i32_0, %c0_i32_1 : i32, i32, i32, i32
  }
  func.func @transform_2(%arg0: i32) -> (i32, i32) {
    %c0_i32 = arith.constant 0 : i32
    %c0_i32_0 = arith.constant 0 : i32
    %c0_i32_1 = arith.constant 0 : i32
    return %c0_i32, %c0_i32_0 : i32, i32
  }
  func.func @transform_3(%arg0: i32) -> (i32, i32) {
    %c0_i32 = arith.constant 0 : i32
    %c0_i32_0 = arith.constant 0 : i32
    %c0_i32_1 = arith.constant 0 : i32
    return %c0_i32, %c0_i32_0 : i32, i32
  }
  func.func @transform_4(%arg0: i32) -> (i32, i32) {
    %c0_i32 = arith.constant 0 : i32
    %c0_i32_0 = arith.constant 0 : i32
    %c0_i32_1 = arith.constant 0 : i32
    return %c0_i32, %c0_i32_0 : i32, i32
  }
  func.func @transform_5(%arg0: i32) -> (i32, i32) {
    %c0_i32 = arith.constant 0 : i32
    %c0_i32_0 = arith.constant 0 : i32
    %c0_i32_1 = arith.constant 0 : i32
    return %c0_i32, %c0_i32_0 : i32, i32
  }
  func.func @transform_6(%arg0: i32) -> (i32, i32) {
    %c0_i32 = arith.constant 0 : i32
    %c0_i32_0 = arith.constant 0 : i32
    %c0_i32_1 = arith.constant 0 : i32
    return %c0_i32, %c0_i32_0 : i32, i32
  }
  func.func @transform_7(%arg0: i32) -> (i32, i32) {
    %c0_i32 = arith.constant 0 : i32
    %c0_i32_0 = arith.constant 0 : i32
    %c0_i32_1 = arith.constant 0 : i32
    return %c0_i32, %c0_i32_0 : i32, i32
  }
  func.func @transform_8(%arg0: i32) -> (i32, i32) {
    %c0_i32 = arith.constant 0 : i32
    %c0_i32_0 = arith.constant 0 : i32
    %c0_i32_1 = arith.constant 0 : i32
    return %c0_i32, %c0_i32_0 : i32, i32
  }
  func.func @transform_9(%arg0: i32) -> (i32, i32) {
    %c0_i32 = arith.constant 0 : i32
    %c0_i32_0 = arith.constant 0 : i32
    %c0_i32_1 = arith.constant 0 : i32
    return %c0_i32, %c0_i32_0 : i32, i32
  }
  func.func @transform_10(%arg0: i32) -> (i32, i32) {
    %c0_i32 = arith.constant 0 : i32
    %c0_i32_0 = arith.constant 0 : i32
    %c0_i32_1 = arith.constant 0 : i32
    return %c0_i32, %c0_i32_0 : i32, i32
  }
  func.func @transform_11(%arg0: i32) -> (i32, i32) {
    %c0_i32 = arith.constant 0 : i32
    %c0_i32_0 = arith.constant 0 : i32
    %c0_i32_1 = arith.constant 0 : i32
    return %c0_i32, %c0_i32_0 : i32, i32
  }
  func.func @transform_12(%arg0: i32) -> (i32, i32, i32) {
    %c0_i32 = arith.constant 0 : i32
    %c0_i32_0 = arith.constant 0 : i32
    %c0_i32_1 = arith.constant 0 : i32
    %c0_i32_2 = arith.constant 0 : i32
    return %c0_i32, %c0_i32_0, %c0_i32_1 : i32, i32, i32
  }
  func.func @transform_13(%arg0: i32) -> (i32, i32) {
    %c0_i32 = arith.constant 0 : i32
    %c0_i32_0 = arith.constant 0 : i32
    %c0_i32_1 = arith.constant 0 : i32
    return %c0_i32, %c0_i32_0 : i32, i32
  }
  func.func @transform_14(%arg0: i32) -> (i32, i32, i32) {
    %c0_i32 = arith.constant 0 : i32
    %c0_i32_0 = arith.constant 0 : i32
    %c0_i32_1 = arith.constant 0 : i32
    return %arg0, %c0_i32, %c0_i32_0 : i32, i32, i32
  }
}

</mosaic_0001>

<bundles_post_ra>
// kernel: tpu_custom_call.1
= control target key start
LH: loop header
LB: loop body
LE: loop exit
PB: predicated region body
PF: predicated region fallthrough
CT: control target
= control target key end

     0   :  { %s14513_s0 = inlined_call_operand.hbm [shape: f32[2,16,16,32], index: 0, kind: input, shape index: {}]   ;;  %s14514_s1 = inlined_call_operand.vmem [shape: f32[2,8,8,64], index: 1, kind: input, shape index: {}]   ;;  %s14515_s2 = inlined_call_operand.vmem [shape: f32[16,8], index: 2, kind: input, shape index: {}]   ;;  %s14516_s3 = inlined_call_operand.vmem [shape: f32[64,32], index: 3, kind: input, shape index: {}]   ;;  %s14517_s4 = inlined_call_operand.vmem [shape: f32[1,32], index: 4, kind: input, shape index: {}]   ;;  %s14518_s5 = inlined_call_operand.vmem [shape: f32[32,8], index: 5, kind: input, shape index: {}]   ;;  %s14519_s6 = inlined_call_operand.vmem [shape: f32[1,8], index: 6, kind: input, shape index: {}]   ;;  %s14520_s7 = inlined_call_operand.vmem [shape: f32[32,8], index: 7, kind: input, shape index: {}]   ;;  %s14521_s8 = inlined_call_operand.vmem [shape: f32[1,8], index: 8, kind: input, shape index: {}]   ;;  %s14522_s9 = inlined_call_operand.vmem [shape: f32[8,1], index: 9, kind: input, shape index: {}]   ;;  %s14523_s10 = inlined_call_operand.vmem [shape: f32[8,1], index: 10, kind: input, shape index: {}]   ;;  %s14524_s11 = inlined_call_operand.<no memory space> [shape: f32[1,1], index: 11, kind: input, shape index: {}]   ;;  %s14525_s12 = inlined_call_operand.hbm [shape: f32[9,32,32], index: 12, kind: input, shape index: {}]   ;;  %s14526_s13 = inlined_call_operand.vmem [shape: f32[1,32], index: 13, kind: input, shape index: {}]   ;;  %s14527_s14 = inlined_call_operand.vmem [shape: f32[2,256,32], index: 14, kind: output, shape index: {}]  }
   0x1   :  { %14802 = sst [smem:[#allocation102_spill]] %s14521_s8  ;;  %v19_v0 = vstv %s14524_s11 }
   0x2   :  { %14803 = sst [smem:[#allocation103_spill]] %s14526_s13  ;;  %20 = vst [vmem:[#allocation3] sm:$0x1] %v19_v0 }
   0x3   :  { %14804 = sst [smem:[#allocation104_spill]] %s14527_s14 }
   0x4   :  { %21 = vsyncpa [#allocation5], 0 }
   0x5   :  { %23 = vsyncpa [#allocation5 + $0x1], 0 }
   0x6   :  { %24 = vsyncpa [#allocation7], 0  ;;  %s11336_s15 = smov 0   ;;  %s11338_s16 = smov 0  }
   0x7   :  { %s11340_s17 = smov 0   ;;  %s11342_s18 = smov 0  }
   0x8 LB: > { %s11355_s11 = sadd.s32 4294967295, %s11250_s18   ;;  %p50_p0 = scmp.ne.s32.totalorder %s11242_s16, %s11238_s15  ;;  %s11250_s18 = sphi %s11342_s18, %s15832_s18   ;;  %s11246_s17 = sphi %s11340_s17, %s15835_s17   ;;  %s11242_s16 = sphi %s11338_s16, %s15834_s16   ;;  %s11238_s15 = sphi %s11336_s15, %s15833_s15  }
   0x9   : > { %p14531_p1 = scmp.eq.s32.totalorder %s11355_s11, 0  ;;  %p8811_p2 = scmp.ge.s32.totalorder %s11250_s18, 1 }
   0xa   : > { %p365_p3 = scmp.lt.s32.totalorder %s11250_s18, 3  ;;  %s11252_s21 = smov [#allocation6]  }
   0xb   : > { %p11363_p4 = por %p14531_p1, %p50_p0  ;;  %s407_s22 = sshll.u32 %s11252_s21, 4  ;;  %s408_s22 = int_to_ptr.vmem [resolvable:$true] %s407_s22 }
   0xc   : > { %p11367_p5 = pnand %p8811_p2, %p365_p3  ;;  %s11380_s24 = sadd.s32 1, %s11250_s18  }
   0xd   : > { %s14805_s19 = scalar_select %p11363_p4, 1, 0 }
   0xe   : > { %s14806_s20 = scalar_select %p11367_p5, 1, 0 }
   0xf   : > { %p10564_p6 = pneg %p11367_p5  ;;  %14808 = sst [smem:[#allocation10_spill]] %s11380_s24 }
  0x10   : > { %s37_s25 = sadd.s32 1, %s11246_s17  ;;  %s34_s26 = ssub.s32 %s11250_s18, %s11380_s24 }
  0x11   : > { %p11375_p7 = pnand %p10564_p6, %p14531_p1  ;;  %s11169_s27 = scalar_lea.vmem %s408_s22, 4608 }
  0x12   : > { %p11170_p9 = scmp.ne.s32.totalorder %s408_s22, %s11169_s27  ;;  %p11177_p12 = scmp.lt.s32.totalorder %s408_s22, %s408_s22 }
  0x13   : > { %p11160_p8 = pneg %p11375_p7  ;;  %p11178_p13 = scmp.lt.s32.totalorder %s11169_s27, %s11169_s27 }
  0x15   : > { %p11172_p10 = pnand %p11170_p9, %p11160_p8  ;;  %p11179_p0 = por %p11178_p13, %p11177_p12 }
  0x17   : > { %p11173_p11 = pneg %p11172_p10 }
  0x19   : > { %p11180_p2 = pnand %p11179_p0, %p11173_p11 }
  0x1b   : > { %11183 = shalt.err (!%p11180_p2)
}
  0x1c   : > { %s14530_s28 = smov 128   ;;  %s11254_s29 = smov 8  }
  0x1d   : > { %10567 = dma.hbm_to_vmem [thread:$0]  (!%p11375_p7), %s14525_s12, 4608, %s408_s22, [#allocation7], %s14530_s28, %s14530_s28, %s11254_s29  }
  0x1e   : > { %p35_p3 = scmp.eq.s32.totalorder %s34_s26, 0  ;;  %p44_p6 = scmp.ne.s32.totalorder %s11246_s17, %s11242_s16 }
  0x1f   : > { %p45_p8 = scmp.eq.s32.totalorder %s11250_s18, 0  ;;  %p10573_p9 = scmp.lt.s32.totalorder %s11250_s18, 2 }
  0x20   : > { %s11400_s21 = scalar_select %p35_p3, %s11246_s17, %s37_s25  }
  0x21   : > { %p46_p10 = por %p45_p8, %p44_p6  ;;  %s424_s27 = sand.u32 1, %s11246_s17  }
  0x22   : > { %s8814_s24 = sshll.u32 %s424_s27, 8  ;;  %s9261_s14 = sshll.u32 %s11250_s18, 12 }
  0x23   : > { %s11407_s23 = scalar_lea.hbm %s14513_s0, %s9261_s14  ;;  %s428_s30 = scalar_lea.vmem [#allocation4], %s8814_s24 }
  0x24   : > { %s435_s22 = sshll.u32 %s428_s30, 4  ;;  %p11411_p7 = pnand %p10573_p9, %p46_p10  ;;  %s11409_s22 = int_to_ptr.vmem [resolvable:$true] %s435_s22 }
  0x25   : > { %s11415_s25 = scalar_lea.sflag [#allocation5], %s424_s27  ;;  %s11184_s18 = scalar_lea.hbm %s11407_s23, 4096 }
  0x26   : > { %p11185_p11 = scmp.ne.s32.totalorder %s11407_s23, %s11184_s18  ;;  %p11186_p12 = pneg %p11411_p7 }
  0x27   : > { %s11189_s14 = scalar_lea.hbm %s14513_s0, 8192  ;;  %p11190_p2 = scmp.lt.s32.totalorder %s11407_s23, %s14513_s0 }
  0x28   : > { %p11187_p13 = pnand %p11186_p12, %p11185_p11  ;;  %p11191_p3 = scmp.lt.s32.totalorder %s11189_s14, %s11184_s18 }
  0x2a   : > { %p11188_p0 = pneg %p11187_p13  ;;  %p11192_p6 = por %p11191_p3, %p11190_p2 }
  0x2c   : > { %p11193_p8 = pnand %p11192_p6, %p11188_p0 }
  0x2e   : > { %11196 = shalt.err (!%p11193_p8)
}
  0x2f   : > { %s11197_s27 = scalar_lea.vmem %s11409_s22, 4096  ;;  %s11255_s30 = smov [#allocation4]  }
  0x30   : > { %p11198_p9 = scmp.ne.s32.totalorder %s11409_s22, %s11197_s27  ;;  %s11202_s28 = sshll.u32 %s11255_s30, 4  ;;  %s11203_s28 = int_to_ptr.vmem [resolvable:$false] %s11202_s28 }
  0x31   : > { %s11204_s8 = scalar_lea.vmem %s11203_s28, 8192  ;;  %p11205_p13 = scmp.lt.s32.totalorder %s11409_s22, %s11203_s28 }
  0x32   : > { %p11200_p10 = pnand %p11198_p9, %p11186_p12  ;;  %p11206_p1 = scmp.lt.s32.totalorder %s11204_s8, %s11197_s27 }
  0x34   : > { %p11201_p11 = pneg %p11200_p10  ;;  %p11207_p4 = por %p11206_p1, %p11205_p13 }
  0x36   : > { %p11208_p5 = pnand %p11207_p4, %p11201_p11 }
  0x38   : > { %11211 = shalt.err (!%p11208_p5)
}
  0x39   : > { %s14810_s18 = smov 128   ;;  %p14811_p12 = scmp.ne.s32.totalorder %s14806_s20, 0 }
  0x3a   : > { %10571 = dma.hbm_to_vmem [thread:$0]  (!%p11411_p7), %s11407_s23, 4096, %s11409_s22, %s11415_s25, %s14810_s18, %s14810_s18, %s11254_s29  }
  0x3b   : > { %455 = sbr.rel (%p14811_p12) target bundleno = 1785 (0x6f9), region = 76 }
  0x40   : > { %s457_s13 = sand.u32 1, %s11242_s16   ;;  %p14812_p1 = scmp.ne.s32.totalorder %s14805_s19, 0 }
  0x41   : > { %s8818_s28 = sshll.u32 %s457_s13, 8  ;;  %s458_s14 = scalar_lea.sflag [#allocation5], %s457_s13 }
  0x42   : > { %s11442_s24 = scalar_lea.vmem [#allocation4], %s8818_s28 }
  0x43   : > { %11229 = dma.done.wait (%p14812_p1), %s458_s14, 4096  }
  0x44   : > { %11231 = vsyncadd (%p14812_p1), %s458_s14, 4294963200  ;;  %p14813_p4 = scmp.eq.s32.totalorder %s11355_s11, 0 }
  0x46   : > { %11233 = dma.done.wait (%p14813_p4), [#allocation7], 4608   ;;  %p14814_p5 = pmov %p14813_p4 }
  0x47   : > { %p515_p7 = scmp.lt.s32.totalorder %s11355_s11, 1  ;;  %v540_v1 = vld [vmem:[%s14516_s3 + $0x38] sm:$0xff]  ;;  %v539_v2 = vld [vmem:[%s14516_s3 + $0x30] sm:$0xff]  ;;  %vm548_vm0 = vcmask 523264   ;;  %v538_v3 = vld [vmem:[%s14516_s3 + $0x28] sm:$0xff]  ;;  %vm736_vm1 = vcmask 64512  }
  0x48   : > { %11235 = vsyncadd (%p14814_p5), [#allocation7], 4294962688  ;;  %9766 = vmatprep.subr.mxu0 %v540_v1  ;;  %v537_v5 = vld [vmem:[%s14516_s3 + $0x20] sm:$0xff]  ;;  %v536_v6 = vld [vmem:[%s14516_s3 + $0x18] sm:$0xff]  ;;  %vm14692_vm2 = vcmask 261120   ;;  %s14835_s26 = sld [smem:[#allocation102_spill]] }
  0x49   : > { %s15837_s11 = smov (!%p515_p7, %s11355_s11), 1  ;;  %9767 = vmatpush3.msra.mxu0 %v540_v1  ;;  %v535_v7 = vld [vmem:[%s14516_s3 + $0x10] sm:$0xff]  ;;  %v534_v8 = vld [vmem:[%s14516_s3 + $0x8] sm:$0xff]  ;;  %v533_v9 = vld [vmem:[%s14516_s3] sm:$0xff]  ;;  %vm14597_vm3 = vcmask 1040384   ;;  %vm14596_vm8 = vcmask 1046528  }
  0x4a   : > { %s9262_s20 = sshll.u32 %s15837_s11, 6  ;;  %9768 = vmatprep.subr.mxu0 %v539_v2  ;;  %v11505_v17 = vld [vmem:[%s14515_s2] sm:$0xff]  ;;  %v11512_v18 = vld [vmem:[%s14518_s5 + $0x18] sm:$0xff]  ;;  %v11517_v19 = vld [vmem:[%s14518_s5 + $0x10] sm:$0xff]  ;;  %s15771_s27 = sld [smem:[#allocation103_spill]] }
  0x4b   : > { %s11460_s22 = scalar_lea.vmem %s14514_s1, %s9262_s20  ;;  %9769 = vmatpush3.msra.mxu0 %v539_v2  ;;  %9796 = vmatprep.mubr.msk.f32.mxu1 %vm736_vm1, %v11505_v17  ;;  %v1407_v20 = vld [vmem:[%s11442_s24] sm:$0xff]  ;;  %v1408_v23 = vld [vmem:[%s11442_s24 + $0x8] sm:$0xff]  ;;  %v1409_v24 = vld [vmem:[%s11442_s24 + $0x10] sm:$0xff]  ;;  %s9263_s30 = sshll.u32 %s15837_s11, 8 }
  0x4c   : > { %v525_v4 = vld [vmem:[%s11460_s22] sm:$0xff]  ;;  %9770 = vmatprep.subr.mxu0 %v538_v3  ;;  %v526_v10 = vld [vmem:[%s11460_s22 + $0x8] sm:$0xff]  ;;  %v527_v11 = vld [vmem:[%s11460_s22 + $0x10] sm:$0xff] }
  0x4d   : > { %9782 = vmatprep.mubr.msk.f32.mxu0 %vm548_vm0, %v525_v4  ;;  %9771 = vmatpush3.msra.mxu0 %v538_v3  ;;  %v528_v12 = vld [vmem:[%s11460_s22 + $0x18] sm:$0xff]  ;;  %v529_v13 = vld [vmem:[%s11460_s22 + $0x20] sm:$0xff]  ;;  %v530_v14 = vld [vmem:[%s11460_s22 + $0x28] sm:$0xff] }
  0x4e   : > { %9772 = vmatprep.subr.mxu0 %v537_v5  ;;  %v531_v15 = vld [vmem:[%s11460_s22 + $0x30] sm:$0xff]  ;;  %v532_v16 = vld [vmem:[%s11460_s22 + $0x38] sm:$0xff]  ;;  %v11525_v21 = vld [vmem:[%s14518_s5 + $0x8] sm:$0xff]  ;;  %s15791_s22 = sld [smem:[#allocation104_spill]] }
  0x4f   : > { %9773 = vmatpush3.msra.mxu0 %v537_v5  ;;  %v11533_v22 = vld [vmem:[%s14518_s5] sm:$0xff]  ;;  %v1412_v27 = vld [vmem:[%s11442_s24 + $0x28] sm:$0xff]  ;;  %v1413_v28 = vld [vmem:[%s11442_s24 + $0x30] sm:$0xff] }
  0x50   : > { %9774 = vmatprep.subr.mxu0 %v536_v6  ;;  %v1410_v25 = vld [vmem:[%s11442_s24 + $0x18] sm:$0xff]  ;;  %v1411_v26 = vld [vmem:[%s11442_s24 + $0x20] sm:$0xff]  ;;  %v1416_v31 = vld [vmem:[%s11442_s24 + $0x48] sm:$0xff] }
  0x51   : > { %9775 = vmatpush3.msra.mxu0 %v536_v6  ;;  %v1414_v29 = vld [vmem:[%s11442_s24 + $0x38] sm:$0xff]  ;;  %v1415_v30 = vld [vmem:[%s11442_s24 + $0x40] sm:$0xff]  ;;  %v1417_v32 = vld [vmem:[%s11442_s24 + $0x50] sm:$0xff] }
  0x52   : > { %9776 = vmatprep.subr.mxu0 %v535_v7  ;;  %v1418_v33 = vld [vmem:[%s11442_s24 + $0x58] sm:$0xff]  ;;  %v1419_v34 = vld [vmem:[%s11442_s24 + $0x60] sm:$0xff]  ;;  %v1420_v35 = vld [vmem:[%s11442_s24 + $0x68] sm:$0xff] }
  0x53   : > { %9777 = vmatpush3.msra.mxu0 %v535_v7  ;;  %v1421_v36 = vld [vmem:[%s11442_s24 + $0x70] sm:$0xff]  ;;  %v1422_v37 = vld [vmem:[%s11442_s24 + $0x78] sm:$0xff]  ;;  %v1423_v38 = vld [vmem:[%s11442_s24 + $0x80] sm:$0xff] }
  0x54   : > { %9778 = vmatprep.subr.mxu0 %v534_v8  ;;  %v1424_v39 = vld [vmem:[%s11442_s24 + $0x88] sm:$0xff]  ;;  %v8824_v40 = vld [vmem:[%s14517_s4] ss:$0 sm:$0xff]  ;;  %s14334_s18 = scalar_lea.vmem %s15791_s22, %s9263_s30 }
  0x55   : > { %9779 = vmatpush3.msra.mxu0 %v534_v8 }
  0x56   : > { %9780 = vmatprep.subr.mxu0 %v533_v9 }
  0x57   : > { %9781 = vmatpush3.msra.mxu0 %v533_v9 }
  0x58   : > { %9783 = vmatmul.mubr.msk.f32.vlgmr.msra.gmra.mxu0 %vm548_vm0, %v526_v10  ;;  %9834 = vmatprep.subr.mxu0 %v11512_v18 }
  0x59   : > { %9785 = vmatprep.mubr.msk.f32.mxu0 %vm548_vm0, %v527_v11  ;;  %9835 = vmatpush3.msra.mxu0 %v11512_v18 }
  0x5a   : > { %9836 = vmatprep.subr.mxu0 %v11517_v19 }
  0x5b   : > { %9837 = vmatpush3.msra.mxu0 %v11517_v19 }
  0x5c   : > { %9786 = vmatmul.mubr.msk.f32.gmra.mxu0 %vm548_vm0, %v528_v12  ;;  %9838 = vmatprep.subr.mxu0 %v11525_v21 }
  0x5d   : > { %9788 = vmatprep.mubr.msk.f32.mxu0 %vm548_vm0, %v529_v13  ;;  %9839 = vmatpush3.msra.mxu0 %v11525_v21 }
  0x5e   : > { %9840 = vmatprep.subr.mxu0 %v11533_v22 }
  0x5f   : > { %9841 = vmatpush3.msra.mxu0 %v11533_v22 }
  0x60   : > { %9789 = vmatmul.mubr.msk.f32.gmra.mxu0 %vm548_vm0, %v530_v14 }
  0x61   : > { %9791 = vmatprep.mubr.msk.f32.mxu0 %vm548_vm0, %v531_v15 }
  0x64   : > { %9792 = vmatmul.mubr.msk.f32.gmra.mxu0 %vm548_vm0, %v532_v16 }
  0x65   : > { %9842 = vmatprep.mubr.msk.f32.mxu0 %vm14692_vm2, %v1407_v20 }
  0x68   : > { %9843 = vmatmul.mubr.msk.f32.vlgmr.msra.gmra.mxu0 %vm14692_vm2, %v1408_v23 }
  0x69   : > { %9845 = vmatprep.mubr.msk.f32.mxu0 %vm14692_vm2, %v1409_v24 }
  0x6c   : > { %9846 = vmatmul.mubr.msk.f32.gmra.mxu0 %vm14692_vm2, %v1410_v25 }
  0x6d   : > { %9848 = vmatprep.mubr.msk.f32.mxu0 %vm14692_vm2, %v1411_v26 }
  0x70   : > { %9849 = vmatmul.mubr.msk.f32.gmra.mxu0 %vm14692_vm2, %v1412_v27 }
  0x71   : > { %9851 = vmatprep.mubr.msk.f32.mxu0 %vm14692_vm2, %v1413_v28 }
  0x74   : > { %9852 = vmatmul.mubr.msk.f32.gmra.mxu0 %vm14692_vm2, %v1414_v29 }
  0x75   : > { %9854 = vmatprep.mubr.msk.f32.mxu0 %vm14692_vm2, %v1415_v30 }
  0x78   : > { %9855 = vmatmul.mubr.msk.f32.gmra.mxu0 %vm14692_vm2, %v1416_v31 }
  0x79   : > { %9857 = vmatprep.mubr.msk.f32.mxu0 %vm14692_vm2, %v1417_v32  ;;  %v735_v32 = vld [vmem:[%s14515_s2 + $0x8] sm:$0xff] }
  0x7c   : > { %9858 = vmatmul.mubr.msk.f32.gmra.mxu0 %vm14692_vm2, %v1418_v33 }
  0x7d   : > { %9860 = vmatprep.mubr.msk.f32.mxu0 %vm14692_vm2, %v1419_v34 }
  0x80   : > { %9861 = vmatmul.mubr.msk.f32.gmra.mxu0 %vm14692_vm2, %v1420_v35 }
  0x81   : > { %9863 = vmatprep.mubr.msk.f32.mxu0 %vm14692_vm2, %v1421_v36 }
  0x84   : > { %9864 = vmatmul.mubr.msk.f32.gmra.mxu0 %vm14692_vm2, %v1422_v37 }
  0x85   : > { %9866 = vmatprep.mubr.msk.f32.mxu0 %vm14692_vm2, %v1423_v38 }
  0x88   : > { %9867 = vmatmul.mubr.msk.f32.gmra.mxu0 %vm14692_vm2, %v1424_v39 }
 0x118   : > { %v9784_v41 = vpop.f32.mrf.mxu0 }
 0x119   : > { %v11576_v42 = vadd.f32 %v9784_v41, %v8824_v40 }
 0x11a   : > { %v639_v43 = vpop.f32.mrf.mxu0 }
 0x11b   : > { %v679_v44 = vsub.f32 0.0, %v11576_v42  ;;  %v640_v45 = vadd.f32 %v8824_v40, %v639_v43 }
 0x11c   : > { %v9787_v46 = vpop.f32.mrf.mxu0 }
 0x11d   : > { %v688_v47 = vmul.f32 1.442695, %v679_v44  ;;  %v678_v48 = vsub.f32 0.0, %v640_v45  ;;  %v11579_v49 = vadd.f32 %v9787_v46, %v8824_v40 }
 0x11e   : > { %v649_v50 = vpop.f32.mrf.mxu0 }
 0x11f   : > { %10614 = vpow2.f32 %v688_v47  ;;  %v686_v51 = vmul.f32 1.442695, %v678_v48  ;;  %v681_v52 = vsub.f32 0.0, %v11579_v49  ;;  %v650_v53 = vadd.f32 %v8824_v40, %v649_v50  ;;  %v1425_v47 = vld [vmem:[%s11442_s24 + $0x90] sm:$0xff]  ;;  %v1430_v50 = vld [vmem:[%s11442_s24 + $0xb8] sm:$0xff] }
 0x120   : > { %v9790_v54 = vpop.f32.mrf.mxu0  ;;  %v1999_v48 = vld [vmem:[%s14520_s7 + $0x18] sm:$0xff] }
 0x121   : > { %10616 = vpow2.f32 %v686_v51  ;;  %v692_v55 = vmul.f32 1.442695, %v681_v52  ;;  %v680_v56 = vsub.f32 0.0, %v650_v53  ;;  %v11582_v57 = vadd.f32 %v9790_v54, %v8824_v40  ;;  %v1431_v51 = vld [vmem:[%s11442_s24 + $0xc0] sm:$0xff]  ;;  %v1432_v52 = vld [vmem:[%s11442_s24 + $0xc8] sm:$0xff]  ;;  %v1434_v54 = vld [vmem:[%s11442_s24 + $0xd8] sm:$0xff] }
 0x122   : > { %v659_v58 = vpop.f32.mrf.mxu0 }
 0x123   : > { %10618 = vpow2.f32 %v692_v55  ;;  %v690_v59 = vmul.f32 1.442695, %v680_v56  ;;  %v683_v60 = vsub.f32 0.0, %v11582_v57  ;;  %v660_v61 = vadd.f32 %v8824_v40, %v659_v58  ;;  %v1435_v55 = vld [vmem:[%s11442_s24 + $0xe0] sm:$0xff]  ;;  %v1436_v56 = vld [vmem:[%s11442_s24 + $0xe8] sm:$0xff]  ;;  %v1438_v58 = vld [vmem:[%s11442_s24 + $0xf8] sm:$0xff] }
 0x124   : > { %v9793_v62 = vpop.f32.mrf.mxu0 }
 0x125   : > { %10620 = vpow2.f32 %v690_v59  ;;  %v696_v63 = vmul.f32 1.442695, %v683_v60  ;;  %v682_v0 = vsub.f32 0.0, %v660_v61  ;;  %v11585_v1 = vadd.f32 %v9793_v62, %v8824_v40  ;;  %v1996_v59 = vld [vmem:[%s14520_s7] sm:$0xff] }
 0x126   : > { %v669_v2 = vpop.f32.mrf.mxu0  ;;  %v2552_v60 = vld [vmem:[%s14522_s9] sm:$0xff] }
 0x127   : > { %v694_v3 = vmul.f32 1.442695, %v682_v0  ;;  %v685_v4 = vsub.f32 0.0, %v11585_v1  ;;  %v11588_v5 = vadd.f32 %v8824_v40, %v669_v2  ;;  %10622 = vpow2.f32 %v696_v63 }
 0x129   : > { %10624 = vpow2.f32 %v694_v3  ;;  %v684_v6 = vsub.f32 0.0, %v11588_v5  ;;  %v700_v7 = vmul.f32 1.442695, %v685_v4 }
 0x12b   : > { %v698_v8 = vmul.f32 1.442695, %v684_v6 }
 0x12c   : > { %v10615_v9 = vpop.eup %10614 }
 0x12d   : > { %v703_v10 = vadd.f32 1.0, %v10615_v9  ;;  %10626 = vpow2.f32 %v698_v8 }
 0x12e   : > { %v10617_v11 = vpop.eup %10616  ;;  %10628 = vpow2.f32 %v700_v7 }
 0x12f   : > { %v702_v12 = vadd.f32 1.0, %v10617_v11  ;;  %10630 = vrcp.f32 %v703_v10 }
 0x130   : > { %v10619_v13 = vpop.eup %10618 }
 0x131   : > { %10632 = vrcp.f32 %v702_v12  ;;  %v705_v15 = vadd.f32 1.0, %v10619_v13 }
 0x132   : > { %v10621_v14 = vpop.eup %10620 }
 0x133   : > { %v704_v16 = vadd.f32 1.0, %v10621_v14 }
 0x134   : > { %v10623_v20 = vpop.eup %10622 }
 0x135   : > { %10634 = vrcp.f32 %v704_v16  ;;  %v707_v25 = vadd.f32 1.0, %v10623_v20 }
 0x136   : > { %v10625_v23 = vpop.eup %10624  ;;  %10636 = vrcp.f32 %v705_v15 }
 0x137   : > { %v706_v24 = vadd.f32 1.0, %v10625_v23 }
 0x139   : > { %10638 = vrcp.f32 %v706_v24  ;;  %v11691_v24 = vld [vmem:[%s14519_s6] ss:$0 sm:$0xff] }
 0x13a   : > { %v10627_v26 = vpop.eup %10626  ;;  %10640 = vrcp.f32 %v707_v25 }
 0x13b   : > { %v10629_v27 = vpop.eup %10628  ;;  %v708_v29 = vadd.f32 1.0, %v10627_v26 }
 0x13c   : > { %v10631_v28 = vpop.eup %10630  ;;  %v709_v34 = vadd.f32 1.0, %v10629_v27 }
 0x13d   : > { %v727_v33 = vmul.f32 %v10631_v28, %v11576_v42  ;;  %10642 = vrcp.f32 %v708_v29 }
 0x13e   : > { %v10633_v30 = vpop.eup %10632  ;;  %10644 = vrcp.f32 %v709_v34 }
 0x13f   : > { %v726_v31 = vmul.f32 %v10633_v30, %v640_v45 }
 0x141   : > { %9794 = vmatprep.subr.mxu1 %v726_v31 }
 0x142   : > { %v10635_v35 = vpop.eup %10634  ;;  %9795 = vmatpush3.msra.mxu1 %v726_v31 }
 0x143   : > { %v728_v36 = vmul.f32 %v10635_v35, %v650_v53  ;;  %9797 = vmatmul.mubr.msk.f32.vlgmr.msra.gmra.mxu1 %vm736_vm1, %v735_v32  ;;  %9799 = vmatprep.subr.mxu1 %v727_v33  ;;  %v10637_v37 = vpop.eup %10636  ;;  %v1433_v53 = vld [vmem:[%s11442_s24 + $0xd0] sm:$0xff] }
 0x144   : > { %9800 = vmatpush3.msra.mxu1 %v727_v33  ;;  %9801 = vmatprep.mubr.msk.f32.mxu1 %vm736_vm1, %v11505_v17  ;;  %v729_v39 = vmul.f32 %v10637_v37, %v11579_v49  ;;  %v1997_v49 = vld [vmem:[%s14520_s7 + $0x8] sm:$0xff] }
 0x145   : > { %9804 = vmatprep.subr.mxu1 %v728_v36 }
 0x146   : > { %v10639_v38 = vpop.eup %10638 }
 0x147   : > { %9802 = vmatmul.mubr.msk.f32.vlgmr.msra.gmra.mxu1 %vm736_vm1, %v735_v32  ;;  %v730_v40 = vmul.f32 %v10639_v38, %v660_v61  ;;  %v10641_v41 = vpop.eup %10640  ;;  %v9844_v61 = vpop.f32.mrf.mxu0 }
 0x148   : > { %9805 = vmatpush3.msra.mxu1 %v728_v36  ;;  %9806 = vmatprep.mubr.msk.f32.mxu1 %vm736_vm1, %v11505_v17  ;;  %v731_v42 = vmul.f32 %v10641_v41, %v11582_v57  ;;  %v1437_v57 = vld [vmem:[%s11442_s24 + $0xf0] sm:$0xff] }
 0x149   : > { %9809 = vmatprep.subr.mxu1 %v729_v39  ;;  %v1613_v62 = vpop.f32.mrf.mxu0 }
 0x14a   : > { %v10643_v43 = vpop.eup %10642  ;;  %v11715_v38 = vadd.f32 %v11691_v24, %v1613_v62 }
 0x14b   : > { %9807 = vmatmul.mubr.msk.f32.vlgmr.msra.gmra.mxu1 %vm736_vm1, %v735_v32  ;;  %v732_v44 = vmul.f32 %v10643_v43, %v11588_v5  ;;  %v10645_v45 = vpop.eup %10644  ;;  %v9847_v63 = vpop.f32.mrf.mxu0 }
 0x14c   : > { %9810 = vmatpush3.msra.mxu1 %v729_v39  ;;  %9811 = vmatprep.mubr.msk.f32.mxu1 %vm736_vm1, %v11505_v17  ;;  %v733_v46 = vmul.f32 %v10645_v45, %v11585_v1 }
 0x14d   : > { %9814 = vmatprep.subr.mxu1 %v730_v40  ;;  %v1623_v0 = vpop.f32.mrf.mxu0 }
 0x14f   : > { %9812 = vmatmul.mubr.msk.f32.vlgmr.msra.gmra.mxu1 %vm736_vm1, %v735_v32  ;;  %v11672_v1 = vpop.f32.mrf.mxu0 }
 0x150   : > { %9815 = vmatpush3.msra.mxu1 %v730_v40  ;;  %9816 = vmatprep.mubr.msk.f32.mxu1 %vm736_vm1, %v11505_v17 }
 0x151   : > { %9819 = vmatprep.subr.mxu1 %v731_v42  ;;  %v11674_v2 = vpop.f32.mrf.mxu0 }
 0x153   : > { %9817 = vmatmul.mubr.msk.f32.vlgmr.msra.gmra.mxu1 %vm736_vm1, %v735_v32  ;;  %v11676_v4 = vpop.f32.mrf.mxu0 }
 0x154   : > { %9820 = vmatpush3.msra.mxu1 %v731_v42  ;;  %9821 = vmatprep.mubr.msk.f32.mxu1 %vm736_vm1, %v11505_v17  ;;  %v11721_v42 = vadd.f32 %v9847_v63, %v11691_v24 }
 0x155   : > { %9824 = vmatprep.subr.mxu1 %v732_v44  ;;  %v11678_v11 = vpop.f32.mrf.mxu0 }
 0x157   : > { %9822 = vmatmul.mubr.msk.f32.vlgmr.msra.gmra.mxu1 %vm736_vm1, %v735_v32  ;;  %v11693_v25 = vpop.f32.mrf.mxu0 }
 0x158   : > { %9825 = vmatpush3.msra.mxu1 %v732_v44  ;;  %9826 = vmatprep.mubr.msk.f32.mxu1 %vm736_vm1, %v11505_v17 }
 0x159   : > { %9829 = vmatprep.subr.mxu1 %v733_v46  ;;  %v11708_v34 = vpop.f32.mrf.mxu0 }
 0x15b   : > { %9827 = vmatmul.mubr.msk.f32.vlgmr.msra.gmra.mxu1 %vm736_vm1, %v735_v32  ;;  %v11725_v44 = vpop.f32.mrf.mxu0 }
 0x15c   : > { %9830 = vmatpush3.msra.mxu1 %v733_v46  ;;  %9831 = vmatprep.mubr.msk.f32.mxu1 %vm736_vm1, %v11505_v17  ;;  %v1426_v17 = vld [vmem:[%s11442_s24 + $0x98] sm:$0xff] }
 0x15d   : > { %10550 = vmatprep.subr.mxu1 %v11512_v18 }
 0x15f   : > { %9832 = vmatmul.mubr.msk.f32.vlgmr.msra.gmra.mxu1 %vm736_vm1, %v735_v32  ;;  %v11704_v32 = vadd.f32 %v9844_v61, %v11691_v24 }
 0x160   : > { %10554 = vmatpush3.msra.mxu1 %v11512_v18  ;;  %9869 = vmatprep.mubr.msk.f32.mxu1 %vm14692_vm2, %v1425_v47  ;;  %v1427_v18 = vld [vmem:[%s11442_s24 + $0xa0] sm:$0xff] }
 0x161   : > { %10551 = vmatprep.subr.mxu1 %v11517_v19  ;;  %v1773_v41 = vsub.f32 0.0, %v11704_v32 }
 0x162   : > { %10555 = vmatpush3.msra.mxu1 %v11517_v19  ;;  %v1998_v19 = vld [vmem:[%s14520_s7 + $0x10] sm:$0xff] }
 0x163   : > { %10552 = vmatprep.subr.mxu1 %v11525_v21 }
 0x164   : > { %10556 = vmatpush3.msra.mxu1 %v11525_v21  ;;  %v1428_v21 = vld [vmem:[%s11442_s24 + $0xa8] sm:$0xff] }
 0x165   : > { %10553 = vmatprep.subr.mxu1 %v11533_v22 }
 0x166   : > { %10557 = vmatpush3.msra.mxu1 %v11533_v22  ;;  %v1429_v22 = vld [vmem:[%s11442_s24 + $0xb0] sm:$0xff] }
 0x167   : > { %9870 = vmatmul.mubr.msk.f32.vlgmr.msra.gmra.mxu1 %vm14692_vm2, %v1426_v17  ;;  %9890 = vmatprep.subr.mxu1 %v1999_v48 }
 0x168   : > { %9872 = vmatprep.mubr.msk.f32.mxu1 %vm14692_vm2, %v1427_v18  ;;  %9891 = vmatpush3.msra.mxu1 %v1999_v48  ;;  %v1772_v48 = vsub.f32 0.0, %v11715_v38 }
 0x169   : > { %9892 = vmatprep.subr.mxu1 %v1998_v19 }
 0x16a   : > { %9893 = vmatpush3.msra.mxu1 %v1998_v19  ;;  %v1806_v19 = vmul.f32 1.442695, %v1773_v41 }
 0x16b   : > { %9873 = vmatmul.mubr.msk.f32.gmra.mxu1 %vm14692_vm2, %v1428_v21  ;;  %9894 = vmatprep.subr.mxu1 %v1997_v49  ;;  %v1775_v21 = vsub.f32 0.0, %v11721_v42 }
 0x16c   : > { %9875 = vmatprep.mubr.msk.f32.mxu1 %vm14692_vm2, %v1429_v22  ;;  %9895 = vmatpush3.msra.mxu1 %v1997_v49  ;;  %v11736_v49 = vadd.f32 %v11691_v24, %v1623_v0  ;;  %10646 = vpow2.f32 %v1806_v19 }
 0x16d   : > { %9896 = vmatprep.subr.mxu1 %v1996_v59 }
 0x16e   : > { %9897 = vmatpush3.msra.mxu1 %v1996_v59  ;;  %v1774_v59 = vsub.f32 0.0, %v11736_v49 }
 0x16f   : > { %9876 = vmatmul.mubr.msk.f32.gmra.mxu1 %vm14692_vm2, %v1430_v50  ;;  %9996 = vmatprep.subr.mxu1 %v2552_v60 }
 0x170   : > { %9878 = vmatprep.mubr.msk.f32.mxu1 %vm14692_vm2, %v1431_v51  ;;  %v11742_v51 = vpop.f32.mrf.mxu0 }
 0x172   : > { %v11761_v62 = vpop.f32.mrf.mxu0 }
 0x173   : > { %9879 = vmatmul.mubr.msk.f32.gmra.mxu1 %vm14692_vm2, %v1432_v52 }
 0x174   : > { %9881 = vmatprep.mubr.msk.f32.mxu1 %vm14692_vm2, %v1433_v53 }
 0x177   : > { %9882 = vmatmul.mubr.msk.f32.gmra.mxu1 %vm14692_vm2, %v1434_v54 }
 0x178   : > { %9884 = vmatprep.mubr.msk.f32.mxu1 %vm14692_vm2, %v1435_v55 }
 0x17b   : > { %9885 = vmatmul.mubr.msk.f32.gmra.mxu1 %vm14692_vm2, %v1436_v56  ;;  %v1804_v56 = vmul.f32 1.442695, %v1772_v48 }
 0x17c   : > { %9887 = vmatprep.mubr.msk.f32.mxu1 %vm14692_vm2, %v1437_v57  ;;  %v11752_v57 = vadd.f32 %v11691_v24, %v11674_v2  ;;  %v11771_v2 = vadd.f32 %v11672_v1, %v11691_v24 }
 0x17d   : > { %10648 = vpow2.f32 %v1804_v56 }
 0x17f   : > { %9888 = vmatmul.mubr.msk.f32.gmra.mxu1 %vm14692_vm2, %v1438_v58  ;;  %v1810_v58 = vmul.f32 1.442695, %v1775_v21 }
 0x181   : > { %10650 = vpow2.f32 %v1810_v58 }
 0x203   : > { %v9798_v3 = vpop.f32.mrf.mxu1 }
 0x204   : > { %v1344_v5 = vmul.f32 0.25, %v9798_v3  ;;  %v1358_v6 = vmul.f32 0.75, %v9798_v3 }
 0x205   : > { %v809_v7 = vpop.f32.mrf.mxu1 }
 0x206   : > { %v1343_v8 = vmul.f32 0.25, %v809_v7  ;;  %v1357_v9 = vmul.f32 0.75, %v809_v7  ;;  %v11682_v13 = vadd.f32 %v1358_v6, %v1344_v5  ;;  %v11776_v7 = vadd.f32 %v11691_v24, %v11678_v11 }
 0x207   : > { %v9803_v10 = vpop.f32.mrf.mxu1 }
 0x208   : > { %v11680_v12 = vadd.f32 %v1357_v9, %v1343_v8  ;;  %v1346_v14 = vmul.f32 0.25, %v9803_v10  ;;  %v1360_v27 = vmul.f32 0.75, %v9803_v10  ;;  %v1673_v10 = vpop.f32.mrf.mxu0 }
 0x209   : > { %v884_v15 = vpop.f32.mrf.mxu1 }
 0x20a   : > { %v1345_v16 = vmul.f32 0.25, %v884_v15  ;;  %v1359_v20 = vmul.f32 0.75, %v884_v15  ;;  %9898 = vmatprep.mubr.msk.f32.mxu1 %vm14692_vm2, %v11680_v12  ;;  %v11697_v28 = vadd.f32 %v1358_v6, %v1346_v14  ;;  %v11712_v35 = vadd.f32 %v1360_v27, %v1344_v5 }
 0x20b   : > { %v9808_v23 = vpop.f32.mrf.mxu1  ;;  %9899 = vmatmul.mubr.msk.f32.vlgmr.msra.gmra.mxu1 %vm14692_vm2, %v11682_v13  ;;  %v1776_v5 = vsub.f32 0.0, %v11752_v57  ;;  %v1808_v6 = vmul.f32 1.442695, %v1774_v59  ;;  %v1777_v15 = vsub.f32 0.0, %v11771_v2 }
 0x20c   : > { %v11695_v26 = vadd.f32 %v1357_v9, %v1345_v16  ;;  %9997 = vmatpush3.msra.mxu1 %v2552_v60  ;;  %v11699_v30 = vadd.f32 %v1359_v20, %v1343_v8  ;;  %v1348_v36 = vmul.f32 0.25, %v9808_v23  ;;  %v1362_v46 = vmul.f32 0.75, %v9808_v23 }
 0x20d   : > { %v959_v29 = vpop.f32.mrf.mxu1  ;;  %v11796_v23 = vadd.f32 %v11676_v4, %v11691_v24  ;;  %10652 = vpow2.f32 %v1808_v6 }
 0x20e   : > { %v1347_v31 = vmul.f32 0.25, %v959_v29  ;;  %9901 = vmatprep.mubr.msk.f32.mxu1 %vm14692_vm2, %v11695_v26  ;;  %v1361_v39 = vmul.f32 0.75, %v959_v29  ;;  %v11729_v47 = vadd.f32 %v1360_v27, %v1348_v36  ;;  %v11748_v54 = vadd.f32 %v1362_v46, %v1346_v14 }
 0x20f   : > { %9902 = vmatmul.mubr.msk.f32.gmra.mxu1 %vm14692_vm2, %v11697_v28  ;;  %v9813_v33 = vpop.f32.mrf.mxu1  ;;  %v1778_v27 = vsub.f32 0.0, %v11776_v7 }
 0x210   : > { %9904 = vmatprep.mubr.msk.f32.mxu1 %vm14692_vm2, %v11699_v30  ;;  %v11717_v40 = vadd.f32 %v1359_v20, %v1347_v31  ;;  %v11732_v18 = vadd.f32 %v1361_v39, %v1345_v16  ;;  %v1350_v22 = vmul.f32 0.25, %v9813_v33  ;;  %v1364_v3 = vmul.f32 0.75, %v9813_v33 }
 0x211   : > { %v1034_v37 = vpop.f32.mrf.mxu1  ;;  %v1812_v20 = vmul.f32 1.442695, %v1776_v5  ;;  %v11806_v33 = vadd.f32 %v11691_v24, %v11708_v34  ;;  %v1816_v34 = vmul.f32 1.442695, %v1778_v27  ;;  %v11856_v27 = vadd.f32 %v11691_v24, %v1673_v10 }
 0x212   : > { %v1349_v45 = vmul.f32 0.25, %v1034_v37  ;;  %14815 = vst [vmem:[#allocation11_spill] sm:$0xff] %v11732_v18  ;;  %v1363_v52 = vmul.f32 0.75, %v1034_v37  ;;  %v11755_v60 = vadd.f32 %v1362_v46, %v1350_v22  ;;  %v11790_v16 = vadd.f32 %v1364_v3, %v1348_v36  ;;  %v11808_v36 = vpop.f32.mrf.mxu0 }
 0x213   : > { %9905 = vmatmul.mubr.msk.f32.gmra.mxu1 %vm14692_vm2, %v11712_v35  ;;  %v9818_v43 = vpop.f32.mrf.mxu1  ;;  %10654 = vpow2.f32 %v1812_v20  ;;  %v11821_v46 = vadd.f32 %v11693_v25, %v11691_v24  ;;  %v1780_v19 = vsub.f32 0.0, %v11806_v33  ;;  %v11840_v25 = vadd.f32 %v11691_v24, %v11742_v51 }
 0x214   : > { %9907 = vmatprep.mubr.msk.f32.mxu1 %vm14692_vm2, %v11717_v40  ;;  %v11746_v53 = vadd.f32 %v1361_v39, %v1349_v45  ;;  %14817 = vst [vmem:[#allocation13_spill] sm:$0xff] %v11755_v60  ;;  %v11763_v63 = vadd.f32 %v1363_v52, %v1347_v31  ;;  %v11778_v8 = vmul.f32 0.25, %v9818_v43  ;;  %14820 = vst [vmem:[#allocation16_spill] sm:$0xff] %v11790_v16  ;;  %v1366_v29 = vmul.f32 0.75, %v9818_v43  ;;  %v1683_v21 = vpop.f32.mrf.mxu0 }
 0x215   : > { %v1109_v17 = vpop.f32.mrf.mxu1  ;;  %v1814_v39 = vmul.f32 1.442695, %v1777_v15  ;;  %v1779_v43 = vsub.f32 0.0, %v11796_v23  ;;  %v1781_v59 = vsub.f32 0.0, %v11821_v46  ;;  %v1820_v51 = vmul.f32 1.442695, %v1780_v19 }
 0x216   : > { %14816 = vst [vmem:[#allocation12_spill] sm:$0xff] %v11746_v53  ;;  %14818 = vst [vmem:[#allocation14_spill] sm:$0xff] %v11763_v63  ;;  %v11767_v0 = vmul.f32 0.25, %v1109_v17  ;;  %v1365_v1 = vmul.f32 0.75, %v1109_v17  ;;  %v11800_v31 = vadd.f32 %v1364_v3, %v11778_v8  ;;  %v10647_v17 = vpop.eup %10646  ;;  %v11823_v48 = vadd.f32 %v1366_v29, %v1350_v22 }
 0x217   : > { %9908 = vmatmul.mubr.msk.f32.gmra.mxu1 %vm14692_vm2, %v11729_v47  ;;  %v11740_v50 = vpop.f32.mrf.mxu1  ;;  %10656 = vpow2.f32 %v1814_v39  ;;  %v1818_v22 = vmul.f32 1.442695, %v1779_v43  ;;  %v11845_v3 = vadd.f32 %v11725_v44, %v11691_v24  ;;  %v1869_v6 = vadd.f32 1.0, %v10647_v17  ;;  %v9868_v44 = vpop.f32.mrf.mxu0 }
 0x218   : > { %9910 = vmatprep.mubr.msk.f32.mxu1 %vm14692_vm2, %v11732_v18  ;;  %v11787_v14 = vadd.f32 %v1363_v52, %v11767_v0  ;;  %14821 = vst [vmem:[#allocation17_spill] sm:$0xff] %v11800_v31  ;;  %v11810_v37 = vadd.f32 %v1365_v1, %v1349_v45  ;;  %14823 = vst [vmem:[#allocation19_spill] sm:$0xff] %v11823_v48  ;;  %v11826_v45 = vmul.f32 0.25, %v11740_v50  ;;  %10658 = vpow2.f32 %v1816_v34 }
 0x219   : > { %v1184_v55 = vpop.f32.mrf.mxu1  ;;  %v1368_v15 = vmul.f32 0.75, %v11740_v50  ;;  %v11871_v34 = vadd.f32 %v11761_v62, %v11691_v24  ;;  %10660 = vpow2.f32 %v1818_v22  ;;  %v1822_v10 = vmul.f32 1.442695, %v1781_v59  ;;  %v1693_v22 = vpop.f32.mrf.mxu0 }
 0x21a   : > { %14819 = vst [vmem:[#allocation15_spill] sm:$0xff] %v11787_v14  ;;  %14822 = vst [vmem:[#allocation18_spill] sm:$0xff] %v11810_v37  ;;  %v11814_v4 = vmul.f32 0.25, %v1184_v55  ;;  %v1367_v56 = vmul.f32 0.75, %v1184_v55  ;;  %v10649_v55 = vpop.eup %10648  ;;  %v11851_v20 = vadd.f32 %v1366_v29, %v11826_v45  ;;  %v1782_v29 = vsub.f32 0.0, %v11840_v25 }
 0x21b   : > { %9911 = vmatmul.mubr.msk.f32.gmra.mxu1 %vm14692_vm2, %v11748_v54  ;;  %v11759_v61 = vpop.f32.mrf.mxu1  ;;  %v1783_v17 = vsub.f32 0.0, %v11845_v3  ;;  %10662 = vrcp.f32 %v1869_v6  ;;  %v1784_v62 = vsub.f32 0.0, %v11856_v27  ;;  %v1785_v6 = vsub.f32 0.0, %v11871_v34 }
 0x21c   : > { %9913 = vmatprep.mubr.msk.f32.mxu1 %vm14692_vm2, %v11746_v53  ;;  %v11834_v58 = vadd.f32 %v1365_v1, %v11814_v4  ;;  %v10651_v1 = vpop.eup %10650  ;;  %14825 = vst [vmem:[#allocation21_spill] sm:$0xff] %v11851_v20  ;;  %v11861_v43 = vadd.f32 %v1367_v56, %v11767_v0  ;;  %v1868_v0 = vadd.f32 1.0, %v10649_v55  ;;  %10664 = vpow2.f32 %v1820_v51 }
 0x21d   : > { %v11782_v9 = vpop.f32.mrf.mxu1  ;;  %10666 = vpow2.f32 %v1822_v10  ;;  %v11899_v51 = vadd.f32 %v11808_v36, %v11691_v24  ;;  %v1828_v36 = vmul.f32 1.442695, %v1784_v62 }
 0x21e   : > { %14824 = vst [vmem:[#allocation20_spill] sm:$0xff] %v11834_v58  ;;  %14826 = vst [vmem:[#allocation22_spill] sm:$0xff] %v11861_v43  ;;  %v11866_v50 = vmul.f32 0.25, %v11782_v9  ;;  %v1369_v55 = vmul.f32 0.75, %v11782_v9  ;;  %10668 = vrcp.f32 %v1868_v0 }
 0x21f   : > { %9914 = vmatmul.mubr.msk.f32.gmra.mxu1 %vm14692_vm2, %v11755_v60  ;;  %v11792_v11 = vpop.f32.mrf.mxu1 }
 0x220   : > { %9916 = vmatprep.mubr.msk.f32.mxu1 %vm14692_vm2, %v11763_v63  ;;  %v1372_v60 = vmul.f32 0.75, %v11792_v11 }
 0x221   : > { %v11816_v41 = vpop.f32.mrf.mxu1 }
 0x223   : > { %9917 = vmatmul.mubr.msk.f32.gmra.mxu1 %vm14692_vm2, %v11790_v16  ;;  %v11905_v16 = vadd.f32 %v11691_v24, %v1693_v22  ;;  %v1787_v22 = vsub.f32 0.0, %v11899_v51 }
 0x224   : > { %9919 = vmatprep.mubr.msk.f32.mxu1 %vm14692_vm2, %v11787_v14  ;;  %v11880_v14 = vadd.f32 %v1368_v15, %v11778_v8  ;;  %v1824_v8 = vmul.f32 1.442695, %v1782_v29  ;;  %v1370_v29 = vmul.f32 0.75, %v11759_v61 }
 0x226   : > { %14827 = vst [vmem:[#allocation23_spill] sm:$0xff] %v11880_v14 }
 0x227   : > { %9920 = vmatmul.mubr.msk.f32.gmra.mxu1 %vm14692_vm2, %v11800_v31  ;;  %v11831_v52 = vpop.f32.mrf.mxu1  ;;  %v11883_v31 = vmul.f32 0.25, %v11759_v61  ;;  %v1830_v61 = vmul.f32 1.442695, %v1785_v6 }
 0x228   : > { %9922 = vmatprep.mubr.msk.f32.mxu1 %vm14692_vm2, %v11810_v37  ;;  %v1871_v37 = vadd.f32 1.0, %v10651_v1  ;;  %v1826_v1 = vmul.f32 1.442695, %v1783_v17  ;;  %v11916_v17 = vadd.f32 %v1369_v55, %v11814_v4 }
 0x229   : > { %v11847_v5 = vpop.f32.mrf.mxu1 }
 0x22a   : > { %10670 = vrcp.f32 %v1871_v37  ;;  %14830 = vst [vmem:[#allocation26_spill] sm:$0xff] %v11916_v17  ;;  %v11923_v37 = vadd.f32 %v9868_v44, %v11691_v24  ;;  %v1371_v44 = vmul.f32 0.75, %v11816_v41 }
 0x22b   : > { %9923 = vmatmul.mubr.msk.f32.gmra.mxu1 %vm14692_vm2, %v11823_v48  ;;  %v11858_v39 = vpop.f32.mrf.mxu1  ;;  %v10653_v48 = vpop.eup %10652  ;;  %10672 = vpow2.f32 %v1824_v8  ;;  %v1390_v8 = vmul.f32 0.25, %v11792_v11 }
 0x22c   : > { %9925 = vmatprep.mubr.msk.f32.mxu1 %vm14692_vm2, %v11834_v58  ;;  %v11877_v58 = vadd.f32 %v11691_v24, %v1683_v21  ;;  %v11892_v21 = vadd.f32 %v1367_v56, %v11866_v50  ;;  %v10655_v63 = vpop.eup %10654  ;;  %v1870_v9 = vadd.f32 1.0, %v10653_v48  ;;  %v1389_v48 = vmul.f32 0.25, %v11816_v41 }
 0x22d   : > { %v11874_v19 = vpop.f32.mrf.mxu1  ;;  %v10657_v0 = vpop.eup %10656  ;;  %10674 = vpow2.f32 %v1826_v1  ;;  %v11988_v18 = vadd.f32 %v1390_v8, %v1372_v60 }
 0x22e   : > { %14828 = vst [vmem:[#allocation24_spill] sm:$0xff] %v11892_v21  ;;  %v1786_v56 = vsub.f32 0.0, %v11877_v58  ;;  %10676 = vrcp.f32 %v1870_v9  ;;  %v10659_v53 = vpop.eup %10658  ;;  %v11939_v6 = vadd.f32 %v1389_v48, %v1369_v55  ;;  %v1873_v1 = vadd.f32 1.0, %v10657_v0 }
 0x22f   : > { %9926 = vmatmul.mubr.msk.f32.gmra.mxu1 %vm14692_vm2, %v11851_v20  ;;  %v11888_v59 = vpop.f32.mrf.mxu1  ;;  %10678 = vpow2.f32 %v1828_v36  ;;  %v1789_v9 = vsub.f32 0.0, %v11923_v37 }
 0x230   : > { %9928 = vmatprep.mubr.msk.f32.mxu1 %vm14692_vm2, %v11861_v43  ;;  %v11909_v43 = vadd.f32 %v1368_v15, %v11883_v31  ;;  %v1872_v15 = vadd.f32 1.0, %v10655_v63  ;;  %v1832_v4 = vmul.f32 1.442695, %v1786_v56  ;;  %v11936_v63 = vadd.f32 %v11691_v24, %v11847_v5  ;;  %14832 = vst [vmem:[#allocation28_spill] sm:$0xff] %v11939_v6  ;;  %v10661_v5 = vpop.eup %10660 }
 0x231   : > { %v11901_v20 = vpop.f32.mrf.mxu1  ;;  %10680 = vpow2.f32 %v1830_v61  ;;  %v11946_v56 = vadd.f32 %v11831_v52, %v11691_v24  ;;  %v10663_v55 = vpop.eup %10662  ;;  %v11958_v52 = vadd.f32 %v11691_v24, %v11874_v19  ;;  %v11968_v19 = vadd.f32 %v11858_v39, %v11691_v24 }
 0x232   : > { %14829 = vst [vmem:[#allocation25_spill] sm:$0xff] %v11909_v43  ;;  %10682 = vrcp.f32 %v1872_v15  ;;  %v1790_v61 = vsub.f32 0.0, %v11936_v63  ;;  %v10665_v0 = vpop.eup %10664  ;;  %v11961_v15 = vadd.f32 %v1371_v44, %v11866_v50  ;;  %v11971_v50 = vadd.f32 %v1372_v60, %v11883_v31 }
 0x233   : > { %9929 = vmatmul.mubr.msk.f32.gmra.mxu1 %vm14692_vm2, %v11880_v14  ;;  %v11913_v10 = vpop.f32.mrf.mxu1  ;;  %v1788_v14 = vsub.f32 0.0, %v11905_v16  ;;  %10684 = vpow2.f32 %v1832_v4  ;;  %v11982_v39 = vadd.f32 %v11691_v24, %v11901_v20 }
 0x234   : > { %9931 = vmatprep.mubr.msk.f32.mxu1 %vm14692_vm2, %v11892_v21  ;;  %v11929_v21 = vadd.f32 %v1370_v29, %v11826_v45  ;;  %v1834_v45 = vmul.f32 1.442695, %v1787_v22  ;;  %10686 = vrcp.f32 %v1873_v1  ;;  %v1875_v22 = vadd.f32 1.0, %v10661_v5 }
 0x235   : > { %v11925_v62 = vpop.f32.mrf.mxu1  ;;  %v1836_v41 = vmul.f32 1.442695, %v1788_v14  ;;  %v1791_v14 = vsub.f32 0.0, %v11946_v56  ;;  %v1840_v1 = vmul.f32 1.442695, %v1790_v61  ;;  %v1876_v5 = vadd.f32 1.0, %v10665_v0 }
 0x236   : > { %14831 = vst [vmem:[#allocation27_spill] sm:$0xff] %v11929_v21  ;;  %10688 = vpow2.f32 %v1834_v45  ;;  %v1792_v45 = vsub.f32 0.0, %v11958_v52  ;;  %v11994_v0 = vadd.f32 %v11888_v59, %v11691_v24  ;;  %v12001_v60 = vadd.f32 %v11691_v24, %v11925_v62 }
 0x237   : > { %9932 = vmatmul.mubr.msk.f32.gmra.mxu1 %vm14692_vm2, %v11909_v43  ;;  %v11948_v36 = vpop.f32.mrf.mxu1  ;;  %v1874_v43 = vadd.f32 1.0, %v10659_v53  ;;  %v1838_v53 = vmul.f32 1.442695, %v1789_v9  ;;  %10690 = vpow2.f32 %v1836_v41  ;;  %v1842_v41 = vmul.f32 1.442695, %v1791_v14 }
 0x238   : > { %9934 = vmatprep.mubr.msk.f32.mxu1 %vm14692_vm2, %v11916_v17  ;;  %v11951_v17 = vadd.f32 %v1390_v8, %v1370_v29  ;;  %v10667_v29 = vpop.eup %10666  ;;  %v1844_v20 = vmul.f32 1.442695, %v1792_v45  ;;  %v1794_v14 = vsub.f32 0.0, %v11982_v39  ;;  %v1965_v59 = vmul.f32 %v10663_v55, %v11704_v32 }
 0x239   : > { %v1743_v11 = vpop.f32.mrf.mxu1  ;;  %v10669_v4 = vpop.eup %10668  ;;  %10692 = vrcp.f32 %v1874_v43  ;;  %v1795_v62 = vsub.f32 0.0, %v11994_v0 }
 0x23a   : > { %14833 = vst [vmem:[#allocation29_spill] sm:$0xff] %v11951_v17  ;;  %v10671_v9 = vpop.eup %10670  ;;  %10694 = vpow2.f32 %v1838_v53  ;;  %v1964_v61 = vmul.f32 %v10669_v4, %v11715_v38  ;;  %v1848_v32 = vmul.f32 1.442695, %v1794_v14 }
 0x23b   : > { %9935 = vmatmul.mubr.msk.f32.gmra.mxu1 %vm14692_vm2, %v11929_v21  ;;  %v10673_v31 = vpop.eup %10672  ;;  %v11984_v21 = vpop.f32.mrf.mxu1  ;;  %10696 = vrcp.f32 %v1875_v22 }
 0x23c   : > { %9937 = vmatprep.mubr.msk.f32.mxu1 %vm14692_vm2, %v11939_v6  ;;  %v11976_v6 = vadd.f32 %v1389_v48, %v1371_v44  ;;  %v10675_v43 = vpop.eup %10674  ;;  %v1793_v48 = vsub.f32 0.0, %v11968_v19  ;;  %10698 = vpow2.f32 %v1840_v1  ;;  %v1878_v38 = vadd.f32 1.0, %v10673_v31 }
 0x23d   : > { %v10677_v44 = vpop.eup %10676  ;;  %10700 = vrcp.f32 %v1876_v5  ;;  %v1753_v22 = vpop.f32.mrf.mxu1  ;;  %v12010_v31 = vadd.f32 %v11913_v10, %v11691_v24  ;;  %v12020_v10 = vadd.f32 %v11948_v36, %v11691_v24 }
 0x23e   : > { %14834 = vst [vmem:[#allocation30_spill] sm:$0xff] %v11976_v6  ;;  %v10679_v53 = vpop.eup %10678  ;;  %10702 = vpow2.f32 %v1842_v41  ;;  %v1966_v1 = vmul.f32 %v10677_v44, %v11736_v49  ;;  %v1846_v45 = vmul.f32 1.442695, %v1793_v48  ;;  %v1796_v49 = vsub.f32 0.0, %v12001_v60 }
 0x23f   : > { %9938 = vmatmul.mubr.msk.f32.gmra.mxu1 %vm14692_vm2, %v11951_v17  ;;  %v1877_v17 = vadd.f32 1.0, %v10667_v29  ;;  %v10681_v8 = vpop.eup %10680  ;;  %v1879_v29 = vadd.f32 1.0, %v10675_v43  ;;  %v1880_v5 = vadd.f32 1.0, %v10679_v53  ;;  %v9889_v43 = vpop.f32.mrf.mxu1  ;;  %v1967_v44 = vmul.f32 %v10671_v9, %v11721_v42 }
 0x240   : > { %9940 = vmatprep.mubr.msk.f32.mxu1 %vm14692_vm2, %v11961_v15  ;;  %v10683_v4 = vpop.eup %10682  ;;  %v1881_v41 = vadd.f32 1.0, %v10681_v8  ;;  %v1852_v42 = vmul.f32 1.442695, %v1796_v49  ;;  %v12028_v9 = vadd.f32 %v11691_v24, %v1753_v22 }
 0x241   : > { %10704 = vrcp.f32 %v1877_v17  ;;  %v12015_v17 = vadd.f32 %v11691_v24, %v1743_v11  ;;  %v1968_v53 = vmul.f32 %v10683_v4, %v11752_v57  ;;  %v1850_v11 = vmul.f32 1.442695, %v1795_v62  ;;  %v1763_v8 = vpop.f32.mrf.mxu1 }
 0x242   : > { %10706 = vpow2.f32 %v1844_v20  ;;  %v1799_v4 = vsub.f32 0.0, %v12020_v10  ;;  %v1800_v49 = vsub.f32 0.0, %v12028_v9 }
 0x243   : > { %9941 = vmatmul.mubr.msk.f32.gmra.mxu1 %vm14692_vm2, %v11971_v50  ;;  %10708 = vrcp.f32 %v1878_v38  ;;  %v1797_v38 = vsub.f32 0.0, %v12010_v31 }
 0x244   : > { %9943 = vmatprep.mubr.msk.f32.mxu1 %vm14692_vm2, %v11976_v6  ;;  %v10685_v6 = vpop.eup %10684  ;;  %10710 = vrcp.f32 %v1879_v29 }
 0x245   : > { %v10687_v55 = vpop.eup %10686  ;;  %v1882_v20 = vadd.f32 1.0, %v10685_v6  ;;  %10712 = vpow2.f32 %v1846_v45  ;;  %v1798_v6 = vsub.f32 0.0, %v12015_v17  ;;  %v1854_v22 = vmul.f32 1.442695, %v1797_v38 }
 0x246   : > { %v10689_v48 = vpop.eup %10688  ;;  %10714 = vrcp.f32 %v1880_v5  ;;  %v1969_v45 = vmul.f32 %v10687_v55, %v11771_v2 }
 0x247   : > { %9944 = vmatmul.mubr.msk.f32.gmra.mxu1 %vm14692_vm2, %v11988_v18  ;;  %10716 = vpow2.f32 %v1848_v32  ;;  %v1883_v36 = vadd.f32 1.0, %v10689_v48  ;;  %v1856_v32 = vmul.f32 1.442695, %v1798_v6 }
 0x248   : > { %9998 = vmatprep.mubr.msk.f32.mxu1 %vm736_vm1, %v1964_v61  ;;  %v10691_v61 = vpop.eup %10690  ;;  %10718 = vrcp.f32 %v1881_v41  ;;  %v12041_v41 = vadd.f32 %v11691_v24, %v1763_v8 }
 0x249   : > { %v10693_v14 = vpop.eup %10692  ;;  %10720 = vrcp.f32 %v1882_v20  ;;  %v1884_v29 = vadd.f32 1.0, %v10691_v61 }
 0x24a   : > { %v10695_v57 = vpop.eup %10694  ;;  %v1970_v5 = vmul.f32 %v10693_v14, %v11776_v7  ;;  %10722 = vpow2.f32 %v1850_v11  ;;  %v1858_v7 = vmul.f32 1.442695, %v1799_v4  ;;  %v1860_v14 = vmul.f32 1.442695, %v1800_v49 }
 0x24b   : > { %9999 = vmatmul.mubr.msk.f32.vlgmr.msra.gmra.mxu1 %vm736_vm1, %v1965_v59  ;;  %v12033_v59 = vadd.f32 %v11984_v21, %v11691_v24  ;;  %10724 = vpow2.f32 %v1852_v42  ;;  %v1885_v48 = vadd.f32 1.0, %v10695_v57  ;;  %v1802_v42 = vsub.f32 0.0, %v12041_v41 }
 0x24c   : > { %10001 = vmatprep.mubr.msk.f32.mxu1 %vm736_vm1, %v1966_v1  ;;  %v10697_v1 = vpop.eup %10696  ;;  %10726 = vrcp.f32 %v1883_v36 }
 0x24d   : > { %v10699_v62 = vpop.eup %10698  ;;  %10728 = vrcp.f32 %v1884_v29  ;;  %v1801_v55 = vsub.f32 0.0, %v12033_v59  ;;  %v1971_v20 = vmul.f32 %v10697_v1, %v11796_v23  ;;  %v1864_v1 = vmul.f32 1.442695, %v1802_v42 }
 0x24e   : > { %v10701_v21 = vpop.eup %10700  ;;  %v1886_v61 = vadd.f32 1.0, %v10699_v62  ;;  %10730 = vpow2.f32 %v1854_v22 }
 0x24f   : > { %10002 = vmatmul.mubr.msk.f32.gmra.mxu1 %vm736_vm1, %v1967_v44  ;;  %v10703_v2 = vpop.eup %10702  ;;  %v1972_v38 = vmul.f32 %v10701_v21, %v11806_v33  ;;  %10732 = vpow2.f32 %v1856_v32  ;;  %v1862_v8 = vmul.f32 1.442695, %v1801_v55 }
 0x250   : > { %10004 = vmatprep.mubr.msk.f32.mxu1 %vm736_vm1, %v1968_v53  ;;  %v10705_v44 = vpop.eup %10704  ;;  %v12047_v53 = vadd.f32 %v9889_v43, %v11691_v24  ;;  %10734 = vrcp.f32 %v1885_v48  ;;  %v1887_v36 = vadd.f32 1.0, %v10703_v2 }
 0x251   : > { %v10707_v11 = vpop.eup %10706  ;;  %10736 = vpow2.f32 %v1858_v7  ;;  %v1973_v29 = vmul.f32 %v10705_v44, %v11821_v46 }
 0x252   : > { %v10709_v6 = vpop.eup %10708  ;;  %10738 = vrcp.f32 %v1886_v61  ;;  %v1888_v24 = vadd.f32 1.0, %v10707_v11  ;;  %v1803_v33 = vsub.f32 0.0, %v12047_v53 }
 0x253   : > { %10005 = vmatmul.mubr.msk.f32.gmra.mxu1 %vm736_vm1, %v1969_v45  ;;  %v10711_v23 = vpop.eup %10710  ;;  %v1974_v4 = vmul.f32 %v10709_v6, %v11840_v25  ;;  %10740 = vpow2.f32 %v1860_v14 }
 0x254   : > { %10007 = vmatprep.mubr.msk.f32.mxu1 %vm736_vm1, %v1970_v5  ;;  %v10713_v57 = vpop.eup %10712  ;;  %10742 = vrcp.f32 %v1887_v36  ;;  %v1975_v46 = vmul.f32 %v10711_v23, %v11845_v3  ;;  %v1866_v32 = vmul.f32 1.442695, %v1803_v33 }
 0x255   : > { %v10715_v43 = vpop.eup %10714  ;;  %v1889_v22 = vadd.f32 1.0, %v10713_v57  ;;  %10744 = vpow2.f32 %v1862_v8 }
 0x256   : > { %v10717_v45 = vpop.eup %10716  ;;  %10746 = vrcp.f32 %v1888_v24  ;;  %v1976_v21 = vmul.f32 %v10715_v43, %v11856_v27 }
 0x257   : > { %10008 = vmatmul.mubr.msk.f32.gmra.mxu1 %vm736_vm1, %v1971_v20  ;;  %v10719_v5 = vpop.eup %10718  ;;  %v1890_v25 = vadd.f32 1.0, %v10717_v45  ;;  %10748 = vpow2.f32 %v1864_v1 }
 0x258   : > { %10010 = vmatprep.mubr.msk.f32.mxu1 %vm736_vm1, %v1972_v38  ;;  %v10721_v62 = vpop.eup %10720  ;;  %10750 = vrcp.f32 %v1889_v22  ;;  %v1977_v55 = vmul.f32 %v10719_v5, %v11871_v34 }
 0x259   : > { %v10723_v49 = vpop.eup %10722  ;;  %10752 = vpow2.f32 %v1866_v32  ;;  %v1978_v20 = vmul.f32 %v10721_v62, %v11877_v58 }
 0x25a   : > { %v10725_v48 = vpop.eup %10724  ;;  %v1891_v44 = vadd.f32 1.0, %v10723_v49  ;;  %10754 = vrcp.f32 %v1890_v25 }
 0x25b   : > { %10011 = vmatmul.mubr.msk.f32.gmra.mxu1 %vm736_vm1, %v1973_v29  ;;  %v10727_v2 = vpop.eup %10726  ;;  %v1892_v61 = vadd.f32 1.0, %v10725_v48 }
 0x25c   : > { %10013 = vmatprep.mubr.msk.f32.mxu1 %vm736_vm1, %v1974_v4  ;;  %v10729_v7 = vpop.eup %10728  ;;  %v1979_v14 = vmul.f32 %v10727_v2, %v11899_v51  ;;  %10756 = vrcp.f32 %v1891_v44 }
 0x25d   : > { %v10731_v3 = vpop.eup %10730  ;;  %v1980_v6 = vmul.f32 %v10729_v7, %v11905_v16  ;;  %10758 = vrcp.f32 %v1892_v61 }
 0x25e   : > { %v10733_v27 = vpop.eup %10732  ;;  %v1893_v42 = vadd.f32 1.0, %v10731_v3 }
 0x25f   : > { %10014 = vmatmul.mubr.msk.f32.gmra.mxu1 %vm736_vm1, %v1975_v46  ;;  %v10735_v11 = vpop.eup %10734  ;;  %v1894_v36 = vadd.f32 1.0, %v10733_v27 }
 0x260   : > { %10016 = vmatprep.mubr.msk.f32.mxu1 %vm736_vm1, %v1976_v21  ;;  %v10737_v38 = vpop.eup %10736  ;;  %v1981_v57 = vmul.f32 %v10735_v11, %v11923_v37  ;;  %10760 = vrcp.f32 %v1893_v42 }
 0x261   : > { %v10739_v34 = vpop.eup %10738  ;;  %v1895_v29 = vadd.f32 1.0, %v10737_v38  ;;  %10762 = vrcp.f32 %v1894_v36 }
 0x262   : > { %v10741_v58 = vpop.eup %10740  ;;  %v1982_v24 = vmul.f32 %v10739_v34, %v11936_v63 }
 0x263   : > { %10017 = vmatmul.mubr.msk.f32.gmra.mxu1 %vm736_vm1, %v1977_v55  ;;  %v10743_v23 = vpop.eup %10742  ;;  %v1896_v33 = vadd.f32 1.0, %v10741_v58  ;;  %10764 = vrcp.f32 %v1895_v29 }
 0x264   : > { %10019 = vmatprep.mubr.msk.f32.mxu1 %vm736_vm1, %v1978_v20  ;;  %v10745_v8 = vpop.eup %10744  ;;  %v1983_v4 = vmul.f32 %v10743_v23, %v11946_v56 }
 0x265   : > { %v10747_v51 = vpop.eup %10746  ;;  %v1897_v1 = vadd.f32 1.0, %v10745_v8  ;;  %10766 = vrcp.f32 %v1896_v33 }
 0x266   : > { %v10749_v16 = vpop.eup %10748  ;;  %v1984_v45 = vmul.f32 %v10747_v51, %v11958_v52 }
 0x267   : > { %10020 = vmatmul.mubr.msk.f32.gmra.mxu1 %vm736_vm1, %v1979_v14  ;;  %v10751_v43 = vpop.eup %10750  ;;  %v1898_v5 = vadd.f32 1.0, %v10749_v16  ;;  %10768 = vrcp.f32 %v1897_v1 }
 0x268   : > { %10022 = vmatprep.mubr.msk.f32.mxu1 %vm736_vm1, %v1980_v6  ;;  %v10753_v37 = vpop.eup %10752  ;;  %v1985_v22 = vmul.f32 %v10751_v43, %v11968_v19  ;;  %v2553_v19 = vld [vmem:[%s14523_s10] sm:$0xff] }
 0x269   : > { %v10755_v63 = vpop.eup %10754  ;;  %v1899_v62 = vadd.f32 1.0, %v10753_v37  ;;  %10770 = vrcp.f32 %v1898_v5  ;;  %9946 = vmatprep.subr.mxu0 %v2553_v19 }
 0x26a   : > { %v10757_v46 = vpop.eup %10756  ;;  %v1986_v56 = vmul.f32 %v10755_v63, %v11982_v39  ;;  %9947 = vmatpush3.msra.mxu0 %v2553_v19 }
 0x26b   : > { %10023 = vmatmul.mubr.msk.f32.gmra.mxu1 %vm736_vm1, %v1981_v57  ;;  %v10759_v32 = vpop.eup %10758  ;;  %v1987_v52 = vmul.f32 %v10757_v46, %v11994_v0  ;;  %10772 = vrcp.f32 %v1899_v62 }
 0x26c   : > { %10025 = vmatprep.mubr.msk.f32.mxu1 %vm736_vm1, %v1982_v24  ;;  %v1988_v21 = vmul.f32 %v10759_v32, %v12001_v60 }
 0x26d   : > { %v10761_v49 = vpop.eup %10760 }
 0x26e   : > { %v10763_v39 = vpop.eup %10762  ;;  %v1989_v25 = vmul.f32 %v10761_v49, %v12010_v31 }
 0x26f   : > { %10026 = vmatmul.mubr.msk.f32.gmra.mxu1 %vm736_vm1, %v1983_v4  ;;  %v1990_v48 = vmul.f32 %v10763_v39, %v12015_v17 }
 0x270   : > { %10028 = vmatprep.mubr.msk.f32.mxu1 %vm736_vm1, %v1984_v45  ;;  %v10765_v0 = vpop.eup %10764 }
 0x271   : > { %v1991_v7 = vmul.f32 %v10765_v0, %v12020_v10  ;;  %v12107_v10 = vld [vmem:[%s14835_s26] ss:$0 sm:$0xff] }
 0x272   : > { %v10767_v2 = vpop.eup %10766 }
 0x273   : > { %10029 = vmatmul.mubr.msk.f32.gmra.mxu1 %vm736_vm1, %v1985_v22  ;;  %v1992_v55 = vmul.f32 %v10767_v2, %v12028_v9 }
 0x274   : > { %10031 = vmatprep.mubr.msk.f32.mxu1 %vm736_vm1, %v1986_v56  ;;  %v10769_v60 = vpop.eup %10768 }
 0x275   : > { %v1993_v31 = vmul.f32 %v10769_v60, %v12033_v59 }
 0x276   : > { %v10771_v44 = vpop.eup %10770 }
 0x277   : > { %10032 = vmatmul.mubr.msk.f32.gmra.mxu1 %vm736_vm1, %v1987_v52  ;;  %v1994_v17 = vmul.f32 %v10771_v44, %v12041_v41 }
 0x278   : > { %10034 = vmatprep.mubr.msk.f32.mxu1 %vm736_vm1, %v1988_v21  ;;  %v10773_v3 = vpop.eup %10772 }
 0x279   : > { %v1995_v20 = vmul.f32 %v10773_v3, %v12047_v53 }
 0x27b   : > { %10035 = vmatmul.mubr.msk.f32.gmra.mxu1 %vm736_vm1, %v1989_v25 }
 0x27c   : > { %10037 = vmatprep.mubr.msk.f32.mxu1 %vm736_vm1, %v1990_v48 }
 0x27f   : > { %10038 = vmatmul.mubr.msk.f32.gmra.mxu1 %vm736_vm1, %v1991_v7 }
 0x280   : > { %10040 = vmatprep.mubr.msk.f32.mxu1 %vm736_vm1, %v1992_v55 }
 0x283   : > { %10041 = vmatmul.mubr.msk.f32.gmra.mxu1 %vm736_vm1, %v1993_v31 }
 0x284   : > { %10043 = vmatprep.mubr.msk.f32.mxu1 %vm736_vm1, %v1994_v17 }
 0x287   : > { %10044 = vmatmul.mubr.msk.f32.gmra.mxu1 %vm736_vm1, %v1995_v20 }
 0x2cb   : > { %v9900_v9 = vpop.f32.mrf.mxu1 }
 0x2cc   : > { %v12110_v59 = vadd.f32 %v9900_v9, %v12107_v10 }
 0x2cd   : > { %v2169_v41 = vpop.f32.mrf.mxu1 }
 0x2ce   : > { %v2329_v61 = vsub.f32 0.0, %v12110_v59  ;;  %v12114_v53 = vadd.f32 %v12107_v10, %v2169_v41 }
 0x2cf   : > { %v9903_v27 = vpop.f32.mrf.mxu1 }
 0x2d0   : > { %v2362_v11 = vmul.f32 1.442695, %v2329_v61  ;;  %v2328_v38 = vsub.f32 0.0, %v12114_v53  ;;  %v12118_v14 = vadd.f32 %v9903_v27, %v12107_v10 }
 0x2d1   : > { %v2179_v42 = vpop.f32.mrf.mxu1 }
 0x2d2   : > { %10774 = vpow2.f32 %v2362_v11  ;;  %v2360_v34 = vmul.f32 1.442695, %v2328_v38  ;;  %v2331_v6 = vsub.f32 0.0, %v12118_v14  ;;  %v12122_v36 = vadd.f32 %v12107_v10, %v2179_v42 }
 0x2d3   : > { %v9906_v58 = vpop.f32.mrf.mxu1 }
 0x2d4   : > { %10776 = vpow2.f32 %v2360_v34  ;;  %v2366_v23 = vmul.f32 1.442695, %v2331_v6  ;;  %v2330_v8 = vsub.f32 0.0, %v12122_v36  ;;  %v12126_v57 = vadd.f32 %v9906_v58, %v12107_v10 }
 0x2d5   : > { %v2189_v29 = vpop.f32.mrf.mxu1 }
 0x2d6   : > { %10778 = vpow2.f32 %v2366_v23  ;;  %v2364_v51 = vmul.f32 1.442695, %v2330_v8  ;;  %v2333_v24 = vsub.f32 0.0, %v12126_v57  ;;  %v12130_v33 = vadd.f32 %v12107_v10, %v2189_v29 }
 0x2d7   : > { %v9909_v16 = vpop.f32.mrf.mxu1 }
 0x2d8   : > { %10780 = vpow2.f32 %v2364_v51  ;;  %v2370_v43 = vmul.f32 1.442695, %v2333_v24  ;;  %v2332_v4 = vsub.f32 0.0, %v12130_v33  ;;  %v12134_v1 = vadd.f32 %v9909_v16, %v12107_v10 }
 0x2d9   : > { %v2199_v37 = vpop.f32.mrf.mxu1 }
 0x2da   : > { %10782 = vpow2.f32 %v2370_v43  ;;  %v2368_v45 = vmul.f32 1.442695, %v2332_v4  ;;  %v2335_v5 = vsub.f32 0.0, %v12134_v1  ;;  %v12138_v63 = vadd.f32 %v12107_v10, %v2199_v37 }
 0x2db   : > { %v9912_v22 = vpop.f32.mrf.mxu1 }
 0x2dc   : > { %10784 = vpow2.f32 %v2368_v45  ;;  %v2374_v62 = vmul.f32 1.442695, %v2335_v5  ;;  %v2334_v46 = vsub.f32 0.0, %v12138_v63  ;;  %v12142_v56 = vadd.f32 %v9912_v22, %v12107_v10 }
 0x2dd   : > { %v2209_v32 = vpop.f32.mrf.mxu1 }
 0x2de   : > { %10786 = vpow2.f32 %v2374_v62  ;;  %v2372_v52 = vmul.f32 1.442695, %v2334_v46  ;;  %v2337_v19 = vsub.f32 0.0, %v12142_v56  ;;  %v12146_v49 = vadd.f32 %v12107_v10, %v2209_v32 }
 0x2df   : > { %v10775_v21 = vpop.eup %10774  ;;  %v9915_v39 = vpop.f32.mrf.mxu1 }
 0x2e0   : > { %v2425_v25 = vadd.f32 1.0, %v10775_v21  ;;  %10788 = vpow2.f32 %v2372_v52  ;;  %v2378_v0 = vmul.f32 1.442695, %v2337_v19  ;;  %v2336_v48 = vsub.f32 0.0, %v12146_v49 }
 0x2e1   : > { %v10777_v2 = vpop.eup %10776  ;;  %v12150_v7 = vadd.f32 %v9915_v39, %v12107_v10  ;;  %v2219_v60 = vpop.f32.mrf.mxu1 }
 0x2e2   : > { %10790 = vrcp.f32 %v2425_v25  ;;  %v2424_v55 = vadd.f32 1.0, %v10777_v2  ;;  %v2376_v44 = vmul.f32 1.442695, %v2336_v48  ;;  %v12153_v31 = vadd.f32 %v12107_v10, %v2219_v60 }
 0x2e3   : > { %v10779_v3 = vpop.eup %10778  ;;  %10792 = vpow2.f32 %v2378_v0  ;;  %v2339_v17 = vsub.f32 0.0, %v12150_v7  ;;  %v9918_v20 = vpop.f32.mrf.mxu1 }
 0x2e4   : > { %10794 = vrcp.f32 %v2424_v55  ;;  %v2427_v9 = vadd.f32 1.0, %v10779_v3  ;;  %v2338_v41 = vsub.f32 0.0, %v12153_v31  ;;  %v12158_v61 = vadd.f32 %v9918_v20, %v12107_v10 }
 0x2e5   : > { %v10781_v27 = vpop.eup %10780  ;;  %10796 = vpow2.f32 %v2376_v44  ;;  %v2382_v11 = vmul.f32 1.442695, %v2339_v17  ;;  %v2229_v38 = vpop.f32.mrf.mxu1 }
 0x2e6   : > { %10798 = vrcp.f32 %v2427_v9  ;;  %v2426_v42 = vadd.f32 1.0, %v10781_v27  ;;  %v2380_v34 = vmul.f32 1.442695, %v2338_v41  ;;  %v2341_v6 = vsub.f32 0.0, %v12158_v61 }
 0x2e7   : > { %v10783_v58 = vpop.eup %10782  ;;  %10800 = vpow2.f32 %v2382_v11  ;;  %v12162_v23 = vadd.f32 %v12107_v10, %v2229_v38  ;;  %v9921_v8 = vpop.f32.mrf.mxu1 }
 0x2e8   : > { %10802 = vrcp.f32 %v2426_v42  ;;  %v2429_v29 = vadd.f32 1.0, %v10783_v58  ;;  %v2386_v51 = vmul.f32 1.442695, %v2341_v6  ;;  %v12165_v24 = vadd.f32 %v9921_v8, %v12107_v10 }
 0x2e9   : > { %v10785_v16 = vpop.eup %10784  ;;  %10804 = vpow2.f32 %v2380_v34  ;;  %v2340_v43 = vsub.f32 0.0, %v12162_v23  ;;  %v2239_v4 = vpop.f32.mrf.mxu1 }
 0x2ea   : > { %10806 = vrcp.f32 %v2429_v29  ;;  %v2428_v37 = vadd.f32 1.0, %v10785_v16  ;;  %v2343_v45 = vsub.f32 0.0, %v12165_v24  ;;  %v12170_v5 = vadd.f32 %v12107_v10, %v2239_v4 }
 0x2eb   : > { %v10787_v22 = vpop.eup %10786  ;;  %10808 = vpow2.f32 %v2386_v51  ;;  %v2384_v62 = vmul.f32 1.442695, %v2340_v43  ;;  %v9924_v46 = vpop.f32.mrf.mxu1 }
 0x2ec   : > { %10810 = vrcp.f32 %v2428_v37  ;;  %v2431_v32 = vadd.f32 1.0, %v10787_v22  ;;  %v2390_v52 = vmul.f32 1.442695, %v2343_v45  ;;  %v2342_v19 = vsub.f32 0.0, %v12170_v5 }
 0x2ed   : > { %v10789_v21 = vpop.eup %10788  ;;  %10812 = vpow2.f32 %v2384_v62  ;;  %v12174_v39 = vadd.f32 %v9924_v46, %v12107_v10  ;;  %v2249_v25 = vpop.f32.mrf.mxu1 }
 0x2ee   : > { %10814 = vrcp.f32 %v2431_v32  ;;  %v2430_v0 = vadd.f32 1.0, %v10789_v21  ;;  %v2388_v48 = vmul.f32 1.442695, %v2342_v19  ;;  %v12177_v2 = vadd.f32 %v12107_v10, %v2249_v25 }
 0x2ef   : > { %v10791_v60 = vpop.eup %10790  ;;  %10816 = vpow2.f32 %v2390_v52  ;;  %v2345_v55 = vsub.f32 0.0, %v12174_v39  ;;  %v9927_v44 = vpop.f32.mrf.mxu1 }
 0x2f0   : > { %v10793_v3 = vpop.eup %10792  ;;  %10818 = vrcp.f32 %v2430_v0  ;;  %v2344_v17 = vsub.f32 0.0, %v12177_v2  ;;  %v12182_v20 = vadd.f32 %v9927_v44, %v12107_v10  ;;  %v2521_v29 = vmul.f32 %v10791_v60, %v12110_v59 }
 0x2f1   : > { %v10795_v9 = vpop.eup %10794  ;;  %v2433_v41 = vadd.f32 1.0, %v10793_v3  ;;  %10820 = vpow2.f32 %v2388_v48  ;;  %v2394_v27 = vmul.f32 1.442695, %v2345_v55  ;;  %v2259_v11 = vpop.f32.mrf.mxu1 }
 0x2f2   : > { %v10797_v38 = vpop.eup %10796  ;;  %v2520_v42 = vmul.f32 %v10795_v9, %v12114_v53  ;;  %v2392_v34 = vmul.f32 1.442695, %v2344_v17  ;;  %v2347_v6 = vsub.f32 0.0, %v12182_v20  ;;  %v12187_v58 = vadd.f32 %v12107_v10, %v2259_v11 }
 0x2f3   : > { %v10799_v8 = vpop.eup %10798  ;;  %10822 = vrcp.f32 %v2433_v41  ;;  %v2432_v51 = vadd.f32 1.0, %v10797_v38  ;;  %v9930_v16 = vpop.f32.mrf.mxu1 }
 0x2f4   : > { %v10801_v43 = vpop.eup %10800  ;;  %10824 = vpow2.f32 %v2394_v27  ;;  %v2398_v4 = vmul.f32 1.442695, %v2347_v6  ;;  %v2346_v37 = vsub.f32 0.0, %v12187_v58  ;;  %9948 = vmatprep.mubr.msk.f32.mxu0 %vm736_vm1, %v2520_v42  ;;  %v12193_v22 = vadd.f32 %v9930_v16, %v12107_v10 }
 0x2f5   : > { %v10803_v53 = vpop.eup %10802  ;;  %10826 = vrcp.f32 %v2432_v51  ;;  %v2435_v45 = vadd.f32 1.0, %v10801_v43  ;;  %v2269_v62 = vpop.f32.mrf.mxu1  ;;  %9949 = vmatmul.mubr.msk.f32.vlgmr.msra.gmra.mxu0 %vm736_vm1, %v2521_v29  ;;  %v2523_v21 = vmul.f32 %v10799_v8, %v12118_v14 }
 0x2f6   : > { %v10805_v59 = vpop.eup %10804  ;;  %v2522_v46 = vmul.f32 %v10803_v53, %v12122_v36  ;;  %10828 = vpow2.f32 %v2392_v34  ;;  %v2396_v32 = vmul.f32 1.442695, %v2346_v37  ;;  %v12198_v52 = vadd.f32 %v12107_v10, %v2269_v62 }
 0x2f7   : > { %v10807_v19 = vpop.eup %10806  ;;  %10830 = vrcp.f32 %v2435_v45  ;;  %v2434_v25 = vadd.f32 1.0, %v10805_v59  ;;  %v2349_v0 = vsub.f32 0.0, %v12193_v22  ;;  %v9933_v48 = vpop.f32.mrf.mxu1 }
 0x2f8   : > { %v10809_v60 = vpop.eup %10808  ;;  %10832 = vpow2.f32 %v2398_v4  ;;  %v2348_v55 = vsub.f32 0.0, %v12198_v52  ;;  %v12204_v44 = vadd.f32 %v9933_v48, %v12107_v10  ;;  %9951 = vmatprep.mubr.msk.f32.mxu0 %vm736_vm1, %v2522_v46  ;;  %v2525_v42 = vmul.f32 %v10807_v19, %v12126_v57 }
 0x2f9   : > { %v10811_v36 = vpop.eup %10810  ;;  %10834 = vrcp.f32 %v2434_v25  ;;  %v2437_v3 = vadd.f32 1.0, %v10809_v60  ;;  %v2402_v17 = vmul.f32 1.442695, %v2349_v0  ;;  %v2279_v9 = vpop.f32.mrf.mxu1  ;;  %9952 = vmatmul.mubr.msk.f32.gmra.mxu0 %vm736_vm1, %v2523_v21 }
 0x2fa   : > { %v10813_v14 = vpop.eup %10812  ;;  %v2524_v41 = vmul.f32 %v10811_v36, %v12130_v33  ;;  %10836 = vpow2.f32 %v2396_v32  ;;  %v2400_v27 = vmul.f32 1.442695, %v2348_v55  ;;  %v2351_v11 = vsub.f32 0.0, %v12204_v44 }
 0x2fb   : > { %v10815_v38 = vpop.eup %10814  ;;  %10838 = vrcp.f32 %v2437_v3  ;;  %v2436_v34 = vadd.f32 1.0, %v10813_v14  ;;  %v12212_v6 = vadd.f32 %v12107_v10, %v2279_v9  ;;  %v9936_v8 = vpop.f32.mrf.mxu1 }
 0x2fc   : > { %v10817_v29 = vpop.eup %10816  ;;  %10840 = vpow2.f32 %v2402_v17  ;;  %v2406_v51 = vmul.f32 1.442695, %v2351_v11  ;;  %v12215_v16 = vadd.f32 %v9936_v8, %v12107_v10  ;;  %9954 = vmatprep.mubr.msk.f32.mxu0 %vm736_vm1, %v2524_v41  ;;  %v2527_v59 = vmul.f32 %v10815_v38, %v12134_v1 }
 0x2fd   : > { %v10819_v33 = vpop.eup %10818  ;;  %10842 = vrcp.f32 %v2436_v34  ;;  %v2439_v43 = vadd.f32 1.0, %v10817_v29  ;;  %v2350_v4 = vsub.f32 0.0, %v12212_v6  ;;  %v2289_v57 = vpop.f32.mrf.mxu1  ;;  %9955 = vmatmul.mubr.msk.f32.gmra.mxu0 %vm736_vm1, %v2525_v42 }
 0x2fe   : > { %v10821_v37 = vpop.eup %10820  ;;  %v2526_v53 = vmul.f32 %v10819_v33, %v12138_v63  ;;  %10844 = vpow2.f32 %v2400_v27  ;;  %v2353_v45 = vsub.f32 0.0, %v12215_v16  ;;  %v12223_v62 = vadd.f32 %v12107_v10, %v2289_v57 }
 0x2ff   : > { %10846 = vrcp.f32 %v2439_v43  ;;  %v2438_v46 = vadd.f32 1.0, %v10821_v37  ;;  %v2404_v32 = vmul.f32 1.442695, %v2350_v4  ;;  %v9939_v19 = vpop.f32.mrf.mxu1 }
 0x300   : > { %v10823_v21 = vpop.eup %10822  ;;  %10848 = vpow2.f32 %v2406_v51  ;;  %v2410_v25 = vmul.f32 1.442695, %v2353_v45  ;;  %v2352_v0 = vsub.f32 0.0, %v12223_v62  ;;  %v12228_v48 = vadd.f32 %v9939_v19, %v12107_v10  ;;  %9957 = vmatprep.mubr.msk.f32.mxu0 %vm736_vm1, %v2526_v53 }
 0x301   : > { %v10825_v63 = vpop.eup %10824  ;;  %10850 = vrcp.f32 %v2438_v46  ;;  %v2299_v60 = vpop.f32.mrf.mxu1  ;;  %9958 = vmatmul.mubr.msk.f32.gmra.mxu0 %vm736_vm1, %v2527_v59  ;;  %v2529_v9 = vmul.f32 %v10823_v21, %v12142_v56 }
 0x302   : > { %v10827_v1 = vpop.eup %10826  ;;  %v2441_v55 = vadd.f32 1.0, %v10825_v63  ;;  %10852 = vpow2.f32 %v2404_v32  ;;  %v2408_v36 = vmul.f32 1.442695, %v2352_v0  ;;  %v2355_v3 = vsub.f32 0.0, %v12228_v48 }
 0x303   : > { %v10829_v17 = vpop.eup %10828  ;;  %v2528_v14 = vmul.f32 %v10827_v1, %v12146_v49  ;;  %10854 = vpow2.f32 %v2410_v25  ;;  %v12236_v41 = vadd.f32 %v12107_v10, %v2299_v60  ;;  %v9942_v27 = vpop.f32.mrf.mxu1 }
 0x304   : > { %v10831_v11 = vpop.eup %10830  ;;  %10856 = vrcp.f32 %v2441_v55  ;;  %v2440_v38 = vadd.f32 1.0, %v10829_v17  ;;  %v2414_v42 = vmul.f32 1.442695, %v2355_v3  ;;  %v12239_v34 = vadd.f32 %v9942_v27, %v12107_v10 }
 0x305   : > { %v10833_v8 = vpop.eup %10832  ;;  %10858 = vpow2.f32 %v2408_v36  ;;  %v2354_v29 = vsub.f32 0.0, %v12236_v41  ;;  %9960 = vmatprep.mubr.msk.f32.mxu0 %vm736_vm1, %v2528_v14  ;;  %v2309_v56 = vpop.f32.mrf.mxu1  ;;  %v2531_v57 = vmul.f32 %v10831_v11, %v12150_v7 }
 0x306   : > { %v10835_v49 = vpop.eup %10834  ;;  %10860 = vrcp.f32 %v2440_v38  ;;  %v2443_v51 = vadd.f32 1.0, %v10833_v8  ;;  %v2357_v33 = vsub.f32 0.0, %v12239_v34  ;;  %v12245_v43 = vadd.f32 %v12107_v10, %v2309_v56  ;;  %9961 = vmatmul.mubr.msk.f32.gmra.mxu0 %vm736_vm1, %v2529_v9 }
 0x307   : > { %v10837_v4 = vpop.eup %10836  ;;  %v2530_v37 = vmul.f32 %v10835_v49, %v12153_v31  ;;  %10862 = vpow2.f32 %v2414_v42  ;;  %v2412_v53 = vmul.f32 1.442695, %v2354_v29  ;;  %v9945_v45 = vpop.f32.mrf.mxu1 }
 0x308   : > { %v10839_v59 = vpop.eup %10838  ;;  %10864 = vrcp.f32 %v2443_v51  ;;  %v2442_v46 = vadd.f32 1.0, %v10837_v4  ;;  %v2418_v32 = vmul.f32 1.442695, %v2357_v33  ;;  %v2356_v19 = vsub.f32 0.0, %v12245_v43 }
 0x309   : > { %v10841_v21 = vpop.eup %10840  ;;  %10866 = vpow2.f32 %v2412_v53  ;;  %v12252_v25 = vadd.f32 %v9945_v45, %v12107_v10  ;;  %9963 = vmatprep.mubr.msk.f32.mxu0 %vm736_vm1, %v2530_v37  ;;  %v2319_v0 = vpop.f32.mrf.mxu1  ;;  %v2533_v17 = vmul.f32 %v10839_v59, %v12158_v61 }
 0x30a   : > { %v10843_v7 = vpop.eup %10842  ;;  %10868 = vrcp.f32 %v2442_v46  ;;  %v2445_v31 = vadd.f32 1.0, %v10841_v21  ;;  %v2416_v63 = vmul.f32 1.442695, %v2356_v19  ;;  %v12256_v60 = vadd.f32 %v12107_v10, %v2319_v0  ;;  %9964 = vmatmul.mubr.msk.f32.gmra.mxu0 %vm736_vm1, %v2531_v57 }
 0x30b   : > { %v10845_v1 = vpop.eup %10844  ;;  %v2532_v55 = vmul.f32 %v10843_v7, %v12162_v23  ;;  %10870 = vpow2.f32 %v2418_v32  ;;  %v2359_v36 = vsub.f32 0.0, %v12252_v25 }
 0x30c   : > { %v10847_v3 = vpop.eup %10846  ;;  %10872 = vrcp.f32 %v2445_v31  ;;  %v2444_v9 = vadd.f32 1.0, %v10845_v1  ;;  %v2358_v14 = vsub.f32 0.0, %v12256_v60 }
 0x30d   : > { %v10849_v27 = vpop.eup %10848  ;;  %10874 = vpow2.f32 %v2416_v63  ;;  %v2422_v11 = vmul.f32 1.442695, %v2359_v36  ;;  %9966 = vmatprep.mubr.msk.f32.mxu0 %vm736_vm1, %v2532_v55  ;;  %v2535_v29 = vmul.f32 %v10847_v3, %v12165_v24 }
 0x30e   : > { %v10851_v10 = vpop.eup %10850  ;;  %10876 = vrcp.f32 %v2444_v9  ;;  %v2447_v38 = vadd.f32 1.0, %v10849_v27  ;;  %v2420_v42 = vmul.f32 1.442695, %v2358_v14  ;;  %9967 = vmatmul.mubr.msk.f32.gmra.mxu0 %vm736_vm1, %v2533_v17 }
 0x30f   : > { %v10853_v23 = vpop.eup %10852  ;;  %v2534_v8 = vmul.f32 %v10851_v10, %v12170_v5  ;;  %10878 = vpow2.f32 %v2422_v11 }
 0x310   : > { %v10855_v61 = vpop.eup %10854  ;;  %10880 = vrcp.f32 %v2447_v38  ;;  %v2446_v56 = vadd.f32 1.0, %v10853_v23 }
 0x311   : > { %v10857_v49 = vpop.eup %10856  ;;  %v2449_v51 = vadd.f32 1.0, %v10855_v61  ;;  %10882 = vpow2.f32 %v2420_v42  ;;  %9969 = vmatprep.mubr.msk.f32.mxu0 %vm736_vm1, %v2534_v8 }
 0x312   : > { %v10859_v33 = vpop.eup %10858  ;;  %10884 = vrcp.f32 %v2446_v56  ;;  %9970 = vmatmul.mubr.msk.f32.gmra.mxu0 %vm736_vm1, %v2535_v29  ;;  %v2537_v24 = vmul.f32 %v10857_v49, %v12174_v39 }
 0x313   : > { %v10861_v4 = vpop.eup %10860  ;;  %v2448_v57 = vadd.f32 1.0, %v10859_v33  ;;  %10886 = vrcp.f32 %v2449_v51 }
 0x314   : > { %v10863_v37 = vpop.eup %10862  ;;  %v2536_v5 = vmul.f32 %v10861_v4, %v12177_v2 }
 0x315   : > { %v10865_v53 = vpop.eup %10864  ;;  %10888 = vrcp.f32 %v2448_v57  ;;  %v2451_v45 = vadd.f32 1.0, %v10863_v37  ;;  %v12301_v37 = vld [vmem:[#allocation3] ss:$0 sm:$0xff] }
 0x316   : > { %v10867_v59 = vpop.eup %10866  ;;  %9972 = vmatprep.mubr.msk.f32.mxu0 %vm736_vm1, %v2536_v5  ;;  %v2539_v2 = vmul.f32 %v10865_v53, %v12182_v20 }
 0x317   : > { %v10869_v46 = vpop.eup %10868  ;;  %v2450_v32 = vadd.f32 1.0, %v10867_v59  ;;  %9973 = vmatmul.mubr.msk.f32.gmra.mxu0 %vm736_vm1, %v2537_v24  ;;  %10890 = vrcp.f32 %v2451_v45 }
 0x318   : > { %v10871_v19 = vpop.eup %10870  ;;  %v2538_v21 = vmul.f32 %v10869_v46, %v12187_v58 }
 0x319   : > { %v10873_v0 = vpop.eup %10872  ;;  %10892 = vrcp.f32 %v2450_v32  ;;  %v2453_v7 = vadd.f32 1.0, %v10871_v19 }
 0x31a   : > { %v10875_v31 = vpop.eup %10874  ;;  %9975 = vmatprep.mubr.msk.f32.mxu0 %vm736_vm1, %v2538_v21  ;;  %v2541_v58 = vmul.f32 %v10873_v0, %v12193_v22 }
 0x31b   : > { %v10877_v39 = vpop.eup %10876  ;;  %v2452_v63 = vadd.f32 1.0, %v10875_v31  ;;  %9976 = vmatmul.mubr.msk.f32.gmra.mxu0 %vm736_vm1, %v2539_v2  ;;  %10894 = vrcp.f32 %v2453_v7 }
 0x31c   : > { %v10879_v1 = vpop.eup %10878  ;;  %v2540_v55 = vmul.f32 %v10877_v39, %v12198_v52 }
 0x31d   : > { %v10881_v36 = vpop.eup %10880  ;;  %10896 = vrcp.f32 %v2452_v63  ;;  %v2455_v3 = vadd.f32 1.0, %v10879_v1 }
 0x31e   : > { %v10883_v17 = vpop.eup %10882  ;;  %9978 = vmatprep.mubr.msk.f32.mxu0 %vm736_vm1, %v2540_v55  ;;  %v2543_v11 = vmul.f32 %v10881_v36, %v12204_v44 }
 0x31f   : > { %v10885_v20 = vpop.eup %10884  ;;  %10898 = vrcp.f32 %v2455_v3  ;;  %v2454_v9 = vadd.f32 1.0, %v10883_v17  ;;  %9979 = vmatmul.mubr.msk.f32.gmra.mxu0 %vm736_vm1, %v2541_v58 }
 0x320   : > { %v2542_v14 = vmul.f32 %v10885_v20, %v12212_v6  ;;  %v10887_v27 = vpop.eup %10886 }
 0x321   : > { %10900 = vrcp.f32 %v2454_v9  ;;  %v2545_v38 = vmul.f32 %v10887_v27, %v12215_v16 }
 0x322   : > { %v10889_v52 = vpop.eup %10888  ;;  %9981 = vmatprep.mubr.msk.f32.mxu0 %vm736_vm1, %v2542_v14 }
 0x323   : > { %v2544_v22 = vmul.f32 %v10889_v52, %v12223_v62  ;;  %9982 = vmatmul.mubr.msk.f32.gmra.mxu0 %vm736_vm1, %v2543_v11 }
 0x324   : > { %v10891_v10 = vpop.eup %10890 }
 0x325   : > { %9984 = vmatprep.mubr.msk.f32.mxu0 %vm736_vm1, %v2544_v22  ;;  %v2547_v44 = vmul.f32 %v10891_v10, %v12228_v48  ;;  %v11256_v48 = vmov 0  }
 0x326   : > { %v10893_v42 = vpop.eup %10892  ;;  %10612 = vset.pattern.permute.xlu1 %v11256_v48  ;;  %10613 = vset.pattern.permute.xlu0 %v11256_v48 }
 0x327   : > { %v2546_v23 = vmul.f32 %v10893_v42, %v12236_v41  ;;  %9985 = vmatmul.mubr.msk.f32.gmra.mxu0 %vm736_vm1, %v2545_v38 }
 0x328   : > { %v10895_v6 = vpop.eup %10894 }
 0x329   : > { %9987 = vmatprep.mubr.msk.f32.mxu0 %vm736_vm1, %v2546_v23  ;;  %v2549_v16 = vmul.f32 %v10895_v6, %v12239_v34 }
 0x32a   : > { %v10897_v8 = vpop.eup %10896 }
 0x32b   : > { %v2548_v62 = vmul.f32 %v10897_v8, %v12245_v43  ;;  %9988 = vmatmul.mubr.msk.f32.gmra.mxu0 %vm736_vm1, %v2547_v44  ;;  %v10000_v43 = vpop.f32.mrf.mxu1 }
 0x32c   : > { %v10899_v61 = vpop.eup %10898 }
 0x32d   : > { %9990 = vmatprep.mubr.msk.f32.mxu0 %vm736_vm1, %v2548_v62  ;;  %v2551_v41 = vmul.f32 %v10899_v61, %v12252_v25  ;;  %v3037_v49 = vpop.f32.mrf.mxu1 }
 0x32e   : > { %v10901_v29 = vpop.eup %10900 }
 0x32f   : > { %v2550_v56 = vmul.f32 %v10901_v29, %v12256_v60  ;;  %9991 = vmatmul.mubr.msk.f32.gmra.mxu0 %vm736_vm1, %v2549_v16  ;;  %v10003_v51 = vpop.f32.mrf.mxu1 }
 0x331   : > { %9993 = vmatprep.mubr.msk.f32.mxu0 %vm736_vm1, %v2550_v56  ;;  %v3047_v34 = vpop.f32.mrf.mxu1 }
 0x333   : > { %9994 = vmatmul.mubr.msk.f32.gmra.mxu0 %vm736_vm1, %v2551_v41  ;;  %v10006_v33 = vpop.f32.mrf.mxu1 }
 0x335   : > { %v3057_v4 = vpop.f32.mrf.mxu1 }
 0x337   : > { %v10009_v5 = vpop.f32.mrf.mxu1 }
 0x339   : > { %v3067_v21 = vpop.f32.mrf.mxu1 }
 0x33b   : > { %v10012_v3 = vpop.f32.mrf.mxu1 }
 0x33d   : > { %v3077_v42 = vpop.f32.mrf.mxu1 }
 0x33f   : > { %v10015_v56 = vpop.f32.mrf.mxu1 }
 0x3b5   : > { %v9950_v57 = vpop.f32.mrf.mxu0 }
 0x3b6   : > { %v3043_v25 = vadd.f32 %v10000_v43, %v9950_v57  ;;  %v3087_v57 = vpop.f32.mrf.mxu1 }
 0x3b7   : > { %v2716_v60 = vpop.f32.mrf.mxu0 }
 0x3b8   : > { %v3204_v53 = vadd.f32 %v12301_v37, %v3043_v25  ;;  %v3038_v24 = vadd.f32 %v3037_v49, %v2716_v60 }
 0x3b9   : > { %v9953_v45 = vpop.f32.mrf.mxu0 }
 0x3ba   : > { %v3236_v59 = vsub.f32 0.0, %v3204_v53  ;;  %v3203_v46 = vadd.f32 %v12301_v37, %v3038_v24  ;;  %v3053_v32 = vadd.f32 %v10003_v51, %v9953_v45 }
 0x3bb   : > { %v2726_v19 = vpop.f32.mrf.mxu0 }
 0x3bc   : > { %v3269_v0 = vmul.f32 1.442695, %v3236_v59  ;;  %v3235_v2 = vsub.f32 0.0, %v3203_v46  ;;  %v3206_v7 = vadd.f32 %v12301_v37, %v3053_v32  ;;  %v3048_v31 = vadd.f32 %v3047_v34, %v2726_v19 }
 0x3bd   : > { %v9956_v39 = vpop.f32.mrf.mxu0 }
 0x3be   : > { %10902 = vpow2.f32 %v3269_v0  ;;  %v3267_v63 = vmul.f32 1.442695, %v3235_v2  ;;  %v3238_v1 = vsub.f32 0.0, %v3206_v7  ;;  %v3205_v55 = vadd.f32 %v12301_v37, %v3048_v31 }
 0x3bf   : > { %v3063_v36 = vadd.f32 %v10006_v33, %v9956_v39  ;;  %v2736_v58 = vpop.f32.mrf.mxu0 }
 0x3c0   : > { %10904 = vpow2.f32 %v3267_v63  ;;  %v3273_v17 = vmul.f32 1.442695, %v3238_v1  ;;  %v3237_v20 = vsub.f32 0.0, %v3205_v55  ;;  %v3058_v9 = vadd.f32 %v3057_v4, %v2736_v58 }
 0x3c1   : > { %v3208_v14 = vadd.f32 %v12301_v37, %v3063_v36  ;;  %v9959_v27 = vpop.f32.mrf.mxu0 }
 0x3c2   : > { %10906 = vpow2.f32 %v3273_v17  ;;  %v3271_v11 = vmul.f32 1.442695, %v3237_v20  ;;  %v3207_v52 = vadd.f32 %v12301_v37, %v3058_v9  ;;  %v3073_v22 = vadd.f32 %v10009_v5, %v9959_v27 }
 0x3c3   : > { %v3240_v10 = vsub.f32 0.0, %v3208_v14  ;;  %v2746_v38 = vpop.f32.mrf.mxu0 }
 0x3c4   : > { %10908 = vpow2.f32 %v3271_v11  ;;  %v3239_v23 = vsub.f32 0.0, %v3207_v52  ;;  %v3210_v6 = vadd.f32 %v12301_v37, %v3073_v22  ;;  %v3068_v44 = vadd.f32 %v3067_v21, %v2746_v38  ;;  %v10018_v21 = vpop.f32.mrf.mxu1  ;;  %v4929_v11 = vld [vmem:[#allocation6 + $0x38] sm:$0xff] }
 0x3c5   : > { %v3277_v8 = vmul.f32 1.442695, %v3240_v10  ;;  %10102 = vmatprep.subr.mxu1 %v4929_v11  ;;  %v4574_v38 = vld [vmem:[#allocation6 + $0x18] sm:$0xff] }
 0x3c6   : > { %v3275_v62 = vmul.f32 1.442695, %v3239_v23  ;;  %v3242_v61 = vsub.f32 0.0, %v3210_v6  ;;  %v3209_v16 = vadd.f32 %v12301_v37, %v3068_v44  ;;  %v9962_v29 = vpop.f32.mrf.mxu0  ;;  %v3097_v58 = vpop.f32.mrf.mxu1  ;;  %10103 = vmatpush3.msra.mxu1 %v4929_v11  ;;  %10046 = vmatprep.subr.mxu0 %v4574_v38 }
 0x3c7   : > { %10910 = vpow2.f32 %v3277_v8  ;;  %v3083_v41 = vadd.f32 %v10012_v3, %v9962_v29  ;;  %10047 = vmatpush3.msra.mxu0 %v4574_v38 }
 0x3c8   : > { %v2756_v48 = vpop.f32.mrf.mxu0  ;;  %v3281_v43 = vmul.f32 1.442695, %v3242_v61  ;;  %v3241_v49 = vsub.f32 0.0, %v3209_v16  ;;  %10912 = vpow2.f32 %v3275_v62  ;;  %v10021_v22 = vpop.f32.mrf.mxu1  ;;  %v4927_v16 = vld [vmem:[#allocation6 + $0x28] sm:$0xff] }
 0x3c9   : > { %v3212_v51 = vadd.f32 %v12301_v37, %v3083_v41  ;;  %v3078_v34 = vadd.f32 %v3077_v42, %v2756_v48  ;;  %v4928_v42 = vld [vmem:[#allocation6 + $0x30] sm:$0xff] }
 0x3ca   : > { %v9965_v33 = vpop.f32.mrf.mxu0  ;;  %10914 = vpow2.f32 %v3281_v43  ;;  %v3279_v24 = vmul.f32 1.442695, %v3241_v49  ;;  %10104 = vmatprep.subr.mxu1 %v4928_v42  ;;  %v3107_v41 = vpop.f32.mrf.mxu1 }
 0x3cb   : > { %v10903_v4 = vpop.eup %10902  ;;  %v3093_v60 = vadd.f32 %v10015_v56, %v9965_v33  ;;  %v3244_v45 = vsub.f32 0.0, %v3212_v51  ;;  %v3211_v59 = vadd.f32 %v12301_v37, %v3078_v34  ;;  %10105 = vmatpush3.msra.mxu1 %v4928_v42 }
 0x3cc   : > { %v3332_v25 = vadd.f32 1.0, %v10903_v4  ;;  %v2766_v5 = vpop.f32.mrf.mxu0  ;;  %10106 = vmatprep.subr.mxu1 %v4927_v16 }
 0x3cd   : > { %v10905_v53 = vpop.eup %10904  ;;  %v3214_v2 = vadd.f32 %v12301_v37, %v3093_v60  ;;  %v3285_v31 = vmul.f32 1.442695, %v3244_v45  ;;  %v3243_v39 = vsub.f32 0.0, %v3211_v59  ;;  %v3088_v63 = vadd.f32 %v3087_v57, %v2766_v5  ;;  %10107 = vmatpush3.msra.mxu1 %v4927_v16  ;;  %v4926_v60 = vld [vmem:[#allocation6 + $0x20] sm:$0xff] }
 0x3ce   : > { %10916 = vrcp.f32 %v3332_v25  ;;  %v3331_v46 = vadd.f32 1.0, %v10905_v53  ;;  %v9968_v32 = vpop.f32.mrf.mxu0  ;;  %v4573_v25 = vld [vmem:[#allocation6 + $0x10] sm:$0xff]  ;;  %10108 = vmatprep.subr.mxu1 %v4926_v60  ;;  %v10024_v53 = vpop.f32.mrf.mxu1 }
 0x3cf   : > { %v10907_v19 = vpop.eup %10906  ;;  %v3246_v3 = vsub.f32 0.0, %v3214_v2  ;;  %v3283_v17 = vmul.f32 1.442695, %v3243_v39  ;;  %v3213_v20 = vadd.f32 %v12301_v37, %v3088_v63  ;;  %v3103_v9 = vadd.f32 %v10018_v21, %v9968_v32  ;;  %10048 = vmatprep.subr.mxu0 %v4573_v25  ;;  %10109 = vmatpush3.msra.mxu1 %v4926_v60  ;;  %v4571_v39 = vld [vmem:[#allocation6] sm:$0xff] }
 0x3d0   : > { %10918 = vrcp.f32 %v3331_v46  ;;  %v3334_v0 = vadd.f32 1.0, %v10907_v19  ;;  %v2776_v55 = vpop.f32.mrf.mxu0  ;;  %10049 = vmatpush3.msra.mxu0 %v4573_v25  ;;  %v3117_v63 = vpop.f32.mrf.mxu1 }
 0x3d1   : > { %v10909_v7 = vpop.eup %10908  ;;  %10920 = vpow2.f32 %v3279_v24  ;;  %v3289_v10 = vmul.f32 1.442695, %v3246_v3  ;;  %v3245_v23 = vsub.f32 0.0, %v3213_v20  ;;  %v3216_v6 = vadd.f32 %v12301_v37, %v3103_v9 }
 0x3d2   : > { %10922 = vrcp.f32 %v3334_v0  ;;  %v3333_v1 = vadd.f32 1.0, %v10909_v7  ;;  %v9971_v27 = vpop.f32.mrf.mxu0  ;;  %v3098_v44 = vadd.f32 %v3097_v58, %v2776_v55  ;;  %v4572_v7 = vld [vmem:[#allocation6 + $0x8] sm:$0xff]  ;;  %v14582_v55 = vmov 0.0   ;;  %v10027_v11 = vpop.f32.mrf.mxu1 }
 0x3d3   : > { %10924 = vpow2.f32 %v3285_v31  ;;  %v3287_v48 = vmul.f32 1.442695, %v3245_v23  ;;  %v3248_v43 = vsub.f32 0.0, %v3216_v6  ;;  %v3113_v51 = vadd.f32 %v10021_v22, %v9971_v27  ;;  %10050 = vmatprep.subr.mxu0 %v4572_v7  ;;  %10110 = vmatprep.mubr.f32.mxu1 %v14582_v55 }
 0x3d4   : > { %v10911_v36 = vpop.eup %10910  ;;  %10926 = vrcp.f32 %v3333_v1  ;;  %v2786_v61 = vpop.f32.mrf.mxu0  ;;  %v3215_v49 = vadd.f32 %v12301_v37, %v3098_v44  ;;  %10111 = vmatmul.mubr.f32.vlgmr.msra.gmra.mxu1 %v14582_v55  ;;  %10051 = vmatpush3.msra.mxu0 %v4572_v7 }
 0x3d5   : > { %v3336_v14 = vadd.f32 1.0, %v10911_v36  ;;  %v10913_v52 = vpop.eup %10912  ;;  %10928 = vpow2.f32 %v3283_v17  ;;  %v3108_v24 = vadd.f32 %v3107_v41, %v2786_v61  ;;  %v3293_v59 = vmul.f32 1.442695, %v3248_v43  ;;  %10052 = vmatprep.subr.mxu0 %v4571_v39  ;;  %10054 = vmatprep.mubr.f32.mxu0 %v14582_v55 }
 0x3d6   : > { %v3335_v62 = vadd.f32 1.0, %v10913_v52  ;;  %v3247_v46 = vsub.f32 0.0, %v3215_v49  ;;  %v3218_v32 = vadd.f32 %v12301_v37, %v3113_v51  ;;  %10053 = vmatpush3.msra.mxu0 %v4571_v39 }
 0x3d7   : > { %v10915_v8 = vpop.eup %10914  ;;  %10930 = vrcp.f32 %v3336_v14  ;;  %v9974_v4 = vpop.f32.mrf.mxu0  ;;  %v3217_v1 = vadd.f32 %v12301_v37, %v3108_v24  ;;  %10055 = vmatmul.mubr.f32.vlgmr.msra.gmra.mxu0 %v14582_v55 }
 0x3d8   : > { %10932 = vpow2.f32 %v3289_v10  ;;  %v3338_v33 = vadd.f32 1.0, %v10915_v8  ;;  %v3291_v36 = vmul.f32 1.442695, %v3247_v46  ;;  %v3250_v58 = vsub.f32 0.0, %v3218_v32 }
 0x3d9   : > { %10934 = vrcp.f32 %v3335_v62  ;;  %v2796_v0 = vpop.f32.mrf.mxu0  ;;  %v3123_v3 = vadd.f32 %v10024_v53, %v9974_v4  ;;  %v3249_v52 = vsub.f32 0.0, %v3217_v1  ;;  %v3127_v62 = vpop.f32.mrf.mxu1 }
 0x3da   : > { %10936 = vpow2.f32 %v3287_v48  ;;  %v3297_v10 = vmul.f32 1.442695, %v3250_v58  ;;  %v3118_v42 = vadd.f32 %v3117_v63, %v2796_v0 }
 0x3db   : > { %v10917_v29 = vpop.eup %10916  ;;  %10938 = vrcp.f32 %v3338_v33  ;;  %v9977_v9 = vpop.f32.mrf.mxu0  ;;  %v3220_v38 = vadd.f32 %v12301_v37, %v3123_v3  ;;  %v3295_v61 = vmul.f32 1.442695, %v3249_v52 }
 0x3dc   : > { %3466 = vperm.xlu1 %10612, %v10917_v29   ;;  %v3428_v57 = vsub.f32 1.0, %v10917_v29  ;;  %10940 = vpow2.f32 %v3293_v59  ;;  %v3219_v29 = vadd.f32 %v12301_v37, %v3118_v42  ;;  %v3133_v41 = vadd.f32 %v10027_v11, %v9977_v9 }
 0x3dd   : > { %v10919_v56 = vpop.eup %10918  ;;  %v2806_v6 = vpop.f32.mrf.mxu0  ;;  %v3252_v16 = vsub.f32 0.0, %v3220_v38 }
 0x3de   : > { %v10921_v34 = vpop.eup %10920  ;;  %3461 = vperm.xlu0 %10613, %v10919_v56   ;;  %v3427_v45 = vsub.f32 1.0, %v10919_v56  ;;  %v3251_v4 = vsub.f32 0.0, %v3219_v29  ;;  %v3128_v25 = vadd.f32 %v3127_v62, %v2806_v6 }
 0x3df   : > { %v10923_v5 = vpop.eup %10922  ;;  %v3337_v21 = vadd.f32 1.0, %v10921_v34  ;;  %v9980_v43 = vpop.f32.mrf.mxu0  ;;  %v3301_v33 = vmul.f32 1.442695, %v3252_v16 }
 0x3e0   : > { %3658 = vperm.xlu1 %10612, %v3428_v57   ;;  %v10925_v19 = vpop.eup %10924  ;;  %v3430_v2 = vsub.f32 1.0, %v10923_v5  ;;  %v10030_v34 = vpop.f32.mrf.mxu1  ;;  %v3222_v57 = vadd.f32 %v12301_v37, %v3133_v41  ;;  %v3299_v32 = vmul.f32 1.442695, %v3251_v4 }
 0x3e1   : > { %v10927_v31 = vpop.eup %10926  ;;  %10942 = vrcp.f32 %v3337_v21  ;;  %v3340_v20 = vadd.f32 1.0, %v10925_v19  ;;  %v2816_v53 = vpop.f32.mrf.mxu0  ;;  %v3143_v46 = vadd.f32 %v10030_v34, %v9980_v43  ;;  %v3221_v21 = vadd.f32 %v12301_v37, %v3128_v25 }
 0x3e2   : > { %3653 = vperm.xlu0 %10613, %v3427_v45   ;;  %v10929_v17 = vpop.eup %10928  ;;  %v3429_v14 = vsub.f32 1.0, %v10927_v31  ;;  %10944 = vpow2.f32 %v3291_v36  ;;  %v3137_v59 = vpop.f32.mrf.mxu1  ;;  %v3254_v19 = vsub.f32 0.0, %v3222_v57 }
 0x3e3   : > { %10946 = vrcp.f32 %v3340_v20  ;;  %v3339_v23 = vadd.f32 1.0, %v10929_v17  ;;  %v9983_v7 = vpop.f32.mrf.mxu0  ;;  %v3224_v1 = vadd.f32 %v12301_v37, %v3143_v46  ;;  %v3253_v58 = vsub.f32 0.0, %v3221_v21 }
 0x3e4   : > { %3668 = vperm.xlu1 %10612, %v3430_v2   ;;  %v10931_v27 = vpop.eup %10930  ;;  %10948 = vpow2.f32 %v3297_v10  ;;  %v10033_v63 = vpop.f32.mrf.mxu1  ;;  %v3305_v36 = vmul.f32 1.442695, %v3254_v19  ;;  %v3138_v3 = vadd.f32 %v3137_v59, %v2816_v53 }
 0x3e5   : > { %v10933_v22 = vpop.eup %10932  ;;  %v3432_v44 = vsub.f32 1.0, %v10931_v27  ;;  %10950 = vrcp.f32 %v3339_v23  ;;  %v2826_v9 = vpop.f32.mrf.mxu0  ;;  %v3256_v52 = vsub.f32 0.0, %v3224_v1  ;;  %v3303_v10 = vmul.f32 1.442695, %v3253_v58 }
 0x3e6   : > { %3476 = vperm.xlu0 %10613, %v10923_v5   ;;  %v10935_v8 = vpop.eup %10934  ;;  %v3342_v48 = vadd.f32 1.0, %v10933_v22  ;;  %10952 = vpow2.f32 %v3295_v61  ;;  %v3147_v11 = vpop.f32.mrf.mxu1  ;;  %v3223_v38 = vadd.f32 %v12301_v37, %v3138_v3  ;;  %v3153_v42 = vadd.f32 %v10033_v63, %v9983_v7 }
 0x3e7   : > { %v10937_v56 = vpop.eup %10936  ;;  %v3431_v49 = vsub.f32 1.0, %v10935_v8  ;;  %v9986_v6 = vpop.f32.mrf.mxu0  ;;  %v3309_v61 = vmul.f32 1.442695, %v3256_v52  ;;  %v3148_v41 = vadd.f32 %v3147_v11, %v2826_v9 }
 0x3e8   : > { %3663 = vperm.xlu1 %10612, %v3429_v14   ;;  %v10939_v51 = vpop.eup %10938  ;;  %10954 = vrcp.f32 %v3342_v48  ;;  %v3341_v5 = vadd.f32 1.0, %v10937_v56  ;;  %v10036_v62 = vpop.f32.mrf.mxu1  ;;  %v3255_v16 = vsub.f32 0.0, %v3223_v38  ;;  %v3226_v29 = vadd.f32 %v12301_v37, %v3153_v42 }
 0x3e9   : > { %v10941_v60 = vpop.eup %10940  ;;  %v3434_v24 = vsub.f32 1.0, %v10939_v51  ;;  %10956 = vpow2.f32 %v3301_v33  ;;  %v2836_v43 = vpop.f32.mrf.mxu0  ;;  %v3225_v57 = vadd.f32 %v12301_v37, %v3148_v41  ;;  %v3163_v25 = vadd.f32 %v10036_v62, %v9986_v6 }
 0x3ea   : > { %3471 = vperm.xlu0 %10613, %v10927_v31   ;;  %10958 = vrcp.f32 %v3341_v5  ;;  %v3344_v2 = vadd.f32 1.0, %v10941_v60  ;;  %v3157_v34 = vpop.f32.mrf.mxu1  ;;  %v3307_v33 = vmul.f32 1.442695, %v3255_v16  ;;  %v3258_v4 = vsub.f32 0.0, %v3226_v29 }
 0x3eb   : > { %10960 = vpow2.f32 %v3299_v32  ;;  %v9989_v53 = vpop.f32.mrf.mxu0  ;;  %v3158_v46 = vadd.f32 %v3157_v34, %v2836_v43  ;;  %v3257_v19 = vsub.f32 0.0, %v3225_v57  ;;  %v3228_v21 = vadd.f32 %v12301_v37, %v3163_v25 }
 0x3ec   : > { %3678 = vperm.xlu1 %10612, %v3432_v44   ;;  %10962 = vrcp.f32 %v3344_v2  ;;  %v10039_v59 = vpop.f32.mrf.mxu1  ;;  %v3313_v32 = vmul.f32 1.442695, %v3258_v4  ;;  %v5505_v4 = vld [vmem:[#allocation6 + $0x58] sm:$0xff] }
 0x3ed   : > { %10964 = vpow2.f32 %v3305_v36  ;;  %v2846_v7 = vpop.f32.mrf.mxu0  ;;  %v3227_v1 = vadd.f32 %v12301_v37, %v3158_v46  ;;  %v3311_v36 = vmul.f32 1.442695, %v3257_v19  ;;  %v3260_v58 = vsub.f32 0.0, %v3228_v21  ;;  %10158 = vmatprep.subr.mxu0 %v5505_v4 }
 0x3ee   : > { %3486 = vperm.xlu0 %10613, %v10931_v27   ;;  %v10943_v45 = vpop.eup %10942  ;;  %v3167_v63 = vpop.f32.mrf.mxu1  ;;  %v3173_v3 = vadd.f32 %v10039_v59, %v9989_v53  ;;  %10159 = vmatpush3.msra.mxu0 %v5505_v4 }
 0x3ef   : > { %v10945_v0 = vpop.eup %10944  ;;  %v3433_v31 = vsub.f32 1.0, %v10943_v45  ;;  %v9992_v9 = vpop.f32.mrf.mxu0  ;;  %v3259_v52 = vsub.f32 0.0, %v3227_v1  ;;  %v3168_v42 = vadd.f32 %v3167_v63, %v2846_v7 }
 0x3f0   : > { %3673 = vperm.xlu1 %10612, %v3431_v49   ;;  %v10947_v39 = vpop.eup %10946  ;;  %v3343_v20 = vadd.f32 1.0, %v10945_v0  ;;  %v10042_v11 = vpop.f32.mrf.mxu1  ;;  %v3230_v38 = vadd.f32 %v12301_v37, %v3173_v3 }
 0x3f1   : > { %v10949_v17 = vpop.eup %10948  ;;  %v3436_v14 = vsub.f32 1.0, %v10947_v39  ;;  %v2856_v6 = vpop.f32.mrf.mxu0  ;;  %v3229_v29 = vadd.f32 %v12301_v37, %v3168_v42  ;;  %v5504_v42 = vld [vmem:[#allocation6 + $0x50] sm:$0xff] }
 0x3f2   : > { %3481 = vperm.xlu0 %10613, %v10935_v8   ;;  %v10951_v27 = vpop.eup %10950  ;;  %10966 = vrcp.f32 %v3343_v20  ;;  %v3346_v23 = vadd.f32 1.0, %v10949_v17  ;;  %v3177_v62 = vpop.f32.mrf.mxu1  ;;  %v3262_v16 = vsub.f32 0.0, %v3230_v38  ;;  %10160 = vmatprep.subr.mxu0 %v5504_v42 }
 0x3f3   : > { %v10953_v22 = vpop.eup %10952  ;;  %v3435_v44 = vsub.f32 1.0, %v10951_v27  ;;  %10968 = vpow2.f32 %v3303_v10  ;;  %v3317_v10 = vmul.f32 1.442695, %v3260_v58  ;;  %v3178_v41 = vadd.f32 %v3177_v62, %v2856_v6  ;;  %v9995_v43 = vpop.f32.mrf.mxu0  ;;  %10161 = vmatpush3.msra.mxu0 %v5504_v42 }
 0x3f4   : > { %3688 = vperm.xlu1 %10612, %v3434_v24   ;;  %10970 = vrcp.f32 %v3346_v23  ;;  %v3345_v48 = vadd.f32 1.0, %v10953_v22  ;;  %v10045_v34 = vpop.f32.mrf.mxu1  ;;  %v3321_v57 = vmul.f32 1.442695, %v3262_v16  ;;  %v3261_v25 = vsub.f32 0.0, %v3229_v29 }
 0x3f5   : > { %v10955_v8 = vpop.eup %10954  ;;  %10972 = vpow2.f32 %v3309_v61  ;;  %v3315_v61 = vmul.f32 1.442695, %v3259_v52 }
 0x3f6   : > { %3496 = vperm.xlu0 %10613, %v10939_v51   ;;  %v10957_v56 = vpop.eup %10956  ;;  %v3438_v49 = vsub.f32 1.0, %v10955_v8  ;;  %10974 = vrcp.f32 %v3345_v48  ;;  %v3187_v46 = vpop.f32.mrf.mxu1  ;;  %v3319_v19 = vmul.f32 1.442695, %v3261_v25  ;;  %v5503_v25 = vld [vmem:[#allocation6 + $0x48] sm:$0xff] }
 0x3f7   : > { %v10959_v51 = vpop.eup %10958  ;;  %v3348_v5 = vadd.f32 1.0, %v10957_v56  ;;  %10976 = vpow2.f32 %v3307_v33  ;;  %v3183_v33 = vadd.f32 %v10042_v11, %v9992_v9  ;;  %10162 = vmatprep.subr.mxu0 %v5503_v25 }
 0x3f8   : > { %3683 = vperm.xlu1 %10612, %v3433_v31   ;;  %v10961_v60 = vpop.eup %10960  ;;  %v3437_v24 = vsub.f32 1.0, %v10959_v51  ;;  %10163 = vmatpush3.msra.mxu0 %v5503_v25 }
 0x3f9   : > { %10978 = vrcp.f32 %v3348_v5  ;;  %v3347_v2 = vadd.f32 1.0, %v10961_v60  ;;  %v3231_v60 = vadd.f32 %v12301_v37, %v3178_v41 }
 0x3fa   : > { %3491 = vperm.xlu0 %10613, %v10943_v45   ;;  %v10963_v45 = vpop.eup %10962  ;;  %10980 = vpow2.f32 %v3313_v32  ;;  %v3232_v32 = vadd.f32 %v12301_v37, %v3183_v33 }
 0x3fb   : > { %v10965_v0 = vpop.eup %10964  ;;  %v3440_v31 = vsub.f32 1.0, %v10963_v45  ;;  %10982 = vrcp.f32 %v3347_v2  ;;  %v3263_v21 = vsub.f32 0.0, %v3231_v60 }
 0x3fc   : > { %3698 = vperm.xlu1 %10612, %v3436_v14   ;;  %v3350_v20 = vadd.f32 1.0, %v10965_v0  ;;  %10984 = vpow2.f32 %v3311_v36  ;;  %v3264_v63 = vsub.f32 0.0, %v3232_v32  ;;  %v3193_v36 = vadd.f32 %v10045_v34, %v9995_v43 }
 0x3fd   : > { %v3323_v1 = vmul.f32 1.442695, %v3263_v21 }
 0x3fe   : > { %3506 = vperm.xlu0 %10613, %v10947_v39   ;;  %10986 = vrcp.f32 %v3350_v20 }
 0x3ff   : > { %v10967_v39 = vpop.eup %10966  ;;  %10988 = vpow2.f32 %v3317_v10 }
 0x400   : > { %3693 = vperm.xlu1 %10612, %v3435_v44   ;;  %v10969_v17 = vpop.eup %10968  ;;  %v3439_v14 = vsub.f32 1.0, %v10967_v39 }
 0x401   : > { %v3349_v23 = vadd.f32 1.0, %v10969_v17 }
 0x402   : > { %3501 = vperm.xlu0 %10613, %v10951_v27   ;;  %v10971_v27 = vpop.eup %10970 }
 0x403   : > { %v10973_v22 = vpop.eup %10972  ;;  %v3442_v44 = vsub.f32 1.0, %v10971_v27  ;;  %10990 = vrcp.f32 %v3349_v23 }
 0x404   : > { %3708 = vperm.xlu1 %10612, %v3438_v49   ;;  %v3352_v48 = vadd.f32 1.0, %v10973_v22  ;;  %10992 = vpow2.f32 %v3315_v61 }
 0x406   : > { %3516 = vperm.xlu0 %10613, %v10955_v8   ;;  %v10975_v8 = vpop.eup %10974  ;;  %10994 = vrcp.f32 %v3352_v48 }
 0x407   : > { %v10977_v56 = vpop.eup %10976  ;;  %v3441_v49 = vsub.f32 1.0, %v10975_v8  ;;  %10996 = vpow2.f32 %v3321_v57 }
 0x408   : > { %3703 = vperm.xlu1 %10612, %v3437_v24   ;;  %v3351_v53 = vadd.f32 1.0, %v10977_v56  ;;  %v2866_v24 = vpop.f32.mrf.mxu0 }
 0x409   : > { %v3188_v0 = vadd.f32 %v3187_v46, %v2866_v24 }
 0x40a   : > { %3511 = vperm.xlu0 %10613, %v10959_v51   ;;  %v10979_v51 = vpop.eup %10978  ;;  %10998 = vrcp.f32 %v3351_v53 }
 0x40b   : > { %v10981_v5 = vpop.eup %10980  ;;  %11000 = vpow2.f32 %v3319_v19  ;;  %v3233_v58 = vadd.f32 %v12301_v37, %v3188_v0 }
 0x40c   : > { %3718 = vperm.xlu1 %10612, %v3440_v31   ;;  %v10983_v59 = vpop.eup %10982  ;;  %v3354_v7 = vadd.f32 1.0, %v10981_v5 }
 0x40d   : > { %v10985_v2 = vpop.eup %10984  ;;  %v3443_v31 = vsub.f32 1.0, %v10983_v59  ;;  %v3265_v11 = vsub.f32 0.0, %v3233_v58  ;;  %v5963_v58 = vld [vmem:[#allocation6 + $0x78] sm:$0xff] }
 0x40e   : > { %3526 = vperm.xlu0 %10613, %v10963_v45   ;;  %v3444_v45 = vsub.f32 1.0, %v10979_v51  ;;  %11002 = vrcp.f32 %v3354_v7  ;;  %v3353_v17 = vadd.f32 1.0, %v10985_v2  ;;  %10214 = vmatprep.subr.mxu1 %v5963_v58 }
 0x40f   : > { %11004 = vpow2.f32 %v3323_v1  ;;  %v3327_v6 = vmul.f32 1.442695, %v3265_v11  ;;  %10215 = vmatpush3.msra.mxu1 %v5963_v58  ;;  %v5961_v11 = vld [vmem:[#allocation6 + $0x68] sm:$0xff]  ;;  %v14895_v58 = vmov 0 }
 0x410   : > { %3713 = vperm.xlu1 %10612, %v3439_v14   ;;  %v3325_v14 = vmul.f32 1.442695, %v3264_v63  ;;  %11006 = vrcp.f32 %v3353_v17 }
 0x412   : > { %3521 = vperm.xlu0 %10613, %v10967_v39   ;;  %v10987_v39 = vpop.eup %10986  ;;  %11008 = vpow2.f32 %v3325_v14 }
 0x413   : > { %v10989_v3 = vpop.eup %10988  ;;  %v3446_v20 = vsub.f32 1.0, %v10987_v39 }
 0x414   : > { %3728 = vperm.xlu1 %10612, %v3442_v44   ;;  %v10991_v9 = vpop.eup %10990  ;;  %v3356_v22 = vadd.f32 1.0, %v10989_v3  ;;  %v5962_v3 = vld [vmem:[#allocation6 + $0x70] sm:$0xff] }
 0x415   : > { %v10993_v52 = vpop.eup %10992  ;;  %v3445_v10 = vsub.f32 1.0, %v10991_v9  ;;  %10216 = vmatprep.subr.mxu1 %v5962_v3 }
 0x416   : > { %3536 = vperm.xlu0 %10613, %v10971_v27   ;;  %v3234_v27 = vadd.f32 %v12301_v37, %v3193_v36  ;;  %v10995_v38 = vpop.eup %10994  ;;  %11010 = vrcp.f32 %v3356_v22  ;;  %10217 = vmatpush3.msra.mxu1 %v5962_v3 }
 0x417   : > { %v10997_v44 = vpop.eup %10996  ;;  %v3448_v62 = vsub.f32 1.0, %v10995_v38  ;;  %11012 = vpow2.f32 %v3327_v6  ;;  %10218 = vmatprep.subr.mxu1 %v5961_v11 }
 0x418   : > { %3723 = vperm.xlu1 %10612, %v3441_v49   ;;  %v3266_v23 = vsub.f32 0.0, %v3234_v27  ;;  %v10999_v37 = vpop.eup %10998  ;;  %v3358_v29 = vadd.f32 1.0, %v10997_v44  ;;  %10219 = vmatpush3.msra.mxu1 %v5961_v11 }
 0x419   : > { %v11001_v16 = vpop.eup %11000  ;;  %v3447_v41 = vsub.f32 1.0, %v10999_v37 }
 0x41a   : > { %3531 = vperm.xlu0 %10613, %v10975_v8   ;;  %v3355_v8 = vadd.f32 1.0, %v10993_v52  ;;  %v3329_v61 = vmul.f32 1.442695, %v3266_v23  ;;  %v3357_v43 = vadd.f32 1.0, %v11001_v16  ;;  %v5960_v52 = vld [vmem:[#allocation6 + $0x60] sm:$0xff] }
 0x41b   : > { %v11003_v56 = vpop.eup %11002  ;;  %10220 = vmatprep.subr.mxu1 %v5960_v52 }
 0x41c   : > { %3738 = vperm.xlu1 %10612, %v3444_v45   ;;  %11014 = vrcp.f32 %v3355_v8  ;;  %v11005_v48 = vpop.eup %11004  ;;  %v3450_v49 = vsub.f32 1.0, %v11003_v56  ;;  %10221 = vmatpush3.msra.mxu1 %v5960_v52 }
 0x41d   : > { %11016 = vpow2.f32 %v3329_v61  ;;  %v3359_v33 = vadd.f32 1.0, %v11005_v48 }
 0x41e   : > { %3546 = vperm.xlu0 %10613, %v10979_v51   ;;  %11018 = vrcp.f32 %v3358_v29  ;;  %v11007_v51 = vpop.eup %11006 }
 0x41f   : > { %v11009_v34 = vpop.eup %11008  ;;  %11020 = vrcp.f32 %v3357_v43  ;;  %v3449_v4 = vsub.f32 1.0, %v11007_v51  ;;  %v14837_v43 = vmov 0 }
 0x420   : > { %3733 = vperm.xlu1 %10612, %v3443_v31   ;;  %v3360_v5 = vadd.f32 1.0, %v11009_v34  ;;  %11022 = vrcp.f32 %v3359_v33  ;;  %v5502_v31 = vld [vmem:[#allocation6 + $0x40] sm:$0xff] }
 0x421   : > { %10164 = vmatprep.subr.mxu0 %v5502_v31 }
 0x422   : > { %3541 = vperm.xlu0 %10613, %v10983_v59   ;;  %11024 = vrcp.f32 %v3360_v5  ;;  %10165 = vmatpush3.msra.mxu0 %v5502_v31 }
 0x423   : > { %v11011_v57 = vpop.eup %11010 }
 0x424   : > { %3748 = vperm.xlu1 %10612, %v3446_v20   ;;  %v11013_v60 = vpop.eup %11012  ;;  %v3452_v53 = vsub.f32 1.0, %v11011_v57  ;;  %v3875_v20 = vlaneseq }
 0x425   : > { %v3361_v59 = vadd.f32 1.0, %v11013_v60 }
 0x426   : > { %3556 = vperm.xlu0 %10613, %v10987_v39   ;;  %v12339_v27 = vshrl.u32 %v3875_v20, 7 }
 0x427   : > { %11026 = vrcp.f32 %v3361_v59 }
 0x428   : > { %3743 = vperm.xlu1 %10612, %v3445_v10   ;;  %v12341_v10 = vld [vmem:[#allocation6 + $0x98] sm:$0xff]  ;;  %v3878_v42 = vadd.s32 16, %v12339_v27  ;;  %v3880_v48 = vadd.s32 32, %v12339_v27  ;;  %v3877_v31 = vadd.s32 8, %v12339_v27  ;;  %v3884_v11 = vadd.s32 64, %v12339_v27 }
 0x429   : > { %v11015_v24 = vpop.eup %11014  ;;  %10270 = vmatprep.subr.mxu0 %v12341_v10 }
 0x42a   : > { %3551 = vperm.xlu0 %10613, %v10991_v9   ;;  %v11017_v45 = vpop.eup %11016  ;;  %v3451_v46 = vsub.f32 1.0, %v11015_v24  ;;  %v3926_v61 = vand.u32 15, %v3878_v42  ;;  %v14848_v42 = vmov 0 }
 0x42b   : > { %v11019_v32 = vpop.eup %11018  ;;  %v3362_v19 = vadd.f32 1.0, %v11017_v45 }
 0x42c   : > { %3758 = vperm.xlu1 %10612, %v3448_v62   ;;  %v3454_v21 = vsub.f32 1.0, %v11019_v32  ;;  %v11021_v0 = vpop.eup %11020  ;;  %vm12356_vm4 = vcmp.gt.s32.totalorder %v3926_v61, 0 }
 0x42d   : > { %11028 = vrcp.f32 %v3362_v19  ;;  %v3453_v2 = vsub.f32 1.0, %v11021_v0  ;;  %v11023_v7 = vpop.eup %11022  ;;  %v14838_v43 = vsel %vm12356_vm4, 4294967295, %v14837_v43 }
 0x42e   : > { %3566 = vperm.xlu0 %10613, %v10995_v38   ;;  %v3455_v39 = vsub.f32 1.0, %v11023_v7  ;;  %14839 = vst [vmem:[#allocation32_spill] sm:$0xff] %v14838_v43 }
 0x42f   : > { %v11025_v63 = vpop.eup %11024 }
 0x430   : > { %3753 = vperm.xlu1 %10612, %v3447_v41   ;;  %v3456_v1 = vsub.f32 1.0, %v11025_v63 }
 0x432   : > { %3561 = vperm.xlu0 %10613, %v10999_v37  }
 0x434   : > { %3768 = vperm.xlu1 %10612, %v3450_v49   ;;  %v11027_v36 = vpop.eup %11026 }
 0x435   : > { %v3457_v17 = vsub.f32 1.0, %v11027_v36 }
 0x436   : > { %3576 = vperm.xlu0 %10613, %v11003_v56  }
 0x438   : > { %3763 = vperm.xlu1 %10612, %v3449_v4  }
 0x43a   : > { %3571 = vperm.xlu0 %10613, %v11007_v51   ;;  %v11029_v9 = vpop.eup %11028 }
 0x43b   : > { %v3458_v14 = vsub.f32 1.0, %v11029_v9 }
 0x43c   : > { %3778 = vperm.xlu1 %10612, %v3452_v53  }
 0x43e   : > { %3586 = vperm.xlu0 %10613, %v11011_v57   ;;  %v3940_v57 = vand.u32 15, %v3880_v48  ;;  %v14852_v48 = vmov 0 }
 0x440   : > { %3773 = vperm.xlu1 %10612, %v3451_v46   ;;  %vm12388_vm5 = vcmp.gt.s32.totalorder %v3940_v57, 0 }
 0x442   : > { %3581 = vperm.xlu0 %10613, %v11015_v24  }
 0x444   : > { %3788 = vperm.xlu1 %10612, %v3454_v21  }
 0x446   : > { %3596 = vperm.xlu0 %10613, %v11019_v32   ;;  %v3912_v32 = vand.u32 15, %v12339_v27 }
 0x448   : > { %3783 = vperm.xlu1 %10612, %v3453_v2   ;;  %vm12404_vm6 = vcmp.gt.s32.totalorder %v3912_v32, 0  ;;  %v3886_v32 = vadd.s32 80, %v12339_v27 }
 0x44a   : > { %3591 = vperm.xlu0 %10613, %v11021_v0  }
 0x44c   : > { %3793 = vperm.xlu1 %10612, %v3455_v39  }
 0x44e   : > { %3601 = vperm.xlu0 %10613, %v11023_v7  }
 0x450   : > { %3798 = vperm.xlu1 %10612, %v3456_v1  }
 0x452   : > { %3606 = vperm.xlu0 %10613, %v11025_v63  }
 0x454   : > { %3803 = vperm.xlu1 %10612, %v3457_v17  }
 0x456   : > { %3611 = vperm.xlu0 %10613, %v11027_v36   ;;  %v14844_v36 = vmov 0 }
 0x457   : > { %v3467_v22 = vpop.permute.xlu1 %3466  ;;  %v14845_v36 = vsel %vm12404_vm6, 4294967295, %v14844_v36 }
 0x458   : > { %3808 = vperm.xlu1 %10612, %v3458_v14   ;;  %v3620_v8 = vmul.f32 %v3467_v22, %v11682_v13  ;;  %14846 = vst [vmem:[#allocation35_spill] sm:$0xff] %v14845_v36  ;;  %v3905_v36 = vadd.s32 232, %v12339_v27 }
 0x459   : > { %v3462_v38 = vpop.permute.xlu0 %3461 }
 0x45a   : > { %3616 = vperm.xlu0 %10613, %v11029_v9   ;;  %v3619_v62 = vmul.f32 %v3462_v38, %v11680_v12 }
 0x45b   : > { %v3659_v23 = vpop.permute.xlu1 %3658 }
 0x45c   : > { %v3812_v6 = vmul.f32 %v3659_v23, %v11682_v13 }
 0x45d   : > { %v3654_v44 = vpop.permute.xlu0 %3653 }
 0x45e   : > { %v3811_v37 = vmul.f32 %v3654_v44, %v11680_v12  ;;  %v12349_v29 = vadd.f32 %v3812_v6, %v3620_v8  ;;  %v3968_v8 = vand.u32 15, %v3884_v11  ;;  %v3982_v11 = vand.u32 15, %v3886_v32 }
 0x45f   : > { %v3669_v16 = vpop.permute.xlu1 %3668 }
 0x460   : > { %v12351_v41 = vadd.f32 %v3811_v37, %v3619_v62  ;;  %v4388_v34 = vrot.slane %v12349_v29, 7  ;;  %v3814_v25 = vmul.f32 %v3669_v16, %v11697_v28  ;;  %v3879_v62 = vadd.s32 24, %v12339_v27 }
 0x461   : > { %v3477_v56 = vpop.permute.xlu0 %3476  ;;  %vm12484_vm10 = vcmp.gt.s32.totalorder %v3968_v8, 0  ;;  %vm12538_vm12 = vcmp.gt.s32.totalorder %v3982_v11, 0 }
 0x462   : > { %14836 = vst [vmem:[#allocation31_spill] sm:$0xff] %v12351_v41  ;;  %10113 = vmatprep.mubr.msk.f32.mxu1 %vm14692_vm2, %v12351_v41  ;;  %v4387_v13 = vrot.slane %v12351_v41, 7  ;;  %v3622_v49 = vmul.f32 %v3477_v56, %v11697_v28  ;;  %v3882_v28 = vadd.s32 48, %v12339_v27 }
 0x463   : > { %v3664_v12 = vpop.permute.xlu1 %3663  ;;  %10114 = vmatmul.mubr.msk.f32.gmra.mxu1 %vm14692_vm2, %v12349_v29 }
 0x464   : > { %v12365_v51 = vsel %vm14597_vm3, 0.0, %v4387_v13  ;;  %v3813_v60 = vmul.f32 %v3664_v12, %v11695_v26  ;;  %v12376_v53 = vsel %vm14597_vm3, %v4387_v13, %v4388_v34  ;;  %v12380_v45 = vadd.f32 %v3814_v25, %v3622_v49 }
 0x465   : > { %v3472_v33 = vpop.permute.xlu0 %3471  ;;  %v4541_v4 = vsel %vm12356_vm4, %v12365_v51, 0.0  ;;  %v3954_v1 = vand.u32 15, %v3882_v28 }
 0x466   : > { %v3621_v5 = vmul.f32 %v3472_v33, %v11695_v26  ;;  %10057 = vmatprep.mubr.msk.f32.mxu0 %vm14692_vm2, %v4541_v4  ;;  %v14840_v26 = vmov 0  ;;  %v4392_v7 = vrot.slane %v12380_v45, 7  ;;  %v14579_v37 = vrot.slane %v12380_v45, 1 }
 0x467   : > { %v3679_v24 = vpop.permute.xlu1 %3678  ;;  %10058 = vmatmul.mubr.msk.f32.gmra.mxu0 %vm14692_vm2, %v12376_v53  ;;  %v14841_v26 = vsel %vm12388_vm5, 4294967295, %v14840_v26  ;;  %vm12430_vm7 = vcmp.gt.s32.totalorder %v3954_v1, 0 }
 0x468   : > { %v12382_v59 = vadd.f32 %v3813_v60, %v3621_v5  ;;  %14842 = vst [vmem:[#allocation33_spill] sm:$0xff] %v14841_v26  ;;  %v3816_v3 = vmul.f32 %v3679_v24, %v11712_v35  ;;  %v14849_v42 = vsel %vm12430_vm7, 4294967295, %v14848_v42 }
 0x469   : > { %v3487_v46 = vpop.permute.xlu0 %3486  ;;  %14850 = vst [vmem:[#allocation37_spill] sm:$0xff] %v14849_v42 }
 0x46a   : > { %10116 = vmatprep.mubr.msk.f32.mxu1 %vm14692_vm2, %v12382_v59  ;;  %v4390_v19 = vrot.slane %v12382_v59, 7  ;;  %v3624_v0 = vmul.f32 %v3487_v46, %v11712_v35  ;;  %v3933_v46 = vand.u32 15, %v3879_v62 }
 0x46b   : > { %v3674_v21 = vpop.permute.xlu1 %3673  ;;  %10117 = vmatmul.mubr.msk.f32.gmra.mxu1 %vm14692_vm2, %v12380_v45 }
 0x46c   : > { %v12397_v2 = vsel %vm14597_vm3, %v4388_v34, %v4390_v19  ;;  %v3815_v17 = vmul.f32 %v3674_v21, %v11699_v30  ;;  %v12416_v9 = vsel %vm14597_vm3, %v4390_v19, %v4392_v7  ;;  %v12424_v35 = vadd.f32 %v3816_v3, %v3624_v0 }
 0x46d   : > { %14843 = vst [vmem:[#allocation34_spill] sm:$0xff] %v12397_v2  ;;  %v3482_v39 = vpop.permute.xlu0 %3481  ;;  %v4543_v63 = vsel %vm12388_vm5, %v12397_v2, 0.0  ;;  %14847 = vst [vmem:[#allocation36_spill] sm:$0xff] %v12416_v9  ;;  %v14855_v19 = vmov 0  ;;  %vm12499_vm11 = vcmp.lt.s32.totalorder %v3933_v46, 15  ;;  %v14865_v46 = vmov 0 }
 0x46e   : > { %v3623_v20 = vmul.f32 %v3482_v39, %v11699_v30  ;;  %10060 = vmatprep.mubr.msk.f32.mxu0 %vm14692_vm2, %v4543_v63  ;;  %v3919_v30 = vand.u32 15, %v3877_v31  ;;  %v4396_v56 = vrot.slane %v12424_v35, 7  ;;  %v14856_v19 = vsel %vm12484_vm10, 4294967295, %v14855_v19 }
 0x46f   : > { %v3689_v14 = vpop.permute.xlu1 %3688  ;;  %10061 = vmatmul.mubr.msk.f32.gmra.mxu0 %vm14692_vm2, %v12416_v9  ;;  %14857 = vst [vmem:[#allocation40_spill] sm:$0xff] %v14856_v19  ;;  %v3881_v31 = vadd.s32 40, %v12339_v27  ;;  %v14578_v39 = vrot.slane %v12424_v35, 1  ;;  %v14866_v46 = vsel %vm12538_vm12, 4294967295, %v14865_v46 }
 0x470   : > { %v12426_v22 = vadd.f32 %v3815_v17, %v3623_v20  ;;  %vm12445_vm9 = vcmp.lt.s32.totalorder %v3919_v30, 15  ;;  %v3818_v13 = vmul.f32 %v3689_v14, %v11729_v47  ;;  %v14859_v17 = vmov 0  ;;  %14867 = vst [vmem:[#allocation44_spill] sm:$0xff] %v14866_v46 }
 0x471   : > { %v3497_v38 = vpop.permute.xlu0 %3496  ;;  %v14853_v48 = vsel %vm12445_vm9, 4294967295, %v14852_v48  ;;  %v14860_v17 = vsel %vm12499_vm11, 4294967295, %v14859_v17 }
 0x472   : > { %10119 = vmatprep.mubr.msk.f32.mxu1 %vm14692_vm2, %v12426_v22  ;;  %v4394_v23 = vrot.slane %v12426_v22, 7  ;;  %v14577_v6 = vrot.slane %v12426_v22, 1  ;;  %v3626_v61 = vmul.f32 %v3497_v38, %v11729_v47 }
 0x473   : > { %v3684_v44 = vpop.permute.xlu1 %3683  ;;  %10120 = vmatmul.mubr.msk.f32.gmra.mxu1 %vm14692_vm2, %v12424_v35 }
 0x474   : > { %v12442_v16 = vsel %vm14597_vm3, %v4392_v7, %v4394_v23  ;;  %v12461_v33 = vsel %vm14596_vm8, %v14579_v37, %v14577_v6  ;;  %v3817_v4 = vmul.f32 %v3684_v44, %v11717_v40  ;;  %v12467_v57 = vsel %vm14597_vm3, %v4394_v23, %v4396_v56  ;;  %v14861_v44 = vld [vmem:[#allocation11_spill] sm:$0xff] }
 0x475   : > { %14851 = vst [vmem:[#allocation38_spill] sm:$0xff] %v12442_v16  ;;  %v3492_v12 = vpop.permute.xlu0 %3491  ;;  %v4545_v49 = vsel %vm12430_vm7, %v12442_v16, 0.0  ;;  %14854 = vst [vmem:[#allocation39_spill] sm:$0xff] %v12467_v57  ;;  %v12477_v24 = vadd.f32 %v3818_v13, %v3626_v61 }
 0x476   : > { %v3625_v47 = vmul.f32 %v3492_v12, %v11717_v40  ;;  %10063 = vmatprep.mubr.msk.f32.mxu0 %vm14692_vm2, %v4545_v49 }
 0x477   : > { %v3699_v60 = vpop.permute.xlu1 %3698  ;;  %10064 = vmatmul.mubr.msk.f32.gmra.mxu0 %vm14692_vm2, %v12467_v57  ;;  %v4400_v3 = vrot.slane %v12477_v24, 7 }
 0x478   : > { %v12479_v40 = vadd.f32 %v3817_v4, %v3625_v47  ;;  %v3820_v23 = vmul.f32 %v3699_v60, %v11748_v54  ;;  %v3947_v4 = vand.u32 15, %v3881_v31  ;;  %v3888_v60 = vadd.s32 96, %v12339_v27 }
 0x479   : > { %v3507_v28 = vpop.permute.xlu0 %3506  ;;  %v14576_v31 = vrot.slane %v12477_v24, 1 }
 0x47a   : > { %10122 = vmatprep.mubr.msk.f32.mxu1 %vm14692_vm2, %v12479_v40  ;;  %v4398_v21 = vrot.slane %v12479_v40, 7  ;;  %v14575_v0 = vrot.slane %v12479_v40, 1  ;;  %v3628_v63 = vmul.f32 %v3507_v28, %v11748_v54  ;;  %vm12553_vm13 = vcmp.lt.s32.totalorder %v3947_v4, 15 }
 0x47b   : > { %v3694_v7 = vpop.permute.xlu1 %3693  ;;  %10123 = vmatmul.mubr.msk.f32.gmra.mxu1 %vm14692_vm2, %v12477_v24 }
 0x47c   : > { %v12496_v1 = vsel %vm14597_vm3, %v4396_v56, %v4398_v21  ;;  %v12514_v38 = vsel %vm14596_vm8, %v14578_v39, %v14575_v0  ;;  %v3819_v8 = vmul.f32 %v3694_v7, %v14861_v44  ;;  %v12521_v61 = vsel %vm14597_vm3, %v4398_v21, %v4400_v3  ;;  %v12633_v39 = vld [vmem:[#allocation6 + $0xb8] sm:$0xff] }
 0x47d   : > { %14858 = vst [vmem:[#allocation41_spill] sm:$0xff] %v12496_v1  ;;  %v3502_v20 = vpop.permute.xlu0 %3501  ;;  %v4547_v14 = vsel %vm12484_vm10, %v12496_v1, 0.0  ;;  %14862 = vst [vmem:[#allocation11_spill] sm:$0xff] %v12521_v61  ;;  %v12531_v12 = vadd.f32 %v3820_v23, %v3628_v63  ;;  %v3883_v7 = vadd.s32 56, %v12339_v27  ;;  %v14868_v63 = vld [vmem:[#allocation13_spill] sm:$0xff]  ;;  %v14870_v23 = vmov 0  ;;  %10326 = vmatprep.subr.mxu1 %v12633_v39 }
 0x47e   : > { %v3627_v62 = vmul.f32 %v3502_v20, %v14861_v44  ;;  %10066 = vmatprep.mubr.msk.f32.mxu0 %vm14692_vm2, %v4547_v14  ;;  %v14871_v23 = vsel %vm12553_vm13, 4294967295, %v14870_v23  ;;  %v14882_v0 = vmov 0  ;;  %vm15031_vm10 = vcmask 1040384  }
 0x47f   : > { %v3709_v56 = vpop.permute.xlu1 %3708  ;;  %10067 = vmatmul.mubr.msk.f32.gmra.mxu0 %vm14692_vm2, %v12521_v61  ;;  %14863 = vst [vmem:[#allocation42_spill] sm:$0xff] %v12531_v12  ;;  %v4404_v11 = vrot.slane %v12531_v12, 7 }
 0x480   : > { %v12533_v49 = vadd.f32 %v3819_v8, %v3627_v62  ;;  %v3996_v62 = vand.u32 15, %v3888_v60  ;;  %v3822_v4 = vmul.f32 %v3709_v56, %v14868_v63 }
 0x481   : > { %v3517_v47 = vpop.permute.xlu0 %3516 }
 0x482   : > { %14864 = vst [vmem:[#allocation43_spill] sm:$0xff] %v12533_v49  ;;  %10125 = vmatprep.mubr.msk.f32.mxu1 %vm14692_vm2, %v12533_v49  ;;  %v4402_v28 = vrot.slane %v12533_v49, 7  ;;  %v14574_v32 = vrot.slane %v12533_v49, 1  ;;  %v3630_v20 = vmul.f32 %v3517_v47, %v14868_v63  ;;  %v14873_v47 = vld [vmem:[#allocation12_spill] sm:$0xff]  ;;  %vm12592_vm14 = vcmp.gt.s32.totalorder %v3996_v62, 0 }
 0x483   : > { %v3704_v21 = vpop.permute.xlu1 %3703  ;;  %10126 = vmatmul.mubr.msk.f32.gmra.mxu1 %vm14692_vm2, %v12531_v12 }
 0x484   : > { %v12550_v14 = vsel %vm14597_vm3, %v4400_v3, %v4402_v28  ;;  %v12568_v3 = vsel %vm14596_vm8, %v14576_v31, %v14574_v32  ;;  %v3821_v25 = vmul.f32 %v3704_v21, %v14873_v47  ;;  %v12575_v60 = vsel %vm14597_vm3, %v4402_v28, %v4404_v11 }
 0x485   : > { %14869 = vst [vmem:[#allocation13_spill] sm:$0xff] %v12550_v14  ;;  %v3512_v44 = vpop.permute.xlu0 %3511  ;;  %v4549_v8 = vsel %vm12538_vm12, %v12550_v14, 0.0  ;;  %14872 = vst [vmem:[#allocation45_spill] sm:$0xff] %v12568_v3  ;;  %v12585_v21 = vadd.f32 %v3822_v4, %v3630_v20  ;;  %v3890_v28 = vadd.s32 112, %v12339_v27  ;;  %vm14919_vm12 = vcmask 1040384  }
 0x486   : > { %v3629_v13 = vmul.f32 %v3512_v44, %v14873_v47  ;;  %10069 = vmatprep.mubr.msk.f32.mxu0 %vm14692_vm2, %v4549_v8  ;;  %14874 = vst [vmem:[#allocation12_spill] sm:$0xff] %v12575_v60  ;;  %v3961_v44 = vand.u32 15, %v3883_v7  ;;  %v14877_v47 = vmov 0  ;;  %v14880_v7 = vld [vmem:[#allocation16_spill] sm:$0xff] }
 0x487   : > { %v3719_v5 = vpop.permute.xlu1 %3718  ;;  %10070 = vmatmul.mubr.msk.f32.gmra.mxu0 %vm14692_vm2, %v12575_v60  ;;  %14875 = vst [vmem:[#allocation46_spill] sm:$0xff] %v12585_v21  ;;  %v14878_v47 = vsel %vm12592_vm14, 4294967295, %v14877_v47  ;;  %v4408_v62 = vrot.slane %v12585_v21, 7  ;;  %v4010_v6 = vand.u32 15, %v3890_v28 }
 0x488   : > { %v12587_v63 = vadd.f32 %v3821_v25, %v3629_v13  ;;  %14879 = vst [vmem:[#allocation48_spill] sm:$0xff] %v14878_v47  ;;  %v3885_v25 = vadd.s32 72, %v12339_v27  ;;  %v14581_v13 = vrot.slane %v12531_v12, 1  ;;  %vm12607_vm15 = vcmp.lt.s32.totalorder %v3961_v44, 15 }
 0x489   : > { %v3527_v8 = vpop.permute.xlu0 %3526  ;;  %v14883_v0 = vsel %vm12607_vm15, 4294967295, %v14882_v0  ;;  %v3824_v44 = vmul.f32 %v3719_v5, %v14880_v7  ;;  %vm12649_vm0 = vcmp.gt.s32.totalorder %v4010_v6, 0 }
 0x48a   : > { %14876 = vst [vmem:[#allocation47_spill] sm:$0xff] %v12587_v63  ;;  %10128 = vmatprep.mubr.msk.f32.mxu1 %vm14692_vm2, %v12587_v63  ;;  %v4406_v52 = vrot.slane %v12587_v63, 7  ;;  %v14580_v32 = vrot.slane %v12587_v63, 1  ;;  %v3632_v20 = vmul.f32 %v3527_v8, %v14880_v7  ;;  %14884 = vst [vmem:[#allocation49_spill] sm:$0xff] %v14883_v0  ;;  %v14886_v8 = vld [vmem:[#allocation14_spill] sm:$0xff]  ;;  %v3892_v7 = vadd.s32 128, %v12339_v27 }
 0x48b   : > { %v3714_v56 = vpop.permute.xlu1 %3713  ;;  %10129 = vmatmul.mubr.msk.f32.gmra.mxu1 %vm14692_vm2, %v12585_v21 }
 0x48c   : > { %v12604_v4 = vsel %vm14597_vm3, %v4404_v11, %v4406_v52  ;;  %v12622_v11 = vsel %vm14596_vm8, %v14581_v13, %v14580_v32  ;;  %v3823_v30 = vmul.f32 %v3714_v56, %v14886_v8  ;;  %v12629_v28 = vsel %vm14597_vm3, %v4406_v52, %v4408_v62 }
 0x48d   : > { %14881 = vst [vmem:[#allocation16_spill] sm:$0xff] %v12604_v4  ;;  %v3522_v31 = vpop.permute.xlu0 %3521  ;;  %v4551_v54 = vsel %vm12592_vm14, %v12604_v4, 0.0  ;;  %14885 = vst [vmem:[#allocation50_spill] sm:$0xff] %v12622_v11  ;;  %v3975_v52 = vand.u32 15, %v3885_v25  ;;  %v14893_v25 = vld [vmem:[#allocation17_spill] sm:$0xff]  ;;  %v4024_v63 = vand.u32 15, %v3892_v7 }
 0x48e   : > { %v3631_v37 = vmul.f32 %v3522_v31, %v14886_v8  ;;  %10072 = vmatprep.mubr.msk.f32.mxu0 %vm14692_vm2, %v4551_v54  ;;  %14887 = vst [vmem:[#allocation14_spill] sm:$0xff] %v12629_v28  ;;  %v12641_v31 = vadd.f32 %v3824_v44, %v3632_v20  ;;  %v14890_v8 = vmov 0  ;;  %vm14937_vm14 = vcmask 1040384  }
 0x48f   : > { %v3729_v34 = vpop.permute.xlu1 %3728  ;;  %10073 = vmatmul.mubr.msk.f32.gmra.mxu0 %vm14692_vm2, %v12629_v28  ;;  %v14891_v8 = vsel %vm12649_vm0, 4294967295, %v14890_v8  ;;  %vm12664_vm1 = vcmp.lt.s32.totalorder %v3975_v52, 15  ;;  %v14901_v28 = vld [vmem:[#allocation15_spill] sm:$0xff] }
 0x490   : > { %14888 = vst [vmem:[#allocation51_spill] sm:$0xff] %v12641_v31  ;;  %v12643_v54 = vadd.f32 %v3823_v30, %v3631_v37  ;;  %14892 = vst [vmem:[#allocation53_spill] sm:$0xff] %v14891_v8  ;;  %v3887_v37 = vadd.s32 88, %v12339_v27  ;;  %v4412_v6 = vrot.slane %v12641_v31, 7  ;;  %v14896_v58 = vsel %vm12664_vm1, 4294967295, %v14895_v58 }
 0x491   : > { %v3537_v56 = vpop.permute.xlu0 %3536  ;;  %14897 = vst [vmem:[#allocation54_spill] sm:$0xff] %v14896_v58  ;;  %v3826_v52 = vmul.f32 %v3729_v34, %v14893_v25  ;;  %vm14912_vm1 = vcmask 1040384  }
 0x492   : > { %14889 = vst [vmem:[#allocation52_spill] sm:$0xff] %v12643_v54  ;;  %10131 = vmatprep.mubr.msk.f32.mxu1 %vm14692_vm2, %v12643_v54  ;;  %v4410_v32 = vrot.slane %v12643_v54, 7  ;;  %v3634_v5 = vmul.f32 %v3537_v56, %v14893_v25  ;;  %v14898_v56 = vrot.slane %v12643_v54, 1  ;;  %v3989_v30 = vand.u32 15, %v3887_v37 }
 0x493   : > { %v3724_v44 = vpop.permute.xlu1 %3723  ;;  %10132 = vmatmul.mubr.msk.f32.gmra.mxu1 %vm14692_vm2, %v12641_v31 }
 0x494   : > { %v12661_v13 = vsel %vm14597_vm3, %v4408_v62, %v4410_v32  ;;  %v14899_v62 = vrot.slane %v12585_v21, 1  ;;  %v3825_v49 = vmul.f32 %v3724_v44, %v14901_v28  ;;  %v12686_v7 = vsel %vm14597_vm3, %v4410_v32, %v4412_v6  ;;  %v14918_v21 = vld [vmem:[#allocation18_spill] sm:$0xff]  ;;  %v10112_v8 = vpop.f32.mrf.mxu1 }
 0x495   : > { %14894 = vst [vmem:[#allocation17_spill] sm:$0xff] %v12661_v13  ;;  %v3532_v55 = vpop.permute.xlu0 %3531  ;;  %v4553_v20 = vsel %vm12649_vm0, %v12661_v13, 0.0  ;;  %14902 = vst [vmem:[#allocation15_spill] sm:$0xff] %v12686_v7  ;;  %v12696_v44 = vadd.f32 %v3826_v52, %v3634_v5  ;;  %v3894_v32 = vadd.s32 144, %v12339_v27  ;;  %vm12711_vm3 = vcmp.lt.s32.totalorder %v3989_v30, 15  ;;  %v14911_v5 = vld [vmem:[#allocation19_spill] sm:$0xff] }
 0x496   : > { %v12679_v11 = vsel %vm14596_vm8, %v14899_v62, %v14898_v56  ;;  %v3633_v12 = vmul.f32 %v3532_v55, %v14901_v28  ;;  %10075 = vmatprep.mubr.msk.f32.mxu0 %vm14692_vm2, %v4553_v20  ;;  %vm12703_vm8 = vcmp.gt.s32.totalorder %v4024_v63, 0  ;;  %v14905_v20 = vmov 0 }
 0x497   : > { %14900 = vst [vmem:[#allocation55_spill] sm:$0xff] %v12679_v11  ;;  %v3739_v3 = vpop.permute.xlu1 %3738  ;;  %10076 = vmatmul.mubr.msk.f32.gmra.mxu0 %vm14692_vm2, %v12686_v7  ;;  %14903 = vst [vmem:[#allocation56_spill] sm:$0xff] %v12696_v44  ;;  %v14906_v20 = vsel %vm12703_vm8, 4294967295, %v14905_v20  ;;  %v4416_v34 = vrot.slane %v12696_v44, 7  ;;  %v3889_v56 = vadd.s32 104, %v12339_v27  ;;  %v4038_v30 = vand.u32 15, %v3894_v32 }
 0x498   : > { %v12698_v55 = vadd.f32 %v3825_v49, %v3633_v12  ;;  %14907 = vst [vmem:[#allocation58_spill] sm:$0xff] %v14906_v20  ;;  %v14908_v12 = vmov 0  ;;  %v3828_v7 = vmul.f32 %v3739_v3, %v14911_v5  ;;  %v14929_v11 = vmov 0 }
 0x499   : > { %v3547_v28 = vpop.permute.xlu0 %3546  ;;  %v14909_v12 = vsel %vm12711_vm3, 4294967295, %v14908_v12  ;;  %vm14955_vm0 = vcmask 1040384  }
 0x49a   : > { %14904 = vst [vmem:[#allocation57_spill] sm:$0xff] %v12698_v55  ;;  %10134 = vmatprep.mubr.msk.f32.mxu1 %vm14692_vm2, %v12698_v55  ;;  %v4414_v37 = vrot.slane %v12698_v55, 7  ;;  %14910 = vst [vmem:[#allocation59_spill] sm:$0xff] %v14909_v12  ;;  %v3636_v52 = vmul.f32 %v3547_v28, %v14911_v5  ;;  %v14914_v49 = vrot.slane %v12698_v55, 1  ;;  %v14915_v28 = vrot.slane %v12641_v31, 1  ;;  %v14936_v31 = vld [vmem:[#allocation20_spill] sm:$0xff] }
 0x49b   : > { %v3734_v62 = vpop.permute.xlu1 %3733  ;;  %10135 = vmatmul.mubr.msk.f32.gmra.mxu1 %vm14692_vm2, %v12696_v44  ;;  %v14923_v5 = vmov 0 }
 0x49c   : > { %v12718_v63 = vsel %vm14912_vm1, %v4412_v6, %v4414_v37  ;;  %vm14916_vm1 = vcmask 1046528   ;;  %v3827_v13 = vmul.f32 %v3734_v62, %v14918_v21  ;;  %v12740_v32 = vsel %vm14919_vm12, %v4414_v37, %v4416_v34 }
 0x49d   : > { %14913 = vst [vmem:[#allocation19_spill] sm:$0xff] %v12718_v63  ;;  %v3542_v25 = vpop.permute.xlu0 %3541  ;;  %v4555_v54 = vsel %vm12703_vm8, %v12718_v63, 0.0  ;;  %v12733_v6 = vsel %vm14916_vm1, %v14915_v28, %v14914_v49  ;;  %14920 = vst [vmem:[#allocation18_spill] sm:$0xff] %v12740_v32  ;;  %v12750_v62 = vadd.f32 %v3828_v7, %v3636_v52  ;;  %v3896_v37 = vadd.s32 160, %v12339_v27  ;;  %v14926_v7 = vld [vmem:[#allocation21_spill] sm:$0xff] }
 0x49e   : > { %14917 = vst [vmem:[#allocation60_spill] sm:$0xff] %v12733_v6  ;;  %v3635_v58 = vmul.f32 %v3542_v25, %v14918_v21  ;;  %10078 = vmatprep.mubr.msk.f32.mxu0 %vm14692_vm2, %v4555_v54  ;;  %v4003_v54 = vand.u32 15, %v3889_v56  ;;  %vm12757_vm12 = vcmp.gt.s32.totalorder %v4038_v30, 0  ;;  %vm14927_vm1 = vcmask 1040384  }
 0x49f   : > { %v3749_v4 = vpop.permute.xlu1 %3748  ;;  %10079 = vmatmul.mubr.msk.f32.gmra.mxu0 %vm14692_vm2, %v12740_v32  ;;  %14921 = vst [vmem:[#allocation61_spill] sm:$0xff] %v12750_v62  ;;  %v14924_v5 = vsel %vm12757_vm12, 4294967295, %v14923_v5  ;;  %v4420_v30 = vrot.slane %v12750_v62, 7  ;;  %v4052_v6 = vand.u32 15, %v3896_v37  ;;  %vm14973_vm8 = vcmask 1040384  }
 0x4a0   : > { %v12752_v21 = vadd.f32 %v3827_v13, %v3635_v58  ;;  %14925 = vst [vmem:[#allocation63_spill] sm:$0xff] %v14924_v5  ;;  %v3891_v58 = vadd.s32 120, %v12339_v27  ;;  %vm12772_vm3 = vcmp.lt.s32.totalorder %v4003_v54, 15  ;;  %v3830_v54 = vmul.f32 %v3749_v4, %v14926_v7 }
 0x4a1   : > { %v3557_v25 = vpop.permute.xlu0 %3556  ;;  %v14930_v11 = vsel %vm12772_vm3, 4294967295, %v14929_v11  ;;  %vm14948_vm3 = vcmask 1040384   ;;  %v15112_v42 = vld [vmem:[#allocation59_spill] sm:$0xff] }
 0x4a2   : > { %14922 = vst [vmem:[#allocation62_spill] sm:$0xff] %v12752_v21  ;;  %10137 = vmatprep.mubr.msk.f32.mxu1 %vm14692_vm2, %v12752_v21  ;;  %v4418_v28 = vrot.slane %v12752_v21, 7  ;;  %v3638_v56 = vmul.f32 %v3557_v25, %v14926_v7  ;;  %14931 = vst [vmem:[#allocation64_spill] sm:$0xff] %v14930_v11  ;;  %v14932_v25 = vrot.slane %v12752_v21, 1  ;;  %v4017_v13 = vand.u32 15, %v3891_v58 }
 0x4a3   : > { %v3744_v3 = vpop.permute.xlu1 %3743  ;;  %10138 = vmatmul.mubr.msk.f32.gmra.mxu1 %vm14692_vm2, %v12750_v62  ;;  %v14941_v58 = vmov 0 }
 0x4a4   : > { %v12769_v52 = vsel %vm14927_vm1, %v4416_v34, %v4418_v28  ;;  %v14933_v34 = vrot.slane %v12696_v44, 1  ;;  %vm14934_vm1 = vcmask 1046528   ;;  %v3829_v63 = vmul.f32 %v3744_v3, %v14936_v31  ;;  %v14954_v44 = vld [vmem:[#allocation22_spill] sm:$0xff] }
 0x4a5   : > { %14928 = vst [vmem:[#allocation21_spill] sm:$0xff] %v12769_v52  ;;  %v3552_v49 = vpop.permute.xlu0 %3551  ;;  %v4557_v55 = vsel %vm12757_vm12, %v12769_v52, 0.0  ;;  %v12794_v37 = vsel %vm14937_vm14, %v4418_v28, %v4420_v30  ;;  %v12804_v3 = vadd.f32 %v3830_v54, %v3638_v56  ;;  %v3898_v28 = vadd.s32 176, %v12339_v27 }
 0x4a6   : > { %v12787_v32 = vsel %vm14934_vm1, %v14933_v34, %v14932_v25  ;;  %v3637_v12 = vmul.f32 %v3552_v49, %v14936_v31  ;;  %10081 = vmatprep.mubr.msk.f32.mxu0 %vm14692_vm2, %v4557_v55  ;;  %14938 = vst [vmem:[#allocation20_spill] sm:$0xff] %v12794_v37  ;;  %v10056_v55 = vpop.f32.mrf.mxu0  ;;  %vm12812_vm14 = vcmp.gt.s32.totalorder %v4052_v6, 0  ;;  %vm12820_vm1 = vcmp.lt.s32.totalorder %v4017_v13, 15  ;;  %v14947_v6 = vld [vmem:[#allocation23_spill] sm:$0xff] }
 0x4a7   : > { %14935 = vst [vmem:[#allocation65_spill] sm:$0xff] %v12787_v32  ;;  %v3759_v47 = vpop.permute.xlu1 %3758  ;;  %10082 = vmatmul.mubr.msk.f32.gmra.mxu0 %vm14692_vm2, %v12794_v37  ;;  %14939 = vst [vmem:[#allocation66_spill] sm:$0xff] %v12804_v3  ;;  %v14942_v58 = vsel %vm12812_vm14, 4294967295, %v14941_v58  ;;  %v4424_v25 = vrot.slane %v12804_v3, 7  ;;  %v3893_v56 = vadd.s32 136, %v12339_v27  ;;  %v4066_v32 = vand.u32 15, %v3898_v28 }
 0x4a8   : > { %v12806_v31 = vadd.f32 %v3829_v63, %v3637_v12  ;;  %4894 = vst.msk [vmem:[#allocation2 + $0x8] sm:$0xff] %vm14692_vm2, %v10056_v55  ;;  %14943 = vst [vmem:[#allocation68_spill] sm:$0xff] %v14942_v58  ;;  %v4734_v34 = vpop.f32.mrf.mxu0  ;;  %v14944_v63 = vmov 0  ;;  %v3832_v37 = vmul.f32 %v3759_v47, %v14947_v6  ;;  %vm14991_vm12 = vcmask 1040384  }
 0x4a9   : > { %v3567_v49 = vpop.permute.xlu0 %3566  ;;  %v14945_v63 = vsel %vm12820_vm1, 4294967295, %v14944_v63  ;;  %4893 = vst.msk [vmem:[#allocation2] sm:$0xff] %vm14692_vm2, %v4734_v34 }
 0x4aa   : > { %14940 = vst [vmem:[#allocation67_spill] sm:$0xff] %v12806_v31  ;;  %10140 = vmatprep.mubr.msk.f32.mxu1 %vm14692_vm2, %v12806_v31  ;;  %v4422_v7 = vrot.slane %v12806_v31, 7  ;;  %14946 = vst [vmem:[#allocation69_spill] sm:$0xff] %v14945_v63  ;;  %v3640_v55 = vmul.f32 %v3567_v49, %v14947_v6  ;;  %v14950_v34 = vrot.slane %v12806_v31, 1  ;;  %v14951_v49 = vrot.slane %v12750_v62, 1 }
 0x4ab   : > { %v3754_v12 = vpop.permute.xlu1 %3753  ;;  %10141 = vmatmul.mubr.msk.f32.gmra.mxu1 %vm14692_vm2, %v12804_v3  ;;  %v14959_v31 = vmov 0 }
 0x4ac   : > { %v12828_v4 = vsel %vm14948_vm3, %v4420_v30, %v4422_v7  ;;  %vm14952_vm3 = vcmask 1046528   ;;  %v3831_v52 = vmul.f32 %v3754_v12, %v14954_v44  ;;  %v12850_v28 = vsel %vm14955_vm0, %v4422_v7, %v4424_v25 }
 0x4ad   : > { %14949 = vst [vmem:[#allocation23_spill] sm:$0xff] %v12828_v4  ;;  %v3562_v21 = vpop.permute.xlu0 %3561  ;;  %v4559_v13 = vsel %vm12812_vm14, %v12828_v4, 0.0  ;;  %v12843_v30 = vsel %vm14952_vm3, %v14951_v49, %v14950_v34  ;;  %14956 = vst [vmem:[#allocation22_spill] sm:$0xff] %v12850_v28  ;;  %v12860_v12 = vadd.f32 %v3832_v37, %v3640_v55  ;;  %vm12867_vm0 = vcmp.gt.s32.totalorder %v4066_v32, 0  ;;  %v5056_v55 = vpop.f32.mrf.mxu1 }
 0x4ae   : > { %14953 = vst [vmem:[#allocation70_spill] sm:$0xff] %v12843_v30  ;;  %v3639_v11 = vmul.f32 %v3562_v21, %v14954_v44  ;;  %10084 = vmatprep.mubr.msk.f32.mxu0 %vm14692_vm2, %v4559_v13  ;;  %v4031_v21 = vand.u32 15, %v3893_v56  ;;  %v3900_v13 = vadd.s32 192, %v12339_v27  ;;  %v14960_v31 = vsel %vm12867_vm0, 4294967295, %v14959_v31 }
 0x4af   : > { %v3769_v54 = vpop.permute.xlu1 %3768  ;;  %10085 = vmatmul.mubr.msk.f32.gmra.mxu0 %vm14692_vm2, %v12850_v28  ;;  %14957 = vst [vmem:[#allocation71_spill] sm:$0xff] %v12860_v12  ;;  %v5216_v7 = vld [vmem:[#allocation2 + $0x8] sm:$0xff]  ;;  %14961 = vst [vmem:[#allocation73_spill] sm:$0xff] %v14960_v31  ;;  %v3895_v56 = vadd.s32 152, %v12339_v27  ;;  %vm14963_vm3 = vcmask 1040384   ;;  %v4428_v37 = vrot.slane %v12860_v12, 7 }
 0x4b0   : > { %v12862_v44 = vadd.f32 %v3831_v52, %v3639_v11  ;;  %v5248_v49 = vadd.f32 %v10112_v8, %v5216_v7  ;;  %v5215_v11 = vld [vmem:[#allocation2] sm:$0xff]  ;;  %v14962_v7 = vld [vmem:[#allocation25_spill] sm:$0xff]  ;;  %vm12883_vm1 = vcmp.lt.s32.totalorder %v4031_v21, 15  ;;  %v14965_v28 = vmov 0 }
 0x4b1   : > { %v3577_v6 = vpop.permute.xlu0 %3576  ;;  %v5247_v32 = vadd.f32 %v5215_v11, %v5056_v55  ;;  %v14966_v28 = vsel %vm12883_vm1, 4294967295, %v14965_v28  ;;  %v4080_v8 = vand.u32 15, %v3900_v13  ;;  %v3834_v21 = vmul.f32 %v3769_v54, %v14962_v7  ;;  %v14972_v11 = vld [vmem:[#allocation24_spill] sm:$0xff] }
 0x4b2   : > { %14958 = vst [vmem:[#allocation72_spill] sm:$0xff] %v12862_v44  ;;  %10143 = vmatprep.mubr.msk.f32.mxu1 %vm14692_vm2, %v12862_v44  ;;  %v4426_v34 = vrot.slane %v12862_v44, 7  ;;  %5280 = vst.msk [vmem:[#allocation2 + $0x8] sm:$0xff] %vm14692_vm2, %v5248_v49  ;;  %v3642_v47 = vmul.f32 %v3577_v6, %v14962_v7  ;;  %v14968_v6 = vrot.slane %v12862_v44, 1  ;;  %v4045_v44 = vand.u32 15, %v3895_v56 }
 0x4b3   : > { %v3764_v52 = vpop.permute.xlu1 %3763  ;;  %10144 = vmatmul.mubr.msk.f32.gmra.mxu1 %vm14692_vm2, %v12860_v12  ;;  %14967 = vst [vmem:[#allocation74_spill] sm:$0xff] %v14966_v28  ;;  %5279 = vst.msk [vmem:[#allocation2] sm:$0xff] %vm14692_vm2, %v5247_v32  ;;  %v14977_v56 = vmov 0  ;;  %vm14984_vm1 = vcmask 1040384   ;;  %v3897_v54 = vadd.s32 168, %v12339_v27  ;;  %vm15009_vm14 = vcmask 1040384  }
 0x4b4   : > { %v12880_v30 = vsel %vm14963_vm3, %v4424_v25, %v4426_v34  ;;  %v14969_v25 = vrot.slane %v12804_v3, 1  ;;  %vm14970_vm3 = vcmask 1046528   ;;  %v3833_v63 = vmul.f32 %v3764_v52, %v14972_v11  ;;  %v14990_v3 = vld [vmem:[#allocation26_spill] sm:$0xff] }
 0x4b5   : > { %14964 = vst [vmem:[#allocation25_spill] sm:$0xff] %v12880_v30  ;;  %v3572_v62 = vpop.permute.xlu0 %3571  ;;  %v4561_v4 = vsel %vm12867_vm0, %v12880_v30, 0.0  ;;  %v12906_v13 = vsel %vm14973_vm8, %v4426_v34, %v4428_v37  ;;  %v12916_v52 = vadd.f32 %v3834_v21, %v3642_v47  ;;  %v3902_v34 = vadd.s32 208, %v12339_v27  ;;  %v14983_v47 = vld [vmem:[#allocation27_spill] sm:$0xff] }
 0x4b6   : > { %v12898_v55 = vsel %vm14970_vm3, %v14969_v25, %v14968_v6  ;;  %v3641_v20 = vmul.f32 %v3572_v62, %v14972_v11  ;;  %10087 = vmatprep.mubr.msk.f32.mxu0 %vm14692_vm2, %v4561_v4  ;;  %14974 = vst [vmem:[#allocation24_spill] sm:$0xff] %v12906_v13  ;;  %vm12923_vm8 = vcmp.gt.s32.totalorder %v4080_v8, 0  ;;  %vm12931_vm3 = vcmp.lt.s32.totalorder %v4045_v44, 15 }
 0x4b7   : > { %14971 = vst [vmem:[#allocation75_spill] sm:$0xff] %v12898_v55  ;;  %v3779_v49 = vpop.permute.xlu1 %3778  ;;  %10088 = vmatmul.mubr.msk.f32.gmra.mxu0 %vm14692_vm2, %v12906_v13  ;;  %14975 = vst [vmem:[#allocation76_spill] sm:$0xff] %v12916_v52  ;;  %v14978_v56 = vsel %vm12923_vm8, 4294967295, %v14977_v56  ;;  %v4432_v11 = vrot.slane %v12916_v52, 7  ;;  %v4094_v44 = vand.u32 15, %v3902_v34  ;;  %v3906_v55 = vadd.s32 240, %v12339_v27 }
 0x4b8   : > { %v12918_v62 = vadd.f32 %v3833_v63, %v3641_v20  ;;  %14979 = vst [vmem:[#allocation78_spill] sm:$0xff] %v14978_v56  ;;  %v14980_v20 = vmov 0  ;;  %v3836_v13 = vmul.f32 %v3779_v49, %v14983_v47 }
 0x4b9   : > { %v3587_v4 = vpop.permute.xlu0 %3586  ;;  %v14981_v20 = vsel %vm12931_vm3, 4294967295, %v14980_v20  ;;  %vm15008_vm3 = vcmask 261120  }
 0x4ba   : > { %14976 = vst [vmem:[#allocation77_spill] sm:$0xff] %v12918_v62  ;;  %10146 = vmatprep.mubr.msk.f32.mxu1 %vm14692_vm2, %v12918_v62  ;;  %v4430_v7 = vrot.slane %v12918_v62, 7  ;;  %14982 = vst [vmem:[#allocation79_spill] sm:$0xff] %v14981_v20  ;;  %v3644_v21 = vmul.f32 %v3587_v4, %v14983_v47  ;;  %v14986_v63 = vrot.slane %v12918_v62, 1  ;;  %v14987_v4 = vrot.slane %v12860_v12, 1 }
 0x4bb   : > { %v3774_v25 = vpop.permute.xlu1 %3773  ;;  %10147 = vmatmul.mubr.msk.f32.gmra.mxu1 %vm14692_vm2, %v12916_v52  ;;  %v14995_v47 = vmov 0  ;;  %vm15011_vm15 = vmmov %vm15008_vm3 }
 0x4bc   : > { %v12938_v8 = vsel %vm14984_vm1, %v4428_v37, %v4430_v7  ;;  %vm14988_vm1 = vcmask 1046528   ;;  %v3835_v30 = vmul.f32 %v3774_v25, %v14990_v3  ;;  %v12960_v34 = vsel %vm14991_vm12, %v4430_v7, %v4432_v11 }
 0x4bd   : > { %14985 = vst [vmem:[#allocation27_spill] sm:$0xff] %v12938_v8  ;;  %v3582_v32 = vpop.permute.xlu0 %3581  ;;  %v4563_v6 = vsel %vm12923_vm8, %v12938_v8, 0.0  ;;  %v12953_v37 = vsel %vm14988_vm1, %v14987_v4, %v14986_v63  ;;  %14992 = vst [vmem:[#allocation26_spill] sm:$0xff] %v12960_v34  ;;  %v12970_v25 = vadd.f32 %v3836_v13, %v3644_v21  ;;  %v3904_v7 = vadd.s32 224, %v12339_v27  ;;  %v14998_v13 = vld [vmem:[#allocation29_spill] sm:$0xff]  ;;  %v15007_v8 = vld [vmem:[#allocation28_spill] sm:$0xff] }
 0x4be   : > { %14989 = vst [vmem:[#allocation80_spill] sm:$0xff] %v12953_v37  ;;  %v3643_v28 = vmul.f32 %v3582_v32, %v14990_v3  ;;  %10090 = vmatprep.mubr.msk.f32.mxu0 %vm14692_vm2, %v4563_v6  ;;  %v4059_v6 = vand.u32 15, %v3897_v54  ;;  %vm12977_vm12 = vcmp.gt.s32.totalorder %v4094_v44, 0  ;;  %vm14999_vm1 = vcmask 1040384  }
 0x4bf   : > { %v3789_v5 = vpop.permute.xlu1 %3788  ;;  %10091 = vmatmul.mubr.msk.f32.gmra.mxu0 %vm14692_vm2, %v12960_v34  ;;  %14993 = vst [vmem:[#allocation81_spill] sm:$0xff] %v12970_v25  ;;  %v14996_v47 = vsel %vm12977_vm12, 4294967295, %v14995_v47  ;;  %v4436_v44 = vrot.slane %v12970_v25, 7  ;;  %v4108_v37 = vand.u32 15, %v3904_v7  ;;  %v15001_v34 = vmov 0 }
 0x4c0   : > { %v12972_v3 = vadd.f32 %v3835_v30, %v3643_v28  ;;  %14997 = vst [vmem:[#allocation83_spill] sm:$0xff] %v14996_v47  ;;  %v3899_v30 = vadd.s32 184, %v12339_v27  ;;  %v3838_v12 = vmul.f32 %v3789_v5, %v14998_v13 }
 0x4c1   : > { %v3597_v32 = vpop.permute.xlu0 %3596 }
 0x4c2   : > { %14994 = vst [vmem:[#allocation82_spill] sm:$0xff] %v12972_v3  ;;  %10149 = vmatprep.mubr.msk.f32.mxu1 %vm14692_vm2, %v12972_v3  ;;  %v4434_v4 = vrot.slane %v12972_v3, 7  ;;  %v3646_v54 = vmul.f32 %v3597_v32, %v14998_v13  ;;  %v15004_v28 = vrot.slane %v12972_v3, 1  ;;  %v15005_v32 = vrot.slane %v12916_v52, 1 }
 0x4c3   : > { %v3784_v49 = vpop.permute.xlu1 %3783  ;;  %10150 = vmatmul.mubr.msk.f32.gmra.mxu1 %vm14692_vm2, %v12970_v25  ;;  %vm12996_vm2 = vcmp.lt.s32.totalorder %v4059_v6, 15  ;;  %v4073_v3 = vand.u32 15, %v3899_v30  ;;  %v3901_v52 = vadd.s32 200, %v12339_v27 }
 0x4c4   : > { %v12989_v21 = vsel %vm14999_vm1, %v4432_v11, %v4434_v4  ;;  %v15002_v34 = vsel %vm12996_vm2, 4294967295, %v15001_v34  ;;  %vm15006_vm1 = vcmask 1046528   ;;  %v3837_v20 = vmul.f32 %v3784_v49, %v15007_v8 }
 0x4c5   : > { %15000 = vst [vmem:[#allocation29_spill] sm:$0xff] %v12989_v21  ;;  %v3592_v62 = vpop.permute.xlu0 %3591  ;;  %v4565_v63 = vsel %vm12977_vm12, %v12989_v21, 0.0  ;;  %15003 = vst [vmem:[#allocation84_spill] sm:$0xff] %v15002_v34  ;;  %v13005_v11 = vsel %vm15006_vm1, %v15005_v32, %v15004_v28  ;;  %v13012_v7 = vsel %vm15009_vm14, %v4434_v4, %v4436_v44  ;;  %v4122_v49 = vand.u32 15, %v3906_v55 }
 0x4c6   : > { %v3645_v58 = vmul.f32 %v3592_v62, %v15007_v8  ;;  %10093 = vmatprep.mubr.msk.f32.mxu0 %vm15008_vm3, %v4565_v63  ;;  %15010 = vst [vmem:[#allocation28_spill] sm:$0xff] %v13012_v7  ;;  %v13023_v8 = vadd.f32 %v3838_v12, %v3646_v54  ;;  %vm13027_vm14 = vcmp.gt.s32.totalorder %v4108_v37, 0  ;;  %v15014_v28 = vmov 0 }
 0x4c7   : > { %10094 = vmatmul.mubr.msk.f32.gmra.mxu0 %vm15011_vm15, %v13012_v7  ;;  %v3794_v6 = vpop.permute.xlu1 %3793  ;;  %v15015_v28 = vsel %vm13027_vm14, 4294967295, %v15014_v28  ;;  %vm15017_vm15 = vmmov %vm15008_vm3  ;;  %vm13039_vm1 = vcmp.lt.s32.totalorder %v4073_v3, 15  ;;  %v15018_v55 = vmov 0  ;;  %v14722_v37 = vrot.slane %v12970_v25, 1 }
 0x4c8   : > { %15012 = vst [vmem:[#allocation85_spill] sm:$0xff] %v13023_v8  ;;  %v13025_v63 = vadd.f32 %v3837_v20, %v3645_v58  ;;  %15016 = vst [vmem:[#allocation87_spill] sm:$0xff] %v15015_v28  ;;  %v3839_v30 = vmul.f32 %v3794_v6, %v11961_v15  ;;  %v15019_v55 = vsel %vm13039_vm1, 4294967295, %v15018_v55  ;;  %v4087_v20 = vand.u32 15, %v3901_v52 }
 0x4c9   : > { %v3602_v4 = vpop.permute.xlu0 %3601  ;;  %15020 = vst [vmem:[#allocation88_spill] sm:$0xff] %v15019_v55  ;;  %vm15022_vm2 = vcmask 1040384   ;;  %v4440_v6 = vrot.slane %v13023_v8, 7  ;;  %v15329_v55 = vld [vmem:[#allocation81_spill] sm:$0xff] }
 0x4ca   : > { %15013 = vst [vmem:[#allocation86_spill] sm:$0xff] %v13025_v63  ;;  %v3647_v13 = vmul.f32 %v3602_v4, %v11961_v15  ;;  %10152 = vmatprep.mubr.msk.f32.mxu1 %vm15017_vm15, %v13025_v63  ;;  %v4438_v32 = vrot.slane %v13025_v63, 7  ;;  %v14721_v12 = vrot.slane %v13025_v63, 1  ;;  %vm13050_vm15 = vcmp.gt.s32.totalorder %v4122_v49, 0 }
 0x4cb   : > { %10153 = vmatmul.mubr.msk.f32.gmra.mxu1 %vm15008_vm3, %v13023_v8  ;;  %v3799_v58 = vpop.permute.xlu1 %3798  ;;  %v15024_v4 = vmov 0  ;;  %vm15027_vm3 = vcmask 1046528  }
 0x4cc   : > { %v13044_v54 = vadd.f32 %v3839_v30, %v3647_v13  ;;  %v13047_v15 = vsel %vm15022_vm2, %v4436_v44, %v4438_v32  ;;  %v15025_v4 = vsel %vm13050_vm15, 4294967295, %v15024_v4  ;;  %v3840_v62 = vmul.f32 %v3799_v58, %v11971_v50 }
 0x4cd   : > { %15023 = vst [vmem:[#allocation90_spill] sm:$0xff] %v13047_v15  ;;  %15026 = vst [vmem:[#allocation91_spill] sm:$0xff] %v15025_v4  ;;  %v3607_v3 = vpop.permute.xlu0 %3606  ;;  %v4567_v52 = vsel %vm13027_vm14, %v13047_v15, 0.0  ;;  %v13063_v44 = vsel %vm15027_vm3, %v14722_v37, %v14721_v12  ;;  %v14730_v30 = vrot.slane %v13023_v8, 1  ;;  %vm15029_vm2 = vcmask 261120   ;;  %v6751_v8 = vld [vmem:[#allocation6 + $0xb0] sm:$0xff] }
 0x4ce   : > { %15021 = vst [vmem:[#allocation89_spill] sm:$0xff] %v13044_v54  ;;  %15028 = vst [vmem:[#allocation92_spill] sm:$0xff] %v13063_v44  ;;  %v3648_v49 = vmul.f32 %v3607_v3, %v11971_v50  ;;  %10096 = vmatprep.mubr.msk.f32.mxu0 %vm15029_vm2, %v4567_v52  ;;  %v13071_v13 = vsel %vm15031_vm10, %v4438_v32, %v4440_v6  ;;  %v4442_v58 = vrot.slane %v13044_v54, 7  ;;  %v14729_v5 = vrot.slane %v13044_v54, 1 }
 0x4cf   : > { %vm15030_vm0 = vmmov %vm15029_vm2  ;;  %15032 = vst [vmem:[#allocation93_spill] sm:$0xff] %v13071_v13  ;;  %v3804_v12 = vpop.permute.xlu1 %3803  ;;  %v15035_v37 = vmov 0  ;;  %v5313_v50 = vrot.slane %v12351_v41, 1  ;;  %v5314_v44 = vrot.slane %v12349_v29, 1 }
 0x4d0   : > { %10155 = vmatprep.mubr.msk.f32.mxu1 %vm15030_vm0, %v13044_v54  ;;  %vm15033_vm13 = vmmov %vm15030_vm0  ;;  %v13083_v52 = vadd.f32 %v3840_v62, %v3648_v49  ;;  %v13086_v32 = vsel %vm15031_vm10, %v4440_v6, %v4442_v58  ;;  %vm13088_vm0 = vcmp.lt.s32.totalorder %v4087_v20, 15  ;;  %v5927_v20 = vsel %vm12404_vm6, %v12365_v51, 0.0  ;;  %v15039_v49 = vld [vmem:[#allocation30_spill] sm:$0xff] }
 0x4d1   : > { %10097 = vmatmul.mubr.msk.f32.gmra.mxu0 %vm15033_vm13, %v13071_v13  ;;  %15034 = vst [vmem:[#allocation94_spill] sm:$0xff] %v13086_v32  ;;  %v15036_v37 = vsel %vm13088_vm0, 4294967295, %v15035_v37  ;;  %vm15038_vm13 = vmmov %vm15027_vm3  ;;  %v3612_v13 = vpop.permute.xlu0 %3611  ;;  %v4569_v62 = vsel %vm13050_vm15, %v13086_v32, 0.0  ;;  %v3903_v6 = vadd.s32 216, %v12339_v27  ;;  %v3841_v3 = vmul.f32 %v3804_v12, %v15039_v49 }
 0x4d2   : > { %15037 = vst [vmem:[#allocation95_spill] sm:$0xff] %v15036_v37  ;;  %v13097_v63 = vsel %vm15038_vm13, %v14730_v30, %v14729_v5  ;;  %v3649_v54 = vmul.f32 %v3612_v13, %v15039_v49  ;;  %vm15040_vm3 = vmmov %vm15029_vm2  ;;  %10156 = vmatmul.mubr.msk.f32.gmra.mxu1 %vm15029_vm2, %v13083_v52  ;;  %v4444_v5 = vrot.slane %v13083_v52, 7  ;;  %vm15042_vm13 = vcmask 1040384  }
 0x4d3   : > { %10099 = vmatprep.mubr.msk.f32.mxu0 %vm15040_vm3, %v4569_v62  ;;  %vm15041_vm10 = vmmov %vm15029_vm2  ;;  %v3809_v51 = vpop.permute.xlu1 %3808  ;;  %v4101_v41 = vand.u32 15, %v3903_v6  ;;  %v15048_v6 = vsel %vm12356_vm4, %v12397_v2, 0.0  ;;  %v15134_v2 = vld [vmem:[#allocation52_spill] sm:$0xff] }
 0x4d4   : > { %10222 = vmatprep.mubr.msk.f32.mxu1 %vm15041_vm10, %v5927_v20  ;;  %v13121_v13 = vadd.f32 %v3841_v3, %v3649_v54  ;;  %v13124_v62 = vsel %vm15042_vm13, %v4442_v58, %v4444_v5  ;;  %vm15044_vm3 = vmmov %vm15029_vm2  ;;  %vm15045_vm2 = vcmask 1046528   ;;  %v5316_v20 = vrot.slane %v12382_v59, 1 }
 0x4d5   : > { %15043 = vst [vmem:[#allocation30_spill] sm:$0xff] %v13124_v62  ;;  %10100 = vmatmul.mubr.msk.f32.gmra.mxu0 %vm15044_vm3, %v13124_v62  ;;  %v3617_v49 = vpop.permute.xlu0 %3616  ;;  %v5405_v30 = vsel %vm15045_vm2, 0.0, %v5313_v50  ;;  %v3842_v54 = vmul.f32 %v3809_v51, %v11988_v18  ;;  %vm15046_vm10 = vmmov %vm15044_vm3  ;;  %v15047_v58 = vmov 0.0   ;;  %v4115_v51 = vand.u32 15, %v3905_v36 }
 0x4d6   : > { %v3650_v3 = vmul.f32 %v3617_v49, %v11988_v18  ;;  %10223 = vmatmul.mubr.msk.f32.vlgmr.msra.gmra.mxu1 %vm15046_vm10, %v12376_v53  ;;  %10166 = vmatprep.mubr.f32.mxu0 %v15047_v58  ;;  %v14745_v12 = vrot.slane %v13121_v13, 7  ;;  %vm15049_vm13 = vmmov %vm15044_vm3  ;;  %v5470_v18 = vsel %vm12445_vm9, %v5405_v30, 0.0  ;;  %v6384_v53 = vld [vmem:[#allocation6 + $0x90] sm:$0xff]  ;;  %vm15050_vm3 = vcmask 1040384  }
 0x4d7   : > { %10225 = vmatprep.mubr.msk.f32.mxu1 %vm15049_vm13, %v15048_v6  ;;  %10327 = vmatpush3.msra.mxu1 %v12633_v39  ;;  %v15051_v58 = vrot.slane %v13121_v13, 1  ;;  %v15052_v6 = vrot.slane %v13083_v52, 1  ;;  %vm15054_vm13 = vmmov %vm15045_vm2  ;;  %vm13168_vm6 = vcmp.lt.s32.totalorder %v4101_v41, 15  ;;  %v15078_v41 = vrot.slane %v12426_v22, 1  ;;  %v15218_v47 = vld [vmem:[#allocation93_spill] sm:$0xff] }
 0x4d8   : > { %v13145_v32 = vadd.f32 %v3842_v54, %v3650_v3  ;;  %v13152_v49 = vsel %vm15050_vm3, %v4444_v5, %v14745_v12  ;;  %10328 = vmatprep.subr.mxu1 %v6751_v8  ;;  %v13163_v36 = vsel %vm15054_vm13, %v5313_v50, %v5314_v44  ;;  %vm15055_vm4 = vmmov %vm15045_vm2  ;;  %v6383_v54 = vld [vmem:[#allocation6 + $0x88] sm:$0xff]  ;;  %v6382_v3 = vld [vmem:[#allocation6 + $0x80] sm:$0xff]  ;;  %v15237_v4 = vrot.slane %v13121_v13, 7 }
 0x4d9   : > { %v13159_v43 = vsel %vm15045_vm2, %v15052_v6, %v15051_v58  ;;  %10167 = vmatmul.mubr.msk.f32.vlgmr.msra.gmra.mxu0 %vm15046_vm10, %v5470_v18  ;;  %v13166_v39 = vsel %vm15055_vm4, %v5314_v44, %v5316_v20  ;;  %10329 = vmatpush3.msra.mxu1 %v6751_v8  ;;  %vm15058_vm3 = vmmov %vm15046_vm10  ;;  %vm13193_vm10 = vcmp.lt.s32.totalorder %v4115_v51, 15  ;;  %v15062_v58 = vmov 0  ;;  %v6750_v5 = vld [vmem:[#allocation6 + $0xa8] sm:$0xff]  ;;  %v15094_v12 = vld [vmem:[#allocation54_spill] sm:$0xff] }
 0x4da   : > { %15053 = vst [vmem:[#allocation96_spill] sm:$0xff] %v13159_v43  ;;  %10271 = vmatpush3.msra.mxu0 %v12341_v10  ;;  %10169 = vmatprep.mubr.msk.f32.mxu0 %vm15058_vm3, %v13163_v36  ;;  %v14746_v50 = vrot.slane %v13145_v32, 7  ;;  %v14744_v44 = vrot.slane %v13145_v32, 1  ;;  %vm15059_vm4 = vmmov %vm15058_vm3  ;;  %v15060_v10 = vsel %vm12388_vm5, %v12442_v16, 0.0  ;;  %v5472_v8 = vsel %vm12499_vm11, %v13166_v39, 0.0  ;;  %v15129_v16 = vld [vmem:[#allocation64_spill] sm:$0xff] }
 0x4db   : > { %10226 = vmatmul.mubr.msk.f32.gmra.mxu1 %vm15059_vm4, %v12416_v9  ;;  %10272 = vmatprep.subr.mxu0 %v6384_v53  ;;  %vm15061_vm2 = vmmov %vm15058_vm3  ;;  %v15063_v58 = vsel %vm13193_vm10, 4294967295, %v15062_v58  ;;  %vm15066_vm3 = vcmask 1040384  }
 0x4dc   : > { %10228 = vmatprep.mubr.msk.f32.mxu1 %vm15061_vm2, %v15060_v10  ;;  %10273 = vmatpush3.msra.mxu0 %v6384_v53  ;;  %15064 = vst [vmem:[#allocation97_spill] sm:$0xff] %v15063_v58  ;;  %v13200_v18 = vsel %vm15054_vm13, %v14744_v44, 0.0  ;;  %v13205_v6 = vsel %vm15066_vm3, %v14746_v50, 0.0  ;;  %vm15068_vm4 = vmmov %vm15061_vm2  ;;  %v15069_v10 = vrot.slane %v12380_v45, 1 }
 0x4dd   : > { %15065 = vst [vmem:[#allocation98_spill] sm:$0xff] %v13200_v18  ;;  %15067 = vst [vmem:[#allocation99_spill] sm:$0xff] %v13205_v6  ;;  %10170 = vmatmul.mubr.msk.f32.gmra.mxu0 %vm15068_vm4, %v5472_v8  ;;  %10274 = vmatprep.subr.mxu0 %v6383_v54  ;;  %v15099_v6 = vld [vmem:[#allocation43_spill] sm:$0xff]  ;;  %v15135_v18 = vrot.slane %v15134_v2, 1  ;;  %v15151_v2 = vld [vmem:[#allocation57_spill] sm:$0xff] }
 0x4de   : > { %vm15070_vm2 = vmmov %vm15054_vm13  ;;  %10275 = vmatpush3.msra.mxu0 %v6383_v54  ;;  %v15077_v54 = vrot.slane %v12424_v35, 1  ;;  %10330 = vmatprep.subr.mxu1 %v6750_v5 }
 0x4df   : > { %v13211_v53 = vsel %vm15070_vm2, %v5316_v20, %v15069_v10  ;;  %vm15071_vm13 = vmmov %vm15068_vm4  ;;  %10276 = vmatprep.subr.mxu0 %v6382_v3  ;;  %v15073_v20 = vsel %vm12430_vm7, %v12496_v1, 0.0  ;;  %vm15075_vm2 = vnez %v14871_v23  ;;  %v6749_v10 = vld [vmem:[#allocation6 + $0xa0] sm:$0xff]  ;;  %10331 = vmatpush3.msra.mxu1 %v6750_v5  ;;  %v15085_v5 = vrot.slane %v12477_v24, 1 }
 0x4e0   : > { %10172 = vmatprep.mubr.msk.f32.mxu0 %vm15071_vm13, %v13211_v53  ;;  %vm15072_vm3 = vmmov %vm15068_vm4  ;;  %v5474_v8 = vsel %vm15075_vm2, %v12461_v33, 0.0  ;;  %10277 = vmatpush3.msra.mxu0 %v6382_v3  ;;  %vm15079_vm13 = vcmask 1046528   ;;  %v13245_v3 = vld [vmem:[#allocation6 + $0xf8] sm:$0xff]  ;;  %v15117_v1 = vld [vmem:[#allocation47_spill] sm:$0xff] }
 0x4e1   : > { %10229 = vmatmul.mubr.msk.f32.gmra.mxu1 %vm15072_vm3, %v12467_v57  ;;  %vm15074_vm4 = vmmov %vm15072_vm3  ;;  %v13237_v51 = vsel %vm15079_vm13, %v15078_v41, %v15077_v54  ;;  %10332 = vmatprep.subr.mxu1 %v6749_v10  ;;  %vm15084_vm13 = vnez %v14883_v0  ;;  %v15086_v54 = vrot.slane %v12479_v40, 1  ;;  %v15118_v26 = vrot.slane %v15117_v1, 1 }
 0x4e2   : > { %10231 = vmatprep.mubr.msk.f32.mxu1 %vm15074_vm4, %v15073_v20  ;;  %vm15076_vm5 = vmmov %vm15072_vm3  ;;  %v13241_v20 = vld [vmem:[#allocation6 + $0xd8] sm:$0xff]  ;;  %v5476_v41 = vsel %vm15084_vm13, %v12514_v38, 0.0  ;;  %10333 = vmatpush3.msra.mxu1 %v6749_v10  ;;  %vm15090_vm13 = vnez %v14866_v46  ;;  %v15091_v10 = vld [vmem:[#allocation16_spill] sm:$0xff] }
 0x4e3   : > { %10173 = vmatmul.mubr.msk.f32.gmra.mxu0 %vm15076_vm5, %v5474_v8  ;;  %vm15080_vm4 = vmmov %vm15072_vm3  ;;  %vm15081_vm5 = vnez %v14856_v19  ;;  %10382 = vmatprep.subr.mxu0 %v13241_v20  ;;  %v15100_v19 = vrot.slane %v15099_v6, 1  ;;  %v15104_v46 = vld [vmem:[#allocation14_spill] sm:$0xff] }
 0x4e4   : > { %10175 = vmatprep.mubr.msk.f32.mxu0 %vm15072_vm3, %v13237_v51  ;;  %v15082_v8 = vsel %vm15081_vm5, %v12550_v14, 0.0  ;;  %vm15083_vm7 = vmmov %vm15072_vm3  ;;  %10438 = vmatprep.subr.mxu1 %v13245_v3 }
 0x4e5   : > { %10232 = vmatmul.mubr.msk.f32.gmra.mxu1 %vm15080_vm4, %v12521_v61  ;;  %vm15087_vm4 = vcmask 1046528   ;;  %vm15088_vm5 = vmmov %vm15072_vm3 }
 0x4e6   : > { %10234 = vmatprep.mubr.msk.f32.mxu1 %vm15083_vm7, %v15082_v8  ;;  %v13261_v44 = vsel %vm15087_vm4, %v15086_v54, %v15085_v5  ;;  %vm15089_vm7 = vmmov %vm15072_vm3  ;;  %v15092_v8 = vsel %vm15090_vm13, %v15091_v10, 0.0  ;;  %vm15095_vm4 = vnez %v15094_v12  ;;  %v15097_v54 = vld [vmem:[#allocation42_spill] sm:$0xff]  ;;  %v15108_v10 = vld [vmem:[#allocation17_spill] sm:$0xff] }
 0x4e7   : > { %10176 = vmatmul.mubr.msk.f32.gmra.mxu0 %vm15072_vm3, %v5476_v41  ;;  %v15093_v41 = vld [vmem:[#allocation45_spill] sm:$0xff]  ;;  %vm15096_vm2 = vmmov %vm15072_vm3  ;;  %v15098_v50 = vrot.slane %v15097_v54, 1 }
 0x4e8   : > { %10178 = vmatprep.mubr.msk.f32.mxu0 %vm15088_vm5, %v13261_v44  ;;  %v5478_v5 = vsel %vm15095_vm4, %v15093_v41, 0.0  ;;  %vm15101_vm5 = vcmask 1046528   ;;  %vm15105_vm13 = vmmov %vm15096_vm2 }
 0x4e9   : > { %10235 = vmatmul.mubr.msk.f32.gmra.mxu1 %vm15089_vm7, %v12575_v60  ;;  %v13283_v14 = vsel %vm15101_vm5, %v15100_v19, %v15098_v50  ;;  %vm15103_vm7 = vmmov %vm15096_vm2  ;;  %v15115_v19 = vld [vmem:[#allocation46_spill] sm:$0xff] }
 0x4ea   : > { %10237 = vmatprep.mubr.msk.f32.mxu1 %vm15072_vm3, %v15092_v8  ;;  %15102 = vst [vmem:[#allocation42_spill] sm:$0xff] %v13283_v14  ;;  %v15106_v8 = vld [vmem:[#allocation48_spill] sm:$0xff]  ;;  %vm15110_vm4 = vmmov %vm15096_vm2  ;;  %v15116_v50 = vrot.slane %v15115_v19, 1 }
 0x4eb   : > { %10179 = vmatmul.mubr.msk.f32.gmra.mxu0 %vm15096_vm2, %v5478_v5  ;;  %vm15107_vm3 = vnez %v15106_v8  ;;  %v15111_v5 = vld [vmem:[#allocation50_spill] sm:$0xff]  ;;  %vm15113_vm2 = vnez %v15112_v42  ;;  %vm15114_vm11 = vmmov %vm15110_vm4  ;;  %v15121_v8 = vld [vmem:[#allocation15_spill] sm:$0xff]  ;;  %v15152_v42 = vrot.slane %v15151_v2, 1 }
 0x4ec   : > { %10181 = vmatprep.mubr.msk.f32.mxu0 %vm15103_vm7, %v13283_v14  ;;  %v15109_v60 = vsel %vm15107_vm3, %v15108_v10, 0.0  ;;  %v5480_v61 = vsel %vm15113_vm2, %v15111_v5, 0.0  ;;  %v13303_v57 = vsel %vm15101_vm5, %v15118_v26, %v15116_v50  ;;  %vm15122_vm7 = vmmov %vm15110_vm4  ;;  %v15125_v10 = vld [vmem:[#allocation19_spill] sm:$0xff]  ;;  %v15168_v2 = vld [vmem:[#allocation62_spill] sm:$0xff] }
 0x4ed   : > { %10238 = vmatmul.mubr.msk.f32.gmra.mxu1 %vm15105_vm13, %v15104_v46  ;;  %15119 = vst [vmem:[#allocation43_spill] sm:$0xff] %v13303_v57  ;;  %vm15120_vm13 = vmmov %vm15110_vm4  ;;  %v15132_v26 = vld [vmem:[#allocation51_spill] sm:$0xff] }
 0x4ee   : > { %10240 = vmatprep.mubr.msk.f32.mxu1 %vm15110_vm4, %v15109_v60  ;;  %v15123_v60 = vld [vmem:[#allocation53_spill] sm:$0xff]  ;;  %vm15127_vm3 = vmmov %vm15122_vm7  ;;  %v15133_v50 = vrot.slane %v15132_v26, 1 }
 0x4ef   : > { %10182 = vmatmul.mubr.msk.f32.gmra.mxu0 %vm15114_vm11, %v5480_v61  ;;  %vm15124_vm4 = vnez %v15123_v60  ;;  %v15128_v61 = vld [vmem:[#allocation55_spill] sm:$0xff]  ;;  %vm15130_vm11 = vnez %v15129_v16  ;;  %vm15131_vm2 = vmmov %vm15127_vm3  ;;  %v15138_v60 = vld [vmem:[#allocation18_spill] sm:$0xff] }
 0x4f0   : > { %10184 = vmatprep.mubr.msk.f32.mxu0 %vm15120_vm13, %v13303_v57  ;;  %v15126_v46 = vsel %vm15124_vm4, %v15125_v10, 0.0  ;;  %v5482_v9 = vsel %vm15130_vm11, %v15128_v61, 0.0  ;;  %v13323_v19 = vsel %vm15101_vm5, %v15135_v18, %v15133_v50  ;;  %vm15137_vm13 = vmmov %vm15131_vm2  ;;  %v15142_v10 = vld [vmem:[#allocation21_spill] sm:$0xff]  ;;  %v15149_v18 = vld [vmem:[#allocation56_spill] sm:$0xff] }
 0x4f1   : > { %10241 = vmatmul.mubr.msk.f32.gmra.mxu1 %vm15122_vm7, %v15121_v8  ;;  %15136 = vst [vmem:[#allocation47_spill] sm:$0xff] %v13323_v19  ;;  %vm15139_vm7 = vmmov %vm15131_vm2  ;;  %v15146_v16 = vld [vmem:[#allocation69_spill] sm:$0xff]  ;;  %v15150_v50 = vrot.slane %v15149_v18, 1 }
 0x4f2   : > { %10243 = vmatprep.mubr.msk.f32.mxu1 %vm15127_vm3, %v15126_v46  ;;  %v15140_v46 = vld [vmem:[#allocation58_spill] sm:$0xff]  ;;  %vm15144_vm4 = vmmov %vm15131_vm2 }
 0x4f3   : > { %10185 = vmatmul.mubr.msk.f32.gmra.mxu0 %vm15131_vm2, %v5482_v9  ;;  %vm15141_vm3 = vnez %v15140_v46  ;;  %v15145_v9 = vld [vmem:[#allocation60_spill] sm:$0xff]  ;;  %vm15147_vm2 = vnez %v15146_v16  ;;  %vm15148_vm11 = vmmov %vm15144_vm4  ;;  %v15163_v16 = vld [vmem:[#allocation74_spill] sm:$0xff] }
 0x4f4   : > { %10187 = vmatprep.mubr.msk.f32.mxu0 %vm15137_vm13, %v13323_v19  ;;  %v15143_v8 = vsel %vm15141_vm3, %v15142_v10, 0.0  ;;  %v5484_v26 = vsel %vm15147_vm2, %v15145_v9, 0.0  ;;  %v13343_v19 = vsel %vm15101_vm5, %v15152_v42, %v15150_v50  ;;  %vm15154_vm13 = vmmov %vm15144_vm4  ;;  %v15155_v46 = vld [vmem:[#allocation20_spill] sm:$0xff]  ;;  %v15159_v10 = vld [vmem:[#allocation23_spill] sm:$0xff]  ;;  %v15169_v9 = vrot.slane %v15168_v2, 1 }
 0x4f5   : > { %10244 = vmatmul.mubr.msk.f32.gmra.mxu1 %vm15139_vm7, %v15138_v60  ;;  %15153 = vst [vmem:[#allocation100_spill] sm:$0xff] %v13343_v19  ;;  %vm15156_vm7 = vmmov %vm15144_vm4  ;;  %v15166_v42 = vld [vmem:[#allocation61_spill] sm:$0xff]  ;;  %v15185_v2 = vld [vmem:[#allocation67_spill] sm:$0xff] }
 0x4f6   : > { %10246 = vmatprep.mubr.msk.f32.mxu1 %vm15144_vm4, %v15143_v8  ;;  %v15157_v8 = vld [vmem:[#allocation63_spill] sm:$0xff]  ;;  %vm15161_vm3 = vmmov %vm15156_vm7  ;;  %v15167_v50 = vrot.slane %v15166_v42, 1 }
 0x4f7   : > { %10188 = vmatmul.mubr.msk.f32.gmra.mxu0 %vm15148_vm11, %v5484_v26  ;;  %vm15158_vm4 = vnez %v15157_v8  ;;  %v15162_v26 = vld [vmem:[#allocation65_spill] sm:$0xff]  ;;  %vm15164_vm11 = vnez %v15163_v16  ;;  %vm15165_vm2 = vmmov %vm15161_vm3  ;;  %v15172_v8 = vld [vmem:[#allocation22_spill] sm:$0xff] }
 0x4f8   : > { %10190 = vmatprep.mubr.msk.f32.mxu0 %vm15154_vm13, %v13343_v19  ;;  %v15160_v60 = vsel %vm15158_vm4, %v15159_v10, 0.0  ;;  %v5486_v18 = vsel %vm15164_vm11, %v15162_v26, 0.0  ;;  %v13363_v19 = vsel %vm15101_vm5, %v15169_v9, %v15167_v50  ;;  %vm15171_vm13 = vmmov %vm15165_vm2  ;;  %v15176_v10 = vld [vmem:[#allocation25_spill] sm:$0xff]  ;;  %v15180_v16 = vld [vmem:[#allocation79_spill] sm:$0xff]  ;;  %v15186_v26 = vrot.slane %v15185_v2, 1 }
 0x4f9   : > { %10247 = vmatmul.mubr.msk.f32.gmra.mxu1 %vm15156_vm7, %v15155_v46  ;;  %15170 = vst [vmem:[#allocation101_spill] sm:$0xff] %v13363_v19  ;;  %vm15173_vm7 = vmmov %vm15165_vm2  ;;  %v15183_v9 = vld [vmem:[#allocation66_spill] sm:$0xff] }
 0x4fa   : > { %10249 = vmatprep.mubr.msk.f32.mxu1 %vm15161_vm3, %v15160_v60  ;;  %v15174_v60 = vld [vmem:[#allocation68_spill] sm:$0xff]  ;;  %vm15178_vm4 = vmmov %vm15165_vm2  ;;  %v15184_v50 = vrot.slane %v15183_v9, 1 }
 0x4fb   : > { %10191 = vmatmul.mubr.msk.f32.gmra.mxu0 %vm15165_vm2, %v5486_v18  ;;  %vm15175_vm3 = vnez %v15174_v60  ;;  %v15179_v18 = vld [vmem:[#allocation70_spill] sm:$0xff]  ;;  %vm15181_vm2 = vnez %v15180_v16  ;;  %vm15182_vm11 = vmmov %vm15178_vm4  ;;  %v15188_v60 = vld [vmem:[#allocation24_spill] sm:$0xff] }
 0x4fc   : > { %10193 = vmatprep.mubr.msk.f32.mxu0 %vm15171_vm13, %v13363_v19  ;;  %v15177_v46 = vsel %vm15175_vm3, %v15176_v10, 0.0  ;;  %v5488_v42 = vsel %vm15181_vm2, %v15179_v18, 0.0  ;;  %v13383_v19 = vsel %vm15101_vm5, %v15186_v26, %v15184_v50  ;;  %vm15187_vm13 = vmmov %vm15178_vm4  ;;  %v15197_v26 = vld [vmem:[#allocation71_spill] sm:$0xff]  ;;  %v15199_v9 = vld [vmem:[#allocation72_spill] sm:$0xff] }
 0x4fd   : > { %10250 = vmatmul.mubr.msk.f32.gmra.mxu1 %vm15173_vm7, %v15172_v8  ;;  %vm15189_vm7 = vmmov %vm15178_vm4  ;;  %v15198_v50 = vrot.slane %v15197_v26, 1  ;;  %v15200_v16 = vrot.slane %v15199_v9, 1 }
 0x4fe   : > { %10252 = vmatprep.mubr.msk.f32.mxu1 %vm15178_vm4, %v15177_v46  ;;  %vm15190_vm4 = vnez %v14960_v31  ;;  %v15191_v46 = vld [vmem:[#allocation27_spill] sm:$0xff]  ;;  %vm15193_vm3 = vmmov %vm15189_vm7  ;;  %v15203_v31 = vld [vmem:[#allocation26_spill] sm:$0xff] }
 0x4ff   : > { %10194 = vmatmul.mubr.msk.f32.gmra.mxu0 %vm15182_vm11, %v5488_v42  ;;  %v15192_v10 = vsel %vm15190_vm4, %v15191_v46, 0.0  ;;  %v15194_v42 = vld [vmem:[#allocation75_spill] sm:$0xff]  ;;  %vm15195_vm11 = vnez %v15002_v34  ;;  %vm15196_vm2 = vmmov %vm15193_vm3  ;;  %v13403_v2 = vsel %vm15101_vm5, %v15200_v16, %v15198_v50  ;;  %v15207_v16 = vld [vmem:[#allocation76_spill] sm:$0xff] }
 0x500   : > { %10196 = vmatprep.mubr.msk.f32.mxu0 %vm15187_vm13, %v13383_v19  ;;  %v5490_v8 = vsel %vm15195_vm11, %v15194_v42, 0.0  ;;  %15201 = vst [vmem:[#allocation72_spill] sm:$0xff] %v13403_v2  ;;  %vm15202_vm13 = vmmov %vm15196_vm2  ;;  %v15208_v50 = vrot.slane %v15207_v16, 1 }
 0x501   : > { %10253 = vmatmul.mubr.msk.f32.gmra.mxu1 %vm15189_vm7, %v15188_v60  ;;  %vm15204_vm7 = vmmov %vm15196_vm2  ;;  %v15209_v60 = vld [vmem:[#allocation77_spill] sm:$0xff] }
 0x502   : > { %10255 = vmatprep.mubr.msk.f32.mxu1 %vm15193_vm3, %v15192_v10  ;;  %v5951_v10 = vsel %vm12923_vm8, %v12989_v21, 0.0  ;;  %vm15205_vm3 = vmmov %vm15196_vm2  ;;  %v15210_v26 = vrot.slane %v15209_v60, 1 }
 0x503   : > { %10197 = vmatmul.mubr.msk.f32.gmra.mxu0 %vm15196_vm2, %v5490_v8  ;;  %v15206_v8 = vld [vmem:[#allocation80_spill] sm:$0xff] }
 0x504   : > { %10199 = vmatprep.mubr.msk.f32.mxu0 %vm15202_vm13, %v13403_v2  ;;  %v5492_v46 = vsel %vm13039_vm1, %v15206_v8, 0.0  ;;  %v13422_v34 = vsel %vm15101_vm5, %v15210_v26, %v15208_v50  ;;  %vm15211_vm13 = vmmov %vm15196_vm2  ;;  %v15214_v26 = vrot.slane %v12970_v25, 1  ;;  %v15215_v50 = vld [vmem:[#allocation82_spill] sm:$0xff] }
 0x505   : > { %10256 = vmatmul.mubr.msk.f32.gmra.mxu1 %vm15204_vm7, %v15203_v31  ;;  %vm15212_vm7 = vmmov %vm15196_vm2  ;;  %v15216_v56 = vrot.slane %v15215_v50, 1 }
 0x506   : > { %10258 = vmatprep.mubr.msk.f32.mxu1 %vm15205_vm3, %v5951_v10  ;;  %v5953_v10 = vsel %vm12977_vm12, %v13047_v15, 0.0  ;;  %vm15213_vm3 = vmmov %vm15196_vm2 }
 0x507   : > { %10200 = vmatmul.mubr.msk.f32.gmra.mxu0 %vm15196_vm2, %v5492_v46  ;;  %v5494_v46 = vsel %vm13088_vm0, %v13005_v11, 0.0  ;;  %v13441_v21 = vsel %vm15101_vm5, %v15216_v56, %v15214_v26  ;;  %v15223_v56 = vld [vmem:[#allocation85_spill] sm:$0xff]  ;;  %v15225_v26 = vld [vmem:[#allocation86_spill] sm:$0xff]  ;;  %vm15290_vm12 = vmmov %vm15196_vm2 }
 0x508   : > { %10202 = vmatprep.mubr.msk.f32.mxu0 %vm15211_vm13, %v13422_v34  ;;  %vm15217_vm13 = vmmov %vm15196_vm2  ;;  %v15226_v25 = vrot.slane %v15225_v26, 1 }
 0x509   : > { %10259 = vmatmul.mubr.msk.f32.gmra.mxu1 %vm15212_vm7, %v13012_v7  ;;  %v3907_v7 = vadd.s32 248, %v12339_v27  ;;  %vm15219_vm7 = vmmov %vm15196_vm2  ;;  %v15224_v27 = vrot.slane %v15223_v56, 1 }
 0x50a   : > { %10261 = vmatprep.mubr.msk.f32.mxu1 %vm15213_vm3, %v5953_v10  ;;  %v15220_v10 = vld [vmem:[#allocation94_spill] sm:$0xff]  ;;  %vm15221_vm3 = vmmov %vm15196_vm2 }
 0x50b   : > { %10203 = vmatmul.mubr.msk.f32.gmra.mxu0 %vm15196_vm2, %v5494_v46  ;;  %v5955_v15 = vsel %vm13027_vm14, %v15220_v10, 0.0  ;;  %v15222_v46 = vld [vmem:[#allocation92_spill] sm:$0xff]  ;;  %v13461_v37 = vsel %vm15101_vm5, %v15226_v25, %v15224_v27  ;;  %v15230_v25 = vrot.slane %v13083_v52, 1  ;;  %vm15262_vm14 = vmmov %vm15196_vm2 }
 0x50c   : > { %10205 = vmatprep.mubr.msk.f32.mxu0 %vm15217_vm13, %v13441_v21  ;;  %v5496_v31 = vsel %vm13168_vm6, %v15222_v46, 0.0  ;;  %vm15227_vm13 = vmmov %vm15196_vm2 }
 0x50d   : > { %10262 = vmatmul.mubr.msk.f32.gmra.mxu1 %vm15219_vm7, %v15218_v47  ;;  %v4129_v47 = vand.u32 15, %v3907_v7  ;;  %vm15228_vm7 = vmmov %vm15196_vm2  ;;  %v15231_v7 = vld [vmem:[#allocation89_spill] sm:$0xff] }
 0x50e   : > { %10264 = vmatprep.mubr.msk.f32.mxu1 %vm15221_vm3, %v5955_v15  ;;  %v5957_v15 = vsel %vm13050_vm15, %v13152_v49, 0.0  ;;  %vm15229_vm3 = vmmov %vm15196_vm2  ;;  %v15232_v27 = vrot.slane %v15231_v7, 1 }
 0x50f   : > { %10206 = vmatmul.mubr.msk.f32.gmra.mxu0 %vm15196_vm2, %v5496_v31  ;;  %v5498_v31 = vsel %vm13193_vm10, %v13097_v63, 0.0  ;;  %vm15240_vm15 = vmmov %vm15196_vm2 }
 0x510   : > { %10208 = vmatprep.mubr.msk.f32.mxu0 %vm15227_vm13, %v13461_v37  ;;  %v13480_v28 = vsel %vm15101_vm5, %v15232_v27, %v15230_v25  ;;  %vm13482_vm13 = vcmp.lt.s32.totalorder %v4129_v47, 15  ;;  %vm15239_vm5 = vmmov %vm15196_vm2  ;;  %v6717_v25 = vsel %vm12445_vm9, %v13166_v39, 0.0  ;;  %v15241_v27 = vld [vmem:[#allocation31_spill] sm:$0xff] }
 0x511   : > { %10265 = vmatmul.mubr.msk.f32.gmra.mxu1 %vm15228_vm7, %v13124_v62  ;;  %vm15235_vm7 = vmmov %vm15196_vm2  ;;  %v5500_v47 = vsel %vm13482_vm13, %v13159_v43, 0.0 }
 0x512   : > { %10267 = vmatprep.mubr.msk.f32.mxu1 %vm15229_vm3, %v5957_v15  ;;  %v15236_v15 = vrot.slane %v13145_v32, 7  ;;  %vm15238_vm3 = vcmask 1040384   ;;  %vm15249_vm9 = vmmov %vm15196_vm2 }
 0x513   : > { %10209 = vmatmul.mubr.msk.f32.gmra.mxu0 %vm15196_vm2, %v5498_v31 }
 0x514   : > { %10211 = vmatprep.mubr.msk.f32.mxu0 %vm15235_vm7, %v13480_v28  ;;  %v13493_v31 = vsel %vm15238_vm3, %v15237_v4, %v15236_v15  ;;  %vm15242_vm7 = vmmov %vm15196_vm2  ;;  %v7625_v4 = vld [vmem:[#allocation6 + $0xf0] sm:$0xff]  ;;  %v7205_v15 = vld [vmem:[#allocation6 + $0xc8] sm:$0xff] }
 0x515   : > { %10268 = vmatmul.mubr.msk.f32.gmra.mxu1 %vm15196_vm2, %v13493_v31  ;;  %vm15243_vm3 = vmmov %vm15196_vm2 }
 0x516   : > { %10334 = vmatprep.mubr.msk.f32.mxu1 %vm15239_vm5, %v13163_v36  ;;  %v7206_v36 = vld [vmem:[#allocation6 + $0xd0] sm:$0xff]  ;;  %vm15244_vm5 = vmmov %vm15196_vm2 }
 0x517   : > { %10212 = vmatmul.mubr.msk.f32.gmra.mxu0 %vm15240_vm15, %v5500_v47  ;;  %vm15245_vm15 = vmmov %vm15196_vm2  ;;  %v13533_v47 = vld [vmem:[#allocation6 + $0x118] sm:$0xff] }
 0x518   : > { %10278 = vmatprep.mubr.msk.f32.mxu0 %vm15242_vm7, %v15241_v27  ;;  %vm15246_vm7 = vnez %v14860_v17  ;;  %v7623_v27 = vld [vmem:[#allocation6 + $0xe0] sm:$0xff] }
 0x519   : > { %10335 = vmatmul.mubr.msk.f32.vlgmr.msra.gmra.mxu1 %vm15243_vm3, %v6717_v25  ;;  %v6719_v39 = vsel %vm15246_vm7, %v12461_v33, 0.0  ;;  %vm15247_vm3 = vmmov %vm15196_vm2 }
 0x51a   : > { %10337 = vmatprep.mubr.msk.f32.mxu1 %vm15196_vm2, %v13211_v53  ;;  %10439 = vmatpush3.msra.mxu1 %v13245_v3  ;;  %v7204_v3 = vld [vmem:[#allocation6 + $0xc0] sm:$0xff]  ;;  %vm15251_vm7 = vmmov %vm15196_vm2 }
 0x51b   : > { %10279 = vmatmul.mubr.msk.f32.vlgmr.msra.gmra.mxu0 %vm15244_vm5, %v12349_v29  ;;  %10440 = vmatprep.subr.mxu1 %v7625_v4  ;;  %vm15248_vm5 = vmmov %vm15196_vm2 }
 0x51c   : > { %10383 = vmatpush3.msra.mxu0 %v13241_v20  ;;  %10281 = vmatprep.mubr.msk.f32.mxu0 %vm15245_vm15, %v12382_v59  ;;  %vm15250_vm15 = vnez %v14871_v23  ;;  %v7624_v20 = vld [vmem:[#allocation6 + $0xe8] sm:$0xff] }
 0x51d   : > { %10338 = vmatmul.mubr.msk.f32.gmra.mxu1 %vm15247_vm3, %v6719_v39  ;;  %10384 = vmatprep.subr.mxu0 %v7206_v36  ;;  %v6721_v29 = vsel %vm15250_vm15, %v12514_v38, 0.0  ;;  %vm15252_vm3 = vmmov %vm15196_vm2 }
 0x51e   : > { %10340 = vmatprep.mubr.msk.f32.mxu1 %vm15196_vm2, %v13237_v51  ;;  %10385 = vmatpush3.msra.mxu0 %v7206_v36  ;;  %vm15259_vm15 = vmmov %vm15196_vm2 }
 0x51f   : > { %10282 = vmatmul.mubr.msk.f32.gmra.mxu0 %vm15248_vm5, %v12380_v45  ;;  %10386 = vmatprep.subr.mxu0 %v7205_v15  ;;  %vm15254_vm5 = vnez %v14883_v0  ;;  %v15279_v0 = vld [vmem:[#allocation51_spill] sm:$0xff] }
 0x520   : > { %10284 = vmatprep.mubr.msk.f32.mxu0 %vm15249_vm9, %v12426_v22  ;;  %10387 = vmatpush3.msra.mxu0 %v7205_v15  ;;  %vm15253_vm9 = vmmov %vm15196_vm2  ;;  %v6723_v25 = vsel %vm15254_vm5, %v15093_v41, 0.0  ;;  %vm15258_vm5 = vnez %v15094_v12  ;;  %v15264_v15 = vld [vmem:[#allocation59_spill] sm:$0xff]  ;;  %v15300_v41 = vld [vmem:[#allocation61_spill] sm:$0xff] }
 0x521   : > { %10341 = vmatmul.mubr.msk.f32.gmra.mxu1 %vm15251_vm7, %v6721_v29  ;;  %10388 = vmatprep.subr.mxu0 %v7204_v3  ;;  %vm15255_vm7 = vmmov %vm15196_vm2  ;;  %v15267_v29 = vld [vmem:[#allocation47_spill] sm:$0xff] }
 0x522   : > { %10343 = vmatprep.mubr.msk.f32.mxu1 %vm15252_vm3, %v13261_v44  ;;  %10389 = vmatpush3.msra.mxu0 %v7204_v3  ;;  %vm15256_vm3 = vmmov %vm15196_vm2 }
 0x523   : > { %10285 = vmatmul.mubr.msk.f32.gmra.mxu0 %vm15196_vm2, %v12424_v35  ;;  %10441 = vmatpush3.msra.mxu1 %v7625_v4  ;;  %v6725_v4 = vsel %vm15258_vm5, %v15111_v5, 0.0  ;;  %vm15265_vm5 = vnez %v15264_v15 }
 0x524   : > { %10287 = vmatprep.mubr.msk.f32.mxu0 %vm15253_vm9, %v12479_v40  ;;  %10442 = vmatprep.subr.mxu1 %v7624_v20  ;;  %vm15257_vm9 = vmmov %vm15196_vm2  ;;  %v6727_v3 = vsel %vm15265_vm5, %v15128_v61, 0.0 }
 0x525   : > { %10344 = vmatmul.mubr.msk.f32.gmra.mxu1 %vm15255_vm7, %v6723_v25  ;;  %10494 = vmatprep.subr.mxu0 %v13533_v47  ;;  %vm15260_vm7 = vmmov %vm15196_vm2  ;;  %v15269_v25 = vld [vmem:[#allocation46_spill] sm:$0xff] }
 0x526   : > { %10346 = vmatprep.mubr.msk.f32.mxu1 %vm15256_vm3, %v13283_v14  ;;  %10443 = vmatpush3.msra.mxu1 %v7624_v20  ;;  %vm15261_vm3 = vmmov %vm15196_vm2  ;;  %v10115_v20 = vpop.f32.mrf.mxu1  ;;  %v15291_v14 = vld [vmem:[#allocation56_spill] sm:$0xff] }
 0x527   : > { %10288 = vmatmul.mubr.msk.f32.gmra.mxu0 %vm15196_vm2, %v12477_v24  ;;  %10444 = vmatprep.subr.mxu1 %v7623_v27  ;;  %v10059_v36 = vpop.f32.mrf.mxu0  ;;  %vm15287_vm5 = vmmov %vm15196_vm2 }
 0x528   : > { %10290 = vmatprep.mubr.msk.f32.mxu0 %vm15257_vm9, %v15099_v6  ;;  %10445 = vmatpush3.msra.mxu1 %v7623_v27  ;;  %4896 = vst.msk [vmem:[#allocation2 + $0x18] sm:$0xff] %vm15260_vm7, %v10059_v36  ;;  %vm15263_vm9 = vmmov %vm15196_vm2  ;;  %v15271_v27 = vld [vmem:[#allocation52_spill] sm:$0xff] }
 0x529   : > { %10347 = vmatmul.mubr.msk.f32.gmra.mxu1 %vm15259_vm15, %v6725_v4  ;;  %v4744_v39 = vpop.f32.mrf.mxu0  ;;  %vm15266_vm15 = vmmov %vm15196_vm2  ;;  %v15272_v4 = vld [vmem:[#allocation60_spill] sm:$0xff] }
 0x52a   : > { %10349 = vmatprep.mubr.msk.f32.mxu1 %vm15261_vm3, %v13303_v57  ;;  %4895 = vst.msk [vmem:[#allocation2 + $0x10] sm:$0xff] %vm15262_vm14, %v4744_v39  ;;  %vm15268_vm7 = vmmov %vm15196_vm2  ;;  %v15273_v36 = vld [vmem:[#allocation64_spill] sm:$0xff] }
 0x52b   : > { %10291 = vmatmul.mubr.msk.f32.gmra.mxu0 %vm15196_vm2, %v15097_v54  ;;  %vm15270_vm3 = vmmov %vm15196_vm2  ;;  %vm15274_vm14 = vnez %v15273_v36 }
 0x52c   : > { %10293 = vmatprep.mubr.msk.f32.mxu0 %vm15263_vm9, %v15117_v1  ;;  %v6729_v39 = vsel %vm15274_vm14, %v15272_v4, 0.0  ;;  %vm15275_vm9 = vmmov %vm15196_vm2  ;;  %v15282_v4 = vld [vmem:[#allocation57_spill] sm:$0xff] }
 0x52d   : > { %10350 = vmatmul.mubr.msk.f32.gmra.mxu1 %vm15266_vm15, %v6727_v3  ;;  %vm15276_vm15 = vmmov %vm15196_vm2  ;;  %v15277_v3 = vld [vmem:[#allocation100_spill] sm:$0xff] }
 0x52e   : > { %10352 = vmatprep.mubr.msk.f32.mxu1 %vm15268_vm7, %v15267_v29  ;;  %vm15278_vm7 = vmmov %vm15196_vm2  ;;  %v5066_v29 = vpop.f32.mrf.mxu1 }
 0x52f   : > { %10294 = vmatmul.mubr.msk.f32.gmra.mxu0 %vm15270_vm3, %v15269_v25  ;;  %v5218_v12 = vld [vmem:[#allocation2 + $0x18] sm:$0xff]  ;;  %v10062_v15 = vpop.f32.mrf.mxu0  ;;  %vm15280_vm3 = vmmov %vm15196_vm2 }
 0x530   : > { %10296 = vmatprep.mubr.msk.f32.mxu0 %vm15196_vm2, %v15271_v27  ;;  %v5250_v61 = vadd.f32 %v10115_v20, %v5218_v12  ;;  %4898 = vst.msk [vmem:[#allocation2 + $0x28] sm:$0xff] %vm15276_vm15, %v10062_v15  ;;  %vm15281_vm14 = vmmov %vm15196_vm2  ;;  %v15284_v12 = vld [vmem:[#allocation65_spill] sm:$0xff] }
 0x531   : > { %10353 = vmatmul.mubr.msk.f32.gmra.mxu1 %vm15275_vm9, %v6729_v39  ;;  %v5217_v57 = vld [vmem:[#allocation2 + $0x10] sm:$0xff]  ;;  %v4754_v5 = vpop.f32.mrf.mxu0  ;;  %vm15283_vm9 = vmmov %vm15196_vm2 }
 0x532   : > { %10355 = vmatprep.mubr.msk.f32.mxu1 %vm15278_vm7, %v15277_v3  ;;  %5282 = vst.msk [vmem:[#allocation2 + $0x18] sm:$0xff] %vm15196_vm2, %v5250_v61  ;;  %v5249_v36 = vadd.f32 %v5217_v57, %v5066_v29  ;;  %v15285_v20 = vld [vmem:[#allocation69_spill] sm:$0xff]  ;;  %vm15288_vm7 = vmmov %vm15196_vm2  ;;  %v10118_v3 = vpop.f32.mrf.mxu1  ;;  %v15293_v57 = vld [vmem:[#allocation62_spill] sm:$0xff] }
 0x533   : > { %10297 = vmatmul.mubr.msk.f32.gmra.mxu0 %vm15280_vm3, %v15279_v0  ;;  %4897 = vst.msk [vmem:[#allocation2 + $0x20] sm:$0xff] %vm15281_vm14, %v4754_v5  ;;  %vm15286_vm15 = vnez %v15285_v20  ;;  %v15289_v39 = vld [vmem:[#allocation101_spill] sm:$0xff]  ;;  %vm15292_vm3 = vmmov %vm15196_vm2  ;;  %v15295_v5 = vld [vmem:[#allocation74_spill] sm:$0xff] }
 0x534   : > { %10299 = vmatprep.mubr.msk.f32.mxu0 %vm15283_vm9, %v15282_v4  ;;  %v6731_v15 = vsel %vm15286_vm15, %v15284_v12, 0.0  ;;  %5281 = vst.msk [vmem:[#allocation2 + $0x10] sm:$0xff] %vm15288_vm7, %v5249_v36  ;;  %vm15294_vm14 = vmmov %vm15196_vm2  ;;  %vm15296_vm2 = vnez %v15295_v5  ;;  %v5076_v36 = vpop.f32.mrf.mxu1 }
 0x535   : > { %10356 = vmatmul.mubr.msk.f32.gmra.mxu1 %vm15287_vm5, %v6731_v15  ;;  %v6733_v61 = vsel %vm15296_vm2, %v15179_v18, 0.0  ;;  %vm15297_vm9 = vmmov %vm15292_vm3  ;;  %v15303_v18 = vld [vmem:[#allocation67_spill] sm:$0xff] }
 0x536   : > { %10358 = vmatprep.mubr.msk.f32.mxu1 %vm15290_vm12, %v15289_v39  ;;  %vm15298_vm5 = vmmov %vm15292_vm3 }
 0x537   : > { %10300 = vmatmul.mubr.msk.f32.gmra.mxu0 %vm15292_vm3, %v15291_v14  ;;  %v5220_v29 = vld [vmem:[#allocation2 + $0x28] sm:$0xff]  ;;  %v10065_v15 = vpop.f32.mrf.mxu0  ;;  %vm15299_vm12 = vmmov %vm15292_vm3 }
 0x538   : > { %10302 = vmatprep.mubr.msk.f32.mxu0 %vm15294_vm14, %v15293_v57  ;;  %v5252_v20 = vadd.f32 %v10118_v3, %v5220_v29  ;;  %4900 = vst.msk [vmem:[#allocation2 + $0x38] sm:$0xff] %vm15298_vm5, %v10065_v15  ;;  %vm15301_vm7 = vmmov %vm15292_vm3  ;;  %v15305_v3 = vld [vmem:[#allocation79_spill] sm:$0xff]  ;;  %v10121_v29 = vpop.f32.mrf.mxu1  ;;  %v15310_v15 = vld [vmem:[#allocation66_spill] sm:$0xff] }
 0x539   : > { %10359 = vmatmul.mubr.msk.f32.gmra.mxu1 %vm15297_vm9, %v6733_v61  ;;  %v4764_v12 = vpop.f32.mrf.mxu0  ;;  %vm15302_vm14 = vmmov %vm15292_vm3  ;;  %vm15306_vm5 = vnez %v15305_v3 }
 0x53a   : > { %10361 = vmatprep.mubr.msk.f32.mxu1 %vm15299_vm12, %v13383_v19  ;;  %v5219_v39 = vld [vmem:[#allocation2 + $0x20] sm:$0xff]  ;;  %5284 = vst.msk [vmem:[#allocation2 + $0x28] sm:$0xff] %vm15292_vm3, %v5252_v20  ;;  %vm15304_vm9 = vmmov %vm15292_vm3  ;;  %v6735_v61 = vsel %vm15306_vm5, %v15194_v42, 0.0  ;;  %v6737_v20 = vsel %vm15195_vm11, %v15206_v8, 0.0 }
 0x53b   : > { %10303 = vmatmul.mubr.msk.f32.gmra.mxu0 %vm15301_vm7, %v15300_v41  ;;  %v5251_v5 = vadd.f32 %v5219_v39, %v5076_v36  ;;  %4899 = vst.msk [vmem:[#allocation2 + $0x30] sm:$0xff] %vm15302_vm14, %v4764_v12  ;;  %vm15307_vm2 = vmmov %vm15292_vm3  ;;  %v15316_v42 = vld [vmem:[#allocation71_spill] sm:$0xff] }
 0x53c   : > { %10305 = vmatprep.mubr.msk.f32.mxu0 %vm15304_vm9, %v15303_v18  ;;  %vm15308_vm12 = vmmov %vm15307_vm2 }
 0x53d   : > { %10362 = vmatmul.mubr.msk.f32.gmra.mxu1 %vm15307_vm2, %v6735_v61  ;;  %5283 = vst.msk [vmem:[#allocation2 + $0x20] sm:$0xff] %vm15308_vm12, %v5251_v5  ;;  %vm15309_vm15 = vmmov %vm15307_vm2  ;;  %v5086_v5 = vpop.f32.mrf.mxu1 }
 0x53e   : > { %10364 = vmatprep.mubr.msk.f32.mxu1 %vm15309_vm15, %v13403_v2  ;;  %vm15311_vm7 = vmmov %vm15307_vm2 }
 0x53f   : > { %10306 = vmatmul.mubr.msk.f32.gmra.mxu0 %vm15311_vm7, %v15310_v15  ;;  %vm15312_vm3 = vmmov %vm15307_vm2  ;;  %v5222_v39 = vld [vmem:[#allocation2 + $0x38] sm:$0xff]  ;;  %v10068_v36 = vpop.f32.mrf.mxu0 }
 0x540   : > { %10308 = vmatprep.mubr.msk.f32.mxu0 %vm15312_vm3, %v15199_v9  ;;  %vm15314_vm14 = vmmov %vm15307_vm2  ;;  %v5254_v61 = vadd.f32 %v10121_v29, %v5222_v39  ;;  %4902 = vst.msk [vmem:[#allocation2 + $0x48] sm:$0xff] %vm15307_vm2, %v10068_v36  ;;  %v6739_v29 = vsel %vm13039_vm1, %v13005_v11, 0.0 }
 0x541   : > { %10365 = vmatmul.mubr.msk.f32.gmra.mxu1 %vm15314_vm14, %v6737_v20  ;;  %vm15315_vm15 = vmmov %vm15307_vm2  ;;  %v4774_v2 = vpop.f32.mrf.mxu0  ;;  %v10124_v20 = vpop.f32.mrf.mxu1 }
 0x542   : > { %10367 = vmatprep.mubr.msk.f32.mxu1 %vm15315_vm15, %v13422_v34  ;;  %v5221_v3 = vld [vmem:[#allocation2 + $0x30] sm:$0xff]  ;;  %vm15317_vm9 = vmmov %vm15307_vm2 }
 0x543   : > { %10309 = vmatmul.mubr.msk.f32.gmra.mxu0 %vm15317_vm9, %v15316_v42  ;;  %vm15318_vm12 = vmmov %vm15307_vm2  ;;  %v5253_v12 = vadd.f32 %v5221_v3, %v5086_v5  ;;  %v6741_v3 = vsel %vm13088_vm0, %v15222_v46, 0.0 }
 0x544   : > { %5286 = vst.msk [vmem:[#allocation2 + $0x38] sm:$0xff] %vm15318_vm12, %v5254_v61  ;;  %vm15319_vm7 = vmmov %vm15307_vm2 }
 0x545   : > { %4901 = vst.msk [vmem:[#allocation2 + $0x40] sm:$0xff] %vm15319_vm7, %v4774_v2  ;;  %vm15320_vm3 = vmmov %vm15307_vm2 }
 0x546   : > { %10311 = vmatprep.mubr.msk.f32.mxu0 %vm15320_vm3, %v15209_v60  ;;  %vm15321_vm14 = vmmov %vm15307_vm2  ;;  %5285 = vst.msk [vmem:[#allocation2 + $0x30] sm:$0xff] %vm15307_vm2, %v5253_v12  ;;  %v5096_v12 = vpop.f32.mrf.mxu1 }
 0x547   : > { %10368 = vmatmul.mubr.msk.f32.gmra.mxu1 %vm15321_vm14, %v6739_v29  ;;  %vm15322_vm15 = vmmov %vm15307_vm2  ;;  %v5224_v39 = vld [vmem:[#allocation2 + $0x48] sm:$0xff]  ;;  %v10071_v36 = vpop.f32.mrf.mxu0 }
 0x548   : > { %10370 = vmatprep.mubr.msk.f32.mxu1 %vm15322_vm15, %v13441_v21  ;;  %vm15323_vm9 = vmmov %vm15307_vm2  ;;  %v5256_v61 = vadd.f32 %v10124_v20, %v5224_v39  ;;  %v6743_v20 = vsel %vm13168_vm6, %v13097_v63, 0.0  ;;  %v6745_v39 = vsel %vm13193_vm10, %v13159_v43, 0.0 }
 0x549   : > { %10312 = vmatmul.mubr.msk.f32.gmra.mxu0 %vm15323_vm9, %v15207_v16  ;;  %vm15324_vm12 = vmmov %vm15307_vm2  ;;  %v4784_v29 = vpop.f32.mrf.mxu0 }
 0x54a   : > { %10314 = vmatprep.mubr.msk.f32.mxu0 %vm15324_vm12, %v15215_v50  ;;  %vm15326_vm7 = vmmov %vm15307_vm2 }
 0x54b   : > { %10371 = vmatmul.mubr.msk.f32.gmra.mxu1 %vm15326_vm7, %v6741_v3  ;;  %vm15327_vm3 = vmmov %vm15307_vm2  ;;  %v10127_v3 = vpop.f32.mrf.mxu1 }
 0x54c   : > { %4904 = vst.msk [vmem:[#allocation2 + $0x58] sm:$0xff] %vm15327_vm3, %v10071_v36  ;;  %vm15328_vm14 = vmmov %vm15307_vm2  ;;  %v5223_v5 = vld [vmem:[#allocation2 + $0x40] sm:$0xff] }
 0x54d   : > { %10373 = vmatprep.mubr.msk.f32.mxu1 %vm15328_vm14, %v13461_v37  ;;  %10315 = vmatmul.mubr.msk.f32.gmra.mxu0 %vm15307_vm2, %v15329_v55  ;;  %vm15330_vm15 = vmmov %vm15307_vm2  ;;  %v5255_v2 = vadd.f32 %v5223_v5, %v5096_v12  ;;  %v15339_v12 = vrot.slane %v13121_v13, 1 }
 0x54e   : > { %5288 = vst.msk [vmem:[#allocation2 + $0x48] sm:$0xff] %vm15330_vm15, %v5256_v61  ;;  %vm15331_vm9 = vmmov %vm15307_vm2 }
 0x54f   : > { %4903 = vst.msk [vmem:[#allocation2 + $0x50] sm:$0xff] %vm15331_vm9, %v4784_v29  ;;  %vm15332_vm12 = vmmov %vm15307_vm2  ;;  %v10074_v61 = vpop.f32.mrf.mxu0 }
 0x550   : > { %10317 = vmatprep.mubr.msk.f32.mxu0 %vm15332_vm12, %v15225_v26  ;;  %vm15333_vm7 = vmmov %vm15307_vm2  ;;  %vm15340_vm12 = vcmask 1046528  }
 0x551   : > { %10374 = vmatmul.mubr.msk.f32.gmra.mxu1 %vm15333_vm7, %v6743_v20  ;;  %vm15334_vm3 = vmmov %vm15307_vm2  ;;  %10318 = vmatmul.mubr.msk.f32.gmra.mxu0 %vm15307_vm2, %v15223_v56  ;;  %v5106_v20 = vpop.f32.mrf.mxu1  ;;  %v4794_v43 = vpop.f32.mrf.mxu0 }
 0x552   : > { %5287 = vst.msk [vmem:[#allocation2 + $0x40] sm:$0xff] %vm15334_vm3, %v5255_v2  ;;  %vm15335_vm14 = vmmov %vm15307_vm2  ;;  %v15338_v2 = vrot.slane %v13145_v32, 1 }
 0x553   : > { %10376 = vmatprep.mubr.msk.f32.mxu1 %vm15335_vm14, %v13480_v28  ;;  %vm15336_vm15 = vmmov %vm15307_vm2  ;;  %v5226_v36 = vld [vmem:[#allocation2 + $0x58] sm:$0xff] }
 0x554   : > { %10320 = vmatprep.mubr.msk.f32.mxu0 %vm15336_vm15, %v15231_v7  ;;  %vm15337_vm9 = vmmov %vm15307_vm2  ;;  %v13677_v5 = vsel %vm15340_vm12, %v15339_v12, %v15338_v2  ;;  %v5258_v29 = vadd.f32 %v10127_v3, %v5226_v36  ;;  %v15346_v3 = vld [vmem:[#allocation98_spill] sm:$0xff] }
 0x555   : > { %10377 = vmatmul.mubr.msk.f32.gmra.mxu1 %vm15337_vm9, %v6745_v39  ;;  %vm15341_vm7 = vmmov %vm15307_vm2  ;;  %v6747_v36 = vsel %vm13482_vm13, %v15346_v3, 0.0 }
 0x556   : > { %4906 = vst.msk [vmem:[#allocation2 + $0x68] sm:$0xff] %vm15341_vm7, %v10074_v61  ;;  %vm15342_vm3 = vmmov %vm15307_vm2  ;;  %v5225_v58 = vld [vmem:[#allocation2 + $0x50] sm:$0xff]  ;;  %v10130_v61 = vpop.f32.mrf.mxu1 }
 0x557   : > { %10379 = vmatprep.mubr.msk.f32.mxu1 %vm15342_vm3, %v13677_v5  ;;  %vm15343_vm14 = vmmov %vm15307_vm2  ;;  %5290 = vst.msk [vmem:[#allocation2 + $0x58] sm:$0xff] %vm15307_vm2, %v5258_v29  ;;  %v5257_v39 = vadd.f32 %v5225_v58, %v5106_v20  ;;  %v15351_v58 = vld [vmem:[#allocation35_spill] sm:$0xff]  ;;  %v10077_v62 = vpop.f32.mrf.mxu0 }
 0x558   : > { %10321 = vmatmul.mubr.msk.f32.gmra.mxu0 %vm15343_vm14, %v13083_v52  ;;  %vm15344_vm15 = vmmov %vm15307_vm2  ;;  %v5116_v20 = vpop.f32.mrf.mxu1 }
 0x559   : > { %4905 = vst.msk [vmem:[#allocation2 + $0x60] sm:$0xff] %vm15344_vm15, %v4794_v43  ;;  %vm15345_vm9 = vmmov %vm15307_vm2  ;;  %v15353_v43 = vld [vmem:[#allocation34_spill] sm:$0xff] }
 0x55a   : > { %10323 = vmatprep.mubr.msk.f32.mxu0 %vm15345_vm9, %v13121_v13  ;;  %vm15347_vm12 = vmmov %vm15307_vm2 }
 0x55b   : > { %10380 = vmatmul.mubr.msk.f32.gmra.mxu1 %vm15347_vm12, %v6747_v36  ;;  %vm15348_vm7 = vmmov %vm15307_vm2  ;;  %v4804_v36 = vpop.f32.mrf.mxu0 }
 0x55c   : > { %5289 = vst.msk [vmem:[#allocation2 + $0x50] sm:$0xff] %vm15348_vm7, %v5257_v39  ;;  %vm15349_vm3 = vmmov %vm15307_vm2 }
 0x55d   : > { %10446 = vmatprep.mubr.msk.f32.mxu1 %vm15349_vm3, %v12382_v59  ;;  %vm15350_vm14 = vmmov %vm15307_vm2  ;;  %vm15352_vm2 = vnez %v15351_v58  ;;  %v5228_v12 = vld [vmem:[#allocation2 + $0x68] sm:$0xff]  ;;  %v7981_v59 = vld [vmem:[#allocation6 + $0x110] sm:$0xff] }
 0x55e   : > { %10324 = vmatmul.mubr.msk.f32.gmra.mxu0 %vm15350_vm14, %v13145_v32  ;;  %v15354_v2 = vsel %vm15352_vm2, %v15353_v43, 0.0  ;;  %vm15355_vm15 = vmmov %vm15349_vm3  ;;  %v5260_v29 = vadd.f32 %v10130_v61, %v5228_v12  ;;  %v15359_v58 = vld [vmem:[#allocation36_spill] sm:$0xff]  ;;  %v15364_v61 = vld [vmem:[#allocation38_spill] sm:$0xff] }
 0x55f   : > { %10390 = vmatprep.mubr.msk.f32.mxu0 %vm15355_vm15, %v15354_v2  ;;  %vm15356_vm13 = vmmov %vm15349_vm3  ;;  %v7979_v12 = vld [vmem:[#allocation6 + $0x100] sm:$0xff] }
 0x560   : > { %10447 = vmatmul.mubr.msk.f32.vlgmr.msra.gmra.mxu1 %vm15356_vm13, %v12380_v45  ;;  %vm15357_vm9 = vmmov %vm15349_vm3  ;;  %v5227_v39 = vld [vmem:[#allocation2 + $0x60] sm:$0xff]  ;;  %5292 = vst.msk [vmem:[#allocation2 + $0x68] sm:$0xff] %vm15349_vm3, %v5260_v29  ;;  %v15362_v45 = vld [vmem:[#allocation32_spill] sm:$0xff] }
 0x561   : > { %4908 = vst.msk [vmem:[#allocation2 + $0x78] sm:$0xff] %vm15357_vm9, %v10077_v62  ;;  %vm15358_vm12 = vmmov %vm15349_vm3  ;;  %v5259_v43 = vadd.f32 %v5227_v39, %v5116_v20  ;;  %vm15363_vm2 = vnez %v15362_v45  ;;  %v10133_v62 = vpop.f32.mrf.mxu1  ;;  %v15372_v29 = vld [vmem:[#allocation33_spill] sm:$0xff]  ;;  %v15380_v45 = vld [vmem:[#allocation11_spill] sm:$0xff] }
 0x562   : > { %10449 = vmatprep.mubr.msk.f32.mxu1 %vm15358_vm12, %v12426_v22  ;;  %vm15360_vm7 = vmmov %vm15349_vm3  ;;  %v15365_v2 = vsel %vm15363_vm2, %v15364_v61, 0.0  ;;  %v7980_v22 = vld [vmem:[#allocation6 + $0x108] sm:$0xff]  ;;  %v15374_v20 = vld [vmem:[#allocation41_spill] sm:$0xff] }
 0x563   : > { %10391 = vmatmul.mubr.msk.f32.vlgmr.msra.gmra.mxu0 %vm15360_vm7, %v15359_v58  ;;  %vm15361_vm14 = vmmov %vm15349_vm3 }
 0x564   : > { %4907 = vst.msk [vmem:[#allocation2 + $0x70] sm:$0xff] %vm15361_vm14, %v4804_v36  ;;  %10495 = vmatpush3.msra.mxu0 %v13533_v47  ;;  %vm15366_vm15 = vmmov %vm15349_vm3  ;;  %v15370_v47 = vld [vmem:[#allocation39_spill] sm:$0xff]  ;;  %v10080_v36 = vpop.f32.mrf.mxu0 }
 0x565   : > { %10393 = vmatprep.mubr.msk.f32.mxu0 %vm15366_vm15, %v15365_v2  ;;  %vm15367_vm13 = vmmov %vm15349_vm3  ;;  %10496 = vmatprep.subr.mxu0 %v7981_v59  ;;  %v15386_v2 = vld [vmem:[#allocation13_spill] sm:$0xff] }
 0x566   : > { %10450 = vmatmul.mubr.msk.f32.gmra.mxu1 %vm15367_vm13, %v12424_v35  ;;  %vm15368_vm9 = vmmov %vm15349_vm3  ;;  %10497 = vmatpush3.msra.mxu0 %v7981_v59  ;;  %v5126_v59 = vpop.f32.mrf.mxu1 }
 0x567   : > { %5291 = vst.msk [vmem:[#allocation2 + $0x60] sm:$0xff] %vm15368_vm9, %v5259_v43  ;;  %vm15369_vm12 = vmmov %vm15349_vm3  ;;  %10498 = vmatprep.subr.mxu0 %v7980_v22  ;;  %v4814_v43 = vpop.f32.mrf.mxu0 }
 0x568   : > { %10452 = vmatprep.mubr.msk.f32.mxu1 %vm15369_vm12, %v12479_v40  ;;  %vm15371_vm7 = vmmov %vm15349_vm3  ;;  %vm15373_vm3 = vnez %v15372_v29  ;;  %10499 = vmatpush3.msra.mxu0 %v7980_v22  ;;  %v5230_v35 = vld [vmem:[#allocation2 + $0x78] sm:$0xff] }
 0x569   : > { %10394 = vmatmul.mubr.msk.f32.gmra.mxu0 %vm15371_vm7, %v15370_v47  ;;  %v15375_v39 = vsel %vm15373_vm3, %v15374_v20, 0.0  ;;  %vm15376_vm14 = vmmov %vm15371_vm7  ;;  %10500 = vmatprep.subr.mxu0 %v7979_v12  ;;  %v5262_v40 = vadd.f32 %v10133_v62, %v5230_v35  ;;  %v15393_v62 = vld [vmem:[#allocation40_spill] sm:$0xff] }
 0x56a   : > { %10396 = vmatprep.mubr.msk.f32.mxu0 %vm15376_vm14, %v15375_v39  ;;  %vm15377_vm2 = vmmov %vm15371_vm7  ;;  %10501 = vmatpush3.msra.mxu0 %v7979_v12  ;;  %v15391_v12 = vld [vmem:[#allocation12_spill] sm:$0xff] }
 0x56b   : > { %10453 = vmatmul.mubr.msk.f32.gmra.mxu1 %vm15377_vm2, %v12477_v24  ;;  %vm15378_vm15 = vmmov %vm15377_vm2  ;;  %v5229_v58 = vld [vmem:[#allocation2 + $0x70] sm:$0xff] }
 0x56c   : > { %4910 = vst.msk [vmem:[#allocation2 + $0x88] sm:$0xff] %vm15378_vm15, %v10080_v36  ;;  %vm15379_vm13 = vmmov %vm15377_vm2  ;;  %v5261_v61 = vadd.f32 %v5229_v58, %v5126_v59  ;;  %v15384_v24 = vld [vmem:[#allocation37_spill] sm:$0xff]  ;;  %v15395_v47 = vld [vmem:[#allocation16_spill] sm:$0xff] }
 0x56d   : > { %10455 = vmatprep.mubr.msk.f32.mxu1 %vm15379_vm13, %v15099_v6  ;;  %vm15381_vm9 = vmmov %vm15377_vm2  ;;  %vm15385_vm3 = vnez %v15384_v24  ;;  %v10136_v6 = vpop.f32.mrf.mxu1  ;;  %v15404_v58 = vld [vmem:[#allocation44_spill] sm:$0xff]  ;;  %v15415_v24 = vld [vmem:[#allocation19_spill] sm:$0xff] }
 0x56e   : > { %10397 = vmatmul.mubr.msk.f32.gmra.mxu0 %vm15381_vm9, %v15380_v45  ;;  %vm15382_vm12 = vmmov %vm15377_vm2  ;;  %v15387_v22 = vsel %vm15385_vm3, %v15386_v2, 0.0  ;;  %v15411_v45 = vld [vmem:[#allocation15_spill] sm:$0xff] }
 0x56f   : > { %5294 = vst.msk [vmem:[#allocation2 + $0x78] sm:$0xff] %vm15382_vm12, %v5262_v40  ;;  %vm15383_vm7 = vmmov %vm15377_vm2  ;;  %10456 = vmatmul.mubr.msk.f32.gmra.mxu1 %vm15377_vm2, %v15097_v54  ;;  %vm15394_vm12 = vnez %v15393_v62  ;;  %v10083_v54 = vpop.f32.mrf.mxu0  ;;  %v15400_v40 = vld [vmem:[#allocation14_spill] sm:$0xff] }
 0x570   : > { %4909 = vst.msk [vmem:[#allocation2 + $0x80] sm:$0xff] %vm15383_vm7, %v4814_v43  ;;  %vm15388_vm14 = vmmov %vm15377_vm2  ;;  %v15396_v29 = vsel %vm15394_vm12, %v15395_v47, 0.0  ;;  %vm15405_vm12 = vnez %v15404_v58  ;;  %v15421_v47 = vld [vmem:[#allocation18_spill] sm:$0xff] }
 0x571   : > { %10399 = vmatprep.mubr.msk.f32.mxu0 %vm15388_vm14, %v15387_v22  ;;  %vm15389_vm15 = vmmov %vm15377_vm2  ;;  %v4824_v36 = vpop.f32.mrf.mxu0 }
 0x572   : > { %5293 = vst.msk [vmem:[#allocation2 + $0x70] sm:$0xff] %vm15389_vm15, %v5261_v61  ;;  %vm15390_vm13 = vmmov %vm15377_vm2  ;;  %v15413_v61 = vld [vmem:[#allocation48_spill] sm:$0xff] }
 0x573   : > { %10458 = vmatprep.mubr.msk.f32.mxu1 %vm15390_vm13, %v15117_v1  ;;  %vm15392_vm9 = vmmov %vm15377_vm2  ;;  %v5232_v20 = vld [vmem:[#allocation2 + $0x88] sm:$0xff]  ;;  %v5136_v1 = vpop.f32.mrf.mxu1 }
 0x574   : > { %10400 = vmatmul.mubr.msk.f32.gmra.mxu0 %vm15392_vm9, %v15391_v12  ;;  %vm15397_vm7 = vmmov %vm15377_vm2  ;;  %v5264_v39 = vadd.f32 %v10136_v6, %v5232_v20  ;;  %v15424_v20 = vld [vmem:[#allocation53_spill] sm:$0xff] }
 0x575   : > { %10402 = vmatprep.mubr.msk.f32.mxu0 %vm15397_vm7, %v15396_v29  ;;  %vm15398_vm3 = vmmov %vm15377_vm2 }
 0x576   : > { %10459 = vmatmul.mubr.msk.f32.gmra.mxu1 %vm15398_vm3, %v15269_v25  ;;  %vm15399_vm14 = vmmov %vm15377_vm2  ;;  %v15406_v25 = vld [vmem:[#allocation17_spill] sm:$0xff] }
 0x577   : > { %4912 = vst.msk [vmem:[#allocation2 + $0x98] sm:$0xff] %vm15399_vm14, %v10083_v54  ;;  %10461 = vmatprep.mubr.msk.f32.mxu1 %vm15377_vm2, %v15271_v27  ;;  %v5231_v35 = vld [vmem:[#allocation2 + $0x80] sm:$0xff]  ;;  %vm15401_vm15 = vmmov %vm15377_vm2  ;;  %v15407_v43 = vsel %vm15405_vm12, %v15406_v25, 0.0  ;;  %v10139_v27 = vpop.f32.mrf.mxu1 }
 0x578   : > { %10403 = vmatmul.mubr.msk.f32.gmra.mxu0 %vm15401_vm15, %v15400_v40  ;;  %vm15402_vm13 = vmmov %vm15377_vm2  ;;  %v5263_v59 = vadd.f32 %v5231_v35, %v5136_v1  ;;  %v15434_v1 = vld [vmem:[#allocation58_spill] sm:$0xff]  ;;  %v15436_v35 = vld [vmem:[#allocation23_spill] sm:$0xff] }
 0x579   : > { %5296 = vst.msk [vmem:[#allocation2 + $0x88] sm:$0xff] %vm15402_vm13, %v5264_v39  ;;  %vm15403_vm9 = vmmov %vm15377_vm2  ;;  %vm15414_vm13 = vnez %v15413_v61  ;;  %v15432_v39 = vld [vmem:[#allocation20_spill] sm:$0xff]  ;;  %v15447_v61 = vld [vmem:[#allocation25_spill] sm:$0xff] }
 0x57a   : > { %4911 = vst.msk [vmem:[#allocation2 + $0x90] sm:$0xff] %vm15403_vm9, %v4824_v36  ;;  %vm15408_vm7 = vmmov %vm15377_vm2  ;;  %v15416_v2 = vsel %vm15414_vm13, %v15415_v24, 0.0  ;;  %vm15425_vm13 = vnez %v15424_v20 }
 0x57b   : > { %10405 = vmatprep.mubr.msk.f32.mxu0 %vm15408_vm7, %v15407_v43  ;;  %vm15409_vm3 = vmmov %vm15377_vm2  ;;  %v15442_v43 = vld [vmem:[#allocation22_spill] sm:$0xff] }
 0x57c   : > { %10462 = vmatmul.mubr.msk.f32.gmra.mxu1 %vm15409_vm3, %v15279_v0  ;;  %vm15410_vm14 = vmmov %vm15377_vm2  ;;  %v10086_v0 = vpop.f32.mrf.mxu0 }
 0x57d   : > { %5295 = vst.msk [vmem:[#allocation2 + $0x80] sm:$0xff] %vm15410_vm14, %v5263_v59  ;;  %10464 = vmatprep.mubr.msk.f32.mxu1 %vm15377_vm2, %v15282_v4  ;;  %vm15412_vm15 = vmmov %vm15377_vm2  ;;  %v5146_v4 = vpop.f32.mrf.mxu1 }
 0x57e   : > { %10406 = vmatmul.mubr.msk.f32.gmra.mxu0 %vm15412_vm15, %v15411_v45  ;;  %vm15417_vm9 = vmmov %vm15377_vm2  ;;  %v5234_v22 = vld [vmem:[#allocation2 + $0x98] sm:$0xff]  ;;  %v4834_v62 = vpop.f32.mrf.mxu0 }
 0x57f   : > { %10408 = vmatprep.mubr.msk.f32.mxu0 %vm15417_vm9, %v15416_v2  ;;  %vm15418_vm12 = vmmov %vm15377_vm2  ;;  %v5266_v6 = vadd.f32 %v10139_v27, %v5234_v22  ;;  %v15455_v22 = vld [vmem:[#allocation68_spill] sm:$0xff] }
 0x580   : > { %10465 = vmatmul.mubr.msk.f32.gmra.mxu1 %vm15418_vm12, %v15291_v14  ;;  %vm15419_vm7 = vmmov %vm15377_vm2  ;;  %v15426_v14 = vld [vmem:[#allocation21_spill] sm:$0xff] }
 0x581   : > { %4914 = vst.msk [vmem:[#allocation2 + $0xa8] sm:$0xff] %vm15419_vm7, %v10086_v0  ;;  %vm15420_vm3 = vmmov %vm15377_vm2  ;;  %v5233_v12 = vld [vmem:[#allocation2 + $0x90] sm:$0xff]  ;;  %v15427_v54 = vsel %vm15425_vm13, %v15426_v14, 0.0  ;;  %v15457_v0 = vld [vmem:[#allocation27_spill] sm:$0xff] }
 0x582   : > { %10467 = vmatprep.mubr.msk.f32.mxu1 %vm15420_vm3, %v15293_v57  ;;  %vm15422_vm14 = vmmov %vm15377_vm2  ;;  %5298 = vst.msk [vmem:[#allocation2 + $0x98] sm:$0xff] %vm15377_vm2, %v5266_v6  ;;  %v5265_v29 = vadd.f32 %v5233_v12, %v5146_v4  ;;  %v10142_v57 = vpop.f32.mrf.mxu1  ;;  %v5825_v14 = vld [vmem:[#allocation2 + $0x8] sm:$0xff] }
 0x583   : > { %10409 = vmatmul.mubr.msk.f32.gmra.mxu0 %vm15422_vm14, %v15421_v47  ;;  %vm15423_vm15 = vmmov %vm15377_vm2 }
 0x584   : > { %4913 = vst.msk [vmem:[#allocation2 + $0xa0] sm:$0xff] %vm15423_vm15, %v4834_v62  ;;  %vm15428_vm9 = vmmov %vm15377_vm2  ;;  %v5156_v59 = vpop.f32.mrf.mxu1 }
 0x585   : > { %10411 = vmatprep.mubr.msk.f32.mxu0 %vm15428_vm9, %v15427_v54  ;;  %vm15429_vm12 = vmmov %vm15377_vm2 }
 0x586   : > { %10468 = vmatmul.mubr.msk.f32.gmra.mxu1 %vm15429_vm12, %v15300_v41  ;;  %vm15430_vm7 = vmmov %vm15377_vm2  ;;  %v10089_v41 = vpop.f32.mrf.mxu0  ;;  %v10145_v45 = vpop.f32.mrf.mxu1 }
 0x587   : > { %5297 = vst.msk [vmem:[#allocation2 + $0x90] sm:$0xff] %vm15430_vm7, %v5265_v29  ;;  %vm15431_vm3 = vmmov %vm15377_vm2  ;;  %v15463_v29 = vld [vmem:[#allocation26_spill] sm:$0xff] }
 0x588   : > { %10470 = vmatprep.mubr.msk.f32.mxu1 %vm15431_vm3, %v15303_v18  ;;  %vm15433_vm14 = vmmov %vm15377_vm2  ;;  %vm15435_vm2 = vnez %v15434_v1  ;;  %v5236_v40 = vld [vmem:[#allocation2 + $0xa8] sm:$0xff]  ;;  %v4844_v25 = vpop.f32.mrf.mxu0  ;;  %v5166_v2 = vpop.f32.mrf.mxu1 }
 0x589   : > { %10412 = vmatmul.mubr.msk.f32.gmra.mxu0 %vm15433_vm14, %v15432_v39  ;;  %v15437_v36 = vsel %vm15435_vm2, %v15436_v35, 0.0  ;;  %vm15438_vm15 = vmmov %vm15431_vm3  ;;  %v5268_v58 = vadd.f32 %v10142_v57, %v5236_v40  ;;  %v15473_v57 = vld [vmem:[#allocation28_spill] sm:$0xff]  ;;  %v15476_v35 = vld [vmem:[#allocation90_spill] sm:$0xff] }
 0x58a   : > { %10414 = vmatprep.mubr.msk.f32.mxu0 %vm15438_vm15, %v15437_v36  ;;  %vm15439_vm13 = vmmov %vm15431_vm3  ;;  %v10148_v62 = vpop.f32.mrf.mxu1  ;;  %v15477_v36 = vsel %vm12923_vm8, %v15476_v35, 0.0 }
 0x58b   : > { %10471 = vmatmul.mubr.msk.f32.gmra.mxu1 %vm15439_vm13, %v15310_v15  ;;  %vm15440_vm9 = vmmov %vm15431_vm3  ;;  %v5235_v18 = vld [vmem:[#allocation2 + $0xa0] sm:$0xff]  ;;  %5300 = vst.msk [vmem:[#allocation2 + $0xa8] sm:$0xff] %vm15431_vm3, %v5268_v58  ;;  %v15482_v58 = vld [vmem:[#allocation93_spill] sm:$0xff] }
 0x58c   : > { %4916 = vst.msk [vmem:[#allocation2 + $0xb8] sm:$0xff] %vm15440_vm9, %v10089_v41  ;;  %vm15441_vm12 = vmmov %vm15431_vm3  ;;  %v5267_v27 = vadd.f32 %v5235_v18, %v5156_v59  ;;  %v15445_v15 = vld [vmem:[#allocation63_spill] sm:$0xff] }
 0x58d   : > { %10473 = vmatprep.mubr.msk.f32.mxu1 %vm15441_vm12, %v15199_v9  ;;  %vm15443_vm7 = vmmov %vm15431_vm3  ;;  %vm15446_vm2 = vnez %v15445_v15  ;;  %v15453_v9 = vld [vmem:[#allocation24_spill] sm:$0xff] }
 0x58e   : > { %10415 = vmatmul.mubr.msk.f32.gmra.mxu0 %vm15443_vm7, %v15442_v43  ;;  %vm15444_vm14 = vmmov %vm15431_vm3  ;;  %v15448_v24 = vsel %vm15446_vm2, %v15447_v61, 0.0  ;;  %v15486_v43 = vld [vmem:[#allocation83_spill] sm:$0xff] }
 0x58f   : > { %4915 = vst.msk [vmem:[#allocation2 + $0xb0] sm:$0xff] %vm15444_vm14, %v4844_v25  ;;  %vm15449_vm15 = vmmov %vm15431_vm3 }
 0x590   : > { %10417 = vmatprep.mubr.msk.f32.mxu0 %vm15449_vm15, %v15448_v24  ;;  %vm15450_vm13 = vmmov %vm15431_vm3 }
 0x591   : > { %10474 = vmatmul.mubr.msk.f32.gmra.mxu1 %vm15450_vm13, %v15316_v42  ;;  %vm15451_vm9 = vmmov %vm15431_vm3  ;;  %v10092_v42 = vpop.f32.mrf.mxu0 }
 0x592   : > { %5299 = vst.msk [vmem:[#allocation2 + $0xa0] sm:$0xff] %vm15451_vm9, %v5267_v27  ;;  %vm15452_vm12 = vmmov %vm15431_vm3  ;;  %v15493_v27 = vld [vmem:[#allocation30_spill] sm:$0xff] }
 0x593   : > { %10476 = vmatprep.mubr.msk.f32.mxu1 %vm15452_vm12, %v15209_v60  ;;  %vm15454_vm7 = vmmov %vm15431_vm3  ;;  %vm15456_vm3 = vnez %v15455_v22  ;;  %v5238_v4 = vld [vmem:[#allocation2 + $0xb8] sm:$0xff]  ;;  %v4854_v47 = vpop.f32.mrf.mxu0 }
 0x594   : > { %10418 = vmatmul.mubr.msk.f32.gmra.mxu0 %vm15454_vm7, %v15453_v9  ;;  %v15458_v6 = vsel %vm15456_vm3, %v15457_v0, 0.0  ;;  %vm15459_vm14 = vmmov %vm15454_vm7  ;;  %v5270_v12 = vadd.f32 %v10145_v45, %v5238_v4  ;;  %v15495_v45 = vld [vmem:[#allocation87_spill] sm:$0xff]  ;;  %v15500_v9 = vmov 0.0  }
 0x595   : > { %10420 = vmatprep.mubr.msk.f32.mxu0 %vm15459_vm14, %v15458_v6  ;;  %vm15460_vm2 = vmmov %vm15454_vm7  ;;  %v15504_v0 = vld [vmem:[#allocation91_spill] sm:$0xff] }
 0x596   : > { %10477 = vmatmul.mubr.msk.f32.gmra.mxu1 %vm15460_vm2, %v15207_v16  ;;  %vm15461_vm15 = vmmov %vm15460_vm2  ;;  %v5237_v60 = vld [vmem:[#allocation2 + $0xb0] sm:$0xff] }
 0x597   : > { %4918 = vst.msk [vmem:[#allocation2 + $0xc8] sm:$0xff] %vm15461_vm15, %v10092_v42  ;;  %vm15462_vm13 = vmmov %vm15460_vm2  ;;  %v5269_v20 = vadd.f32 %v5237_v60, %v5166_v2  ;;  %v15468_v16 = vld [vmem:[#allocation29_spill] sm:$0xff] }
 0x598   : > { %10479 = vmatprep.mubr.msk.f32.mxu1 %vm15462_vm13, %v15215_v50  ;;  %vm15464_vm9 = vmmov %vm15460_vm2  ;;  %v15469_v54 = vsel %vm15190_vm4, %v15468_v16, 0.0  ;;  %v5176_v50 = vpop.f32.mrf.mxu1 }
 0x599   : > { %10421 = vmatmul.mubr.msk.f32.gmra.mxu0 %vm15464_vm9, %v15463_v29  ;;  %vm15465_vm12 = vmmov %vm15460_vm2  ;;  %5301 = vst.msk [vmem:[#allocation2 + $0xb0] sm:$0xff] %vm15460_vm2, %v5269_v20 }
 0x59a   : > { %5302 = vst.msk [vmem:[#allocation2 + $0xb8] sm:$0xff] %vm15465_vm12, %v5270_v12  ;;  %vm15466_vm7 = vmmov %vm15460_vm2  ;;  %v10151_v39 = vpop.f32.mrf.mxu1 }
 0x59b   : > { %4917 = vst.msk [vmem:[#allocation2 + $0xc0] sm:$0xff] %vm15466_vm7, %v4854_v47  ;;  %vm15470_vm3 = vmmov %vm15460_vm2 }
 0x59c   : > { %10423 = vmatprep.mubr.msk.f32.mxu0 %vm15470_vm3, %v15469_v54  ;;  %vm15471_vm14 = vmmov %vm15460_vm2  ;;  %v5186_v25 = vpop.f32.mrf.mxu1 }
 0x59d   : > { %10480 = vmatmul.mubr.msk.f32.gmra.mxu1 %vm15471_vm14, %v15329_v55  ;;  %vm15472_vm15 = vmmov %vm15460_vm2  ;;  %v10095_v55 = vpop.f32.mrf.mxu0 }
 0x59e   : > { %10482 = vmatprep.mubr.msk.f32.mxu1 %vm15472_vm15, %v15225_v26  ;;  %vm15474_vm13 = vmmov %vm15460_vm2  ;;  %v5240_v40 = vld [vmem:[#allocation2 + $0xc8] sm:$0xff] }
 0x59f   : > { %10424 = vmatmul.mubr.msk.f32.gmra.mxu0 %vm15474_vm13, %v15473_v57  ;;  %vm15478_vm4 = vmmov %vm15460_vm2  ;;  %v5272_v41 = vadd.f32 %v10148_v62, %v5240_v40  ;;  %v4864_v59 = vpop.f32.mrf.mxu0 }
 0x5a0   : > { %10426 = vmatprep.mubr.msk.f32.mxu0 %vm15478_vm4, %v15477_v36  ;;  %vm15479_vm9 = vmmov %vm15460_vm2  ;;  %v5827_v36 = vld [vmem:[#allocation2 + $0x18] sm:$0xff] }
 0x5a1   : > { %10483 = vmatmul.mubr.msk.f32.gmra.mxu1 %vm15479_vm9, %v15223_v56  ;;  %vm15480_vm12 = vmmov %vm15460_vm2 }
 0x5a2   : > { %4920 = vst.msk [vmem:[#allocation2 + $0xd8] sm:$0xff] %vm15480_vm12, %v10095_v55  ;;  %vm15481_vm7 = vmmov %vm15460_vm2  ;;  %v5239_v26 = vld [vmem:[#allocation2 + $0xc0] sm:$0xff] }
 0x5a3   : > { %10485 = vmatprep.mubr.msk.f32.mxu1 %vm15481_vm7, %v15231_v7  ;;  %vm15483_vm3 = vmmov %vm15460_vm2  ;;  %v5271_v18 = vadd.f32 %v5239_v26, %v5176_v50  ;;  %v10154_v7 = vpop.f32.mrf.mxu1  ;;  %vm15496_vm7 = vnez %v15495_v45 }
 0x5a4   : > { %10427 = vmatmul.mubr.msk.f32.gmra.mxu0 %vm15483_vm3, %v15482_v58  ;;  %vm15484_vm14 = vmmov %vm15460_vm2  ;;  %v15497_v15 = vsel %vm15496_vm7, %v13152_v49, 0.0  ;;  %v5826_v58 = vld [vmem:[#allocation2 + $0x10] sm:$0xff] }
 0x5a5   : > { %5304 = vst.msk [vmem:[#allocation2 + $0xc8] sm:$0xff] %vm15484_vm14, %v5272_v41  ;;  %vm15485_vm8 = vmmov %vm15460_vm2  ;;  %vm15487_vm2 = vnez %v15486_v43  ;;  %v5196_v24 = vpop.f32.mrf.mxu1  ;;  %v5829_v43 = vld [vmem:[#allocation2 + $0x28] sm:$0xff] }
 0x5a6   : > { %4919 = vst.msk [vmem:[#allocation2 + $0xd0] sm:$0xff] %vm15485_vm8, %v4864_v59  ;;  %v15488_v56 = vsel %vm15487_vm2, %v15220_v10, 0.0  ;;  %vm15489_vm15 = vmmov %vm15483_vm3 }
 0x5a7   : > { %10429 = vmatprep.mubr.msk.f32.mxu0 %vm15489_vm15, %v15488_v56  ;;  %vm15490_vm13 = vmmov %vm15483_vm3  ;;  %v10157_v22 = vpop.f32.mrf.mxu1  ;;  %v15526_v56 = vld [vmem:[#allocation45_spill] sm:$0xff] }
 0x5a8   : > { %10486 = vmatmul.mubr.msk.f32.gmra.mxu1 %vm15490_vm13, %v13083_v52  ;;  %vm15491_vm4 = vmmov %vm15483_vm3  ;;  %v10098_v52 = vpop.f32.mrf.mxu0 }
 0x5a9   : > { %5303 = vst.msk [vmem:[#allocation2 + $0xc0] sm:$0xff] %vm15491_vm4, %v5271_v18  ;;  %vm15492_vm9 = vmmov %vm15483_vm3  ;;  %v5242_v10 = vld [vmem:[#allocation2 + $0xd8] sm:$0xff]  ;;  %vm15505_vm4 = vnez %v15504_v0  ;;  %v5206_v4 = vpop.f32.mrf.mxu1 }
 0x5aa   : > { %10488 = vmatprep.mubr.msk.f32.mxu1 %vm15492_vm9, %v13121_v13  ;;  %vm15494_vm12 = vmmov %vm15483_vm3  ;;  %v5274_v61 = vadd.f32 %v10151_v39, %v5242_v10  ;;  %v4874_v2 = vpop.f32.mrf.mxu0  ;;  %v5824_v39 = vld [vmem:[#allocation2] sm:$0xff] }
 0x5ab   : > { %10430 = vmatmul.mubr.msk.f32.gmra.mxu0 %vm15494_vm12, %v15493_v27  ;;  %vm15498_vm14 = vmmov %vm15483_vm3  ;;  %v15531_v27 = vld [vmem:[#allocation42_spill] sm:$0xff] }
 0x5ac   : > { %10432 = vmatprep.mubr.msk.f32.mxu0 %vm15483_vm3, %v15497_v15  ;;  %10489 = vmatmul.mubr.msk.f32.gmra.mxu1 %vm15498_vm14, %v13145_v32  ;;  %vm15499_vm8 = vmmov %vm15483_vm3  ;;  %v15506_v32 = vld [vmem:[#allocation99_spill] sm:$0xff]  ;;  %v10101_v42 = vpop.f32.mrf.mxu0 }
 0x5ad   : > { %4922 = vst.msk [vmem:[#allocation2 + $0xe8] sm:$0xff] %vm15499_vm8, %v10098_v52  ;;  %10491 = vmatprep.mubr.f32.mxu1 %v15500_v9  ;;  %v5241_v13 = vld [vmem:[#allocation2 + $0xd0] sm:$0xff]  ;;  %vm15501_vm2 = vmmov %vm15483_vm3  ;;  %v15507_v6 = vsel %vm15505_vm4, %v15506_v32, 0.0  ;;  %vm15513_vm8 = vnez %v14853_v48  ;;  %v5828_v10 = vld [vmem:[#allocation2 + $0x20] sm:$0xff] }
 0x5ae   : > { %vm15502_vm15 = vmmov %vm15501_vm2  ;;  %v5273_v49 = vadd.f32 %v5241_v13, %v5186_v25  ;;  %v4884_v62 = vpop.f32.mrf.mxu0  ;;  %v15514_v16 = vsel %vm15513_vm8, %v12461_v33, 0.0 }
 0x5af   : > { %10433 = vmatmul.mubr.msk.f32.gmra.mxu0 %vm15501_vm2, %v13493_v31  ;;  %5306 = vst.msk [vmem:[#allocation2 + $0xd8] sm:$0xff] %vm15502_vm15, %v5274_v61  ;;  %vm15503_vm13 = vmmov %vm15501_vm2  ;;  %v10224_v31 = vpop.f32.mrf.mxu1 }
 0x5b0   : > { %4921 = vst.msk [vmem:[#allocation2 + $0xe0] sm:$0xff] %vm15503_vm13, %v4874_v2  ;;  %vm15508_vm9 = vmmov %vm15501_vm2  ;;  %10492 = vmatmul.mubr.f32.gmra.mxu1 %v15500_v9  ;;  %v10168_v20 = vpop.f32.mrf.mxu0  ;;  %v5831_v2 = vld [vmem:[#allocation2 + $0x38] sm:$0xff] }
 0x5b1   : > { %10435 = vmatprep.mubr.msk.f32.mxu0 %vm15508_vm9, %v15507_v6  ;;  %vm15509_vm12 = vmmov %vm15501_vm2  ;;  %v6126_v47 = vpop.f32.mrf.mxu1  ;;  %v5857_v50 = vadd.f32 %v10168_v20, %v5825_v14 }
 0x5b2   : > { %5305 = vst.msk [vmem:[#allocation2 + $0xd0] sm:$0xff] %vm15509_vm12, %v5273_v49  ;;  %vm15510_vm7 = vmmov %vm15501_vm2  ;;  %v5665_v57 = vpop.f32.mrf.mxu0  ;;  %vm15519_vm12 = vnez %v14860_v17  ;;  %v15534_v49 = vld [vmem:[#allocation49_spill] sm:$0xff] }
 0x5b3   : > { %10436 = vmatmul.mubr.f32.gmra.mxu0 %v15500_v9  ;;  %4924 = vst.msk [vmem:[#allocation2 + $0xf8] sm:$0xff] %vm15510_vm7, %v10101_v42  ;;  %vm15511_vm3 = vmmov %vm15501_vm2  ;;  %v5856_v1 = vadd.f32 %v5824_v39, %v5665_v57  ;;  %v15520_v40 = vsel %vm15519_vm12, %v12514_v38, 0.0  ;;  %v15546_v57 = vld [vmem:[#allocation55_spill] sm:$0xff] }
 0x5b4   : > { %10502 = vmatprep.mubr.msk.f32.mxu0 %vm15511_vm3, %v13211_v53  ;;  %v5244_v12 = vld [vmem:[#allocation2 + $0xe8] sm:$0xff]  ;;  %vm15512_vm14 = vmmov %vm15501_vm2  ;;  %v10227_v53 = vpop.f32.mrf.mxu1  ;;  %v10171_v33 = vpop.f32.mrf.mxu0 }
 0x5b5   : > { %v5276_v60 = vadd.f32 %v10154_v7, %v5244_v12  ;;  %4923 = vst.msk [vmem:[#allocation2 + $0xf0] sm:$0xff] %vm15512_vm14, %v4884_v62  ;;  %vm15515_vm15 = vmmov %vm15501_vm2  ;;  %v5830_v62 = vld [vmem:[#allocation2 + $0x30] sm:$0xff] }
 0x5b6   : > { %vm15516_vm13 = vmmov %vm15501_vm2  ;;  %v6136_v35 = vpop.f32.mrf.mxu1  ;;  %v5675_v59 = vpop.f32.mrf.mxu0 }
 0x5b7   : > { %v5243_v29 = vld [vmem:[#allocation2 + $0xe0] sm:$0xff]  ;;  %10503 = vmatmul.mubr.msk.f32.vlgmr.msra.gmra.mxu0 %vm15501_vm2, %v15514_v16  ;;  %5308 = vst.msk [vmem:[#allocation2 + $0xe8] sm:$0xff] %vm15515_vm15, %v5276_v60  ;;  %vm15517_vm4 = vmmov %vm15501_vm2  ;;  %v5858_v17 = vadd.f32 %v5826_v58, %v5675_v59  ;;  %vm15525_vm15 = vnez %v14871_v23 }
 0x5b8   : > { %v5275_v54 = vadd.f32 %v5243_v29, %v5196_v24  ;;  %10505 = vmatprep.mubr.msk.f32.mxu0 %vm15516_vm13, %v13237_v51  ;;  %vm15518_vm9 = vmmov %vm15501_vm2  ;;  %v5859_v51 = vadd.f32 %v10171_v33, %v5827_v36  ;;  %v10230_v26 = vpop.f32.mrf.mxu1  ;;  %v10174_v25 = vpop.f32.mrf.mxu0  ;;  %v15527_v7 = vsel %vm15525_vm15, %v15526_v56, 0.0 }
 0x5b9   : > { %5889 = vst.msk [vmem:[#allocation2 + $0x8] sm:$0xff] %vm15518_vm9, %v5857_v50  ;;  %vm15521_vm7 = vmmov %vm15501_vm2  ;;  %v15544_v50 = vld [vmem:[#allocation54_spill] sm:$0xff] }
 0x5ba   : > { %5307 = vst.msk [vmem:[#allocation2 + $0xe0] sm:$0xff] %vm15517_vm4, %v5275_v54  ;;  %v5246_v48 = vld [vmem:[#allocation2 + $0xf8] sm:$0xff]  ;;  %vm15522_vm3 = vmmov %vm15501_vm2  ;;  %v6146_v38 = vpop.f32.mrf.mxu1  ;;  %v5685_v15 = vpop.f32.mrf.mxu0  ;;  %v5833_v54 = vld [vmem:[#allocation2 + $0x48] sm:$0xff] }
 0x5bb   : > { %10506 = vmatmul.mubr.msk.f32.gmra.mxu0 %vm15521_vm7, %v15520_v40  ;;  %v5278_v55 = vadd.f32 %v10157_v22, %v5246_v48  ;;  %5888 = vst.msk [vmem:[#allocation2] sm:$0xff] %vm15522_vm3, %v5856_v1  ;;  %vm15523_vm14 = vmmov %vm15501_vm2  ;;  %v5860_v61 = vadd.f32 %v5828_v10, %v5685_v15  ;;  %vm15535_vm3 = vnez %v15534_v49  ;;  %v15536_v22 = vld [vmem:[#allocation50_spill] sm:$0xff]  ;;  %v15550_v48 = vld [vmem:[#allocation47_spill] sm:$0xff] }
 0x5bc   : > { %10508 = vmatprep.mubr.msk.f32.mxu0 %vm15523_vm14, %v13261_v44  ;;  %v5245_v41 = vld [vmem:[#allocation2 + $0xf0] sm:$0xff]  ;;  %vm15524_vm8 = vmmov %vm15501_vm2  ;;  %5891 = vst.msk [vmem:[#allocation2 + $0x18] sm:$0xff] %vm15501_vm2, %v5859_v51  ;;  %v5861_v44 = vadd.f32 %v10174_v25, %v5829_v43  ;;  %v10233_v45 = vpop.f32.mrf.mxu1  ;;  %v10177_v13 = vpop.f32.mrf.mxu0  ;;  %v15537_v0 = vsel %vm15535_vm3, %v15536_v22, 0.0  ;;  %v5832_v40 = vld [vmem:[#allocation2 + $0x40] sm:$0xff] }
 0x5bd   : > { %5310 = vst.msk [vmem:[#allocation2 + $0xf8] sm:$0xff] %vm15524_vm8, %v5278_v55  ;;  %v5277_v18 = vadd.f32 %v5245_v41, %v5206_v4  ;;  %vm15528_vm13 = vmmov %vm15501_vm2  ;;  %v5863_v6 = vadd.f32 %v10177_v13, %v5831_v2  ;;  %v15540_v4 = vld [vmem:[#allocation43_spill] sm:$0xff]  ;;  %v15556_v25 = vld [vmem:[#allocation60_spill] sm:$0xff] }
 0x5be   : > { %vm15529_vm4 = vmmov %vm15501_vm2  ;;  %v13935_v24 = vpop.f32.mrf.mxu1  ;;  %v5695_v12 = vpop.f32.mrf.mxu0  ;;  %v5834_v15 = vld [vmem:[#allocation2 + $0x50] sm:$0xff]  ;;  %v5837_v2 = vld [vmem:[#allocation2 + $0x68] sm:$0xff] }
 0x5bf   : > { %10509 = vmatmul.mubr.msk.f32.gmra.mxu0 %vm15528_vm13, %v15527_v7  ;;  %5309 = vst.msk [vmem:[#allocation2 + $0xf0] sm:$0xff] %vm15529_vm4, %v5277_v18  ;;  %vm15530_vm9 = vmmov %vm15501_vm2  ;;  %v5862_v29 = vadd.f32 %v5830_v62, %v5695_v12  ;;  %v5835_v18 = vld [vmem:[#allocation2 + $0x58] sm:$0xff]  ;;  %v15560_v7 = vld [vmem:[#allocation100_spill] sm:$0xff] }
 0x5c0   : > { %5890 = vst.msk [vmem:[#allocation2 + $0x10] sm:$0xff] %vm15530_vm9, %v5858_v17  ;;  %vm15532_vm12 = vmmov %vm15501_vm2  ;;  %v6286_v52 = vld [vmem:[#allocation2 + $0x8] sm:$0xff]  ;;  %v10180_v16 = vpop.f32.mrf.mxu0  ;;  %vm15545_vm9 = vnez %v15544_v50  ;;  %v15567_v22 = vld [vmem:[#allocation65_spill] sm:$0xff] }
 0x5c1   : > { %10511 = vmatprep.mubr.msk.f32.mxu0 %vm15532_vm12, %v15531_v27  ;;  %vm15533_vm7 = vmmov %vm15501_vm2  ;;  %v6318_v23 = vadd.f32 %v10224_v31, %v6286_v52  ;;  %v10236_v31 = vpop.f32.mrf.mxu1  ;;  %v15547_v39 = vsel %vm15545_vm9, %v15546_v57, 0.0  ;;  %v5865_v1 = vadd.f32 %v10180_v16, %v5833_v54  ;;  %v15554_v17 = vld [vmem:[#allocation59_spill] sm:$0xff]  ;;  %v15565_v49 = vld [vmem:[#allocation64_spill] sm:$0xff] }
 0x5c2   : > { %5893 = vst.msk [vmem:[#allocation2 + $0x28] sm:$0xff] %vm15533_vm7, %v5861_v44  ;;  %vm15538_vm14 = vmmov %vm15501_vm2  ;;  %v6285_v32 = vld [vmem:[#allocation2] sm:$0xff]  ;;  %v5705_v36 = vpop.f32.mrf.mxu0  ;;  %v5839_v54 = vld [vmem:[#allocation2 + $0x78] sm:$0xff] }
 0x5c3   : > { %10512 = vmatmul.mubr.msk.f32.gmra.mxu0 %vm15538_vm14, %v15537_v0  ;;  %vm15539_vm8 = vmmov %vm15501_vm2  ;;  %v6317_v42 = vadd.f32 %v6285_v32, %v6126_v47  ;;  %v6288_v60 = vld [vmem:[#allocation2 + $0x18] sm:$0xff]  ;;  %v13948_v14 = vpop.f32.mrf.mxu1  ;;  %v5864_v51 = vadd.f32 %v5832_v40, %v5705_v36  ;;  %v5836_v12 = vld [vmem:[#allocation2 + $0x60] sm:$0xff] }
 0x5c4   : > { %5892 = vst.msk [vmem:[#allocation2 + $0x20] sm:$0xff] %vm15539_vm8, %v5860_v61  ;;  %10514 = vmatprep.mubr.msk.f32.mxu0 %vm15501_vm2, %v15540_v4  ;;  %vm15541_vm15 = vmmov %vm15501_vm2  ;;  %v6320_v20 = vadd.f32 %v10227_v53, %v6288_v60  ;;  %v10183_v58 = vpop.f32.mrf.mxu0  ;;  %v15575_v50 = vld [vmem:[#allocation69_spill] sm:$0xff]  ;;  %v15577_v57 = vld [vmem:[#allocation70_spill] sm:$0xff] }
 0x5c5   : > { %6350 = vst.msk [vmem:[#allocation2 + $0x8] sm:$0xff] %vm15541_vm15, %v6318_v23  ;;  %vm15542_vm13 = vmmov %vm15501_vm2  ;;  %v10239_v33 = vpop.f32.mrf.mxu1  ;;  %vm15555_vm15 = vnez %v15554_v17  ;;  %v5867_v56 = vadd.f32 %v10183_v58, %v5835_v18  ;;  %v5841_v58 = vld [vmem:[#allocation2 + $0x88] sm:$0xff]  ;;  %v15584_v18 = vld [vmem:[#allocation74_spill] sm:$0xff] }
 0x5c6   : > { %5895 = vst.msk [vmem:[#allocation2 + $0x38] sm:$0xff] %vm15542_vm13, %v5863_v6  ;;  %vm15543_vm4 = vmmov %vm15501_vm2  ;;  %v15557_v43 = vsel %vm15555_vm15, %v15556_v25, 0.0  ;;  %v5715_v27 = vpop.f32.mrf.mxu0  ;;  %v15570_v6 = vld [vmem:[#allocation101_spill] sm:$0xff] }
 0x5c7   : > { %6349 = vst.msk [vmem:[#allocation2] sm:$0xff] %vm15543_vm4, %v6317_v42  ;;  %vm15548_vm12 = vmmov %vm15501_vm2  ;;  %v6287_v47 = vld [vmem:[#allocation2 + $0x10] sm:$0xff]  ;;  %v13961_v59 = vpop.f32.mrf.mxu1  ;;  %v5866_v52 = vadd.f32 %v5834_v15, %v5715_v27 }
 0x5c8   : > { %10515 = vmatmul.mubr.msk.f32.gmra.mxu0 %vm15548_vm12, %v15547_v39  ;;  %vm15549_vm7 = vmmov %vm15501_vm2  ;;  %v6319_v53 = vadd.f32 %v6287_v47, %v6136_v35  ;;  %v10186_v13 = vpop.f32.mrf.mxu0 }
 0x5c9   : > { %5894 = vst.msk [vmem:[#allocation2 + $0x30] sm:$0xff] %vm15549_vm7, %v5862_v29  ;;  %vm15551_vm3 = vmmov %vm15501_vm2  ;;  %v6290_v55 = vld [vmem:[#allocation2 + $0x28] sm:$0xff]  ;;  %v10242_v44 = vpop.f32.mrf.mxu1  ;;  %v5869_v32 = vadd.f32 %v10186_v13, %v5837_v2  ;;  %v15596_v2 = vsel %vm15306_vm5, %v15206_v8, 0.0 }
 0x5ca   : > { %10517 = vmatprep.mubr.msk.f32.mxu0 %vm15551_vm3, %v15550_v48  ;;  %vm15552_vm14 = vmmov %vm15501_vm2  ;;  %6351 = vst.msk [vmem:[#allocation2 + $0x10] sm:$0xff] %vm15501_vm2, %v6319_v53  ;;  %v6322_v41 = vadd.f32 %v10230_v26, %v6290_v55  ;;  %v5725_v42 = vpop.f32.mrf.mxu0  ;;  %v5838_v53 = vld [vmem:[#allocation2 + $0x70] sm:$0xff] }
 0x5cb   : > { %6352 = vst.msk [vmem:[#allocation2 + $0x18] sm:$0xff] %vm15552_vm14, %v6320_v20  ;;  %vm15553_vm8 = vmmov %vm15501_vm2  ;;  %v6289_v35 = vld [vmem:[#allocation2 + $0x20] sm:$0xff]  ;;  %v13974_v23 = vpop.f32.mrf.mxu1  ;;  %vm15566_vm14 = vnez %v15565_v49  ;;  %v5868_v60 = vadd.f32 %v5836_v12, %v5725_v42  ;;  %v5845_v12 = vld [vmem:[#allocation2 + $0xa8] sm:$0xff] }
 0x5cc   : > { %5897 = vst.msk [vmem:[#allocation2 + $0x48] sm:$0xff] %vm15553_vm8, %v5865_v1  ;;  %vm15558_vm13 = vmmov %vm15501_vm2  ;;  %v6321_v26 = vadd.f32 %v6289_v35, %v6146_v38  ;;  %v15568_v0 = vsel %vm15566_vm14, %v15567_v22, 0.0  ;;  %v10189_v16 = vpop.f32.mrf.mxu0 }
 0x5cd   : > { %10518 = vmatmul.mubr.msk.f32.gmra.mxu0 %vm15558_vm13, %v15557_v43  ;;  %vm15559_vm4 = vmmov %vm15501_vm2  ;;  %v6292_v10 = vld [vmem:[#allocation2 + $0x38] sm:$0xff]  ;;  %5898 = vst.msk [vmem:[#allocation2 + $0x50] sm:$0xff] %vm15501_vm2, %v5866_v52  ;;  %v10245_v4 = vpop.f32.mrf.mxu1  ;;  %v5871_v47 = vadd.f32 %v10189_v16, %v5839_v54  ;;  %v15590_v43 = vld [vmem:[#allocation72_spill] sm:$0xff] }
 0x5ce   : > { %5896 = vst.msk [vmem:[#allocation2 + $0x40] sm:$0xff] %vm15559_vm4, %v5864_v51  ;;  %vm15561_vm9 = vmmov %vm15501_vm2  ;;  %v6324_v61 = vadd.f32 %v10233_v45, %v6292_v10  ;;  %v5735_v48 = vpop.f32.mrf.mxu0  ;;  %v5844_v54 = vld [vmem:[#allocation2 + $0xa0] sm:$0xff] }
 0x5cf   : > { %10520 = vmatprep.mubr.msk.f32.mxu0 %vm15561_vm9, %v15560_v7  ;;  %vm15562_vm12 = vmmov %vm15501_vm2  ;;  %v13988_v20 = vpop.f32.mrf.mxu1  ;;  %5903 = vst.msk [vmem:[#allocation2 + $0x78] sm:$0xff] %vm15501_vm2, %v5871_v47  ;;  %v5870_v40 = vadd.f32 %v5838_v53, %v5735_v48  ;;  %v5840_v7 = vld [vmem:[#allocation2 + $0x80] sm:$0xff]  ;;  %v5847_v47 = vld [vmem:[#allocation2 + $0xb8] sm:$0xff] }
 0x5d0   : > { %6354 = vst.msk [vmem:[#allocation2 + $0x28] sm:$0xff] %vm15562_vm12, %v6322_v41  ;;  %vm15563_vm7 = vmmov %vm15501_vm2  ;;  %v6291_v38 = vld [vmem:[#allocation2 + $0x30] sm:$0xff]  ;;  %vm15576_vm12 = vnez %v15575_v50  ;;  %v10192_v41 = vpop.f32.mrf.mxu0 }
 0x5d1   : > { %5899 = vst.msk [vmem:[#allocation2 + $0x58] sm:$0xff] %vm15563_vm7, %v5867_v56  ;;  %vm15564_vm3 = vmmov %vm15501_vm2  ;;  %v6323_v45 = vadd.f32 %v6291_v38, %v13935_v24  ;;  %v15578_v39 = vsel %vm15576_vm12, %v15577_v57, 0.0  ;;  %v10248_v1 = vpop.f32.mrf.mxu1  ;;  %v5873_v25 = vadd.f32 %v10192_v41, %v5841_v58  ;;  %v5842_v38 = vld [vmem:[#allocation2 + $0x90] sm:$0xff] }
 0x5d2   : > { %6353 = vst.msk [vmem:[#allocation2 + $0x20] sm:$0xff] %vm15564_vm3, %v6321_v26  ;;  %vm15569_vm8 = vmmov %vm15501_vm2  ;;  %v5745_v56 = vpop.f32.mrf.mxu0 }
 0x5d3   : > { %10521 = vmatmul.mubr.msk.f32.gmra.mxu0 %vm15569_vm8, %v15568_v0  ;;  %vm15571_vm15 = vmmov %vm15501_vm2  ;;  %v6294_v62 = vld [vmem:[#allocation2 + $0x48] sm:$0xff]  ;;  %v14002_v51 = vpop.f32.mrf.mxu1  ;;  %v5872_v27 = vadd.f32 %v5840_v7, %v5745_v56 }
 0x5d4   : > { %10523 = vmatprep.mubr.msk.f32.mxu0 %vm15571_vm15, %v15570_v6  ;;  %vm15572_vm13 = vmmov %vm15501_vm2  ;;  %v6326_v29 = vadd.f32 %v10236_v31, %v6294_v62  ;;  %v10195_v52 = vpop.f32.mrf.mxu0 }
 0x5d5   : > { %6356 = vst.msk [vmem:[#allocation2 + $0x38] sm:$0xff] %vm15572_vm13, %v6324_v61  ;;  %vm15573_vm4 = vmmov %vm15501_vm2  ;;  %v6293_v24 = vld [vmem:[#allocation2 + $0x40] sm:$0xff]  ;;  %vm15585_vm13 = vnez %v15584_v18  ;;  %v10251_v35 = vpop.f32.mrf.mxu1  ;;  %v5843_v61 = vld [vmem:[#allocation2 + $0x98] sm:$0xff] }
 0x5d6   : > { %5901 = vst.msk [vmem:[#allocation2 + $0x68] sm:$0xff] %vm15573_vm4, %v5869_v32  ;;  %vm15574_vm9 = vmmov %vm15501_vm2  ;;  %v6325_v31 = vadd.f32 %v6293_v24, %v13948_v14  ;;  %v6295_v14 = vld [vmem:[#allocation2 + $0x50] sm:$0xff]  ;;  %v5875_v49 = vadd.f32 %v10195_v52, %v5843_v61  ;;  %v5755_v0 = vpop.f32.mrf.mxu0  ;;  %v6300_v32 = vld [vmem:[#allocation2 + $0x78] sm:$0xff] }
 0x5d7   : > { %6355 = vst.msk [vmem:[#allocation2 + $0x30] sm:$0xff] %vm15574_vm9, %v6323_v45  ;;  %vm15579_vm7 = vmmov %vm15501_vm2  ;;  %v14016_v10 = vpop.f32.mrf.mxu1  ;;  %v5874_v8 = vadd.f32 %v5842_v38, %v5755_v0  ;;  %v6332_v6 = vadd.f32 %v10245_v4, %v6300_v32  ;;  %v5853_v32 = vld [vmem:[#allocation2 + $0xe8] sm:$0xff] }
 0x5d8   : > { %10524 = vmatmul.mubr.msk.f32.gmra.mxu0 %vm15579_vm7, %v15578_v39  ;;  %vm15580_vm3 = vmmov %vm15501_vm2  ;;  %v6296_v36 = vld [vmem:[#allocation2 + $0x58] sm:$0xff]  ;;  %5904 = vst.msk [vmem:[#allocation2 + $0x80] sm:$0xff] %vm15501_vm2, %v5872_v27  ;;  %v10198_v42 = vpop.f32.mrf.mxu0 }
 0x5d9   : > { %5900 = vst.msk [vmem:[#allocation2 + $0x60] sm:$0xff] %vm15580_vm3, %v5868_v60  ;;  %vm15581_vm14 = vmmov %vm15501_vm2  ;;  %v6328_v55 = vadd.f32 %v10239_v33, %v6296_v36  ;;  %v6327_v33 = vadd.f32 %v6295_v14, %v13961_v59  ;;  %v10254_v22 = vpop.f32.mrf.mxu1  ;;  %v5877_v60 = vadd.f32 %v10198_v42, %v5845_v12 }
 0x5da   : > { %10526 = vmatprep.mubr.msk.f32.mxu0 %vm15581_vm14, %v13383_v19  ;;  %vm15582_vm8 = vmmov %vm15501_vm2  ;;  %v15586_v19 = vld [vmem:[#allocation75_spill] sm:$0xff]  ;;  %v5765_v16 = vpop.f32.mrf.mxu0 }
 0x5db   : > { %6358 = vst.msk [vmem:[#allocation2 + $0x48] sm:$0xff] %vm15582_vm8, %v6326_v29  ;;  %vm15583_vm15 = vmmov %vm15501_vm2  ;;  %v15587_v17 = vsel %vm15585_vm13, %v15586_v19, 0.0  ;;  %v14030_v45 = vpop.f32.mrf.mxu1  ;;  %v5849_v19 = vld [vmem:[#allocation2 + $0xc8] sm:$0xff] }
 0x5dc   : > { %6357 = vst.msk [vmem:[#allocation2 + $0x40] sm:$0xff] %vm15583_vm15, %v6325_v31  ;;  %vm15588_vm4 = vmmov %vm15501_vm2  ;;  %v10201_v24 = vpop.f32.mrf.mxu0 }
 0x5dd   : > { %10527 = vmatmul.mubr.msk.f32.gmra.mxu0 %vm15588_vm4, %v15587_v17  ;;  %vm15589_vm9 = vmmov %vm15501_vm2  ;;  %v6298_v26 = vld [vmem:[#allocation2 + $0x68] sm:$0xff]  ;;  %v10257_v29 = vpop.f32.mrf.mxu1  ;;  %v5879_v48 = vadd.f32 %v10201_v24, %v5847_v47  ;;  %v5854_v24 = vld [vmem:[#allocation2 + $0xf0] sm:$0xff] }
 0x5de   : > { %5902 = vst.msk [vmem:[#allocation2 + $0x70] sm:$0xff] %vm15589_vm9, %v5870_v40  ;;  %vm15591_vm12 = vmmov %vm15501_vm2  ;;  %v6330_v15 = vadd.f32 %v10242_v44, %v6298_v26  ;;  %v5775_v36 = vpop.f32.mrf.mxu0  ;;  %v5846_v40 = vld [vmem:[#allocation2 + $0xb0] sm:$0xff] }
 0x5df   : > { %10529 = vmatprep.mubr.msk.f32.mxu0 %vm15591_vm12, %v15590_v43  ;;  %vm15592_vm7 = vmmov %vm15501_vm2  ;;  %v14044_v39 = vpop.f32.mrf.mxu1 }
 0x5e0   : > { %6360 = vst.msk [vmem:[#allocation2 + $0x58] sm:$0xff] %vm15592_vm7, %v6328_v55  ;;  %vm15593_vm3 = vmmov %vm15501_vm2  ;;  %v6297_v59 = vld [vmem:[#allocation2 + $0x60] sm:$0xff]  ;;  %v10204_v18 = vpop.f32.mrf.mxu0 }
 0x5e1   : > { %5905 = vst.msk [vmem:[#allocation2 + $0x88] sm:$0xff] %vm15593_vm3, %v5873_v25  ;;  %vm15594_vm14 = vmmov %vm15501_vm2  ;;  %v6329_v44 = vadd.f32 %v6297_v59, %v13974_v23  ;;  %v10260_v53 = vpop.f32.mrf.mxu1  ;;  %v5881_v14 = vadd.f32 %v10204_v18, %v5849_v19 }
 0x5e2   : > { %6359 = vst.msk [vmem:[#allocation2 + $0x50] sm:$0xff] %vm15594_vm14, %v6327_v33  ;;  %vm15597_vm8 = vmmov %vm15501_vm2  ;;  %v5785_v33 = vpop.f32.mrf.mxu0 }
 0x5e3   : > { %10530 = vmatmul.mubr.msk.f32.gmra.mxu0 %vm15597_vm8, %v15596_v2  ;;  %vm15598_vm15 = vmmov %vm15501_vm2  ;;  %v6246_v58 = vpop.f32.mrf.mxu1 }
 0x5e4   : > { %10532 = vmatprep.mubr.msk.f32.mxu0 %vm15598_vm15, %v13422_v34  ;;  %vm15599_vm13 = vmmov %vm15501_vm2  ;;  %v15603_v34 = vsel %vm15195_vm11, %v13005_v11, 0.0  ;;  %v5876_v11 = vadd.f32 %v5844_v54, %v5765_v16  ;;  %v10207_v27 = vpop.f32.mrf.mxu0  ;;  %v5855_v16 = vld [vmem:[#allocation2 + $0xf8] sm:$0xff] }
 0x5e5   : > { %6362 = vst.msk [vmem:[#allocation2 + $0x68] sm:$0xff] %vm15599_vm13, %v6330_v15  ;;  %vm15600_vm4 = vmmov %vm15501_vm2  ;;  %v6299_v23 = vld [vmem:[#allocation2 + $0x70] sm:$0xff]  ;;  %v10263_v43 = vpop.f32.mrf.mxu1  ;;  %v5851_v15 = vld [vmem:[#allocation2 + $0xd8] sm:$0xff] }
 0x5e6   : > { %5907 = vst.msk [vmem:[#allocation2 + $0x98] sm:$0xff] %vm15600_vm4, %v5875_v49  ;;  %vm15601_vm5 = vmmov %vm15501_vm2  ;;  %v6331_v4 = vadd.f32 %v6299_v23, %v13988_v20  ;;  %v6301_v20 = vld [vmem:[#allocation2 + $0x80] sm:$0xff]  ;;  %v5883_v61 = vadd.f32 %v10207_v27, %v5851_v15  ;;  %v5795_v59 = vpop.f32.mrf.mxu0  ;;  %v5850_v49 = vld [vmem:[#allocation2 + $0xd0] sm:$0xff] }
 0x5e7   : > { %6361 = vst.msk [vmem:[#allocation2 + $0x60] sm:$0xff] %vm15601_vm5, %v6329_v44  ;;  %vm15604_vm9 = vmmov %vm15501_vm2  ;;  %v6256_v26 = vpop.f32.mrf.mxu1  ;;  %v5882_v30 = vadd.f32 %v5850_v49, %v5795_v59  ;;  %v6620_v15 = vld [vmem:[#allocation2 + $0x28] sm:$0xff] }
 0x5e8   : > { %10533 = vmatmul.mubr.msk.f32.gmra.mxu0 %vm15604_vm9, %v15603_v34  ;;  %vm15605_vm12 = vmmov %vm15501_vm2  ;;  %v6302_v50 = vld [vmem:[#allocation2 + $0x88] sm:$0xff]  ;;  %5908 = vst.msk [vmem:[#allocation2 + $0xa0] sm:$0xff] %vm15501_vm2, %v5876_v11  ;;  %v10210_v38 = vpop.f32.mrf.mxu0  ;;  %v5852_v34 = vld [vmem:[#allocation2 + $0xe0] sm:$0xff] }
 0x5e9   : > { %5906 = vst.msk [vmem:[#allocation2 + $0x90] sm:$0xff] %vm15605_vm12, %v5874_v8  ;;  %vm15606_vm7 = vmmov %vm15501_vm2  ;;  %v6334_v57 = vadd.f32 %v10248_v1, %v6302_v50  ;;  %v6333_v1 = vadd.f32 %v6301_v20, %v14002_v51  ;;  %v10266_v2 = vpop.f32.mrf.mxu1 }
 0x5ea   : > { %10535 = vmatprep.mubr.msk.f32.mxu0 %vm15606_vm7, %v13441_v21  ;;  %vm15607_vm3 = vmmov %vm15501_vm2  ;;  %v15611_v21 = vsel %vm13039_vm1, %v15222_v46, 0.0  ;;  %v5878_v46 = vadd.f32 %v5846_v40, %v5775_v36  ;;  %v5805_v62 = vpop.f32.mrf.mxu0 }
 0x5eb   : > { %6364 = vst.msk [vmem:[#allocation2 + $0x78] sm:$0xff] %vm15607_vm3, %v6332_v6  ;;  %vm15608_vm14 = vmmov %vm15501_vm2  ;;  %v6266_v0 = vpop.f32.mrf.mxu1 }
 0x5ec   : > { %5909 = vst.msk [vmem:[#allocation2 + $0xa8] sm:$0xff] %vm15608_vm14, %v5877_v60  ;;  %vm15609_vm11 = vmmov %vm15501_vm2  ;;  %v5884_v60 = vadd.f32 %v5852_v34, %v5805_v62 }
 0x5ed   : > { %6363 = vst.msk [vmem:[#allocation2 + $0x70] sm:$0xff] %vm15609_vm11, %v6331_v4  ;;  %vm15612_vm8 = vmmov %vm15501_vm2  ;;  %v6304_v55 = vld [vmem:[#allocation2 + $0x98] sm:$0xff]  ;;  %v10269_v12 = vpop.f32.mrf.mxu1 }
 0x5ee   : > { %10536 = vmatmul.mubr.msk.f32.gmra.mxu0 %vm15612_vm8, %v15611_v21  ;;  %vm15613_vm15 = vmmov %vm15501_vm2  ;;  %v6336_v41 = vadd.f32 %v10251_v35, %v6304_v55  ;;  %v5848_v35 = vld [vmem:[#allocation2 + $0xc0] sm:$0xff] }
 0x5ef   : > { %10538 = vmatprep.mubr.msk.f32.mxu0 %vm15613_vm15, %v13461_v37  ;;  %vm15614_vm13 = vmmov %vm15501_vm2  ;;  %v15618_v37 = vsel %vm13088_vm0, %v13097_v63, 0.0  ;;  %v5880_v63 = vadd.f32 %v5848_v35, %v5785_v33  ;;  %v6276_v4 = vpop.f32.mrf.mxu1  ;;  %v6617_v35 = vld [vmem:[#allocation2 + $0x10] sm:$0xff] }
 0x5f0   : > { %6366 = vst.msk [vmem:[#allocation2 + $0x88] sm:$0xff] %vm15614_vm13, %v6334_v57  ;;  %vm15615_vm4 = vmmov %vm15501_vm2  ;;  %v6303_v51 = vld [vmem:[#allocation2 + $0x90] sm:$0xff] }
 0x5f1   : > { %5911 = vst.msk [vmem:[#allocation2 + $0xb8] sm:$0xff] %vm15615_vm4, %v5879_v48  ;;  %vm15616_vm1 = vmmov %vm15501_vm2  ;;  %v6335_v25 = vadd.f32 %v6303_v51, %v14016_v10  ;;  %v6305_v10 = vld [vmem:[#allocation2 + $0xa0] sm:$0xff]  ;;  %v10336_v57 = vpop.f32.mrf.mxu1 }
 0x5f2   : > { %6365 = vst.msk [vmem:[#allocation2 + $0x80] sm:$0xff] %vm15616_vm1, %v6333_v1  ;;  %vm15619_vm5 = vmmov %vm15616_vm1  ;;  %v6337_v13 = vadd.f32 %v6305_v10, %v14030_v45  ;;  %v5885_v45 = vadd.f32 %v10210_v38, %v5853_v32 }
 0x5f3   : > { %10539 = vmatmul.mubr.msk.f32.gmra.mxu0 %vm15619_vm5, %v15618_v37  ;;  %vm15620_vm9 = vmmov %vm15616_vm1  ;;  %v6306_v56 = vld [vmem:[#allocation2 + $0xa8] sm:$0xff]  ;;  %v6915_v20 = vpop.f32.mrf.mxu1  ;;  %v6618_v37 = vld [vmem:[#allocation2 + $0x18] sm:$0xff] }
 0x5f4   : > { %5910 = vst.msk [vmem:[#allocation2 + $0xb0] sm:$0xff] %vm15620_vm9, %v5878_v46  ;;  %vm15621_vm12 = vmmov %vm15616_vm1  ;;  %v6338_v7 = vadd.f32 %v10254_v22, %v6306_v56  ;;  %v6615_v46 = vld [vmem:[#allocation2] sm:$0xff] }
 0x5f5   : > { %10541 = vmatprep.mubr.msk.f32.mxu0 %vm15621_vm12, %v13480_v28  ;;  %vm15622_vm7 = vmmov %vm15616_vm1  ;;  %v15625_v28 = vld [vmem:[#allocation96_spill] sm:$0xff]  ;;  %v10339_v40 = vpop.f32.mrf.mxu1 }
 0x5f6   : > { %6368 = vst.msk [vmem:[#allocation2 + $0x98] sm:$0xff] %vm15622_vm7, %v6336_v41  ;;  %vm15623_vm3 = vmmov %vm15616_vm1  ;;  %v15626_v52 = vsel %vm13168_vm6, %v15625_v28, 0.0 }
 0x5f7   : > { %5913 = vst.msk [vmem:[#allocation2 + $0xc8] sm:$0xff] %vm15623_vm3, %v5881_v14  ;;  %vm15624_vm0 = vmmov %vm15616_vm1  ;;  %v6925_v19 = vpop.f32.mrf.mxu1 }
 0x5f8   : > { %6367 = vst.msk [vmem:[#allocation2 + $0x90] sm:$0xff] %vm15624_vm0, %v6335_v25  ;;  %vm15627_vm14 = vmmov %vm15624_vm0  ;;  %v6308_v44 = vld [vmem:[#allocation2 + $0xb8] sm:$0xff] }
 0x5f9   : > { %10542 = vmatmul.mubr.msk.f32.gmra.mxu0 %vm15627_vm14, %v15626_v52  ;;  %vm15628_vm11 = vmmov %vm15624_vm0  ;;  %v6340_v22 = vadd.f32 %v10257_v29, %v6308_v44  ;;  %v10213_v29 = vpop.f32.mrf.mxu0 }
 0x5fa   : > { %5912 = vst.msk [vmem:[#allocation2 + $0xc0] sm:$0xff] %vm15628_vm11, %v5880_v63  ;;  %vm15629_vm8 = vmmov %vm15624_vm0  ;;  %v5887_v50 = vadd.f32 %v10213_v29, %v5855_v16 }
 0x5fb   : > { %10544 = vmatprep.mubr.msk.f32.mxu0 %vm15629_vm8, %v13677_v5  ;;  %vm15630_vm2 = vmmov %vm15624_vm0  ;;  %v15634_v5 = vsel %vm13193_vm10, %v15346_v3, 0.0  ;;  %v6307_v6 = vld [vmem:[#allocation2 + $0xb0] sm:$0xff] }
 0x5fc   : > { %6370 = vst.msk [vmem:[#allocation2 + $0xa8] sm:$0xff] %vm15630_vm2, %v6338_v7  ;;  %vm15631_vm15 = vmmov %vm15624_vm0  ;;  %v6339_v42 = vadd.f32 %v6307_v6, %v14044_v39  ;;  %v5815_v39 = vpop.f32.mrf.mxu0 }
 0x5fd   : > { %5915 = vst.msk [vmem:[#allocation2 + $0xd8] sm:$0xff] %vm15631_vm15, %v5883_v61  ;;  %vm15632_vm6 = vmmov %vm15624_vm0  ;;  %v5886_v31 = vadd.f32 %v5854_v24, %v5815_v39 }
 0x5fe   : > { %6369 = vst.msk [vmem:[#allocation2 + $0xa0] sm:$0xff] %vm15632_vm6, %v6337_v13  ;;  %vm15635_vm13 = vmmov %vm15624_vm0  ;;  %v6310_v23 = vld [vmem:[#allocation2 + $0xc8] sm:$0xff]  ;;  %v10280_v48 = vpop.f32.mrf.mxu0 }
 0x5ff   : > { %10545 = vmatmul.mubr.msk.f32.gmra.mxu0 %vm15635_vm13, %v15634_v5  ;;  %vm15636_vm4 = vmmov %vm15624_vm0  ;;  %v6342_v3 = vadd.f32 %v10260_v53, %v6310_v23  ;;  %5918 = vst.msk [vmem:[#allocation2 + $0xf0] sm:$0xff] %vm15624_vm0, %v5886_v31  ;;  %v6626_v31 = vld [vmem:[#allocation2 + $0x58] sm:$0xff] }
 0x600   : > { %5914 = vst.msk [vmem:[#allocation2 + $0xd0] sm:$0xff] %vm15636_vm4, %v5882_v30  ;;  %10547 = vmatprep.mubr.f32.mxu0 %v15500_v9  ;;  %vm15637_vm1 = vmmov %vm15624_vm0  ;;  %v6456_v55 = vpop.f32.mrf.mxu0 }
 0x601   : > { %6372 = vst.msk [vmem:[#allocation2 + $0xb8] sm:$0xff] %vm15637_vm1, %v6340_v22  ;;  %vm15638_vm5 = vmmov %vm15624_vm0  ;;  %v6309_v54 = vld [vmem:[#allocation2 + $0xc0] sm:$0xff] }
 0x602   : > { %5917 = vst.msk [vmem:[#allocation2 + $0xe8] sm:$0xff] %vm15638_vm5, %v5885_v45  ;;  %vm15639_vm10 = vmmov %vm15624_vm0  ;;  %v6341_v11 = vadd.f32 %v6309_v54, %v6246_v58  ;;  %v6647_v58 = vadd.f32 %v6615_v46, %v6456_v55  ;;  %v10283_v17 = vpop.f32.mrf.mxu0  ;;  %v6621_v45 = vld [vmem:[#allocation2 + $0x30] sm:$0xff] }
 0x603   : > { %6371 = vst.msk [vmem:[#allocation2 + $0xb0] sm:$0xff] %vm15639_vm10, %v6339_v42  ;;  %10548 = vmatmul.mubr.f32.gmra.mxu0 %v15500_v9  ;;  %vm15640_vm9 = vmmov %vm15624_vm0  ;;  %v6616_v9 = vld [vmem:[#allocation2 + $0x8] sm:$0xff]  ;;  %v6650_v14 = vadd.f32 %v10283_v17, %v6618_v37 }
 0x604   : > { %5916 = vst.msk [vmem:[#allocation2 + $0xe0] sm:$0xff] %vm15640_vm9, %v5884_v60  ;;  %vm15641_vm12 = vmmov %vm15624_vm0  ;;  %v6312_v47 = vld [vmem:[#allocation2 + $0xd8] sm:$0xff]  ;;  %v6648_v53 = vadd.f32 %v10280_v48, %v6616_v9  ;;  %v6466_v33 = vpop.f32.mrf.mxu0  ;;  %v6624_v60 = vld [vmem:[#allocation2 + $0x48] sm:$0xff] }
 0x605   : > { %6374 = vst.msk [vmem:[#allocation2 + $0xc8] sm:$0xff] %vm15641_vm12, %v6342_v3  ;;  %vm15642_vm7 = vmmov %vm15624_vm0  ;;  %v6344_v21 = vadd.f32 %v10263_v43, %v6312_v47  ;;  %v10342_v43 = vpop.f32.mrf.mxu1  ;;  %v6649_v63 = vadd.f32 %v6617_v35, %v6466_v33 }
 0x606   : > { %5919 = vst.msk [vmem:[#allocation2 + $0xf8] sm:$0xff] %vm15642_vm7, %v5887_v50  ;;  %vm15643_vm3 = vmmov %vm15624_vm0  ;;  %v10286_v27 = vpop.f32.mrf.mxu0  ;;  %v6315_v28 = vld [vmem:[#allocation2 + $0xf0] sm:$0xff]  ;;  %v6623_v50 = vld [vmem:[#allocation2 + $0x40] sm:$0xff] }
 0x607   : > { %6373 = vst.msk [vmem:[#allocation2 + $0xc0] sm:$0xff] %vm15643_vm3, %v6341_v11  ;;  %v6311_v1 = vld [vmem:[#allocation2 + $0xd0] sm:$0xff]  ;;  %vm15644_vm14 = vmmov %vm15624_vm0  ;;  %v6652_v52 = vadd.f32 %v10286_v27, %v6620_v15  ;;  %v6347_v10 = vadd.f32 %v6315_v28, %v6276_v4 }
 0x608   : > { %6376 = vst.msk [vmem:[#allocation2 + $0xd8] sm:$0xff] %vm15644_vm14, %v6344_v21  ;;  %v6343_v36 = vadd.f32 %v6311_v1, %v6256_v26  ;;  %vm15645_vm11 = vmmov %vm15624_vm0  ;;  %v6935_v26 = vpop.f32.mrf.mxu1  ;;  %v6476_v13 = vpop.f32.mrf.mxu0 }
 0x609   : > { %v6314_v41 = vld [vmem:[#allocation2 + $0xe8] sm:$0xff]  ;;  %6680 = vst.msk [vmem:[#allocation2 + $0x8] sm:$0xff] %vm15645_vm11, %v6648_v53  ;;  %vm15646_vm8 = vmmov %vm15624_vm0  ;;  %v6625_v53 = vld [vmem:[#allocation2 + $0x50] sm:$0xff] }
 0x60a   : > { %6375 = vst.msk [vmem:[#allocation2 + $0xd0] sm:$0xff] %vm15646_vm8, %v6343_v36  ;;  %v6346_v18 = vadd.f32 %v10266_v2, %v6314_v41  ;;  %vm15647_vm2 = vmmov %vm15624_vm0  ;;  %v10345_v61 = vpop.f32.mrf.mxu1  ;;  %v6619_v2 = vld [vmem:[#allocation2 + $0x20] sm:$0xff]  ;;  %v10289_v22 = vpop.f32.mrf.mxu0 }
 0x60b   : > { %v6313_v51 = vld [vmem:[#allocation2 + $0xe0] sm:$0xff]  ;;  %6679 = vst.msk [vmem:[#allocation2] sm:$0xff] %vm15647_vm2, %v6647_v58  ;;  %vm15648_vm15 = vmmov %vm15624_vm0  ;;  %v6651_v49 = vadd.f32 %v6619_v2, %v6476_v13  ;;  %v6628_v58 = vld [vmem:[#allocation2 + $0x68] sm:$0xff] }
 0x60c   : > { %6378 = vst.msk [vmem:[#allocation2 + $0xe8] sm:$0xff] %vm15648_vm15, %v6346_v18  ;;  %v6345_v25 = vadd.f32 %v6313_v51, %v6266_v0  ;;  %vm15649_vm6 = vmmov %vm15624_vm0  ;;  %v6945_v30 = vpop.f32.mrf.mxu1  ;;  %v6622_v0 = vld [vmem:[#allocation2 + $0x38] sm:$0xff]  ;;  %v6486_v6 = vpop.f32.mrf.mxu0 }
 0x60d   : > { %v6316_v56 = vld [vmem:[#allocation2 + $0xf8] sm:$0xff]  ;;  %6682 = vst.msk [vmem:[#allocation2 + $0x18] sm:$0xff] %vm15649_vm6, %v6650_v14  ;;  %vm15650_vm13 = vmmov %vm15624_vm0  ;;  %v6654_v32 = vadd.f32 %v10289_v22, %v6622_v0  ;;  %v6627_v14 = vld [vmem:[#allocation2 + $0x60] sm:$0xff] }
 0x60e   : > { %6377 = vst.msk [vmem:[#allocation2 + $0xe0] sm:$0xff] %vm15650_vm13, %v6345_v25  ;;  %v6348_v7 = vadd.f32 %v10269_v12, %v6316_v56  ;;  %vm15651_vm4 = vmmov %vm15624_vm0  ;;  %v10348_v5 = vpop.f32.mrf.mxu1  ;;  %v6653_v12 = vadd.f32 %v6621_v45, %v6486_v6  ;;  %v10292_v23 = vpop.f32.mrf.mxu0 }
 0x60f   : > { %6681 = vst.msk [vmem:[#allocation2 + $0x10] sm:$0xff] %vm15651_vm4, %v6649_v63  ;;  %vm15652_vm1 = vmmov %vm15624_vm0  ;;  %v6656_v4 = vadd.f32 %v10292_v23, %v6624_v60  ;;  %v6630_v63 = vld [vmem:[#allocation2 + $0x78] sm:$0xff] }
 0x610   : > { %6380 = vst.msk [vmem:[#allocation2 + $0xf8] sm:$0xff] %vm15652_vm1, %v6348_v7  ;;  %v7075_v59 = vld [vmem:[#allocation2 + $0x8] sm:$0xff]  ;;  %vm15653_vm5 = vmmov %vm15624_vm0  ;;  %v6955_v34 = vpop.f32.mrf.mxu1  ;;  %v6496_v54 = vpop.f32.mrf.mxu0 }
 0x611   : > { %6684 = vst.msk [vmem:[#allocation2 + $0x28] sm:$0xff] %vm15653_vm5, %v6652_v52  ;;  %vm15654_vm10 = vmmov %vm15624_vm0  ;;  %v7107_v44 = vadd.f32 %v10336_v57, %v7075_v59  ;;  %v6655_v57 = vadd.f32 %v6623_v50, %v6496_v54  ;;  %v6629_v52 = vld [vmem:[#allocation2 + $0x70] sm:$0xff] }
 0x612   : > { %6379 = vst.msk [vmem:[#allocation2 + $0xf0] sm:$0xff] %vm15654_vm10, %v6347_v10  ;;  %v7074_v38 = vld [vmem:[#allocation2] sm:$0xff]  ;;  %vm15655_vm9 = vmmov %vm15624_vm0  ;;  %v10351_v16 = vpop.f32.mrf.mxu1  ;;  %v10295_v47 = vpop.f32.mrf.mxu0 }
 0x613   : > { %6683 = vst.msk [vmem:[#allocation2 + $0x20] sm:$0xff] %vm15655_vm9, %v6651_v49  ;;  %vm15656_vm12 = vmmov %vm15624_vm0  ;;  %v7106_v8 = vadd.f32 %v7074_v38, %v6915_v20  ;;  %v6658_v20 = vadd.f32 %v10295_v47, %v6626_v31  ;;  %v6632_v49 = vld [vmem:[#allocation2 + $0x88] sm:$0xff] }
 0x614   : > { %7139 = vst.msk [vmem:[#allocation2 + $0x8] sm:$0xff] %vm15656_vm12, %v7107_v44  ;;  %v7077_v42 = vld [vmem:[#allocation2 + $0x18] sm:$0xff]  ;;  %vm15657_vm7 = vmmov %vm15624_vm0  ;;  %v6965_v24 = vpop.f32.mrf.mxu1  ;;  %v6506_v1 = vpop.f32.mrf.mxu0 }
 0x615   : > { %6686 = vst.msk [vmem:[#allocation2 + $0x38] sm:$0xff] %vm15657_vm7, %v6654_v32  ;;  %vm15658_vm3 = vmmov %vm15624_vm0  ;;  %v7109_v62 = vadd.f32 %v10339_v40, %v7077_v42  ;;  %v6657_v40 = vadd.f32 %v6625_v53, %v6506_v1  ;;  %v6631_v32 = vld [vmem:[#allocation2 + $0x80] sm:$0xff] }
 0x616   : > { %7138 = vst.msk [vmem:[#allocation2] sm:$0xff] %vm15658_vm3, %v7106_v8  ;;  %v7076_v3 = vld [vmem:[#allocation2 + $0x10] sm:$0xff]  ;;  %vm15659_vm14 = vmmov %vm15624_vm0  ;;  %v10354_v9 = vpop.f32.mrf.mxu1  ;;  %v10298_v41 = vpop.f32.mrf.mxu0 }
 0x617   : > { %6685 = vst.msk [vmem:[#allocation2 + $0x30] sm:$0xff] %vm15624_vm0, %v6653_v12  ;;  %v7108_v29 = vadd.f32 %v7076_v3, %v6925_v19  ;;  %vm15660_vm11 = vmmov %vm15624_vm0  ;;  %v6660_v19 = vadd.f32 %v10298_v41, %v6628_v58  ;;  %v6634_v12 = vld [vmem:[#allocation2 + $0x98] sm:$0xff] }
 0x618   : > { %7141 = vst.msk [vmem:[#allocation2 + $0x18] sm:$0xff] %vm15659_vm14, %v7109_v62  ;;  %v7079_v11 = vld [vmem:[#allocation2 + $0x28] sm:$0xff]  ;;  %vm15661_vm8 = vmmov %vm15624_vm0  ;;  %v6975_v46 = vpop.f32.mrf.mxu1  ;;  %v6516_v51 = vpop.f32.mrf.mxu0 }
 0x619   : > { %6688 = vst.msk [vmem:[#allocation2 + $0x48] sm:$0xff] %vm15660_vm11, %v6656_v4  ;;  %v7111_v39 = vadd.f32 %v10342_v43, %v7079_v11  ;;  %vm15662_vm2 = vmmov %vm15624_vm0  ;;  %v6659_v43 = vadd.f32 %v6627_v14, %v6516_v51  ;;  %v6633_v4 = vld [vmem:[#allocation2 + $0x90] sm:$0xff] }
 0x61a   : > { %7140 = vst.msk [vmem:[#allocation2 + $0x10] sm:$0xff] %vm15661_vm8, %v7108_v29  ;;  %v7078_v21 = vld [vmem:[#allocation2 + $0x20] sm:$0xff]  ;;  %vm15663_vm15 = vmmov %vm15624_vm0  ;;  %v10357_v37 = vpop.f32.mrf.mxu1  ;;  %v10301_v56 = vpop.f32.mrf.mxu0 }
 0x61b   : > { %6687 = vst.msk [vmem:[#allocation2 + $0x40] sm:$0xff] %vm15662_vm2, %v6655_v57  ;;  %v7110_v48 = vadd.f32 %v7078_v21, %v6935_v26  ;;  %vm15664_vm6 = vmmov %vm15624_vm0  ;;  %v6662_v26 = vadd.f32 %v10301_v56, %v6630_v63  ;;  %v6636_v57 = vld [vmem:[#allocation2 + $0xa8] sm:$0xff] }
 0x61c   : > { %7143 = vst.msk [vmem:[#allocation2 + $0x28] sm:$0xff] %vm15663_vm15, %v7111_v39  ;;  %v7081_v36 = vld [vmem:[#allocation2 + $0x38] sm:$0xff]  ;;  %vm15665_vm13 = vmmov %vm15624_vm0  ;;  %v6985_v35 = vpop.f32.mrf.mxu1  ;;  %v6526_v28 = vpop.f32.mrf.mxu0 }
 0x61d   : > { %6690 = vst.msk [vmem:[#allocation2 + $0x58] sm:$0xff] %vm15664_vm6, %v6658_v20  ;;  %v7113_v55 = vadd.f32 %v10345_v61, %v7081_v36  ;;  %vm15666_vm4 = vmmov %vm15624_vm0  ;;  %v6661_v61 = vadd.f32 %v6629_v52, %v6526_v28  ;;  %v6635_v20 = vld [vmem:[#allocation2 + $0xa0] sm:$0xff] }
 0x61e   : > { %7142 = vst.msk [vmem:[#allocation2 + $0x20] sm:$0xff] %vm15665_vm13, %v7110_v48  ;;  %v7080_v18 = vld [vmem:[#allocation2 + $0x30] sm:$0xff]  ;;  %vm15667_vm1 = vmmov %vm15624_vm0  ;;  %v10360_v15 = vpop.f32.mrf.mxu1  ;;  %v10304_v59 = vpop.f32.mrf.mxu0 }
 0x61f   : > { %6689 = vst.msk [vmem:[#allocation2 + $0x50] sm:$0xff] %vm15666_vm4, %v6657_v40  ;;  %v7112_v17 = vadd.f32 %v7080_v18, %v6945_v30  ;;  %vm15668_vm5 = vmmov %vm15624_vm0  ;;  %v6664_v30 = vadd.f32 %v10304_v59, %v6632_v49  ;;  %v6638_v40 = vld [vmem:[#allocation2 + $0xb8] sm:$0xff] }
 0x620   : > { %7145 = vst.msk [vmem:[#allocation2 + $0x38] sm:$0xff] %vm15667_vm1, %v7113_v55  ;;  %v7083_v25 = vld [vmem:[#allocation2 + $0x48] sm:$0xff]  ;;  %vm15669_vm10 = vmmov %vm15624_vm0  ;;  %v6995_v2 = vpop.f32.mrf.mxu1  ;;  %v6536_v38 = vpop.f32.mrf.mxu0 }
 0x621   : > { %6692 = vst.msk [vmem:[#allocation2 + $0x68] sm:$0xff] %vm15668_vm5, %v6660_v19  ;;  %v7115_v33 = vadd.f32 %v10348_v5, %v7083_v25  ;;  %vm15670_vm9 = vmmov %vm15624_vm0  ;;  %v6663_v5 = vadd.f32 %v6631_v32, %v6536_v38  ;;  %v6637_v19 = vld [vmem:[#allocation2 + $0xb0] sm:$0xff] }
 0x622   : > { %7144 = vst.msk [vmem:[#allocation2 + $0x30] sm:$0xff] %vm15669_vm10, %v7112_v17  ;;  %v7082_v7 = vld [vmem:[#allocation2 + $0x40] sm:$0xff]  ;;  %vm15671_vm12 = vmmov %vm15624_vm0  ;;  %v10363_v0 = vpop.f32.mrf.mxu1  ;;  %v10307_v42 = vpop.f32.mrf.mxu0 }
 0x623   : > { %6691 = vst.msk [vmem:[#allocation2 + $0x60] sm:$0xff] %vm15670_vm9, %v6659_v43  ;;  %v7114_v27 = vadd.f32 %v7082_v7, %v6955_v34  ;;  %vm15672_vm7 = vmmov %vm15624_vm0  ;;  %v6666_v34 = vadd.f32 %v10307_v42, %v6634_v12  ;;  %v6640_v43 = vld [vmem:[#allocation2 + $0xc8] sm:$0xff] }
 0x624   : > { %7147 = vst.msk [vmem:[#allocation2 + $0x48] sm:$0xff] %vm15671_vm12, %v7115_v33  ;;  %v7085_v10 = vld [vmem:[#allocation2 + $0x58] sm:$0xff]  ;;  %vm15673_vm3 = vmmov %vm15624_vm0  ;;  %v7005_v45 = vpop.f32.mrf.mxu1  ;;  %v6546_v3 = vpop.f32.mrf.mxu0 }
 0x625   : > { %6694 = vst.msk [vmem:[#allocation2 + $0x78] sm:$0xff] %vm15672_vm7, %v6662_v26  ;;  %v7117_v13 = vadd.f32 %v10351_v16, %v7085_v10  ;;  %vm15674_vm14 = vmmov %vm15624_vm0  ;;  %v6665_v16 = vadd.f32 %v6633_v4, %v6546_v3  ;;  %v6639_v26 = vld [vmem:[#allocation2 + $0xc0] sm:$0xff] }
 0x626   : > { %7146 = vst.msk [vmem:[#allocation2 + $0x40] sm:$0xff] %vm15673_vm3, %v7114_v27  ;;  %v7084_v44 = vld [vmem:[#allocation2 + $0x50] sm:$0xff]  ;;  %vm15675_vm11 = vmmov %vm15624_vm0  ;;  %v10366_v60 = vpop.f32.mrf.mxu1  ;;  %v10310_v11 = vpop.f32.mrf.mxu0 }
 0x627   : > { %6693 = vst.msk [vmem:[#allocation2 + $0x70] sm:$0xff] %vm15624_vm0, %v6661_v61  ;;  %v7116_v22 = vadd.f32 %v7084_v44, %v6965_v24  ;;  %vm15676_vm8 = vmmov %vm15624_vm0  ;;  %v6668_v24 = vadd.f32 %v10310_v11, %v6636_v57  ;;  %v6642_v61 = vld [vmem:[#allocation2 + $0xd8] sm:$0xff] }
 0x628   : > { %7149 = vst.msk [vmem:[#allocation2 + $0x58] sm:$0xff] %vm15674_vm14, %v7117_v13  ;;  %v7087_v8 = vld [vmem:[#allocation2 + $0x68] sm:$0xff]  ;;  %vm15677_vm2 = vmmov %vm15624_vm0  ;;  %v7015_v50 = vpop.f32.mrf.mxu1  ;;  %v6556_v21 = vpop.f32.mrf.mxu0 }
 0x629   : > { %6696 = vst.msk [vmem:[#allocation2 + $0x88] sm:$0xff] %vm15675_vm11, %v6664_v30  ;;  %v7119_v6 = vadd.f32 %v10354_v9, %v7087_v8  ;;  %vm15678_vm15 = vmmov %vm15624_vm0  ;;  %v6667_v9 = vadd.f32 %v6635_v20, %v6556_v21  ;;  %v6641_v30 = vld [vmem:[#allocation2 + $0xd0] sm:$0xff] }
 0x62a   : > { %7148 = vst.msk [vmem:[#allocation2 + $0x50] sm:$0xff] %vm15676_vm8, %v7116_v22  ;;  %v7086_v62 = vld [vmem:[#allocation2 + $0x60] sm:$0xff]  ;;  %vm15679_vm6 = vmmov %vm15624_vm0  ;;  %v10369_v31 = vpop.f32.mrf.mxu1  ;;  %v10313_v36 = vpop.f32.mrf.mxu0 }
 0x62b   : > { %6695 = vst.msk [vmem:[#allocation2 + $0x80] sm:$0xff] %vm15677_vm2, %v6663_v5  ;;  %v7118_v23 = vadd.f32 %v7086_v62, %v6975_v46  ;;  %vm15680_vm13 = vmmov %vm15624_vm0  ;;  %v6670_v46 = vadd.f32 %v10313_v36, %v6638_v40  ;;  %v6644_v5 = vld [vmem:[#allocation2 + $0xe8] sm:$0xff] }
 0x62c   : > { %7151 = vst.msk [vmem:[#allocation2 + $0x68] sm:$0xff] %vm15678_vm15, %v7119_v6  ;;  %v7089_v29 = vld [vmem:[#allocation2 + $0x78] sm:$0xff]  ;;  %vm15681_vm4 = vmmov %vm15624_vm0  ;;  %v7025_v53 = vpop.f32.mrf.mxu1  ;;  %v6566_v18 = vpop.f32.mrf.mxu0 }
 0x62d   : > { %6698 = vst.msk [vmem:[#allocation2 + $0x98] sm:$0xff] %vm15679_vm6, %v6666_v34  ;;  %v7121_v54 = vadd.f32 %v10357_v37, %v7089_v29  ;;  %vm15682_vm1 = vmmov %vm15624_vm0  ;;  %v6669_v37 = vadd.f32 %v6637_v19, %v6566_v18  ;;  %v6643_v34 = vld [vmem:[#allocation2 + $0xe0] sm:$0xff] }
 0x62e   : > { %7150 = vst.msk [vmem:[#allocation2 + $0x60] sm:$0xff] %vm15680_vm13, %v7118_v23  ;;  %v7088_v39 = vld [vmem:[#allocation2 + $0x70] sm:$0xff]  ;;  %vm15683_vm5 = vmmov %vm15624_vm0  ;;  %v10372_v58 = vpop.f32.mrf.mxu1  ;;  %v10316_v25 = vpop.f32.mrf.mxu0 }
 0x62f   : > { %6697 = vst.msk [vmem:[#allocation2 + $0x90] sm:$0xff] %vm15681_vm4, %v6665_v16  ;;  %v7120_v47 = vadd.f32 %v7088_v39, %v6985_v35  ;;  %vm15684_vm10 = vmmov %vm15624_vm0  ;;  %v6672_v35 = vadd.f32 %v10316_v25, %v6640_v43  ;;  %v6646_v16 = vld [vmem:[#allocation2 + $0xf8] sm:$0xff] }
 0x630   : > { %7153 = vst.msk [vmem:[#allocation2 + $0x78] sm:$0xff] %vm15682_vm1, %v7121_v54  ;;  %v7091_v48 = vld [vmem:[#allocation2 + $0x88] sm:$0xff]  ;;  %vm15685_vm9 = vmmov %vm15624_vm0  ;;  %v7035_v14 = vpop.f32.mrf.mxu1  ;;  %v6576_v7 = vpop.f32.mrf.mxu0 }
 0x631   : > { %6700 = vst.msk [vmem:[#allocation2 + $0xa8] sm:$0xff] %vm15683_vm5, %v6668_v24  ;;  %v7123_v1 = vadd.f32 %v10360_v15, %v7091_v48  ;;  %vm15686_vm12 = vmmov %vm15624_vm0  ;;  %v6671_v15 = vadd.f32 %v6639_v26, %v6576_v7  ;;  %v6645_v24 = vld [vmem:[#allocation2 + $0xf0] sm:$0xff] }
 0x632   : > { %7152 = vst.msk [vmem:[#allocation2 + $0x70] sm:$0xff] %vm15684_vm10, %v7120_v47  ;;  %v7090_v55 = vld [vmem:[#allocation2 + $0x80] sm:$0xff]  ;;  %vm15687_vm7 = vmmov %vm15624_vm0  ;;  %v10375_v63 = vpop.f32.mrf.mxu1  ;;  %v10319_v10 = vpop.f32.mrf.mxu0 }
 0x633   : > { %6699 = vst.msk [vmem:[#allocation2 + $0xa0] sm:$0xff] %vm15685_vm9, %v6667_v9  ;;  %v7122_v41 = vadd.f32 %v7090_v55, %v6995_v2  ;;  %vm15688_vm3 = vmmov %vm15624_vm0  ;;  %v6674_v2 = vadd.f32 %v10319_v10, %v6642_v61  ;;  %v7527_v9 = vld [vmem:[#allocation2 + $0x8] sm:$0xff] }
 0x634   : > { %7155 = vst.msk [vmem:[#allocation2 + $0x88] sm:$0xff] %vm15686_vm12, %v7123_v1  ;;  %v7093_v17 = vld [vmem:[#allocation2 + $0x98] sm:$0xff]  ;;  %vm15689_vm14 = vmmov %vm15624_vm0  ;;  %v7045_v52 = vpop.f32.mrf.mxu1  ;;  %v6586_v44 = vpop.f32.mrf.mxu0 }
 0x635   : > { %6702 = vst.msk [vmem:[#allocation2 + $0xb8] sm:$0xff] %vm15687_vm7, %v6670_v46  ;;  %v7125_v51 = vadd.f32 %v10363_v0, %v7093_v17  ;;  %vm15690_vm11 = vmmov %vm15624_vm0  ;;  %v6673_v0 = vadd.f32 %v6641_v30, %v6586_v44  ;;  %v7526_v46 = vld [vmem:[#allocation2] sm:$0xff] }
 0x636   : > { %7154 = vst.msk [vmem:[#allocation2 + $0x80] sm:$0xff] %vm15688_vm3, %v7122_v41  ;;  %v7092_v33 = vld [vmem:[#allocation2 + $0x90] sm:$0xff]  ;;  %vm15691_vm8 = vmmov %vm15624_vm0  ;;  %v10378_v49 = vpop.f32.mrf.mxu1  ;;  %v10322_v8 = vpop.f32.mrf.mxu0 }
 0x637   : > { %6701 = vst.msk [vmem:[#allocation2 + $0xb0] sm:$0xff] %vm15624_vm0, %v6669_v37  ;;  %v7124_v56 = vadd.f32 %v7092_v33, %v7005_v45  ;;  %vm15692_vm2 = vmmov %vm15624_vm0  ;;  %v6676_v45 = vadd.f32 %v10322_v8, %v6644_v5  ;;  %v7529_v37 = vld [vmem:[#allocation2 + $0x18] sm:$0xff] }
 0x638   : > { %7157 = vst.msk [vmem:[#allocation2 + $0x98] sm:$0xff] %vm15689_vm14, %v7125_v51  ;;  %v7095_v27 = vld [vmem:[#allocation2 + $0xa8] sm:$0xff]  ;;  %vm15693_vm15 = vmmov %vm15624_vm0  ;;  %v7055_v32 = vpop.f32.mrf.mxu1  ;;  %v6596_v62 = vpop.f32.mrf.mxu0 }
 0x639   : > { %6704 = vst.msk [vmem:[#allocation2 + $0xc8] sm:$0xff] %vm15690_vm11, %v6672_v35  ;;  %v7127_v28 = vadd.f32 %v10366_v60, %v7095_v27  ;;  %vm15694_vm6 = vmmov %vm15624_vm0  ;;  %v6675_v60 = vadd.f32 %v6643_v34, %v6596_v62  ;;  %v7528_v35 = vld [vmem:[#allocation2 + $0x10] sm:$0xff] }
 0x63a   : > { %7156 = vst.msk [vmem:[#allocation2 + $0x90] sm:$0xff] %vm15691_vm8, %v7124_v56  ;;  %v7094_v13 = vld [vmem:[#allocation2 + $0xa0] sm:$0xff]  ;;  %vm15695_vm13 = vmmov %vm15624_vm0  ;;  %v10381_v12 = vpop.f32.mrf.mxu1  ;;  %v10325_v29 = vpop.f32.mrf.mxu0 }
 0x63b   : > { %6703 = vst.msk [vmem:[#allocation2 + $0xc0] sm:$0xff] %vm15692_vm2, %v6671_v15  ;;  %v7126_v59 = vadd.f32 %v7094_v13, %v7015_v50  ;;  %vm15696_vm4 = vmmov %vm15624_vm0  ;;  %v6678_v50 = vadd.f32 %v10325_v29, %v6646_v16  ;;  %v7531_v15 = vld [vmem:[#allocation2 + $0x28] sm:$0xff] }
 0x63c   : > { %7159 = vst.msk [vmem:[#allocation2 + $0xa8] sm:$0xff] %vm15693_vm15, %v7127_v28  ;;  %v7097_v22 = vld [vmem:[#allocation2 + $0xb8] sm:$0xff]  ;;  %vm15697_vm1 = vmmov %vm15624_vm0  ;;  %v7065_v4 = vpop.f32.mrf.mxu1  ;;  %v6606_v39 = vpop.f32.mrf.mxu0 }
 0x63d   : > { %6706 = vst.msk [vmem:[#allocation2 + $0xd8] sm:$0xff] %vm15694_vm6, %v6674_v2  ;;  %v7129_v38 = vadd.f32 %v10369_v31, %v7097_v22  ;;  %vm15698_vm5 = vmmov %vm15624_vm0  ;;  %v6677_v31 = vadd.f32 %v6645_v24, %v6606_v39  ;;  %v7530_v2 = vld [vmem:[#allocation2 + $0x20] sm:$0xff] }
 0x63e   : > { %7158 = vst.msk [vmem:[#allocation2 + $0xa0] sm:$0xff] %vm15695_vm13, %v7126_v59  ;;  %v7096_v6 = vld [vmem:[#allocation2 + $0xb0] sm:$0xff]  ;;  %vm15699_vm10 = vmmov %vm15624_vm0  ;;  %v10448_v57 = vpop.f32.mrf.mxu1  ;;  %v10392_v48 = vpop.f32.mrf.mxu0 }
 0x63f   : > { %6705 = vst.msk [vmem:[#allocation2 + $0xd0] sm:$0xff] %vm15696_vm4, %v6673_v0  ;;  %v7128_v42 = vadd.f32 %v7096_v6, %v7025_v53  ;;  %vm15700_vm9 = vmmov %vm15624_vm0  ;;  %v7559_v53 = vadd.f32 %v10392_v48, %v7527_v9  ;;  %v7533_v0 = vld [vmem:[#allocation2 + $0x38] sm:$0xff] }
 0x640   : > { %7161 = vst.msk [vmem:[#allocation2 + $0xb8] sm:$0xff] %vm15697_vm1, %v7129_v38  ;;  %v7099_v23 = vld [vmem:[#allocation2 + $0xc8] sm:$0xff]  ;;  %vm15701_vm12 = vmmov %vm15624_vm0  ;;  %v7693_v20 = vpop.f32.mrf.mxu1  ;;  %v7367_v55 = vpop.f32.mrf.mxu0 }
 0x641   : > { %6708 = vst.msk [vmem:[#allocation2 + $0xe8] sm:$0xff] %vm15698_vm5, %v6676_v45  ;;  %v7131_v3 = vadd.f32 %v10372_v58, %v7099_v23  ;;  %vm15702_vm7 = vmmov %vm15624_vm0  ;;  %v7558_v58 = vadd.f32 %v7526_v46, %v7367_v55  ;;  %v7532_v45 = vld [vmem:[#allocation2 + $0x30] sm:$0xff] }
 0x642   : > { %7160 = vst.msk [vmem:[#allocation2 + $0xb0] sm:$0xff] %vm15699_vm10, %v7128_v42  ;;  %v7098_v54 = vld [vmem:[#allocation2 + $0xc0] sm:$0xff]  ;;  %vm15703_vm3 = vmmov %vm15624_vm0  ;;  %v10451_v40 = vpop.f32.mrf.mxu1  ;;  %v10395_v17 = vpop.f32.mrf.mxu0 }
 0x643   : > { %6707 = vst.msk [vmem:[#allocation2 + $0xe0] sm:$0xff] %vm15700_vm9, %v6675_v60  ;;  %v7130_v11 = vadd.f32 %v7098_v54, %v7035_v14  ;;  %vm15704_vm14 = vmmov %vm15624_vm0  ;;  %v7561_v14 = vadd.f32 %v10395_v17, %v7529_v37  ;;  %v7535_v60 = vld [vmem:[#allocation2 + $0x48] sm:$0xff] }
 0x644   : > { %7163 = vst.msk [vmem:[#allocation2 + $0xc8] sm:$0xff] %vm15701_vm12, %v7131_v3  ;;  %v7101_v47 = vld [vmem:[#allocation2 + $0xd8] sm:$0xff]  ;;  %vm15705_vm11 = vmmov %vm15624_vm0  ;;  %v7703_v19 = vpop.f32.mrf.mxu1  ;;  %v7377_v33 = vpop.f32.mrf.mxu0 }
 0x645   : > { %6710 = vst.msk [vmem:[#allocation2 + $0xf8] sm:$0xff] %vm15702_vm7, %v6678_v50  ;;  %v7133_v21 = vadd.f32 %v10375_v63, %v7101_v47  ;;  %vm15706_vm8 = vmmov %vm15624_vm0  ;;  %v7560_v63 = vadd.f32 %v7528_v35, %v7377_v33  ;;  %v7534_v50 = vld [vmem:[#allocation2 + $0x40] sm:$0xff] }
 0x646   : > { %7162 = vst.msk [vmem:[#allocation2 + $0xc0] sm:$0xff] %vm15703_vm3, %v7130_v11  ;;  %v7100_v1 = vld [vmem:[#allocation2 + $0xd0] sm:$0xff]  ;;  %vm15707_vm2 = vmmov %vm15624_vm0  ;;  %v10454_v43 = vpop.f32.mrf.mxu1  ;;  %v10398_v27 = vpop.f32.mrf.mxu0 }
 0x647   : > { %6709 = vst.msk [vmem:[#allocation2 + $0xf0] sm:$0xff] %vm15624_vm0, %v6677_v31  ;;  %v7132_v36 = vadd.f32 %v7100_v1, %v7045_v52  ;;  %vm15708_vm15 = vmmov %vm15624_vm0  ;;  %v7563_v52 = vadd.f32 %v10398_v27, %v7531_v15  ;;  %v7537_v31 = vld [vmem:[#allocation2 + $0x58] sm:$0xff] }
 0x648   : > { %7165 = vst.msk [vmem:[#allocation2 + $0xd8] sm:$0xff] %vm15704_vm14, %v7133_v21  ;;  %v7103_v41 = vld [vmem:[#allocation2 + $0xe8] sm:$0xff]  ;;  %vm15709_vm6 = vmmov %vm15624_vm0  ;;  %v7713_v26 = vpop.f32.mrf.mxu1  ;;  %v7387_v13 = vpop.f32.mrf.mxu0 }
 0x649   : > { %7591 = vst.msk [vmem:[#allocation2 + $0x8] sm:$0xff] %vm15705_vm11, %v7559_v53  ;;  %v7135_v18 = vadd.f32 %v10378_v49, %v7103_v41  ;;  %vm15710_vm13 = vmmov %vm15624_vm0  ;;  %v7562_v49 = vadd.f32 %v7530_v2, %v7387_v13  ;;  %v7536_v53 = vld [vmem:[#allocation2 + $0x50] sm:$0xff] }
 0x64a   : > { %7164 = vst.msk [vmem:[#allocation2 + $0xd0] sm:$0xff] %vm15706_vm8, %v7132_v36  ;;  %v7102_v51 = vld [vmem:[#allocation2 + $0xe0] sm:$0xff]  ;;  %vm15711_vm4 = vmmov %vm15624_vm0  ;;  %v10457_v61 = vpop.f32.mrf.mxu1  ;;  %v10401_v22 = vpop.f32.mrf.mxu0 }
 0x64b   : > { %7590 = vst.msk [vmem:[#allocation2] sm:$0xff] %vm15707_vm2, %v7558_v58  ;;  %v7134_v25 = vadd.f32 %v7102_v51, %v7055_v32  ;;  %vm15712_vm1 = vmmov %vm15624_vm0  ;;  %v7565_v32 = vadd.f32 %v10401_v22, %v7533_v0  ;;  %v7539_v58 = vld [vmem:[#allocation2 + $0x68] sm:$0xff] }
 0x64c   : > { %7167 = vst.msk [vmem:[#allocation2 + $0xe8] sm:$0xff] %vm15708_vm15, %v7135_v18  ;;  %v7105_v56 = vld [vmem:[#allocation2 + $0xf8] sm:$0xff]  ;;  %vm15713_vm5 = vmmov %vm15624_vm0  ;;  %v7723_v30 = vpop.f32.mrf.mxu1  ;;  %v7397_v6 = vpop.f32.mrf.mxu0 }
 0x64d   : > { %7593 = vst.msk [vmem:[#allocation2 + $0x18] sm:$0xff] %vm15709_vm6, %v7561_v14  ;;  %v7137_v7 = vadd.f32 %v10381_v12, %v7105_v56  ;;  %vm15714_vm10 = vmmov %vm15624_vm0  ;;  %v7564_v12 = vadd.f32 %v7532_v45, %v7397_v6  ;;  %v7538_v14 = vld [vmem:[#allocation2 + $0x60] sm:$0xff] }
 0x64e   : > { %7166 = vst.msk [vmem:[#allocation2 + $0xe0] sm:$0xff] %vm15710_vm13, %v7134_v25  ;;  %v7104_v28 = vld [vmem:[#allocation2 + $0xf0] sm:$0xff]  ;;  %vm15715_vm9 = vmmov %vm15624_vm0  ;;  %v10460_v5 = vpop.f32.mrf.mxu1  ;;  %v10404_v23 = vpop.f32.mrf.mxu0 }
 0x64f   : > { %7592 = vst.msk [vmem:[#allocation2 + $0x10] sm:$0xff] %vm15711_vm4, %v7560_v63  ;;  %v7136_v10 = vadd.f32 %v7104_v28, %v7065_v4  ;;  %vm15716_vm12 = vmmov %vm15624_vm0  ;;  %v7567_v4 = vadd.f32 %v10404_v23, %v7535_v60  ;;  %v7541_v63 = vld [vmem:[#allocation2 + $0x78] sm:$0xff] }
 0x650   : > { %7169 = vst.msk [vmem:[#allocation2 + $0xf8] sm:$0xff] %vm15712_vm1, %v7137_v7  ;;  %v7853_v59 = vld [vmem:[#allocation2 + $0x8] sm:$0xff]  ;;  %vm15717_vm7 = vmmov %vm15624_vm0  ;;  %v7733_v34 = vpop.f32.mrf.mxu1  ;;  %v7407_v54 = vpop.f32.mrf.mxu0 }
 0x651   : > { %7595 = vst.msk [vmem:[#allocation2 + $0x28] sm:$0xff] %vm15713_vm5, %v7563_v52  ;;  %v7885_v44 = vadd.f32 %v10448_v57, %v7853_v59  ;;  %vm15718_vm3 = vmmov %vm15624_vm0  ;;  %v7566_v57 = vadd.f32 %v7534_v50, %v7407_v54  ;;  %v7540_v52 = vld [vmem:[#allocation2 + $0x70] sm:$0xff] }
 0x652   : > { %7168 = vst.msk [vmem:[#allocation2 + $0xf0] sm:$0xff] %vm15714_vm10, %v7136_v10  ;;  %v7852_v38 = vld [vmem:[#allocation2] sm:$0xff]  ;;  %vm15719_vm14 = vmmov %vm15624_vm0  ;;  %v10463_v16 = vpop.f32.mrf.mxu1  ;;  %v10407_v47 = vpop.f32.mrf.mxu0 }
 0x653   : > { %7594 = vst.msk [vmem:[#allocation2 + $0x20] sm:$0xff] %vm15715_vm9, %v7562_v49  ;;  %v7884_v8 = vadd.f32 %v7852_v38, %v7693_v20  ;;  %vm15720_vm11 = vmmov %vm15624_vm0  ;;  %v7569_v20 = vadd.f32 %v10407_v47, %v7537_v31  ;;  %v7543_v49 = vld [vmem:[#allocation2 + $0x88] sm:$0xff] }
 0x654   : > { %7917 = vst.msk [vmem:[#allocation2 + $0x8] sm:$0xff] %vm15716_vm12, %v7885_v44  ;;  %v7855_v42 = vld [vmem:[#allocation2 + $0x18] sm:$0xff]  ;;  %vm15721_vm8 = vmmov %vm15624_vm0  ;;  %v7743_v24 = vpop.f32.mrf.mxu1  ;;  %v7417_v1 = vpop.f32.mrf.mxu0 }
 0x655   : > { %7597 = vst.msk [vmem:[#allocation2 + $0x38] sm:$0xff] %vm15717_vm7, %v7565_v32  ;;  %v7887_v62 = vadd.f32 %v10451_v40, %v7855_v42  ;;  %vm15722_vm2 = vmmov %vm15624_vm0  ;;  %v7568_v40 = vadd.f32 %v7536_v53, %v7417_v1  ;;  %v7542_v32 = vld [vmem:[#allocation2 + $0x80] sm:$0xff] }
 0x656   : > { %7916 = vst.msk [vmem:[#allocation2] sm:$0xff] %vm15718_vm3, %v7884_v8  ;;  %v7854_v3 = vld [vmem:[#allocation2 + $0x10] sm:$0xff]  ;;  %vm15723_vm15 = vmmov %vm15624_vm0  ;;  %v10466_v9 = vpop.f32.mrf.mxu1  ;;  %v10410_v41 = vpop.f32.mrf.mxu0 }
 0x657   : > { %7596 = vst.msk [vmem:[#allocation2 + $0x30] sm:$0xff] %vm15624_vm0, %v7564_v12  ;;  %v7886_v29 = vadd.f32 %v7854_v3, %v7703_v19  ;;  %vm15724_vm6 = vmmov %vm15624_vm0  ;;  %v7571_v19 = vadd.f32 %v10410_v41, %v7539_v58  ;;  %v7545_v12 = vld [vmem:[#allocation2 + $0x98] sm:$0xff] }
 0x658   : > { %7919 = vst.msk [vmem:[#allocation2 + $0x18] sm:$0xff] %vm15719_vm14, %v7887_v62  ;;  %v7857_v11 = vld [vmem:[#allocation2 + $0x28] sm:$0xff]  ;;  %vm15725_vm13 = vmmov %vm15624_vm0  ;;  %v7753_v46 = vpop.f32.mrf.mxu1  ;;  %v7427_v51 = vpop.f32.mrf.mxu0 }
 0x659   : > { %7599 = vst.msk [vmem:[#allocation2 + $0x48] sm:$0xff] %vm15720_vm11, %v7567_v4  ;;  %v7889_v39 = vadd.f32 %v10454_v43, %v7857_v11  ;;  %vm15726_vm4 = vmmov %vm15624_vm0  ;;  %v7570_v43 = vadd.f32 %v7538_v14, %v7427_v51  ;;  %v7544_v4 = vld [vmem:[#allocation2 + $0x90] sm:$0xff] }
 0x65a   : > { %7918 = vst.msk [vmem:[#allocation2 + $0x10] sm:$0xff] %vm15721_vm8, %v7886_v29  ;;  %v7856_v21 = vld [vmem:[#allocation2 + $0x20] sm:$0xff]  ;;  %vm15727_vm1 = vmmov %vm15624_vm0  ;;  %v10469_v37 = vpop.f32.mrf.mxu1  ;;  %v10413_v56 = vpop.f32.mrf.mxu0 }
 0x65b   : > { %7598 = vst.msk [vmem:[#allocation2 + $0x40] sm:$0xff] %vm15722_vm2, %v7566_v57  ;;  %v7888_v48 = vadd.f32 %v7856_v21, %v7713_v26  ;;  %vm15728_vm5 = vmmov %vm15624_vm0  ;;  %v7573_v26 = vadd.f32 %v10413_v56, %v7541_v63  ;;  %v7547_v57 = vld [vmem:[#allocation2 + $0xa8] sm:$0xff] }
 0x65c   : > { %7921 = vst.msk [vmem:[#allocation2 + $0x28] sm:$0xff] %vm15723_vm15, %v7889_v39  ;;  %v7859_v36 = vld [vmem:[#allocation2 + $0x38] sm:$0xff]  ;;  %vm15729_vm10 = vmmov %vm15624_vm0  ;;  %v7763_v35 = vpop.f32.mrf.mxu1  ;;  %v7437_v28 = vpop.f32.mrf.mxu0 }
 0x65d   : > { %7601 = vst.msk [vmem:[#allocation2 + $0x58] sm:$0xff] %vm15724_vm6, %v7569_v20  ;;  %v7891_v55 = vadd.f32 %v10457_v61, %v7859_v36  ;;  %vm15730_vm9 = vmmov %vm15624_vm0  ;;  %v7572_v61 = vadd.f32 %v7540_v52, %v7437_v28  ;;  %v7546_v20 = vld [vmem:[#allocation2 + $0xa0] sm:$0xff] }
 0x65e   : > { %7920 = vst.msk [vmem:[#allocation2 + $0x20] sm:$0xff] %vm15725_vm13, %v7888_v48  ;;  %v7858_v18 = vld [vmem:[#allocation2 + $0x30] sm:$0xff]  ;;  %vm15731_vm12 = vmmov %vm15624_vm0  ;;  %v10472_v15 = vpop.f32.mrf.mxu1  ;;  %v10416_v59 = vpop.f32.mrf.mxu0 }
 0x65f   : > { %7600 = vst.msk [vmem:[#allocation2 + $0x50] sm:$0xff] %vm15726_vm4, %v7568_v40  ;;  %v7890_v17 = vadd.f32 %v7858_v18, %v7723_v30  ;;  %vm15732_vm7 = vmmov %vm15624_vm0  ;;  %v7575_v30 = vadd.f32 %v10416_v59, %v7543_v49  ;;  %v7549_v40 = vld [vmem:[#allocation2 + $0xb8] sm:$0xff]  ;;  %v7552_v49 = vld [vmem:[#allocation2 + $0xd0] sm:$0xff] }
 0x660   : > { %7923 = vst.msk [vmem:[#allocation2 + $0x38] sm:$0xff] %vm15727_vm1, %v7891_v55  ;;  %v7861_v25 = vld [vmem:[#allocation2 + $0x48] sm:$0xff]  ;;  %vm15733_vm3 = vmmov %vm15624_vm0  ;;  %v7773_v2 = vpop.f32.mrf.mxu1  ;;  %v7447_v38 = vpop.f32.mrf.mxu0 }
 0x661   : > { %7603 = vst.msk [vmem:[#allocation2 + $0x68] sm:$0xff] %vm15728_vm5, %v7571_v19  ;;  %v7893_v33 = vadd.f32 %v10460_v5, %v7861_v25  ;;  %vm15734_vm14 = vmmov %vm15624_vm0  ;;  %v7574_v5 = vadd.f32 %v7542_v32, %v7447_v38  ;;  %v7548_v19 = vld [vmem:[#allocation2 + $0xb0] sm:$0xff]  ;;  %v7555_v32 = vld [vmem:[#allocation2 + $0xe8] sm:$0xff] }
 0x662   : > { %7922 = vst.msk [vmem:[#allocation2 + $0x30] sm:$0xff] %vm15729_vm10, %v7890_v17  ;;  %v7860_v7 = vld [vmem:[#allocation2 + $0x40] sm:$0xff]  ;;  %v10475_v0 = vpop.f32.mrf.mxu1  ;;  %vm15735_vm11 = vmmov %vm15624_vm0  ;;  %v10419_v42 = vpop.f32.mrf.mxu0 }
 0x663   : > { %7602 = vst.msk [vmem:[#allocation2 + $0x60] sm:$0xff] %vm15730_vm9, %v7570_v43  ;;  %v7892_v27 = vadd.f32 %v7860_v7, %v7733_v34  ;;  %vm15736_vm8 = vmmov %vm15624_vm0  ;;  %v7577_v34 = vadd.f32 %v10419_v42, %v7545_v12  ;;  %v7551_v43 = vld [vmem:[#allocation2 + $0xc8] sm:$0xff]  ;;  %v7550_v7 = vld [vmem:[#allocation2 + $0xc0] sm:$0xff] }
 0x664   : > { %7925 = vst.msk [vmem:[#allocation2 + $0x48] sm:$0xff] %vm15731_vm12, %v7893_v33  ;;  %v7863_v10 = vld [vmem:[#allocation2 + $0x58] sm:$0xff]  ;;  %v7783_v45 = vpop.f32.mrf.mxu1  ;;  %vm15737_vm2 = vmmov %vm15624_vm0  ;;  %v7457_v3 = vpop.f32.mrf.mxu0  ;;  %v7554_v42 = vld [vmem:[#allocation2 + $0xe0] sm:$0xff] }
 0x665   : > { %7605 = vst.msk [vmem:[#allocation2 + $0x78] sm:$0xff] %vm15732_vm7, %v7573_v26  ;;  %v7895_v13 = vadd.f32 %v10463_v16, %v7863_v10  ;;  %vm15738_vm15 = vmmov %vm15624_vm0  ;;  %v7576_v16 = vadd.f32 %v7544_v4, %v7457_v3  ;;  %v7553_v10 = vld [vmem:[#allocation2 + $0xd8] sm:$0xff] }
 0x666   : > { %7924 = vst.msk [vmem:[#allocation2 + $0x40] sm:$0xff] %vm15733_vm3, %v7892_v27  ;;  %v7862_v44 = vld [vmem:[#allocation2 + $0x50] sm:$0xff]  ;;  %v10478_v60 = vpop.f32.mrf.mxu1  ;;  %vm15739_vm6 = vmmov %vm15624_vm0  ;;  %v10422_v11 = vpop.f32.mrf.mxu0  ;;  %v7557_v3 = vld [vmem:[#allocation2 + $0xf8] sm:$0xff] }
 0x667   : > { %7604 = vst.msk [vmem:[#allocation2 + $0x70] sm:$0xff] %vm15624_vm0, %v7572_v61  ;;  %v7894_v22 = vadd.f32 %v7862_v44, %v7743_v24  ;;  %vm15740_vm13 = vmmov %vm15624_vm0  ;;  %v7579_v24 = vadd.f32 %v10422_v11, %v7547_v57 }
 0x668   : > { %7927 = vst.msk [vmem:[#allocation2 + $0x58] sm:$0xff] %vm15734_vm14, %v7895_v13  ;;  %v7865_v8 = vld [vmem:[#allocation2 + $0x68] sm:$0xff]  ;;  %v7793_v50 = vpop.f32.mrf.mxu1  ;;  %vm15741_vm4 = vmmov %vm15624_vm0  ;;  %v7467_v21 = vpop.f32.mrf.mxu0 }
 0x669   : > { %7607 = vst.msk [vmem:[#allocation2 + $0x88] sm:$0xff] %vm15735_vm11, %v7575_v30  ;;  %v7897_v6 = vadd.f32 %v10466_v9, %v7865_v8  ;;  %vm15742_vm1 = vmmov %vm15624_vm0  ;;  %v7578_v9 = vadd.f32 %v7546_v20, %v7467_v21 }
 0x66a   : > { %7926 = vst.msk [vmem:[#allocation2 + $0x50] sm:$0xff] %vm15736_vm8, %v7894_v22  ;;  %v7864_v62 = vld [vmem:[#allocation2 + $0x60] sm:$0xff]  ;;  %v10481_v31 = vpop.f32.mrf.mxu1  ;;  %vm15743_vm5 = vmmov %vm15624_vm0  ;;  %v10425_v36 = vpop.f32.mrf.mxu0 }
 0x66b   : > { %7606 = vst.msk [vmem:[#allocation2 + $0x80] sm:$0xff] %vm15737_vm2, %v7574_v5  ;;  %v7896_v23 = vadd.f32 %v7864_v62, %v7753_v46  ;;  %vm15744_vm10 = vmmov %vm15624_vm0  ;;  %v7581_v46 = vadd.f32 %v10425_v36, %v7549_v40 }
 0x66c   : > { %7929 = vst.msk [vmem:[#allocation2 + $0x68] sm:$0xff] %vm15738_vm15, %v7897_v6  ;;  %v7867_v29 = vld [vmem:[#allocation2 + $0x78] sm:$0xff]  ;;  %v7803_v53 = vpop.f32.mrf.mxu1  ;;  %vm15745_vm9 = vmmov %vm15624_vm0  ;;  %v7477_v18 = vpop.f32.mrf.mxu0 }
 0x66d   : > { %7609 = vst.msk [vmem:[#allocation2 + $0x98] sm:$0xff] %vm15739_vm6, %v7577_v34  ;;  %v7899_v54 = vadd.f32 %v10469_v37, %v7867_v29  ;;  %vm15746_vm12 = vmmov %vm15624_vm0  ;;  %v7580_v37 = vadd.f32 %v7548_v19, %v7477_v18 }
 0x66e   : > { %7928 = vst.msk [vmem:[#allocation2 + $0x60] sm:$0xff] %vm15740_vm13, %v7896_v23  ;;  %v7866_v39 = vld [vmem:[#allocation2 + $0x70] sm:$0xff]  ;;  %v10484_v58 = vpop.f32.mrf.mxu1  ;;  %vm15747_vm7 = vmmov %vm15624_vm0  ;;  %v10428_v25 = vpop.f32.mrf.mxu0 }
 0x66f   : > { %7608 = vst.msk [vmem:[#allocation2 + $0x90] sm:$0xff] %vm15741_vm4, %v7576_v16  ;;  %v7898_v47 = vadd.f32 %v7866_v39, %v7763_v35  ;;  %vm15748_vm3 = vmmov %vm15624_vm0  ;;  %v7583_v35 = vadd.f32 %v10428_v25, %v7551_v43 }
 0x670   : > { %7931 = vst.msk [vmem:[#allocation2 + $0x78] sm:$0xff] %vm15742_vm1, %v7899_v54  ;;  %v7869_v48 = vld [vmem:[#allocation2 + $0x88] sm:$0xff]  ;;  %v7813_v14 = vpop.f32.mrf.mxu1  ;;  %vm15749_vm14 = vmmov %vm15624_vm0  ;;  %v7487_v63 = vpop.f32.mrf.mxu0 }
 0x671   : > { %7611 = vst.msk [vmem:[#allocation2 + $0xa8] sm:$0xff] %vm15743_vm5, %v7579_v24  ;;  %v7901_v1 = vadd.f32 %v10472_v15, %v7869_v48  ;;  %vm15750_vm11 = vmmov %vm15624_vm0  ;;  %v7582_v27 = vadd.f32 %v7550_v7, %v7487_v63  ;;  %v8303_v63 = vld [vmem:[#allocation2 + $0x28] sm:$0xff] }
 0x672   : > { %7930 = vst.msk [vmem:[#allocation2 + $0x70] sm:$0xff] %vm15744_vm10, %v7898_v47  ;;  %v7868_v55 = vld [vmem:[#allocation2 + $0x80] sm:$0xff]  ;;  %vm15751_vm8 = vmmov %vm15624_vm0  ;;  %v10487_v28 = vpop.f32.mrf.mxu1  ;;  %v10431_v52 = vpop.f32.mrf.mxu0 }
 0x673   : > { %7610 = vst.msk [vmem:[#allocation2 + $0xa0] sm:$0xff] %vm15745_vm9, %v7578_v9  ;;  %v7900_v41 = vadd.f32 %v7868_v55, %v7773_v2  ;;  %vm15752_vm2 = vmmov %vm15624_vm0  ;;  %v7585_v13 = vadd.f32 %v10431_v52, %v7553_v10 }
 0x674   : > { %7933 = vst.msk [vmem:[#allocation2 + $0x88] sm:$0xff] %vm15746_vm12, %v7901_v1  ;;  %v7871_v17 = vld [vmem:[#allocation2 + $0x98] sm:$0xff]  ;;  %vm15753_vm15 = vmmov %vm15624_vm0  ;;  %v7497_v59 = vpop.f32.mrf.mxu0  ;;  %v8298_v1 = vld [vmem:[#allocation2] sm:$0xff] }
 0x675   : > { %7613 = vst.msk [vmem:[#allocation2 + $0xb8] sm:$0xff] %vm15747_vm7, %v7581_v46  ;;  %v7903_v51 = vadd.f32 %v10475_v0, %v7871_v17  ;;  %vm15754_vm6 = vmmov %vm15624_vm0  ;;  %v7584_v30 = vadd.f32 %v7552_v49, %v7497_v59  ;;  %v7823_v0 = vpop.f32.mrf.mxu1 }
 0x676   : > { %7932 = vst.msk [vmem:[#allocation2 + $0x80] sm:$0xff] %vm15748_vm3, %v7900_v41  ;;  %v7870_v33 = vld [vmem:[#allocation2 + $0x90] sm:$0xff]  ;;  %vm15755_vm13 = vmmov %vm15624_vm0  ;;  %v10434_v38 = vpop.f32.mrf.mxu0  ;;  %v8301_v41 = vld [vmem:[#allocation2 + $0x18] sm:$0xff] }
 0x677   : > { %7612 = vst.msk [vmem:[#allocation2 + $0xb0] sm:$0xff] %vm15624_vm0, %v7580_v37  ;;  %v7902_v56 = vadd.f32 %v7870_v33, %v7783_v45  ;;  %vm15756_vm4 = vmmov %vm15624_vm0  ;;  %v7587_v5 = vadd.f32 %v10434_v38, %v7555_v32  ;;  %v10490_v23 = vpop.f32.mrf.mxu1  ;;  %v14237_v33 = vld [vmem:[%s15771_s27] ss:$0 sm:$0xff] }
 0x678   : > { %7935 = vst.msk [vmem:[#allocation2 + $0x98] sm:$0xff] %vm15749_vm14, %v7903_v51  ;;  %v7873_v26 = vld [vmem:[#allocation2 + $0xa8] sm:$0xff]  ;;  %vm15757_vm1 = vmmov %vm15624_vm0  ;;  %v7507_v45 = vpop.f32.mrf.mxu0  ;;  %v8300_v51 = vld [vmem:[#allocation2 + $0x10] sm:$0xff] }
 0x679   : > { %7615 = vst.msk [vmem:[#allocation2 + $0xc8] sm:$0xff] %vm15750_vm11, %v7583_v35  ;;  %v7905_v15 = vadd.f32 %v10478_v60, %v7873_v26  ;;  %vm15758_vm5 = vmmov %vm15624_vm0  ;;  %v7586_v62 = vadd.f32 %v7554_v42, %v7507_v45  ;;  %v7833_v24 = vpop.f32.mrf.mxu1 }
 0x67a   : > { %7934 = vst.msk [vmem:[#allocation2 + $0x90] sm:$0xff] %vm15751_vm8, %v7902_v56  ;;  %v7872_v61 = vld [vmem:[#allocation2 + $0xa0] sm:$0xff]  ;;  %vm15759_vm10 = vmmov %vm15624_vm0  ;;  %v10437_v60 = vpop.f32.mrf.mxu0 }
 0x67b   : > { %7614 = vst.msk [vmem:[#allocation2 + $0xc0] sm:$0xff] %vm15752_vm2, %v7582_v27  ;;  %v7904_v2 = vadd.f32 %v7872_v61, %v7793_v50  ;;  %vm15760_vm9 = vmmov %vm15624_vm0  ;;  %v7589_v29 = vadd.f32 %v10437_v60, %v7557_v3  ;;  %v7556_v50 = vld [vmem:[#allocation2 + $0xf0] sm:$0xff] }
 0x67c   : > { %7937 = vst.msk [vmem:[#allocation2 + $0xa8] sm:$0xff] %vm15753_vm15, %v7905_v15  ;;  %v7875_v44 = vld [vmem:[#allocation2 + $0xb8] sm:$0xff]  ;;  %vm15761_vm12 = vmmov %vm15624_vm0  ;;  %v7517_v54 = vpop.f32.mrf.mxu0 }
 0x67d   : > { %7617 = vst.msk [vmem:[#allocation2 + $0xd8] sm:$0xff] %vm15754_vm6, %v7585_v13  ;;  %v7907_v22 = vadd.f32 %v10481_v31, %v7875_v44  ;;  %vm15762_vm7 = vmmov %vm15624_vm0  ;;  %v7588_v57 = vadd.f32 %v7556_v50, %v7517_v54  ;;  %v8299_v31 = vld [vmem:[#allocation2 + $0x8] sm:$0xff]  ;;  %v8306_v54 = vld [vmem:[#allocation2 + $0x40] sm:$0xff] }
 0x67e   : > { %7936 = vst.msk [vmem:[#allocation2 + $0xa0] sm:$0xff] %vm15755_vm13, %v7904_v2  ;;  %v7874_v8 = vld [vmem:[#allocation2 + $0xb0] sm:$0xff]  ;;  %vm15763_vm3 = vmmov %vm15624_vm0  ;;  %v10504_v47 = vpop.f32.mrf.mxu0  ;;  %v8305_v2 = vld [vmem:[#allocation2 + $0x38] sm:$0xff] }
 0x67f   : > { %7616 = vst.msk [vmem:[#allocation2 + $0xd0] sm:$0xff] %vm15756_vm4, %v7584_v30  ;;  %v7906_v6 = vadd.f32 %v7874_v8, %v7803_v53  ;;  %v8331_v20 = vadd.f32 %v10504_v47, %v8299_v31  ;;  %vm15764_vm14 = vmmov %vm15624_vm0  ;;  %v10493_v53 = vpop.f32.mrf.mxu1  ;;  %v8309_v31 = vld [vmem:[#allocation2 + $0x58] sm:$0xff] }
 0x680   : > { %7939 = vst.msk [vmem:[#allocation2 + $0xb8] sm:$0xff] %vm15757_vm1, %v7907_v22  ;;  %v7877_v12 = vld [vmem:[#allocation2 + $0xc8] sm:$0xff]  ;;  %v8139_v9 = vpop.f32.mrf.mxu0  ;;  %vm15765_vm11 = vmmov %vm15624_vm0 }
 0x681   : > { %7619 = vst.msk [vmem:[#allocation2 + $0xe8] sm:$0xff] %vm15758_vm5, %v7587_v5  ;;  %v7909_v34 = vadd.f32 %v10484_v58, %v7877_v12  ;;  %v8330_v40 = vadd.f32 %v8298_v1, %v8139_v9  ;;  %vm15766_vm8 = vmmov %vm15624_vm0 }
 0x682   : > { %7938 = vst.msk [vmem:[#allocation2 + $0xb0] sm:$0xff] %vm15759_vm10, %v7906_v6  ;;  %v7876_v4 = vld [vmem:[#allocation2 + $0xc0] sm:$0xff]  ;;  %v10507_v46 = vpop.f32.mrf.mxu0  ;;  %vm15767_vm2 = vmmov %vm15624_vm0 }
 0x683   : > { %7618 = vst.msk [vmem:[#allocation2 + $0xe0] sm:$0xff] %vm15760_vm9, %v7586_v62  ;;  %v7908_v16 = vadd.f32 %v7876_v4, %v7813_v14  ;;  %v8333_v18 = vadd.f32 %v10507_v46, %v8301_v41  ;;  %vm15768_vm15 = vmmov %vm15624_vm0  ;;  %v7843_v14 = vpop.f32.mrf.mxu1 }
 0x684   : > { %7941 = vst.msk [vmem:[#allocation2 + $0xc8] sm:$0xff] %vm15761_vm12, %v7909_v34  ;;  %v7879_v11 = vld [vmem:[#allocation2 + $0xd8] sm:$0xff]  ;;  %v8149_v37 = vpop.f32.mrf.mxu0  ;;  %vm15769_vm6 = vmmov %vm15624_vm0  ;;  %v8307_v34 = vld [vmem:[#allocation2 + $0x48] sm:$0xff] }
 0x685   : > { %7621 = vst.msk [vmem:[#allocation2 + $0xf8] sm:$0xff] %vm15762_vm7, %v7589_v29  ;;  %v7911_v39 = vadd.f32 %v10487_v28, %v7879_v11  ;;  %v8332_v43 = vadd.f32 %v8300_v51, %v8149_v37  ;;  %vm15770_vm13 = vmmov %vm15624_vm0  ;;  %v8302_v28 = vld [vmem:[#allocation2 + $0x20] sm:$0xff] }
 0x686   : > { %7940 = vst.msk [vmem:[#allocation2 + $0xc0] sm:$0xff] %vm15763_vm3, %v7908_v16  ;;  %v7878_v21 = vld [vmem:[#allocation2 + $0xd0] sm:$0xff]  ;;  %v10510_v56 = vpop.f32.mrf.mxu0  ;;  %vm15772_vm4 = vmmov %vm15624_vm0  ;;  %v8310_v51 = vld [vmem:[#allocation2 + $0x60] sm:$0xff] }
 0x687   : > { %7620 = vst.msk [vmem:[#allocation2 + $0xf0] sm:$0xff] %vm15624_vm0, %v7588_v57  ;;  %v7910_v48 = vadd.f32 %v7878_v21, %v7823_v0  ;;  %vm15773_vm1 = vmmov %vm15624_vm0  ;;  %v8335_v26 = vadd.f32 %v10510_v56, %v8303_v63  ;;  %v8304_v0 = vld [vmem:[#allocation2 + $0x30] sm:$0xff] }
 0x688   : > { %7943 = vst.msk [vmem:[#allocation2 + $0xd8] sm:$0xff] %vm15764_vm14, %v7911_v39  ;;  %v7881_v36 = vld [vmem:[#allocation2 + $0xe8] sm:$0xff]  ;;  %v8159_v15 = vpop.f32.mrf.mxu0  ;;  %vm15774_vm5 = vmmov %vm15624_vm0 }
 0x689   : > { %8363 = vst.msk [vmem:[#allocation2 + $0x8] sm:$0xff] %vm15765_vm11, %v8331_v20  ;;  %v7913_v55 = vadd.f32 %v10490_v23, %v7881_v36  ;;  %vm15775_vm10 = vmmov %vm15624_vm0  ;;  %v8334_v10 = vadd.f32 %v8302_v28, %v8159_v15  ;;  %v8308_v36 = vld [vmem:[#allocation2 + $0x50] sm:$0xff] }
 0x68a   : > { %7942 = vst.msk [vmem:[#allocation2 + $0xd0] sm:$0xff] %vm15766_vm8, %v7910_v48  ;;  %v7880_v58 = vld [vmem:[#allocation2 + $0xe0] sm:$0xff]  ;;  %v10513_v13 = vpop.f32.mrf.mxu0  ;;  %vm15776_vm9 = vmmov %vm15624_vm0 }
 0x68b   : > { %8362 = vst.msk [vmem:[#allocation2] sm:$0xff] %vm15767_vm2, %v8330_v40  ;;  %v7912_v19 = vadd.f32 %v7880_v58, %v7833_v24  ;;  %v8337_v44 = vadd.f32 %v10513_v13, %v8305_v2  ;;  %vm15777_vm12 = vmmov %vm15624_vm0  ;;  %v8312_v2 = vld [vmem:[#allocation2 + $0x70] sm:$0xff] }
 0x68c   : > { %7945 = vst.msk [vmem:[#allocation2 + $0xe8] sm:$0xff] %vm15768_vm15, %v7913_v55  ;;  %v7883_v17 = vld [vmem:[#allocation2 + $0xf8] sm:$0xff]  ;;  %v8169_v22 = vpop.f32.mrf.mxu0  ;;  %vm15778_vm7 = vmmov %vm15624_vm0 }
 0x68d   : > { %8365 = vst.msk [vmem:[#allocation2 + $0x18] sm:$0xff] %vm15769_vm6, %v8333_v18  ;;  %v7915_v25 = vadd.f32 %v10493_v53, %v7883_v17  ;;  %v8336_v5 = vadd.f32 %v8304_v0, %v8169_v22  ;;  %vm15779_vm3 = vmmov %vm15624_vm0 }
 0x68e   : > { %7944 = vst.msk [vmem:[#allocation2 + $0xe0] sm:$0xff] %vm15770_vm13, %v7912_v19  ;;  %v7882_v35 = vld [vmem:[#allocation2 + $0xf0] sm:$0xff]  ;;  %v10516_v45 = vpop.f32.mrf.mxu0  ;;  %vm15780_vm14 = vmmov %vm15624_vm0  ;;  %v8311_v19 = vld [vmem:[#allocation2 + $0x68] sm:$0xff] }
 0x68f   : > { %7947 = vst.msk [vmem:[#allocation2 + $0xf8] sm:$0xff] %vm15772_vm4, %v7915_v25  ;;  %v7914_v7 = vadd.f32 %v7882_v35, %v7843_v14  ;;  %v8339_v60 = vadd.f32 %v10516_v45, %v8307_v34  ;;  %vm15781_vm11 = vmmov %vm15624_vm0 }
 0x690   : > { %8364 = vst.msk [vmem:[#allocation2 + $0x10] sm:$0xff] %vm15773_vm1, %v8332_v43  ;;  %v8395_v27 = vld [vmem:[#allocation2 + $0x8] sm:$0xff]  ;;  %v8179_v3 = vpop.f32.mrf.mxu0  ;;  %vm15782_vm8 = vmmov %vm15624_vm0 }
 0x691   : > { %v14242_v52 = vadd.f32 %v14237_v33, %v8395_v27  ;;  %7946 = vst.msk [vmem:[#allocation2 + $0xf0] sm:$0xff] %vm15774_vm5, %v7914_v7  ;;  %v8338_v11 = vadd.f32 %v8306_v54, %v8179_v3  ;;  %v8313_v7 = vld [vmem:[#allocation2 + $0x78] sm:$0xff]  ;;  %vm15783_vm2 = vmmov %vm15624_vm0 }
 0x692   : > { %8367 = vst.msk [vmem:[#allocation2 + $0x28] sm:$0xff] %vm15775_vm10, %v8335_v26  ;;  %v8394_v61 = vld [vmem:[#allocation2] sm:$0xff]  ;;  %v10519_v57 = vpop.f32.mrf.mxu0  ;;  %vm15784_vm15 = vmmov %vm15624_vm0 }
 0x693   : > { %v8466_v59 = vsub.f32 0.0, %v14242_v52  ;;  %v14248_v49 = vadd.f32 %v14237_v33, %v8394_v61  ;;  %8366 = vst.msk [vmem:[#allocation2 + $0x20] sm:$0xff] %vm15776_vm9, %v8334_v10  ;;  %v8341_v20 = vadd.f32 %v10519_v57, %v8309_v31  ;;  %vm15785_vm6 = vmmov %vm15624_vm0 }
 0x694   : > { %v8397_v30 = vld [vmem:[#allocation2 + $0x18] sm:$0xff]  ;;  %8369 = vst.msk [vmem:[#allocation2 + $0x38] sm:$0xff] %vm15777_vm12, %v8337_v44  ;;  %v8189_v48 = vpop.f32.mrf.mxu0  ;;  %vm15786_vm13 = vmmov %vm15624_vm0 }
 0x695   : > { %v8499_v38 = vmul.f32 1.442695, %v8466_v59  ;;  %v8465_v32 = vsub.f32 0.0, %v14248_v49  ;;  %v14253_v8 = vadd.f32 %v14237_v33, %v8397_v30  ;;  %8368 = vst.msk [vmem:[#allocation2 + $0x30] sm:$0xff] %vm15778_vm7, %v8336_v5  ;;  %v8340_v55 = vadd.f32 %v8308_v36, %v8189_v48  ;;  %v8317_v48 = vld [vmem:[#allocation2 + $0x98] sm:$0xff]  ;;  %vm15787_vm4 = vmmov %vm15624_vm0 }
 0x696   : > { %8371 = vst.msk [vmem:[#allocation2 + $0x48] sm:$0xff] %vm15779_vm3, %v8339_v60  ;;  %v10522_v46 = vpop.f32.mrf.mxu0  ;;  %vm15788_vm1 = vmmov %vm15624_vm0 }
 0x697   : > { %v8396_v6 = vld [vmem:[#allocation2 + $0x10] sm:$0xff]  ;;  %11030 = vpow2.f32 %v8499_v38  ;;  %v8497_v42 = vmul.f32 1.442695, %v8465_v32  ;;  %v8468_v12 = vsub.f32 0.0, %v14253_v8  ;;  %8370 = vst.msk [vmem:[#allocation2 + $0x40] sm:$0xff] %vm15624_vm0, %v8338_v11  ;;  %v8343_v17 = vadd.f32 %v10522_v46, %v8311_v19  ;;  %vm15789_vm5 = vmmov %vm15624_vm0 }
 0x698   : > { %v14258_v62 = vadd.f32 %v14237_v33, %v8396_v6  ;;  %8373 = vst.msk [vmem:[#allocation2 + $0x58] sm:$0xff] %vm15780_vm14, %v8341_v20  ;;  %v8199_v37 = vpop.f32.mrf.mxu0  ;;  %v8315_v6 = vld [vmem:[#allocation2 + $0x88] sm:$0xff]  ;;  %vm15790_vm10 = vmmov %vm15624_vm0 }
 0x699   : > { %v8399_v23 = vld [vmem:[#allocation2 + $0x28] sm:$0xff]  ;;  %11032 = vpow2.f32 %v8497_v42  ;;  %v8503_v4 = vmul.f32 1.442695, %v8468_v12  ;;  %8372 = vst.msk [vmem:[#allocation2 + $0x50] sm:$0xff] %vm15781_vm11, %v8340_v55  ;;  %v8342_v35 = vadd.f32 %v8310_v51, %v8199_v37  ;;  %v8316_v51 = vld [vmem:[#allocation2 + $0x90] sm:$0xff]  ;;  %vm15792_vm9 = vmmov %vm15624_vm0 }
 0x69a   : > { %v8467_v29 = vsub.f32 0.0, %v14258_v62  ;;  %v14263_v16 = vadd.f32 %v14237_v33, %v8399_v23  ;;  %v8398_v50 = vld [vmem:[#allocation2 + $0x20] sm:$0xff]  ;;  %8375 = vst.msk [vmem:[#allocation2 + $0x68] sm:$0xff] %vm15782_vm8, %v8343_v17  ;;  %v10525_v63 = vpop.f32.mrf.mxu0  ;;  %vm15793_vm12 = vmmov %vm15624_vm0 }
 0x69b   : > { %11034 = vpow2.f32 %v8503_v4  ;;  %v14268_v47 = vadd.f32 %v14237_v33, %v8398_v50  ;;  %v8401_v21 = vld [vmem:[#allocation2 + $0x38] sm:$0xff]  ;;  %8374 = vst.msk [vmem:[#allocation2 + $0x60] sm:$0xff] %vm15783_vm2, %v8342_v35  ;;  %v8345_v15 = vadd.f32 %v10525_v63, %v8313_v7  ;;  %vm15794_vm7 = vmmov %vm15624_vm0 }
 0x69c   : > { %v8501_v39 = vmul.f32 1.442695, %v8467_v29  ;;  %v8470_v24 = vsub.f32 0.0, %v14263_v16  ;;  %v14273_v53 = vadd.f32 %v14237_v33, %v8401_v21  ;;  %v8400_v40 = vld [vmem:[#allocation2 + $0x30] sm:$0xff]  ;;  %v8209_v13 = vpop.f32.mrf.mxu0  ;;  %v8314_v29 = vld [vmem:[#allocation2 + $0x80] sm:$0xff]  ;;  %vm15795_vm3 = vmmov %vm15624_vm0 }
 0x69d   : > { %v8469_v1 = vsub.f32 0.0, %v14268_v47  ;;  %v14278_v18 = vadd.f32 %v14237_v33, %v8400_v40  ;;  %v8403_v43 = vld [vmem:[#allocation2 + $0x48] sm:$0xff]  ;;  %8377 = vst.msk [vmem:[#allocation2 + $0x78] sm:$0xff] %vm15784_vm15, %v8345_v15  ;;  %v8344_v30 = vadd.f32 %v8312_v2, %v8209_v13  ;;  %vm15796_vm14 = vmmov %vm15624_vm0 }
 0x69e   : > { %11036 = vpow2.f32 %v8501_v39  ;;  %v8507_v9 = vmul.f32 1.442695, %v8470_v24  ;;  %v8472_v58 = vsub.f32 0.0, %v14273_v53  ;;  %v14283_v56 = vadd.f32 %v14237_v33, %v8403_v43  ;;  %v8402_v27 = vld [vmem:[#allocation2 + $0x40] sm:$0xff]  ;;  %v10528_v5 = vpop.f32.mrf.mxu0  ;;  %v8319_v15 = vld [vmem:[#allocation2 + $0xa8] sm:$0xff]  ;;  %vm15797_vm11 = vmmov %vm15624_vm0 }
 0x69f   : > { %v8505_v41 = vmul.f32 1.442695, %v8469_v1  ;;  %v8471_v25 = vsub.f32 0.0, %v14278_v18  ;;  %v14289_v61 = vadd.f32 %v14237_v33, %v8402_v27  ;;  %v8405_v44 = vld [vmem:[#allocation2 + $0x58] sm:$0xff]  ;;  %8376 = vst.msk [vmem:[#allocation2 + $0x70] sm:$0xff] %vm15785_vm6, %v8344_v30  ;;  %v8347_v12 = vadd.f32 %v10528_v5, %v8315_v6  ;;  %vm15798_vm8 = vmmov %vm15624_vm0 }
 0x6a0   : > { %11038 = vpow2.f32 %v8507_v9  ;;  %v8511_v14 = vmul.f32 1.442695, %v8472_v58  ;;  %v8474_v10 = vsub.f32 0.0, %v14283_v56  ;;  %v14294_v32 = vadd.f32 %v14237_v33, %v8405_v44  ;;  %v8404_v42 = vld [vmem:[#allocation2 + $0x50] sm:$0xff]  ;;  %v8219_v4 = vpop.f32.mrf.mxu0  ;;  %vm15799_vm2 = vmmov %vm15624_vm0 }
 0x6a1   : > { %11040 = vpow2.f32 %v8505_v41  ;;  %v8509_v26 = vmul.f32 1.442695, %v8471_v25  ;;  %v8473_v38 = vsub.f32 0.0, %v14289_v61  ;;  %v14299_v3 = vadd.f32 %v14237_v33, %v8404_v42  ;;  %v8407_v50 = vld [vmem:[#allocation2 + $0x68] sm:$0xff]  ;;  %8379 = vst.msk [vmem:[#allocation2 + $0x88] sm:$0xff] %vm15786_vm13, %v8347_v12  ;;  %vm15800_vm15 = vmmov %vm15624_vm0 }
 0x6a2   : > { %11042 = vpow2.f32 %v8511_v14  ;;  %v8515_v0 = vmul.f32 1.442695, %v8474_v10  ;;  %v8476_v60 = vsub.f32 0.0, %v14294_v32  ;;  %v8346_v11 = vadd.f32 %v8314_v29, %v8219_v4  ;;  %v8406_v21 = vld [vmem:[#allocation2 + $0x60] sm:$0xff]  ;;  %vm15801_vm6 = vmmov %vm15624_vm0 }
 0x6a3   : > { %11044 = vpow2.f32 %v8509_v26  ;;  %v8513_v23 = vmul.f32 1.442695, %v8473_v38  ;;  %v8475_v24 = vsub.f32 0.0, %v14299_v3  ;;  %v14304_v31 = vadd.f32 %v14237_v33, %v8407_v50  ;;  %v10531_v20 = vpop.f32.mrf.mxu0  ;;  %vm15802_vm13 = vmmov %vm15624_vm0 }
 0x6a4   : > { %v11031_v28 = vpop.eup %11030  ;;  %v8519_v39 = vmul.f32 1.442695, %v8476_v60  ;;  %v14307_v1 = vadd.f32 %v14237_v33, %v8406_v21  ;;  %8378 = vst.msk [vmem:[#allocation2 + $0x80] sm:$0xff] %vm15787_vm4, %v8346_v11  ;;  %v8349_v36 = vadd.f32 %v10531_v20, %v8317_v48  ;;  %v8409_v41 = vld [vmem:[#allocation2 + $0x78] sm:$0xff]  ;;  %v8320_v20 = vld [vmem:[#allocation2 + $0xb0] sm:$0xff]  ;;  %vm15803_vm4 = vmmov %vm15624_vm0 }
 0x6a5   : > { %v8562_v59 = vadd.f32 1.0, %v11031_v28  ;;  %v8517_v55 = vmul.f32 1.442695, %v8475_v24  ;;  %v8478_v46 = vsub.f32 0.0, %v14304_v31  ;;  %v8229_v58 = vpop.f32.mrf.mxu0  ;;  %v14313_v37 = vadd.f32 %v14237_v33, %v8409_v41  ;;  %v8321_v60 = vld [vmem:[#allocation2 + $0xb8] sm:$0xff] }
 0x6a6   : > { %v11033_v22 = vpop.eup %11032  ;;  %v8477_v17 = vsub.f32 0.0, %v14307_v1  ;;  %8381 = vst.msk [vmem:[#allocation2 + $0x98] sm:$0xff] %vm15788_vm1, %v8349_v36  ;;  %v8408_v43 = vld [vmem:[#allocation2 + $0x70] sm:$0xff]  ;;  %v8348_v35 = vadd.f32 %v8316_v51, %v8229_v58  ;;  %vm15804_vm1 = vmmov %vm15624_vm0 }
 0x6a7   : > { %11046 = vrcp.f32 %v8562_v59  ;;  %v8561_v45 = vadd.f32 1.0, %v11033_v22  ;;  %v8523_v25 = vmul.f32 1.442695, %v8478_v46  ;;  %v8480_v27 = vsub.f32 0.0, %v14313_v37  ;;  %v8323_v46 = vld [vmem:[#allocation2 + $0xc8] sm:$0xff] }
 0x6a8   : > { %v11035_v34 = vpop.eup %11034  ;;  %11048 = vpow2.f32 %v8515_v0  ;;  %v10534_v63 = vpop.f32.mrf.mxu0  ;;  %v8521_v26 = vmul.f32 1.442695, %v8477_v17  ;;  %v14318_v10 = vadd.f32 %v14237_v33, %v8408_v43  ;;  %v8411_v13 = vld [vmem:[#allocation2 + $0x88] sm:$0xff]  ;;  %8380 = vst.msk [vmem:[#allocation2 + $0x90] sm:$0xff] %vm15789_vm5, %v8348_v35  ;;  %v8318_v0 = vld [vmem:[#allocation2 + $0xa0] sm:$0xff]  ;;  %vm15805_vm5 = vmmov %vm15624_vm0 }
 0x6a9   : > { %11050 = vrcp.f32 %v8561_v45  ;;  %v8564_v54 = vadd.f32 1.0, %v11035_v34  ;;  %v8351_v2 = vadd.f32 %v10534_v63, %v8319_v15  ;;  %v8527_v30 = vmul.f32 1.442695, %v8480_v27  ;;  %v8322_v63 = vld [vmem:[#allocation2 + $0xc0] sm:$0xff] }
 0x6aa   : > { %11052 = vpow2.f32 %v8513_v23  ;;  %v8239_v59 = vpop.f32.mrf.mxu0  ;;  %v14323_v22 = vadd.f32 %v14237_v33, %v8411_v13  ;;  %v8479_v5 = vsub.f32 0.0, %v14318_v10 }
 0x6ab   : > { %v11037_v57 = vpop.eup %11036  ;;  %11054 = vrcp.f32 %v8564_v54  ;;  %v8410_v6 = vld [vmem:[#allocation2 + $0x80] sm:$0xff]  ;;  %8383 = vst.msk [vmem:[#allocation2 + $0xa8] sm:$0xff] %vm15790_vm10, %v8351_v2  ;;  %v8350_v45 = vadd.f32 %v8318_v0, %v8239_v59  ;;  %vm15806_vm10 = vmmov %vm15624_vm0 }
 0x6ac   : > { %v8563_v9 = vadd.f32 1.0, %v11037_v57  ;;  %11056 = vpow2.f32 %v8519_v39  ;;  %v8482_v34 = vsub.f32 0.0, %v14323_v22  ;;  %v14329_v23 = vadd.f32 %v14237_v33, %v8410_v6 }
 0x6ad   : > { %v11039_v40 = vpop.eup %11038  ;;  %v8525_v29 = vmul.f32 1.442695, %v8479_v5  ;;  %v8413_v54 = vld [vmem:[#allocation2 + $0x98] sm:$0xff]  ;;  %8382 = vst.msk [vmem:[#allocation2 + $0xa0] sm:$0xff] %vm15792_vm9, %v8350_v45  ;;  %vm15807_vm9 = vmmov %vm15624_vm0 }
 0x6ae   : > { %11058 = vrcp.f32 %v8563_v9  ;;  %v8566_v19 = vadd.f32 1.0, %v11039_v40  ;;  %v11041_v14 = vpop.eup %11040  ;;  %v10537_v42 = vpop.f32.mrf.mxu0  ;;  %v8531_v24 = vmul.f32 1.442695, %v8482_v34  ;;  %v8481_v21 = vsub.f32 0.0, %v14329_v23 }
 0x6af   : > { %11060 = vpow2.f32 %v8517_v55  ;;  %v8565_v7 = vadd.f32 1.0, %v11041_v14  ;;  %v11043_v28 = vpop.eup %11042  ;;  %v8353_v50 = vadd.f32 %v10537_v42, %v8321_v60  ;;  %v14340_v36 = vadd.f32 %v14237_v33, %v8413_v54  ;;  %v8324_v60 = vld [vmem:[#allocation2 + $0xd0] sm:$0xff] }
 0x6b0   : > { %11062 = vrcp.f32 %v8566_v19  ;;  %v8568_v44 = vadd.f32 1.0, %v11043_v28  ;;  %v11045_v38 = vpop.eup %11044  ;;  %v8249_v11 = vpop.f32.mrf.mxu0  ;;  %v8529_v58 = vmul.f32 1.442695, %v8481_v21  ;;  %v8412_v19 = vld [vmem:[#allocation2 + $0x90] sm:$0xff] }
 0x6b1   : > { %11064 = vpow2.f32 %v8523_v25  ;;  %v8567_v12 = vadd.f32 1.0, %v11045_v38  ;;  %8385 = vst.msk [vmem:[#allocation2 + $0xb8] sm:$0xff] %vm15793_vm12, %v8353_v50  ;;  %v8352_v40 = vadd.f32 %v8320_v20, %v8249_v11  ;;  %v8484_v25 = vsub.f32 0.0, %v14340_v36  ;;  %v8327_v20 = vld [vmem:[#allocation2 + $0xe8] sm:$0xff]  ;;  %vm15808_vm12 = vmmov %vm15624_vm0 }
 0x6b2   : > { %11066 = vrcp.f32 %v8565_v7  ;;  %v14348_v43 = vadd.f32 %v14237_v33, %v8412_v19 }
 0x6b3   : > { %11068 = vpow2.f32 %v8521_v26  ;;  %v10540_v55 = vpop.f32.mrf.mxu0  ;;  %8384 = vst.msk [vmem:[#allocation2 + $0xb0] sm:$0xff] %vm15795_vm3, %v8352_v40  ;;  %v8415_v26 = vld [vmem:[#allocation2 + $0xa8] sm:$0xff]  ;;  %v8535_v13 = vmul.f32 1.442695, %v8484_v25  ;;  %vm15810_vm3 = vmmov %vm15624_vm0 }
 0x6b4   : > { %11070 = vrcp.f32 %v8568_v44  ;;  %v11047_v4 = vpop.eup %11046  ;;  %v8355_v17 = vadd.f32 %v10540_v55, %v8323_v46  ;;  %v8483_v2 = vsub.f32 0.0, %v14348_v43  ;;  %v8325_v44 = vld [vmem:[#allocation2 + $0xd8] sm:$0xff]  ;;  %v8414_v38 = vld [vmem:[#allocation2 + $0xa0] sm:$0xff] }
 0x6b5   : > { %11072 = vpow2.f32 %v8527_v30  ;;  %v11049_v57 = vpop.eup %11048  ;;  %v8658_v39 = vmul.f32 %v11047_v4, %v14242_v52  ;;  %v8259_v35 = vpop.f32.mrf.mxu0 }
 0x6b6   : > { %11074 = vrcp.f32 %v8567_v12  ;;  %v11051_v48 = vpop.eup %11050  ;;  %v8570_v9 = vadd.f32 1.0, %v11049_v57  ;;  %8387 = vst.msk [vmem:[#allocation2 + $0xc8] sm:$0xff] %vm15796_vm14, %v8355_v17  ;;  %v8354_v27 = vadd.f32 %v8322_v63, %v8259_v35  ;;  %v8533_v42 = vmul.f32 1.442695, %v8483_v2  ;;  %v8326_v35 = vld [vmem:[#allocation2 + $0xe0] sm:$0xff]  ;;  %vm15811_vm14 = vmmov %vm15624_vm0 }
 0x6b7   : > { %11076 = vpow2.f32 %v8525_v29  ;;  %v11053_v41 = vpop.eup %11052  ;;  %8690 = vst.msk [vmem:[%s14334_s18 + $0x8] sm:$0xff] %vm15794_vm7, %v8658_v39  ;;  %v8657_v52 = vmul.f32 %v11051_v48, %v14248_v49  ;;  %v14364_v12 = vadd.f32 %v14237_v33, %v8414_v38  ;;  %vm15809_vm7 = vmmov %vm15624_vm0 }
 0x6b8   : > { %11078 = vpow2.f32 %v8531_v24  ;;  %v11055_v51 = vpop.eup %11054  ;;  %v8569_v14 = vadd.f32 1.0, %v11053_v41  ;;  %8386 = vst.msk [vmem:[#allocation2 + $0xc0] sm:$0xff] %vm15798_vm8, %v8354_v27  ;;  %v8417_v54 = vld [vmem:[#allocation2 + $0xb8] sm:$0xff]  ;;  %vm15813_vm8 = vmmov %vm15624_vm0 }
 0x6b9   : > { %11080 = vrcp.f32 %v8570_v9  ;;  %v11057_v7 = vpop.eup %11056  ;;  %8689 = vst.msk [vmem:[%s14334_s18] sm:$0xff] %vm15624_vm0, %v8657_v52  ;;  %v8660_v49 = vmul.f32 %v11055_v51, %v14253_v8  ;;  %v10543_v59 = vpop.f32.mrf.mxu0  ;;  %v14360_v8 = vadd.f32 %v14237_v33, %v8415_v26  ;;  %v8485_v39 = vsub.f32 0.0, %v14364_v12 }
 0x6ba   : > { %11082 = vpow2.f32 %v8529_v58  ;;  %v8572_v28 = vadd.f32 1.0, %v11057_v7  ;;  %v8357_v5 = vadd.f32 %v10543_v59, %v8325_v44  ;;  %v14373_v24 = vadd.f32 %v14237_v33, %v8417_v54  ;;  %v8416_v40 = vld [vmem:[#allocation2 + $0xb0] sm:$0xff]  ;;  %v8329_v59 = vld [vmem:[#allocation2 + $0xf8] sm:$0xff] }
 0x6bb   : > { %v11059_v15 = vpop.eup %11058  ;;  %11084 = vrcp.f32 %v8569_v14  ;;  %8692 = vst.msk [vmem:[%s14334_s18 + $0x18] sm:$0xff] %vm15797_vm11, %v8660_v49  ;;  %v8269_v34 = vpop.f32.mrf.mxu0  ;;  %v8486_v29 = vsub.f32 0.0, %v14360_v8  ;;  %v8537_v52 = vmul.f32 1.442695, %v8485_v39  ;;  %v14384_v14 = vadd.f32 %v14237_v33, %v8416_v40  ;;  %vm15812_vm11 = vmmov %vm15624_vm0 }
 0x6bc   : > { %v11061_v30 = vpop.eup %11060  ;;  %v8659_v0 = vmul.f32 %v11059_v15, %v14258_v62  ;;  %11086 = vrcp.f32 %v8572_v28  ;;  %8389 = vst.msk [vmem:[#allocation2 + $0xd8] sm:$0xff] %vm15800_vm15, %v8357_v5  ;;  %v8356_v50 = vadd.f32 %v8324_v60, %v8269_v34  ;;  %v8488_v58 = vsub.f32 0.0, %v14373_v24  ;;  %vm15815_vm15 = vmmov %vm15624_vm0 }
 0x6bd   : > { %v11063_v6 = vpop.eup %11062  ;;  %v8571_v45 = vadd.f32 1.0, %v11061_v30  ;;  %11088 = vpow2.f32 %v8535_v13  ;;  %v8539_v9 = vmul.f32 1.442695, %v8486_v29  ;;  %v8419_v19 = vld [vmem:[#allocation2 + $0xc8] sm:$0xff]  ;;  %v8487_v13 = vsub.f32 0.0, %v14384_v14 }
 0x6be   : > { %v11065_v4 = vpop.eup %11064  ;;  %8691 = vst.msk [vmem:[%s14334_s18 + $0x10] sm:$0xff] %vm15799_vm2, %v8659_v0  ;;  %v8662_v62 = vmul.f32 %v11063_v6, %v14263_v16  ;;  %v14387_v25 = vadd.f32 %v14237_v33, %v8419_v19  ;;  %v8543_v49 = vmul.f32 1.442695, %v8488_v58  ;;  %vm15814_vm2 = vmmov %vm15624_vm0 }
 0x6bf   : > { %v11067_v11 = vpop.eup %11066  ;;  %11090 = vrcp.f32 %v8571_v45  ;;  %v8574_v57 = vadd.f32 1.0, %v11065_v4  ;;  %v10546_v21 = vpop.f32.mrf.mxu0  ;;  %8388 = vst.msk [vmem:[#allocation2 + $0xd0] sm:$0xff] %vm15802_vm13, %v8356_v50  ;;  %v8418_v26 = vld [vmem:[#allocation2 + $0xc0] sm:$0xff]  ;;  %v8328_v50 = vld [vmem:[#allocation2 + $0xf0] sm:$0xff]  ;;  %vm15817_vm13 = vmmov %vm15624_vm0 }
 0x6c0   : > { %v11069_v48 = vpop.eup %11068  ;;  %8694 = vst.msk [vmem:[%s14334_s18 + $0x28] sm:$0xff] %vm15801_vm6, %v8662_v62  ;;  %v8661_v16 = vmul.f32 %v11067_v11, %v14268_v47  ;;  %11092 = vpow2.f32 %v8533_v42  ;;  %v8359_v55 = vadd.f32 %v10546_v21, %v8327_v20  ;;  %v8490_v2 = vsub.f32 0.0, %v14387_v25  ;;  %vm15816_vm6 = vmmov %vm15624_vm0 }
 0x6c1   : > { %v11071_v46 = vpop.eup %11070  ;;  %11094 = vrcp.f32 %v8574_v57  ;;  %v8573_v41 = vadd.f32 1.0, %v11069_v48  ;;  %v8279_v17 = vpop.f32.mrf.mxu0  ;;  %v14396_v0 = vadd.f32 %v14237_v33, %v8418_v26  ;;  %v8541_v42 = vmul.f32 1.442695, %v8487_v13 }
 0x6c2   : > { %v11073_v51 = vpop.eup %11072  ;;  %8693 = vst.msk [vmem:[%s14334_s18 + $0x20] sm:$0xff] %vm15803_vm4, %v8661_v16  ;;  %v8664_v47 = vmul.f32 %v11071_v46, %v14273_v53  ;;  %11096 = vpow2.f32 %v8539_v9  ;;  %v8358_v27 = vadd.f32 %v8326_v35, %v8279_v17  ;;  %v8547_v34 = vmul.f32 1.442695, %v8490_v2  ;;  %vm15818_vm4 = vmmov %vm15624_vm0 }
 0x6c3   : > { %8391 = vst.msk [vmem:[#allocation2 + $0xe8] sm:$0xff] %vm15804_vm1, %v8359_v55  ;;  %v11075_v63 = vpop.eup %11074  ;;  %11098 = vrcp.f32 %v8573_v41  ;;  %v8576_v7 = vadd.f32 1.0, %v11073_v51  ;;  %v10549_v15 = vpop.f32.mrf.mxu0  ;;  %v8421_v38 = vld [vmem:[#allocation2 + $0xd8] sm:$0xff]  ;;  %v8489_v62 = vsub.f32 0.0, %v14396_v0  ;;  %vm15819_vm1 = vmmov %vm15624_vm0 }
 0x6c4   : > { %v11077_v28 = vpop.eup %11076  ;;  %8696 = vst.msk [vmem:[%s14334_s18 + $0x38] sm:$0xff] %vm15805_vm5, %v8664_v47  ;;  %v8663_v53 = vmul.f32 %v11075_v63, %v14278_v18  ;;  %11100 = vpow2.f32 %v8537_v52  ;;  %v8361_v5 = vadd.f32 %v10549_v15, %v8329_v59  ;;  %v14404_v29 = vadd.f32 %v14237_v33, %v8421_v38  ;;  %vm15820_vm5 = vmmov %vm15624_vm0 }
 0x6c5   : > { %v11079_v44 = vpop.eup %11078  ;;  %11102 = vrcp.f32 %v8576_v7  ;;  %v8575_v30 = vadd.f32 1.0, %v11077_v28  ;;  %8390 = vst.msk [vmem:[#allocation2 + $0xe0] sm:$0xff] %vm15806_vm10, %v8358_v27  ;;  %v8289_v6 = vpop.f32.mrf.mxu0  ;;  %v8545_v20 = vmul.f32 1.442695, %v8489_v62  ;;  %vm15821_vm10 = vmmov %vm15624_vm0 }
 0x6c6   : > { %v11081_v45 = vpop.eup %11080  ;;  %8695 = vst.msk [vmem:[%s14334_s18 + $0x30] sm:$0xff] %vm15807_vm9, %v8663_v53  ;;  %v8578_v18 = vadd.f32 1.0, %v11079_v44  ;;  %11104 = vpow2.f32 %v8543_v49  ;;  %v8420_v54 = vld [vmem:[#allocation2 + $0xd0] sm:$0xff]  ;;  %v8360_v21 = vadd.f32 %v8328_v50, %v8289_v6  ;;  %v8492_v48 = vsub.f32 0.0, %v14404_v29  ;;  %vm15822_vm9 = vmmov %vm15624_vm0 }
 0x6c7   : > { %v11083_v60 = vpop.eup %11082  ;;  %v8666_v4 = vmul.f32 %v11081_v45, %v14283_v56  ;;  %11106 = vrcp.f32 %v8575_v30  ;;  %8393 = vst.msk [vmem:[#allocation2 + $0xf8] sm:$0xff] %vm15808_vm12, %v8361_v5  ;;  %v14408_v39 = vadd.f32 %v14237_v33, %v8420_v54  ;;  %vm15823_vm12 = vmmov %vm15624_vm0 }
 0x6c8   : > { %v11085_v11 = vpop.eup %11084  ;;  %11108 = vrcp.f32 %v8578_v18  ;;  %v8577_v57 = vadd.f32 1.0, %v11083_v60  ;;  %8392 = vst.msk [vmem:[#allocation2 + $0xf0] sm:$0xff] %vm15810_vm3, %v8360_v21  ;;  %v8551_v41 = vmul.f32 1.442695, %v8492_v48  ;;  %vm15825_vm3 = vmmov %vm15624_vm0 }
 0x6c9   : > { %8698 = vst.msk [vmem:[%s14334_s18 + $0x48] sm:$0xff] %vm15809_vm7, %v8666_v4  ;;  %v8665_v56 = vmul.f32 %v11085_v11, %v14289_v61  ;;  %11110 = vpow2.f32 %v8541_v42  ;;  %v11087_v9 = vpop.eup %11086  ;;  %v8491_v40 = vsub.f32 0.0, %v14408_v39  ;;  %vm15824_vm7 = vmmov %vm15624_vm0 }
 0x6ca   : > { %v8423_v16 = vld [vmem:[#allocation2 + $0xe8] sm:$0xff]  ;;  %11112 = vrcp.f32 %v8577_v57  ;;  %v11089_v46 = vpop.eup %11088  ;;  %v8668_v61 = vmul.f32 %v11087_v9, %v14294_v32 }
 0x6cb   : > { %v14416_v55 = vadd.f32 %v14237_v33, %v8423_v16  ;;  %8697 = vst.msk [vmem:[%s14334_s18 + $0x40] sm:$0xff] %vm15624_vm0, %v8665_v56  ;;  %11114 = vpow2.f32 %v8547_v34  ;;  %v8580_v58 = vadd.f32 1.0, %v11089_v46  ;;  %v8549_v19 = vmul.f32 1.442695, %v8491_v40 }
 0x6cc   : > { %v11091_v52 = vpop.eup %11090  ;;  %11116 = vpow2.f32 %v8545_v20  ;;  %v8422_v51 = vld [vmem:[#allocation2 + $0xe0] sm:$0xff]  ;;  %8700 = vst.msk [vmem:[%s14334_s18 + $0x58] sm:$0xff] %vm15811_vm14, %v8668_v61  ;;  %vm15826_vm14 = vmmov %vm15624_vm0 }
 0x6cd   : > { %v8494_v17 = vsub.f32 0.0, %v14416_v55  ;;  %v11093_v47 = vpop.eup %11092  ;;  %v8667_v35 = vmul.f32 %v11091_v52, %v14299_v3  ;;  %11118 = vpow2.f32 %v8551_v41  ;;  %v14427_v63 = vadd.f32 %v14237_v33, %v8422_v51 }
 0x6ce   : > { %v11095_v32 = vpop.eup %11094  ;;  %11120 = vrcp.f32 %v8580_v58  ;;  %v8579_v7 = vadd.f32 1.0, %v11093_v47  ;;  %v8425_v26 = vld [vmem:[#allocation2 + $0xf8] sm:$0xff] }
 0x6cf   : > { %v8555_v49 = vmul.f32 1.442695, %v8494_v17  ;;  %v11097_v27 = vpop.eup %11096  ;;  %8699 = vst.msk [vmem:[%s14334_s18 + $0x50] sm:$0xff] %vm15812_vm11, %v8667_v35  ;;  %v8670_v15 = vmul.f32 %v11095_v32, %v14304_v31  ;;  %11122 = vpow2.f32 %v8549_v19  ;;  %v8493_v28 = vsub.f32 0.0, %v14427_v63  ;;  %v8424_v31 = vld [vmem:[#allocation2 + $0xf0] sm:$0xff]  ;;  %vm15827_vm11 = vmmov %vm15624_vm0 }
 0x6d0   : > { %v14434_v3 = vadd.f32 %v14237_v33, %v8425_v26  ;;  %v11099_v53 = vpop.eup %11098  ;;  %11124 = vrcp.f32 %v8579_v7  ;;  %v8582_v13 = vadd.f32 1.0, %v11097_v27  ;;  %v14441_v6 = vadd.f32 %v14237_v33, %v8424_v31 }
 0x6d1   : > { %v11101_v2 = vpop.eup %11100  ;;  %8702 = vst.msk [vmem:[%s14334_s18 + $0x68] sm:$0xff] %vm15813_vm8, %v8670_v15  ;;  %v8669_v59 = vmul.f32 %v11099_v53, %v14307_v1  ;;  %11126 = vpow2.f32 %v8555_v49  ;;  %v8553_v44 = vmul.f32 1.442695, %v8493_v28  ;;  %vm15828_vm8 = vmmov %vm15624_vm0 }
 0x6d2   : > { %v8496_v30 = vsub.f32 0.0, %v14434_v3  ;;  %v11103_v38 = vpop.eup %11102  ;;  %11128 = vrcp.f32 %v8582_v13  ;;  %v8581_v5 = vadd.f32 1.0, %v11101_v2  ;;  %v8495_v60 = vsub.f32 0.0, %v14441_v6 }
 0x6d3   : > { %v11105_v45 = vpop.eup %11104  ;;  %8701 = vst.msk [vmem:[%s14334_s18 + $0x60] sm:$0xff] %vm15814_vm2, %v8669_v59  ;;  %v8672_v18 = vmul.f32 %v11103_v38, %v14313_v37  ;;  %11130 = vpow2.f32 %v8553_v44  ;;  %vm15829_vm2 = vmmov %vm15624_vm0 }
 0x6d4   : > { %v8559_v1 = vmul.f32 1.442695, %v8496_v30  ;;  %v11107_v42 = vpop.eup %11106  ;;  %11132 = vrcp.f32 %v8581_v5  ;;  %v8584_v34 = vadd.f32 1.0, %v11105_v45  ;;  %v8557_v37 = vmul.f32 1.442695, %v8495_v60 }
 0x6d5   : > { %v11109_v4 = vpop.eup %11108  ;;  %8704 = vst.msk [vmem:[%s14334_s18 + $0x78] sm:$0xff] %vm15815_vm15, %v8672_v18  ;;  %v8671_v33 = vmul.f32 %v11107_v42, %v14318_v10  ;;  %vm15830_vm15 = vmmov %vm15624_vm0 }
 0x6d6   : > { %11134 = vpow2.f32 %v8559_v1  ;;  %v11111_v62 = vpop.eup %11110  ;;  %v8674_v54 = vmul.f32 %v11109_v4, %v14323_v22 }
 0x6d7   : > { %11136 = vrcp.f32 %v8584_v34  ;;  %v11113_v50 = vpop.eup %11112  ;;  %8703 = vst.msk [vmem:[%s14334_s18 + $0x70] sm:$0xff] %vm15816_vm6, %v8671_v33  ;;  %v8583_v11 = vadd.f32 1.0, %v11111_v62  ;;  %vm15831_vm6 = vmmov %vm15624_vm0 }
 0x6d8   : > { %v11115_v57 = vpop.eup %11114  ;;  %8706 = vst.msk [vmem:[%s14334_s18 + $0x88] sm:$0xff] %vm15817_vm13, %v8674_v54  ;;  %v8673_v21 = vmul.f32 %v11113_v50, %v14329_v23  ;;  %11138 = vpow2.f32 %v8557_v37 }
 0x6d9   : > { %v11117_v56 = vpop.eup %11116  ;;  %11140 = vrcp.f32 %v8583_v11  ;;  %v8586_v10 = vadd.f32 1.0, %v11115_v57 }
 0x6da   : > { %v11119_v20 = vpop.eup %11118  ;;  %8705 = vst.msk [vmem:[%s14334_s18 + $0x80] sm:$0xff] %vm15818_vm4, %v8673_v21  ;;  %v8585_v22 = vadd.f32 1.0, %v11117_v56 }
 0x6db   : > { %v11121_v48 = vpop.eup %11120  ;;  %11142 = vrcp.f32 %v8586_v10  ;;  %v8588_v16 = vadd.f32 1.0, %v11119_v20 }
 0x6dc   : > { %v11123_v9 = vpop.eup %11122  ;;  %v8676_v40 = vmul.f32 %v11121_v48, %v14340_v36  ;;  %11144 = vrcp.f32 %v8585_v22 }
 0x6dd   : > { %v11125_v46 = vpop.eup %11124  ;;  %11146 = vrcp.f32 %v8588_v16  ;;  %v8587_v23 = vadd.f32 1.0, %v11123_v9 }
 0x6de   : > { %v11127_v61 = vpop.eup %11126  ;;  %8708 = vst.msk [vmem:[%s14334_s18 + $0x98] sm:$0xff] %vm15819_vm1, %v8676_v40  ;;  %v8675_v41 = vmul.f32 %v11125_v46, %v14348_v43 }
 0x6df   : > { %v11129_v52 = vpop.eup %11128  ;;  %11148 = vrcp.f32 %v8587_v23  ;;  %v8590_v58 = vadd.f32 1.0, %v11127_v61 }
 0x6e0   : > { %v11131_v19 = vpop.eup %11130  ;;  %8707 = vst.msk [vmem:[%s14334_s18 + $0x90] sm:$0xff] %vm15820_vm5, %v8675_v41  ;;  %v8678_v36 = vmul.f32 %v11129_v52, %v14360_v8 }
 0x6e1   : > { %v11133_v17 = vpop.eup %11132  ;;  %11150 = vrcp.f32 %v8590_v58  ;;  %v8589_v51 = vadd.f32 1.0, %v11131_v19 }
 0x6e2   : > { %8710 = vst.msk [vmem:[%s14334_s18 + $0xa8] sm:$0xff] %vm15821_vm10, %v8678_v36  ;;  %v8677_v35 = vmul.f32 %v11133_v17, %v14364_v12 }
 0x6e3   : > { %v11135_v47 = vpop.eup %11134  ;;  %11152 = vrcp.f32 %v8589_v51 }
 0x6e4   : > { %v11137_v43 = vpop.eup %11136  ;;  %v8592_v32 = vadd.f32 1.0, %v11135_v47  ;;  %8709 = vst.msk [vmem:[%s14334_s18 + $0xa0] sm:$0xff] %vm15822_vm9, %v8677_v35 }
 0x6e5   : > { %v8680_v7 = vmul.f32 %v11137_v43, %v14373_v24  ;;  %v11139_v49 = vpop.eup %11138 }
 0x6e6   : > { %11154 = vrcp.f32 %v8592_v32  ;;  %v11141_v8 = vpop.eup %11140  ;;  %v8591_v26 = vadd.f32 1.0, %v11139_v49 }
 0x6e7   : > { %8712 = vst.msk [vmem:[%s14334_s18 + $0xb8] sm:$0xff] %vm15823_vm12, %v8680_v7  ;;  %v8679_v27 = vmul.f32 %v11141_v8, %v14384_v14 }
 0x6e8   : > { %v11143_v12 = vpop.eup %11142  ;;  %11156 = vrcp.f32 %v8591_v26 }
 0x6e9   : > { %v11145_v15 = vpop.eup %11144  ;;  %8711 = vst.msk [vmem:[%s14334_s18 + $0xb0] sm:$0xff] %vm15824_vm7, %v8679_v27  ;;  %v8682_v28 = vmul.f32 %v11143_v12, %v14387_v25 }
 0x6ea   : > { %v11147_v24 = vpop.eup %11146  ;;  %v8681_v53 = vmul.f32 %v11145_v15, %v14396_v0 }
 0x6eb   : > { %8714 = vst.msk [vmem:[%s14334_s18 + $0xc8] sm:$0xff] %vm15825_vm3, %v8682_v28  ;;  %v8684_v13 = vmul.f32 %v11147_v24, %v14404_v29 }
 0x6ec   : > { %v11149_v2 = vpop.eup %11148  ;;  %8713 = vst.msk [vmem:[%s14334_s18 + $0xc0] sm:$0xff] %vm15624_vm0, %v8681_v53 }
 0x6ed   : > { %8716 = vst.msk [vmem:[%s14334_s18 + $0xd8] sm:$0xff] %vm15826_vm14, %v8684_v13  ;;  %v8683_v14 = vmul.f32 %v11149_v2, %v14408_v39 }
 0x6ee   : > { %v11151_v59 = vpop.eup %11150 }
 0x6ef   : > { %8715 = vst.msk [vmem:[%s14334_s18 + $0xd0] sm:$0xff] %vm15827_vm11, %v8683_v14  ;;  %v8686_v25 = vmul.f32 %v11151_v59, %v14416_v55 }
 0x6f0   : > { %v11153_v44 = vpop.eup %11152 }
 0x6f1   : > { %8718 = vst.msk [vmem:[%s14334_s18 + $0xe8] sm:$0xff] %vm15828_vm8, %v8686_v25  ;;  %v8685_v0 = vmul.f32 %v11153_v44, %v14427_v63 }
 0x6f3   : > { %v11155_v30 = vpop.eup %11154  ;;  %8717 = vst.msk [vmem:[%s14334_s18 + $0xe0] sm:$0xff] %vm15829_vm2, %v8685_v0 }
 0x6f4   : > { %v8688_v29 = vmul.f32 %v11155_v30, %v14434_v3 }
 0x6f5   : > { %v11157_v31 = vpop.eup %11156 }
 0x6f6   : > { %8720 = vst.msk [vmem:[%s14334_s18 + $0xf8] sm:$0xff] %vm15830_vm15, %v8688_v29  ;;  %v8687_v39 = vmul.f32 %v11157_v31, %v14441_v6 }
 0x6f8   : > { %8719 = vst.msk [vmem:[%s14334_s18 + $0xf0] sm:$0xff] %vm15831_vm6, %v8687_v39 }
 0x6f9 PF: > { %s15832_s18 = sld [smem:[#allocation10_spill]]  ;;  %s15833_s15 = smov %s11242_s16 }
 0x6fa   : > { %s15834_s16 = smov %s11246_s17  ;;  %s15835_s17 = smov %s11400_s21 }
 0x6ff   : > { %p27_p0 = scmp.ge.s32.totalorder %s15832_s18, 4  }
 0x701   :  { %29 = sbr.rel (!%p27_p0) target bundleno = 8 (0x8), region = 131 }
 0x706   :  { %8742 = vsyncpa [#allocation5], 1 }
 0x707   :  { %8744 = vsyncpa [#allocation5 + $0x1], 1 }
 0x708   :  { %8745 = vsyncpa [#allocation7], 1 }

</bundles_post_ra>
